<compile_context>
chip_gen: v7x
topology: tpu7x:2x2x1
jax: 0.10.0
libtpu: 0.0.40
codegen_flags: <defaults>
</compile_context>

<pallas_src>
import jax
import jax.numpy as jnp
from jax import lax
from jax.experimental import pallas as pl
from jax.experimental.pallas import tpu as pltpu

# ----------------------------- static dimensions -----------------------------
B = 2
H, W = 43, 79                      # input spatial size (implied by fc = 16*7*16)
K = 6                              # conv kernel size (both convs)
C1, C2 = 6, 16                     # conv1 / conv2 output channels
H1, W1 = H - K + 1, W - K + 1      # 38, 74  (conv1 output)
HP1, WP1 = H1 // 2, W1 // 2        # 19, 37  (after 2x2 max pool)
H2, W2 = HP1 - K + 1, WP1 - K + 1  # 14, 32  (conv2 output)
HP2, WP2 = H2 // 2, W2 // 2        # 7, 16   (after 2x2 max pool)
FLAT = C2 * HP2 * WP2              # 1792 == 16 * 7 * 16
FC_OUT = 128


# ------------------------- in-kernel pooling helpers -------------------------
def _row_pool_selectors(n_out, n_in):
    """(n_out, n_in) 0/1 matrices picking rows 2r / 2r+1."""
    r = lax.broadcasted_iota(jnp.int32, (n_out, n_in), 0)
    q = lax.broadcasted_iota(jnp.int32, (n_out, n_in), 1)
    d = q - 2 * r
    return jnp.where(d == 0, 1.0, 0.0), jnp.where(d == 1, 1.0, 0.0)


def _col_pool_selectors(n_in, n_out):
    """(n_in, n_out) 0/1 matrices picking cols 2p / 2p+1."""
    q = lax.broadcasted_iota(jnp.int32, (n_in, n_out), 0)
    p = lax.broadcasted_iota(jnp.int32, (n_in, n_out), 1)
    d = q - 2 * p
    return jnp.where(d == 0, 1.0, 0.0), jnp.where(d == 1, 1.0, 0.0)


def _maxpool2x2(y, rows_out, cols_out):
    """Exact 2x2 max pool of y (2*rows_out, 2*cols_out) via 0/1 selector matmuls."""
    f32 = jnp.float32
    rse, rso = _row_pool_selectors(rows_out, 2 * rows_out)
    cse, cso = _col_pool_selectors(2 * cols_out, cols_out)
    rows = jnp.maximum(jnp.dot(rse, y, preferred_element_type=f32),
                       jnp.dot(rso, y, preferred_element_type=f32))
    return jnp.maximum(jnp.dot(rows, cse, preferred_element_type=f32),
                       jnp.dot(rows, cso, preferred_element_type=f32))


# ---------------------------------- kernel -----------------------------------
def net_kernel(x_ref, bw1_ref, b1_ref, bw2_ref, b2_ref, wfc_ref, fcb_ref, out_ref):
    """Whole forward pass for one batch element."""
    f32 = jnp.float32
    x = x_ref[...]                                                   # (H, W)

    # ---- conv1 (1->6, 6x6 VALID): K width-banded matmuls, channels on lanes --
    acc1 = jnp.dot(x[0:H1, :], bw1_ref[0], preferred_element_type=f32)
    for kh in range(1, K):
        acc1 = acc1 + jnp.dot(x[kh:kh + H1, :], bw1_ref[kh],
                              preferred_element_type=f32)
    acc1 = acc1 + b1_ref[...]                                        # (H1, C1*W1)

    p1 = _maxpool2x2(acc1, HP1, C1 * WP1)                            # (19, 222)

    # ---- conv2 (6->16, 6x6 VALID): K width-banded matmuls ---------------------
    acc2 = jnp.dot(p1[0:H2, :], bw2_ref[0], preferred_element_type=f32)
    for kh in range(1, K):
        acc2 = acc2 + jnp.dot(p1[kh:kh + H2, :], bw2_ref[kh],
                              preferred_element_type=f32)
    acc2 = acc2 + b2_ref[...]                                        # (H2, C2*W2)

    p2 = _maxpool2x2(acc2, HP2, C2 * WP2)                            # (7, 256)

    # ---- fused fc + relu ------------------------------------------------------
    # q[h, h'*128 + j] = sum_{c,w} p2[h, c*16+w] * fcw[j, c*112 + h'*16 + w]
    q = jnp.dot(p2, wfc_ref[...], preferred_element_type=f32)        # (7, 896)
    fc = fcb_ref[...]                                                # (1, 128)
    for h in range(HP2):
        fc = fc + q[h:h + 1, h * FC_OUT:(h + 1) * FC_OUT]
    out_ref[...] = jnp.maximum(fc, 0.0)                              # (1, 128)


# -------------------------- host-side weight prep ----------------------------
def _width_banded(w, in_w, out_w):
    """w: (Cout, Cin, K, K) -> (K, Cin*in_w, Cout*out_w) width-banded matrices.

    band[kh][cin*in_w + win, cout*out_w + wout] = w[cout, cin, kh, win - wout]
    for 0 <= win - wout < K, else 0.
    """
    c_out, c_in = w.shape[0], w.shape[1]
    win = jnp.arange(in_w)[:, None]
    wout = jnp.arange(out_w)[None, :]
    kw = win - wout
    valid = (kw >= 0) & (kw < K)
    kw_c = jnp.clip(kw, 0, K - 1)
    mats = []
    for kh in range(K):
        w_kh = w[:, :, kh, :]                               # (Cout, Cin, K)
        vals = w_kh[:, :, kw_c]                             # (Cout, Cin, in_w, out_w)
        vals = jnp.where(valid[None, None, :, :], vals, 0.0)
        mats.append(jnp.transpose(vals, (1, 2, 0, 3)).reshape(c_in * in_w,
                                                              c_out * out_w))
    return jnp.stack(mats, axis=0)


def prepare_params(w1, b1, w2, b2, fcw, fcb):
    """Done ONCE outside the jitted forward (per perf feedback)."""
    bw1 = _width_banded(w1, W, W1)                          # (K, 79, 444)
    bw2 = _width_banded(w2, WP1, W2)                        # (K, 222, 512)
    b1row = jnp.repeat(b1, W1)[None, :]                     # (1, 444)
    b2row = jnp.repeat(b2, W2)[None, :]                     # (1, 512)
    # fcw[j, c*112 + h*16 + w] -> wfc_cat[c*16 + w, h*128 + j]
    wfc = jnp.transpose(fcw.reshape(FC_OUT, C2, HP2, WP2), (2, 1, 3, 0))
    wfc = wfc.reshape(HP2, C2 * WP2, FC_OUT)                # (7, 256, 128)
    wfc_cat = jnp.transpose(wfc, (1, 0, 2)).reshape(C2 * WP2, HP2 * FC_OUT)
    fcb_row = fcb[None, :]                                  # (1, 128)
    f32 = jnp.float32
    return (bw1.astype(f32), b1row.astype(f32), bw2.astype(f32),
            b2row.astype(f32), wfc_cat.astype(f32), fcb_row.astype(f32))


# --------------------------------- wrapper -----------------------------------
@jax.jit
def net_forward(x, params):
    bw1, b1row, bw2, b2row, wfc_cat, fcb_row = params
    out = pl.pallas_call(
        net_kernel,
        out_shape=jax.ShapeDtypeStruct((B, 1, FC_OUT), jnp.float32),
        grid=(B,),
        in_specs=[
            pl.BlockSpec((None, H, W), lambda b: (b, 0, 0)),
            pl.BlockSpec((K, W, C1 * W1), lambda b: (0, 0, 0)),
            pl.BlockSpec((1, C1 * W1), lambda b: (0, 0)),
            pl.BlockSpec((K, C1 * WP1, C2 * W2), lambda b: (0, 0, 0)),
            pl.BlockSpec((1, C2 * W2), lambda b: (0, 0)),
            pl.BlockSpec((C2 * WP2, HP2 * FC_OUT), lambda b: (0, 0)),
            pl.BlockSpec((1, FC_OUT), lambda b: (0, 0)),
        ],
        out_specs=pl.BlockSpec((None, 1, FC_OUT), lambda b: (b, 0, 0)),
        compiler_params=pltpu.CompilerParams(
            dimension_semantics=("parallel",),
            vmem_limit_bytes=32 * 1024 * 1024),
    )(x, bw1, b1row, bw2, b2row, wfc_cat, fcb_row)
    return out.reshape(B, FC_OUT)


# ----------------------------- pure-JAX reference -----------------------------
def reference_forward(x, w1, b1, w2, b2, fcw, fcb):
    hi = lax.Precision.HIGHEST
    y = x[:, None, :, :]
    y = lax.conv_general_dilated(y, w1, (1, 1), 'VALID',
                                 dimension_numbers=('NCHW', 'OIHW', 'NCHW'),
                                 precision=hi) + b1.reshape(1, C1, 1, 1)
    y = lax.reduce_window(y, -jnp.inf, lax.max, (1, 1, 2, 2), (1, 1, 2, 2), 'VALID')
    y = lax.conv_general_dilated(y, w2, (1, 1), 'VALID',
                                 dimension_numbers=('NCHW', 'OIHW', 'NCHW'),
                                 precision=hi) + b2.reshape(1, C2, 1, 1)
    y = lax.reduce_window(y, -jnp.inf, lax.max, (1, 1, 2, 2), (1, 1, 2, 2), 'VALID')
    y = y.reshape(B, FLAT)
    y = jnp.dot(y, fcw.T, precision=hi) + fcb
    return jnp.maximum(y, 0.0)


if __name__ == "__main__":
    key = jax.random.PRNGKey(0)
    kx, k1, k2, k3, k4, k5, k6 = jax.random.split(key, 7)
    x = jax.random.normal(kx, (B, H, W), jnp.float32)
    w1 = jax.random.normal(k1, (C1, 1, K, K), jnp.float32) * 0.10
    b1 = jax.random.normal(k2, (C1,), jnp.float32) * 0.10
    w2 = jax.random.normal(k3, (C2, C1, K, K), jnp.float32) * 0.05
    b2 = jax.random.normal(k4, (C2,), jnp.float32) * 0.05
    fcw = jax.random.normal(k5, (FC_OUT, FLAT), jnp.float32) * 0.02
    fcb = jax.random.normal(k6, (FC_OUT,), jnp.float32) * 0.02

    params = prepare_params(w1, b1, w2, b2, fcw, fcb)   # one-time prep, outside jit

    out = jax.block_until_ready(net_forward(x, params))
    assert out.shape == (B, FC_OUT), out.shape

    ref = jax.block_until_ready(reference_forward(x, w1, b1, w2, b2, fcw, fcb))
    if not jnp.allclose(out, ref, atol=2e-3, rtol=2e-3):
        max_err = float(jnp.max(jnp.abs(out - ref)))
        raise SystemExit(f"mismatch vs reference, max abs err = {max_err}")
    print("KERNEL_OK")
</pallas_src>

<mosaic_0001>
module attributes {stable_mosaic.version = 11 : i64} {
  func.func @net_kernel(%arg0: i32, %arg1: memref<1x43x79xf32, #tpu.memory_space<vmem>>, %arg2: memref<6x79x444xf32, #tpu.memory_space<vmem>>, %arg3: memref<1x444xf32, #tpu.memory_space<vmem>>, %arg4: memref<6x222x512xf32, #tpu.memory_space<vmem>>, %arg5: memref<1x512xf32, #tpu.memory_space<vmem>>, %arg6: memref<256x896xf32, #tpu.memory_space<vmem>>, %arg7: memref<1x128xf32, #tpu.memory_space<vmem>>, %arg8: memref<1x1x128xf32, #tpu.memory_space<vmem>>) attributes {dimension_semantics = [#tpu.dimension_semantics<parallel>], iteration_bounds = array<i64: 2>, scalar_prefetch = 0 : i64, scratch_operands = 0 : i64, tpu.core_type = #tpu.core_type<tc>, window_params = [{transform_indices = @transform_0, window_bounds = array<i64: 1, 43, 79>}, {pipeline_mode = #tpu.pipeline_mode<synchronous>, transform_indices = @transform_1, window_bounds = array<i64: 6, 79, 444>}, {pipeline_mode = #tpu.pipeline_mode<synchronous>, transform_indices = @transform_2, window_bounds = array<i64: 1, 444>}, {pipeline_mode = #tpu.pipeline_mode<synchronous>, transform_indices = @transform_3, window_bounds = array<i64: 6, 222, 512>}, {pipeline_mode = #tpu.pipeline_mode<synchronous>, transform_indices = @transform_4, window_bounds = array<i64: 1, 512>}, {pipeline_mode = #tpu.pipeline_mode<synchronous>, transform_indices = @transform_5, window_bounds = array<i64: 256, 896>}, {pipeline_mode = #tpu.pipeline_mode<synchronous>, transform_indices = @transform_6, window_bounds = array<i64: 1, 128>}, {transform_indices = @transform_7, window_bounds = array<i64: 1, 1, 128>}]} {
    %c0 = arith.constant 0 : index
    %c0_0 = arith.constant 0 : index
    %c0_1 = arith.constant 0 : index
    %0 = vector.load %arg1[%c0, %c0_0, %c0_1] : memref<1x43x79xf32, #tpu.memory_space<vmem>>, vector<1x43x79xf32>
    %1 = vector.shape_cast %0 : vector<1x43x79xf32> to vector<43x79xf32>
    %2 = vector.extract_strided_slice %1 {offsets = [0, 0], sizes = [38, 79], strides = [1, 1]} : vector<43x79xf32> to vector<38x79xf32>
    %c0_2 = arith.constant 0 : index
    %c0_3 = arith.constant 0 : index
    %c0_4 = arith.constant 0 : index
    %3 = vector.load %arg2[%c0_2, %c0_3, %c0_4] : memref<6x79x444xf32, #tpu.memory_space<vmem>>, vector<1x79x444xf32>
    %4 = vector.shape_cast %3 : vector<1x79x444xf32> to vector<79x444xf32>
    %cst = arith.constant dense<0.000000e+00> : vector<38x444xf32>
    %5 = tpu.matmul %2, %4, %cst {dimension_numbers = #tpu.dot_dimension_numbers<[1], [0], [0], [1], [0, 0, 1, 1], [], []>} : vector<38x79xf32>, vector<79x444xf32>, vector<38x444xf32> -> vector<38x444xf32>
    %6 = vector.extract_strided_slice %1 {offsets = [1, 0], sizes = [38, 79], strides = [1, 1]} : vector<43x79xf32> to vector<38x79xf32>
    %c1 = arith.constant 1 : index
    %c0_5 = arith.constant 0 : index
    %c0_6 = arith.constant 0 : index
    %7 = vector.load %arg2[%c1, %c0_5, %c0_6] : memref<6x79x444xf32, #tpu.memory_space<vmem>>, vector<1x79x444xf32>
    %8 = vector.shape_cast %7 : vector<1x79x444xf32> to vector<79x444xf32>
    %cst_7 = arith.constant dense<0.000000e+00> : vector<38x444xf32>
    %9 = tpu.matmul %6, %8, %cst_7 {dimension_numbers = #tpu.dot_dimension_numbers<[1], [0], [0], [1], [0, 0, 1, 1], [], []>} : vector<38x79xf32>, vector<79x444xf32>, vector<38x444xf32> -> vector<38x444xf32>
    %10 = arith.addf %5, %9 : vector<38x444xf32>
    %11 = vector.extract_strided_slice %1 {offsets = [2, 0], sizes = [38, 79], strides = [1, 1]} : vector<43x79xf32> to vector<38x79xf32>
    %c2 = arith.constant 2 : index
    %c0_8 = arith.constant 0 : index
    %c0_9 = arith.constant 0 : index
    %12 = vector.load %arg2[%c2, %c0_8, %c0_9] : memref<6x79x444xf32, #tpu.memory_space<vmem>>, vector<1x79x444xf32>
    %13 = vector.shape_cast %12 : vector<1x79x444xf32> to vector<79x444xf32>
    %cst_10 = arith.constant dense<0.000000e+00> : vector<38x444xf32>
    %14 = tpu.matmul %11, %13, %cst_10 {dimension_numbers = #tpu.dot_dimension_numbers<[1], [0], [0], [1], [0, 0, 1, 1], [], []>} : vector<38x79xf32>, vector<79x444xf32>, vector<38x444xf32> -> vector<38x444xf32>
    %15 = arith.addf %10, %14 : vector<38x444xf32>
    %16 = vector.extract_strided_slice %1 {offsets = [3, 0], sizes = [38, 79], strides = [1, 1]} : vector<43x79xf32> to vector<38x79xf32>
    %c3 = arith.constant 3 : index
    %c0_11 = arith.constant 0 : index
    %c0_12 = arith.constant 0 : index
    %17 = vector.load %arg2[%c3, %c0_11, %c0_12] : memref<6x79x444xf32, #tpu.memory_space<vmem>>, vector<1x79x444xf32>
    %18 = vector.shape_cast %17 : vector<1x79x444xf32> to vector<79x444xf32>
    %cst_13 = arith.constant dense<0.000000e+00> : vector<38x444xf32>
    %19 = tpu.matmul %16, %18, %cst_13 {dimension_numbers = #tpu.dot_dimension_numbers<[1], [0], [0], [1], [0, 0, 1, 1], [], []>} : vector<38x79xf32>, vector<79x444xf32>, vector<38x444xf32> -> vector<38x444xf32>
    %20 = arith.addf %15, %19 : vector<38x444xf32>
    %21 = vector.extract_strided_slice %1 {offsets = [4, 0], sizes = [38, 79], strides = [1, 1]} : vector<43x79xf32> to vector<38x79xf32>
    %c4 = arith.constant 4 : index
    %c0_14 = arith.constant 0 : index
    %c0_15 = arith.constant 0 : index
    %22 = vector.load %arg2[%c4, %c0_14, %c0_15] : memref<6x79x444xf32, #tpu.memory_space<vmem>>, vector<1x79x444xf32>
    %23 = vector.shape_cast %22 : vector<1x79x444xf32> to vector<79x444xf32>
    %cst_16 = arith.constant dense<0.000000e+00> : vector<38x444xf32>
    %24 = tpu.matmul %21, %23, %cst_16 {dimension_numbers = #tpu.dot_dimension_numbers<[1], [0], [0], [1], [0, 0, 1, 1], [], []>} : vector<38x79xf32>, vector<79x444xf32>, vector<38x444xf32> -> vector<38x444xf32>
    %25 = arith.addf %20, %24 : vector<38x444xf32>
    %26 = vector.extract_strided_slice %1 {offsets = [5, 0], sizes = [38, 79], strides = [1, 1]} : vector<43x79xf32> to vector<38x79xf32>
    %c5 = arith.constant 5 : index
    %c0_17 = arith.constant 0 : index
    %c0_18 = arith.constant 0 : index
    %27 = vector.load %arg2[%c5, %c0_17, %c0_18] : memref<6x79x444xf32, #tpu.memory_space<vmem>>, vector<1x79x444xf32>
    %28 = vector.shape_cast %27 : vector<1x79x444xf32> to vector<79x444xf32>
    %cst_19 = arith.constant dense<0.000000e+00> : vector<38x444xf32>
    %29 = tpu.matmul %26, %28, %cst_19 {dimension_numbers = #tpu.dot_dimension_numbers<[1], [0], [0], [1], [0, 0, 1, 1], [], []>} : vector<38x79xf32>, vector<79x444xf32>, vector<38x444xf32> -> vector<38x444xf32>
    %30 = arith.addf %25, %29 : vector<38x444xf32>
    %c0_20 = arith.constant 0 : index
    %c0_21 = arith.constant 0 : index
    %31 = vector.load %arg3[%c0_20, %c0_21] : memref<1x444xf32, #tpu.memory_space<vmem>>, vector<1x444xf32>
    %32 = vector.broadcast %31 : vector<1x444xf32> to vector<38x444xf32>
    %33 = arith.addf %30, %32 : vector<38x444xf32>
    %34 = tpu.iota {dimensions = array<i32: 0>} : vector<19x38xi32>
    %35 = tpu.iota {dimensions = array<i32: 1>} : vector<19x38xi32>
    %c2_i32 = arith.constant 2 : i32
    %36 = vector.broadcast %c2_i32 : i32 to vector<19x38xi32>
    %37 = arith.muli %36, %34 : vector<19x38xi32>
    %38 = arith.subi %35, %37 : vector<19x38xi32>
    %c0_i32 = arith.constant 0 : i32
    %39 = vector.broadcast %c0_i32 : i32 to vector<19x38xi32>
    %40 = arith.cmpi eq, %38, %39 : vector<19x38xi32>
    %cst_22 = arith.constant 1.000000e+00 : f32
    %cst_23 = arith.constant 0.000000e+00 : f32
    %41 = vector.broadcast %cst_22 : f32 to vector<19x38xf32>
    %42 = vector.broadcast %cst_23 : f32 to vector<19x38xf32>
    %43 = arith.select %40, %41, %42 : vector<19x38xi1>, vector<19x38xf32>
    %c1_i32 = arith.constant 1 : i32
    %44 = vector.broadcast %c1_i32 : i32 to vector<19x38xi32>
    %45 = arith.cmpi eq, %38, %44 : vector<19x38xi32>
    %cst_24 = arith.constant 1.000000e+00 : f32
    %cst_25 = arith.constant 0.000000e+00 : f32
    %46 = vector.broadcast %cst_24 : f32 to vector<19x38xf32>
    %47 = vector.broadcast %cst_25 : f32 to vector<19x38xf32>
    %48 = arith.select %45, %46, %47 : vector<19x38xi1>, vector<19x38xf32>
    %49 = tpu.iota {dimensions = array<i32: 0>} : vector<444x222xi32>
    %50 = tpu.iota {dimensions = array<i32: 1>} : vector<444x222xi32>
    %c2_i32_26 = arith.constant 2 : i32
    %51 = vector.broadcast %c2_i32_26 : i32 to vector<444x222xi32>
    %52 = arith.muli %51, %50 : vector<444x222xi32>
    %53 = arith.subi %49, %52 : vector<444x222xi32>
    %c0_i32_27 = arith.constant 0 : i32
    %54 = vector.broadcast %c0_i32_27 : i32 to vector<444x222xi32>
    %55 = arith.cmpi eq, %53, %54 : vector<444x222xi32>
    %cst_28 = arith.constant 1.000000e+00 : f32
    %cst_29 = arith.constant 0.000000e+00 : f32
    %56 = vector.broadcast %cst_28 : f32 to vector<444x222xf32>
    %57 = vector.broadcast %cst_29 : f32 to vector<444x222xf32>
    %58 = arith.select %55, %56, %57 : vector<444x222xi1>, vector<444x222xf32>
    %c1_i32_30 = arith.constant 1 : i32
    %59 = vector.broadcast %c1_i32_30 : i32 to vector<444x222xi32>
    %60 = arith.cmpi eq, %53, %59 : vector<444x222xi32>
    %cst_31 = arith.constant 1.000000e+00 : f32
    %cst_32 = arith.constant 0.000000e+00 : f32
    %61 = vector.broadcast %cst_31 : f32 to vector<444x222xf32>
    %62 = vector.broadcast %cst_32 : f32 to vector<444x222xf32>
    %63 = arith.select %60, %61, %62 : vector<444x222xi1>, vector<444x222xf32>
    %cst_33 = arith.constant dense<0.000000e+00> : vector<19x444xf32>
    %64 = tpu.matmul %43, %33, %cst_33 {dimension_numbers = #tpu.dot_dimension_numbers<[1], [0], [0], [1], [0, 0, 1, 1], [], []>} : vector<19x38xf32>, vector<38x444xf32>, vector<19x444xf32> -> vector<19x444xf32>
    %cst_34 = arith.constant dense<0.000000e+00> : vector<19x444xf32>
    %65 = tpu.matmul %48, %33, %cst_34 {dimension_numbers = #tpu.dot_dimension_numbers<[1], [0], [0], [1], [0, 0, 1, 1], [], []>} : vector<19x38xf32>, vector<38x444xf32>, vector<19x444xf32> -> vector<19x444xf32>
    %66 = arith.maximumf %64, %65 : vector<19x444xf32>
    %cst_35 = arith.constant dense<0.000000e+00> : vector<19x222xf32>
    %67 = tpu.matmul %66, %58, %cst_35 {dimension_numbers = #tpu.dot_dimension_numbers<[1], [0], [0], [1], [0, 0, 1, 1], [], []>} : vector<19x444xf32>, vector<444x222xf32>, vector<19x222xf32> -> vector<19x222xf32>
    %cst_36 = arith.constant dense<0.000000e+00> : vector<19x222xf32>
    %68 = tpu.matmul %66, %63, %cst_36 {dimension_numbers = #tpu.dot_dimension_numbers<[1], [0], [0], [1], [0, 0, 1, 1], [], []>} : vector<19x444xf32>, vector<444x222xf32>, vector<19x222xf32> -> vector<19x222xf32>
    %69 = arith.maximumf %67, %68 : vector<19x222xf32>
    %70 = vector.extract_strided_slice %69 {offsets = [0, 0], sizes = [14, 222], strides = [1, 1]} : vector<19x222xf32> to vector<14x222xf32>
    %c0_37 = arith.constant 0 : index
    %c0_38 = arith.constant 0 : index
    %c0_39 = arith.constant 0 : index
    %71 = vector.load %arg4[%c0_37, %c0_38, %c0_39] : memref<6x222x512xf32, #tpu.memory_space<vmem>>, vector<1x222x512xf32>
    %72 = vector.shape_cast %71 : vector<1x222x512xf32> to vector<222x512xf32>
    %cst_40 = arith.constant dense<0.000000e+00> : vector<14x512xf32>
    %73 = tpu.matmul %70, %72, %cst_40 {dimension_numbers = #tpu.dot_dimension_numbers<[1], [0], [0], [1], [0, 0, 1, 1], [], []>} : vector<14x222xf32>, vector<222x512xf32>, vector<14x512xf32> -> vector<14x512xf32>
    %74 = vector.extract_strided_slice %69 {offsets = [1, 0], sizes = [14, 222], strides = [1, 1]} : vector<19x222xf32> to vector<14x222xf32>
    %c1_41 = arith.constant 1 : index
    %c0_42 = arith.constant 0 : index
    %c0_43 = arith.constant 0 : index
    %75 = vector.load %arg4[%c1_41, %c0_42, %c0_43] : memref<6x222x512xf32, #tpu.memory_space<vmem>>, vector<1x222x512xf32>
    %76 = vector.shape_cast %75 : vector<1x222x512xf32> to vector<222x512xf32>
    %cst_44 = arith.constant dense<0.000000e+00> : vector<14x512xf32>
    %77 = tpu.matmul %74, %76, %cst_44 {dimension_numbers = #tpu.dot_dimension_numbers<[1], [0], [0], [1], [0, 0, 1, 1], [], []>} : vector<14x222xf32>, vector<222x512xf32>, vector<14x512xf32> -> vector<14x512xf32>
    %78 = arith.addf %73, %77 : vector<14x512xf32>
    %79 = vector.extract_strided_slice %69 {offsets = [2, 0], sizes = [14, 222], strides = [1, 1]} : vector<19x222xf32> to vector<14x222xf32>
    %c2_45 = arith.constant 2 : index
    %c0_46 = arith.constant 0 : index
    %c0_47 = arith.constant 0 : index
    %80 = vector.load %arg4[%c2_45, %c0_46, %c0_47] : memref<6x222x512xf32, #tpu.memory_space<vmem>>, vector<1x222x512xf32>
    %81 = vector.shape_cast %80 : vector<1x222x512xf32> to vector<222x512xf32>
    %cst_48 = arith.constant dense<0.000000e+00> : vector<14x512xf32>
    %82 = tpu.matmul %79, %81, %cst_48 {dimension_numbers = #tpu.dot_dimension_numbers<[1], [0], [0], [1], [0, 0, 1, 1], [], []>} : vector<14x222xf32>, vector<222x512xf32>, vector<14x512xf32> -> vector<14x512xf32>
    %83 = arith.addf %78, %82 : vector<14x512xf32>
    %84 = vector.extract_strided_slice %69 {offsets = [3, 0], sizes = [14, 222], strides = [1, 1]} : vector<19x222xf32> to vector<14x222xf32>
    %c3_49 = arith.constant 3 : index
    %c0_50 = arith.constant 0 : index
    %c0_51 = arith.constant 0 : index
    %85 = vector.load %arg4[%c3_49, %c0_50, %c0_51] : memref<6x222x512xf32, #tpu.memory_space<vmem>>, vector<1x222x512xf32>
    %86 = vector.shape_cast %85 : vector<1x222x512xf32> to vector<222x512xf32>
    %cst_52 = arith.constant dense<0.000000e+00> : vector<14x512xf32>
    %87 = tpu.matmul %84, %86, %cst_52 {dimension_numbers = #tpu.dot_dimension_numbers<[1], [0], [0], [1], [0, 0, 1, 1], [], []>} : vector<14x222xf32>, vector<222x512xf32>, vector<14x512xf32> -> vector<14x512xf32>
    %88 = arith.addf %83, %87 : vector<14x512xf32>
    %89 = vector.extract_strided_slice %69 {offsets = [4, 0], sizes = [14, 222], strides = [1, 1]} : vector<19x222xf32> to vector<14x222xf32>
    %c4_53 = arith.constant 4 : index
    %c0_54 = arith.constant 0 : index
    %c0_55 = arith.constant 0 : index
    %90 = vector.load %arg4[%c4_53, %c0_54, %c0_55] : memref<6x222x512xf32, #tpu.memory_space<vmem>>, vector<1x222x512xf32>
    %91 = vector.shape_cast %90 : vector<1x222x512xf32> to vector<222x512xf32>
    %cst_56 = arith.constant dense<0.000000e+00> : vector<14x512xf32>
    %92 = tpu.matmul %89, %91, %cst_56 {dimension_numbers = #tpu.dot_dimension_numbers<[1], [0], [0], [1], [0, 0, 1, 1], [], []>} : vector<14x222xf32>, vector<222x512xf32>, vector<14x512xf32> -> vector<14x512xf32>
    %93 = arith.addf %88, %92 : vector<14x512xf32>
    %94 = vector.extract_strided_slice %69 {offsets = [5, 0], sizes = [14, 222], strides = [1, 1]} : vector<19x222xf32> to vector<14x222xf32>
    %c5_57 = arith.constant 5 : index
    %c0_58 = arith.constant 0 : index
    %c0_59 = arith.constant 0 : index
    %95 = vector.load %arg4[%c5_57, %c0_58, %c0_59] : memref<6x222x512xf32, #tpu.memory_space<vmem>>, vector<1x222x512xf32>
    %96 = vector.shape_cast %95 : vector<1x222x512xf32> to vector<222x512xf32>
    %cst_60 = arith.constant dense<0.000000e+00> : vector<14x512xf32>
    %97 = tpu.matmul %94, %96, %cst_60 {dimension_numbers = #tpu.dot_dimension_numbers<[1], [0], [0], [1], [0, 0, 1, 1], [], []>} : vector<14x222xf32>, vector<222x512xf32>, vector<14x512xf32> -> vector<14x512xf32>
    %98 = arith.addf %93, %97 : vector<14x512xf32>
    %c0_61 = arith.constant 0 : index
    %c0_62 = arith.constant 0 : index
    %99 = vector.load %arg5[%c0_61, %c0_62] : memref<1x512xf32, #tpu.memory_space<vmem>>, vector<1x512xf32>
    %100 = vector.broadcast %99 : vector<1x512xf32> to vector<14x512xf32>
    %101 = arith.addf %98, %100 : vector<14x512xf32>
    %102 = tpu.iota {dimensions = array<i32: 0>} : vector<7x14xi32>
    %103 = tpu.iota {dimensions = array<i32: 1>} : vector<7x14xi32>
    %c2_i32_63 = arith.constant 2 : i32
    %104 = vector.broadcast %c2_i32_63 : i32 to vector<7x14xi32>
    %105 = arith.muli %104, %102 : vector<7x14xi32>
    %106 = arith.subi %103, %105 : vector<7x14xi32>
    %c0_i32_64 = arith.constant 0 : i32
    %107 = vector.broadcast %c0_i32_64 : i32 to vector<7x14xi32>
    %108 = arith.cmpi eq, %106, %107 : vector<7x14xi32>
    %cst_65 = arith.constant 1.000000e+00 : f32
    %cst_66 = arith.constant 0.000000e+00 : f32
    %109 = vector.broadcast %cst_65 : f32 to vector<7x14xf32>
    %110 = vector.broadcast %cst_66 : f32 to vector<7x14xf32>
    %111 = arith.select %108, %109, %110 : vector<7x14xi1>, vector<7x14xf32>
    %c1_i32_67 = arith.constant 1 : i32
    %112 = vector.broadcast %c1_i32_67 : i32 to vector<7x14xi32>
    %113 = arith.cmpi eq, %106, %112 : vector<7x14xi32>
    %cst_68 = arith.constant 1.000000e+00 : f32
    %cst_69 = arith.constant 0.000000e+00 : f32
    %114 = vector.broadcast %cst_68 : f32 to vector<7x14xf32>
    %115 = vector.broadcast %cst_69 : f32 to vector<7x14xf32>
    %116 = arith.select %113, %114, %115 : vector<7x14xi1>, vector<7x14xf32>
    %117 = tpu.iota {dimensions = array<i32: 0>} : vector<512x256xi32>
    %118 = tpu.iota {dimensions = array<i32: 1>} : vector<512x256xi32>
    %c2_i32_70 = arith.constant 2 : i32
    %119 = vector.broadcast %c2_i32_70 : i32 to vector<512x256xi32>
    %120 = arith.muli %119, %118 : vector<512x256xi32>
    %121 = arith.subi %117, %120 : vector<512x256xi32>
    %c0_i32_71 = arith.constant 0 : i32
    %122 = vector.broadcast %c0_i32_71 : i32 to vector<512x256xi32>
    %123 = arith.cmpi eq, %121, %122 : vector<512x256xi32>
    %cst_72 = arith.constant 1.000000e+00 : f32
    %cst_73 = arith.constant 0.000000e+00 : f32
    %124 = vector.broadcast %cst_72 : f32 to vector<512x256xf32>
    %125 = vector.broadcast %cst_73 : f32 to vector<512x256xf32>
    %126 = arith.select %123, %124, %125 : vector<512x256xi1>, vector<512x256xf32>
    %c1_i32_74 = arith.constant 1 : i32
    %127 = vector.broadcast %c1_i32_74 : i32 to vector<512x256xi32>
    %128 = arith.cmpi eq, %121, %127 : vector<512x256xi32>
    %cst_75 = arith.constant 1.000000e+00 : f32
    %cst_76 = arith.constant 0.000000e+00 : f32
    %129 = vector.broadcast %cst_75 : f32 to vector<512x256xf32>
    %130 = vector.broadcast %cst_76 : f32 to vector<512x256xf32>
    %131 = arith.select %128, %129, %130 : vector<512x256xi1>, vector<512x256xf32>
    %cst_77 = arith.constant dense<0.000000e+00> : vector<7x512xf32>
    %132 = tpu.matmul %111, %101, %cst_77 {dimension_numbers = #tpu.dot_dimension_numbers<[1], [0], [0], [1], [0, 0, 1, 1], [], []>} : vector<7x14xf32>, vector<14x512xf32>, vector<7x512xf32> -> vector<7x512xf32>
    %cst_78 = arith.constant dense<0.000000e+00> : vector<7x512xf32>
    %133 = tpu.matmul %116, %101, %cst_78 {dimension_numbers = #tpu.dot_dimension_numbers<[1], [0], [0], [1], [0, 0, 1, 1], [], []>} : vector<7x14xf32>, vector<14x512xf32>, vector<7x512xf32> -> vector<7x512xf32>
    %134 = arith.maximumf %132, %133 : vector<7x512xf32>
    %cst_79 = arith.constant dense<0.000000e+00> : vector<7x256xf32>
    %135 = tpu.matmul %134, %126, %cst_79 {dimension_numbers = #tpu.dot_dimension_numbers<[1], [0], [0], [1], [0, 0, 1, 1], [], []>} : vector<7x512xf32>, vector<512x256xf32>, vector<7x256xf32> -> vector<7x256xf32>
    %cst_80 = arith.constant dense<0.000000e+00> : vector<7x256xf32>
    %136 = tpu.matmul %134, %131, %cst_80 {dimension_numbers = #tpu.dot_dimension_numbers<[1], [0], [0], [1], [0, 0, 1, 1], [], []>} : vector<7x512xf32>, vector<512x256xf32>, vector<7x256xf32> -> vector<7x256xf32>
    %137 = arith.maximumf %135, %136 : vector<7x256xf32>
    %c0_81 = arith.constant 0 : index
    %c0_82 = arith.constant 0 : index
    %138 = vector.load %arg6[%c0_81, %c0_82] : memref<256x896xf32, #tpu.memory_space<vmem>>, vector<256x896xf32>
    %cst_83 = arith.constant dense<0.000000e+00> : vector<7x896xf32>
    %139 = tpu.matmul %137, %138, %cst_83 {dimension_numbers = #tpu.dot_dimension_numbers<[1], [0], [0], [1], [0, 0, 1, 1], [], []>} : vector<7x256xf32>, vector<256x896xf32>, vector<7x896xf32> -> vector<7x896xf32>
    %c0_84 = arith.constant 0 : index
    %c0_85 = arith.constant 0 : index
    %140 = vector.load %arg7[%c0_84, %c0_85] : memref<1x128xf32, #tpu.memory_space<vmem>>, vector<1x128xf32>
    %141 = vector.extract_strided_slice %139 {offsets = [0, 0], sizes = [1, 128], strides = [1, 1]} : vector<7x896xf32> to vector<1x128xf32>
    %142 = arith.addf %140, %141 : vector<1x128xf32>
    %143 = vector.extract_strided_slice %139 {offsets = [1, 128], sizes = [1, 128], strides = [1, 1]} : vector<7x896xf32> to vector<1x128xf32>
    %144 = arith.addf %142, %143 : vector<1x128xf32>
    %145 = vector.extract_strided_slice %139 {offsets = [2, 256], sizes = [1, 128], strides = [1, 1]} : vector<7x896xf32> to vector<1x128xf32>
    %146 = arith.addf %144, %145 : vector<1x128xf32>
    %147 = vector.extract_strided_slice %139 {offsets = [3, 384], sizes = [1, 128], strides = [1, 1]} : vector<7x896xf32> to vector<1x128xf32>
    %148 = arith.addf %146, %147 : vector<1x128xf32>
    %149 = vector.extract_strided_slice %139 {offsets = [4, 512], sizes = [1, 128], strides = [1, 1]} : vector<7x896xf32> to vector<1x128xf32>
    %150 = arith.addf %148, %149 : vector<1x128xf32>
    %151 = vector.extract_strided_slice %139 {offsets = [5, 640], sizes = [1, 128], strides = [1, 1]} : vector<7x896xf32> to vector<1x128xf32>
    %152 = arith.addf %150, %151 : vector<1x128xf32>
    %153 = vector.extract_strided_slice %139 {offsets = [6, 768], sizes = [1, 128], strides = [1, 1]} : vector<7x896xf32> to vector<1x128xf32>
    %154 = arith.addf %152, %153 : vector<1x128xf32>
    %cst_86 = arith.constant 0.000000e+00 : f32
    %155 = vector.broadcast %cst_86 : f32 to vector<1x128xf32>
    %156 = arith.maximumf %154, %155 : vector<1x128xf32>
    %c0_87 = arith.constant 0 : index
    %c0_88 = arith.constant 0 : index
    %c0_89 = arith.constant 0 : index
    %157 = vector.load %arg8[%c0_87, %c0_88, %c0_89] : memref<1x1x128xf32, #tpu.memory_space<vmem>>, vector<1x1x128xf32>
    %158 = vector.shape_cast %157 : vector<1x1x128xf32> to vector<1x128xf32>
    %159 = vector.shape_cast %156 : vector<1x128xf32> to vector<1x1x128xf32>
    tpu.vector_store %arg8[%c0_87, %c0_88, %c0_89], %159 {strides = array<i32>} : memref<1x1x128xf32, #tpu.memory_space<vmem>>, vector<1x1x128xf32>,
    return
  }
  func.func @transform_0(%arg0: i32) -> (i32, i32, i32) {
    %c0_i32 = arith.constant 0 : i32
    %c0_i32_0 = arith.constant 0 : i32
    %c0_i32_1 = arith.constant 0 : i32
    return %arg0, %c0_i32, %c0_i32_0 : i32, i32, i32
  }
  func.func @transform_1(%arg0: i32) -> (i32, i32, i32) {
    %c0_i32 = arith.constant 0 : i32
    %c0_i32_0 = arith.constant 0 : i32
    %c0_i32_1 = arith.constant 0 : i32
    %c0_i32_2 = arith.constant 0 : i32
    return %c0_i32, %c0_i32_0, %c0_i32_1 : i32, i32, i32
  }
  func.func @transform_2(%arg0: i32) -> (i32, i32) {
    %c0_i32 = arith.constant 0 : i32
    %c0_i32_0 = arith.constant 0 : i32
    %c0_i32_1 = arith.constant 0 : i32
    return %c0_i32, %c0_i32_0 : i32, i32
  }
  func.func @transform_3(%arg0: i32) -> (i32, i32, i32) {
    %c0_i32 = arith.constant 0 : i32
    %c0_i32_0 = arith.constant 0 : i32
    %c0_i32_1 = arith.constant 0 : i32
    %c0_i32_2 = arith.constant 0 : i32
    return %c0_i32, %c0_i32_0, %c0_i32_1 : i32, i32, i32
  }
  func.func @transform_4(%arg0: i32) -> (i32, i32) {
    %c0_i32 = arith.constant 0 : i32
    %c0_i32_0 = arith.constant 0 : i32
    %c0_i32_1 = arith.constant 0 : i32
    return %c0_i32, %c0_i32_0 : i32, i32
  }
  func.func @transform_5(%arg0: i32) -> (i32, i32) {
    %c0_i32 = arith.constant 0 : i32
    %c0_i32_0 = arith.constant 0 : i32
    %c0_i32_1 = arith.constant 0 : i32
    return %c0_i32, %c0_i32_0 : i32, i32
  }
  func.func @transform_6(%arg0: i32) -> (i32, i32) {
    %c0_i32 = arith.constant 0 : i32
    %c0_i32_0 = arith.constant 0 : i32
    %c0_i32_1 = arith.constant 0 : i32
    return %c0_i32, %c0_i32_0 : i32, i32
  }
  func.func @transform_7(%arg0: i32) -> (i32, i32, i32) {
    %c0_i32 = arith.constant 0 : i32
    %c0_i32_0 = arith.constant 0 : i32
    %c0_i32_1 = arith.constant 0 : i32
    return %arg0, %c0_i32, %c0_i32_0 : i32, i32, i32
  }
}

</mosaic_0001>

<bundles_post_ra>
// kernel: net_forward.1
= control target key start
LH: loop header
LB: loop body
LE: loop exit
PB: predicated region body
PF: predicated region fallthrough
CT: control target
= control target key end

     0   :  { %s12534_s0 = inlined_call_operand.vmem [shape: f32[2,43,79], index: 0, kind: input, shape index: {}]   ;;  %s12535_s1 = inlined_call_operand.hbm [shape: f32[6,79,444], index: 1, kind: input, shape index: {}]   ;;  %s12536_s2 = inlined_call_operand.hbm [shape: f32[1,444], index: 2, kind: input, shape index: {}]   ;;  %s12537_s3 = inlined_call_operand.hbm [shape: f32[6,222,512], index: 3, kind: input, shape index: {}]   ;;  %s12538_s4 = inlined_call_operand.hbm [shape: f32[1,512], index: 4, kind: input, shape index: {}]   ;;  %s12539_s5 = inlined_call_operand.hbm [shape: f32[256,896], index: 5, kind: input, shape index: {}]   ;;  %s12540_s6 = inlined_call_operand.hbm [shape: f32[1,128], index: 6, kind: input, shape index: {}]   ;;  %s12541_s7 = inlined_call_operand.hbm [shape: f32[2,1,128], index: 7, kind: output, shape index: {}]  }
   0x1   :  { %12767 = sst [smem:[#allocation116_spill]] %s12536_s2 }
   0x2   :  { %12768 = sst [smem:[#allocation117_spill]] %s12538_s4 }
   0x3   :  { %12 = vsyncpa [#allocation3], 0 }
   0x4   :  { %13 = vsyncpa [#allocation6], 0 }
   0x5   :  { %14 = vsyncpa [#allocation9], 0 }
   0x6   :  { %15 = vsyncpa [#allocation12], 0 }
   0x7   :  { %16 = vsyncpa [#allocation4], 0 }
   0x8   :  { %18 = vsyncpa [#allocation4 + $0x1], 0  ;;  %s9687_s24 = smov 0   ;;  %s9689_s25 = smov 0  }
   0x9   :  { %s9691_s26 = smov 0   ;;  %s9693_s27 = smov 0  }
   0xa LB: > { %12769 = sst [smem:[#allocation19_spill]] %s9625_s26  ;;  %s9708_s28 = sadd.s32 4294967295, %s9629_s27   ;;  %s9629_s27 = sphi %s9693_s27, %s13446_s27   ;;  %s9625_s26 = sphi %s9691_s26, %s13448_s26   ;;  %s9621_s25 = sphi %s9689_s25, %s13450_s25   ;;  %s9617_s24 = sphi %s9687_s24, %s13449_s24  }
   0xb   : > { %s6688_s29 = sadd.s32 4294967294, %s9629_s27   ;;  %s9712_s30 = sadd.s32 1, %s9629_s27  }
   0xc   : > { %12770 = sst [smem:[#allocation20_spill]] %s9712_s30  ;;  %s183_s8 = sadd.s32 1, %s9625_s26 }
   0xd   : > { %s180_s9 = ssub.s32 %s9629_s27, %s9712_s30  ;;  %p193_p0 = scmp.ne.s32.totalorder %s9625_s26, %s9621_s25 }
   0xe   : > { %p181_p1 = scmp.eq.s32.totalorder %s180_s9, 0  ;;  %p194_p2 = scmp.eq.s32.totalorder %s9708_s28, 1 }
   0xf   : > { %p199_p3 = scmp.ne.s32.totalorder %s9621_s25, %s9617_s24  ;;  %p200_p4 = scmp.eq.s32.totalorder %s6688_s29, 1 }
  0x10   : > { %s9723_s10 = scalar_select %p181_p1, %s9625_s26, %s183_s8  }
  0x11   : > { %p9725_p5 = por %p194_p2, %p193_p0  ;;  %p9729_p6 = por %p200_p4, %p199_p3 }
  0x12   : > { %12771 = sst [smem:[#allocation21_spill]] %s9723_s10  ;;  %p6689_p7 = scmp.ge.s32.totalorder %s9629_s27, 1 }
  0x13   : > { %s12772_s11 = scalar_select %p9725_p5, 1, 0 }
  0x14   : > { %s12773_s12 = scalar_select %p9729_p6, 1, 0 }
  0x15   : > { %p207_p8 = scmp.lt.s32.totalorder %s9629_s27, 3  ;;  %p12542_p9 = scmp.eq.s32.totalorder %s9708_s28, 0 }
  0x16   : > { %s9631_s14 = smov [#allocation5]   ;;  %s9632_s16 = smov [#allocation8]  }
  0x17   : > { %p9736_p10 = pnand %p6689_p7, %p207_p8  ;;  %s233_s15 = sshll.u32 %s9631_s14, 4  ;;  %s234_s15 = int_to_ptr.vmem [resolvable:$true] %s233_s15 }
  0x18   : > { %s257_s17 = sshll.u32 %s9632_s16, 4  ;;  %s9633_s19 = smov [#allocation2]   ;;  %s9748_s17 = int_to_ptr.vmem [resolvable:$true] %s257_s17 }
  0x19   : > { %s12774_s13 = scalar_select %p9736_p10, 1, 0 }
  0x1a   : > { %p9300_p11 = pneg %p9736_p10  ;;  %s219_s20 = sshll.u32 %s9633_s19, 4  ;;  %s9750_s20 = int_to_ptr.vmem [resolvable:$true] %s219_s20 }
  0x1b   : > { %s12776_s2 = sld [smem:[#allocation116_spill]] }
  0x1c   : > { %p9744_p12 = pnand %p12542_p9, %p9300_p11 }
  0x1e   : > { %p9760_p0 = pneg %p9744_p12 }
  0x21   : > { %s9383_s23 = scalar_lea.hbm %s12776_s2, 64 }
  0x22   : > { %p9384_p13 = scmp.ne.s32.totalorder %s12776_s2, %s9383_s23  ;;  %p9390_p3 = scmp.lt.u32.totalorder %s9383_s23, %s12776_s2 }
  0x24   : > { %p9386_p1 = pnand %p9760_p0, %p9384_p13 }
  0x26   : > { %p9387_p2 = pneg %p9386_p1 }
  0x28   : > { %p9392_p4 = pnand %p9390_p3, %p9387_p2 }
  0x2a   : > { %9395 = shalt.err (!%p9392_p4)
}
  0x2b   : > { %s9396_s19 = scalar_lea.vmem %s234_s15, 64  ;;  %p9404_p9 = scmp.lt.s32.totalorder %s234_s15, %s234_s15 }
  0x2c   : > { %p9397_p7 = scmp.ne.s32.totalorder %s234_s15, %s9396_s19  ;;  %p9405_p6 = scmp.lt.s32.totalorder %s9396_s19, %s9396_s19 }
  0x2e   : > { %p9399_p8 = pnand %p9397_p7, %p9760_p0  ;;  %p9406_p5 = por %p9405_p6, %p9404_p9 }
  0x30   : > { %p9400_p11 = pneg %p9399_p8 }
  0x32   : > { %p9407_p10 = pnand %p9406_p5, %p9400_p11 }
  0x34   : > { %9410 = shalt.err (!%p9407_p10)
}
  0x35   : > { %9306 = dma.hbm_to_vmem [thread:$0]  (!%p9744_p12), %s12776_s2, 64, %s234_s15, [#allocation6]  }
  0x36   : > { %s12778_s4 = sld [smem:[#allocation117_spill]] }
  0x3c   : > { %s9411_s8 = scalar_lea.hbm %s12778_s4, 64 }
  0x3d   : > { %p9412_p13 = scmp.ne.s32.totalorder %s12778_s4, %s9411_s8  ;;  %p9418_p5 = scmp.lt.u32.totalorder %s9411_s8, %s12778_s4 }
  0x3f   : > { %p9414_p1 = pnand %p9412_p13, %p9760_p0 }
  0x41   : > { %p9415_p6 = pneg %p9414_p1 }
  0x43   : > { %p9420_p9 = pnand %p9418_p5, %p9415_p6 }
  0x45   : > { %9423 = shalt.err (!%p9420_p9)
}
  0x46   : > { %s9424_s15 = scalar_lea.vmem %s9748_s17, 64  ;;  %p9432_p4 = scmp.lt.s32.totalorder %s9748_s17, %s9748_s17 }
  0x47   : > { %p9425_p10 = scmp.ne.s32.totalorder %s9748_s17, %s9424_s15  ;;  %p9433_p7 = scmp.lt.s32.totalorder %s9424_s15, %s9424_s15 }
  0x49   : > { %p9427_p2 = pnand %p9425_p10, %p9760_p0  ;;  %p9434_p8 = por %p9433_p7, %p9432_p4 }
  0x4b   : > { %p9428_p3 = pneg %p9427_p2 }
  0x4d   : > { %p9435_p11 = pnand %p9434_p8, %p9428_p3 }
  0x4f   : > { %9438 = shalt.err (!%p9435_p11)
}
  0x50   : > { %9312 = dma.hbm_to_vmem [thread:$0]  (!%p9744_p12), %s12778_s4, 64, %s9748_s17, [#allocation9]  }
  0x51   : > { %s9439_s29 = scalar_lea.hbm %s12535_s1, 30720 }
  0x52   : > { %p9440_p13 = scmp.ne.s32.totalorder %s12535_s1, %s9439_s29  ;;  %p9446_p5 = scmp.lt.u32.totalorder %s9439_s29, %s12535_s1 }
  0x54   : > { %p9442_p1 = pnand %p9440_p13, %p9760_p0 }
  0x56   : > { %p9443_p6 = pneg %p9442_p1 }
  0x58   : > { %p9448_p9 = pnand %p9446_p5, %p9443_p6 }
  0x5a   : > { %9451 = shalt.err (!%p9448_p9)
}
  0x5b   : > { %s9452_s17 = scalar_lea.vmem %s9750_s20, 30720  ;;  %p9460_p4 = scmp.lt.s32.totalorder %s9750_s20, %s9750_s20 }
  0x5c   : > { %p9453_p10 = scmp.ne.s32.totalorder %s9750_s20, %s9452_s17  ;;  %p9461_p7 = scmp.lt.s32.totalorder %s9452_s17, %s9452_s17 }
  0x5e   : > { %p9455_p2 = pnand %p9453_p10, %p9760_p0  ;;  %p9462_p8 = por %p9461_p7, %p9460_p4 }
  0x60   : > { %p9456_p3 = pneg %p9455_p2 }
  0x62   : > { %p9463_p11 = pnand %p9462_p8, %p9456_p3 }
  0x64   : > { %9466 = shalt.err (!%p9463_p11)
}
  0x65   : > { %s9634_s15 = smov 512   ;;  %s9635_s10 = smov 32  }
  0x66   : > { %9303 = dma.hbm_to_vmem [thread:$0]  (!%p9744_p12), %s12535_s1, 30720, %s9750_s20, [#allocation3], %s9634_s15, %s9634_s15, %s9635_s10  }
  0x67   : > { %s9636_s23 = smov [#allocation7]   ;;  %s9637_s8 = smov [#allocation10]  }
  0x68   : > { %s243_s29 = sshll.u32 %s9636_s23, 4  ;;  %s267_s14 = sshll.u32 %s9637_s8, 4  ;;  %s244_s29 = int_to_ptr.vmem [resolvable:$true] %s243_s29  ;;  %s268_s14 = int_to_ptr.vmem [resolvable:$true] %s267_s14 }
  0x69   : > { %s9467_s17 = scalar_lea.hbm %s12537_s3, 86016 }
  0x6a   : > { %p9468_p13 = scmp.ne.s32.totalorder %s12537_s3, %s9467_s17  ;;  %p9474_p5 = scmp.lt.u32.totalorder %s9467_s17, %s12537_s3 }
  0x6c   : > { %p9470_p1 = pnand %p9468_p13, %p9760_p0 }
  0x6e   : > { %p9471_p6 = pneg %p9470_p1 }
  0x70   : > { %p9476_p9 = pnand %p9474_p5, %p9471_p6 }
  0x72   : > { %9479 = shalt.err (!%p9476_p9)
}
  0x73   : > { %s9480_s20 = scalar_lea.vmem %s244_s29, 86016  ;;  %p9488_p4 = scmp.lt.s32.totalorder %s244_s29, %s244_s29 }
  0x74   : > { %p9481_p10 = scmp.ne.s32.totalorder %s244_s29, %s9480_s20  ;;  %p9489_p7 = scmp.lt.s32.totalorder %s9480_s20, %s9480_s20 }
  0x76   : > { %p9483_p2 = pnand %p9481_p10, %p9760_p0  ;;  %p9490_p8 = por %p9489_p7, %p9488_p4 }
  0x78   : > { %p9484_p3 = pneg %p9483_p2 }
  0x7a   : > { %p9491_p11 = pnand %p9490_p8, %p9484_p3 }
  0x7c   : > { %9494 = shalt.err (!%p9491_p11)
}
  0x7d   : > { %9309 = dma.hbm_to_vmem [thread:$0]  (!%p9744_p12), %s12537_s3, 86016, %s244_s29, [#allocation6], %s9634_s15, %s9634_s15, %s9635_s10  }
  0x7e   : > { %s9495_s21 = scalar_lea.hbm %s12539_s5, 28672 }
  0x7f   : > { %p9496_p13 = scmp.ne.s32.totalorder %s12539_s5, %s9495_s21  ;;  %p9502_p5 = scmp.lt.u32.totalorder %s9495_s21, %s12539_s5 }
  0x81   : > { %p9498_p1 = pnand %p9496_p13, %p9760_p0 }
  0x83   : > { %p9499_p6 = pneg %p9498_p1 }
  0x85   : > { %p9504_p9 = pnand %p9502_p5, %p9499_p6 }
  0x87   : > { %9507 = shalt.err (!%p9504_p9)
}
  0x88   : > { %s9508_s19 = scalar_lea.vmem %s268_s14, 28672  ;;  %p9516_p4 = scmp.lt.s32.totalorder %s268_s14, %s268_s14 }
  0x89   : > { %p9509_p10 = scmp.ne.s32.totalorder %s268_s14, %s9508_s19  ;;  %p9517_p7 = scmp.lt.s32.totalorder %s9508_s19, %s9508_s19 }
  0x8b   : > { %p9511_p2 = pnand %p9509_p10, %p9760_p0  ;;  %p9518_p8 = por %p9517_p7, %p9516_p4 }
  0x8d   : > { %p9512_p3 = pneg %p9511_p2 }
  0x8f   : > { %p9519_p11 = pnand %p9518_p8, %p9512_p3 }
  0x91   : > { %9522 = shalt.err (!%p9519_p11)
}
  0x92   : > { %s9638_s15 = smov 896   ;;  %s9639_s10 = smov 56  }
  0x93   : > { %9315 = dma.hbm_to_vmem [thread:$0]  (!%p9744_p12), %s12539_s5, 28672, %s268_s14, [#allocation9], %s9638_s15, %s9638_s15, %s9639_s10  }
  0x94   : > { %s9640_s20 = smov [#allocation11]   ;;  %s9523_s30 = scalar_lea.hbm %s12540_s6, 16 }
  0x95   : > { %s281_s2 = sshll.u32 %s9640_s20, 4  ;;  %p9524_p13 = scmp.ne.s32.totalorder %s12540_s6, %s9523_s30  ;;  %s282_s2 = int_to_ptr.vmem [resolvable:$true] %s281_s2 }
  0x96   : > { %p9530_p5 = scmp.lt.u32.totalorder %s9523_s30, %s12540_s6 }
  0x97   : > { %p9526_p1 = pnand %p9524_p13, %p9760_p0 }
  0x99   : > { %p9527_p6 = pneg %p9526_p1 }
  0x9b   : > { %p9532_p9 = pnand %p9530_p5, %p9527_p6 }
  0x9d   : > { %9535 = shalt.err (!%p9532_p9)
}
  0x9e   : > { %s9536_s14 = scalar_lea.vmem %s282_s2, 16  ;;  %s9543_s16 = scalar_lea.vmem %s282_s2, 32 }
  0x9f   : > { %p9537_p10 = scmp.ne.s32.totalorder %s282_s2, %s9536_s14  ;;  %p9544_p4 = scmp.lt.s32.totalorder %s282_s2, %s282_s2 }
  0xa0   : > { %p9545_p7 = scmp.lt.s32.totalorder %s9543_s16, %s9536_s14 }
  0xa1   : > { %p9539_p2 = pnand %p9537_p10, %p9760_p0 }
  0xa2   : > { %p9546_p8 = por %p9545_p7, %p9544_p4 }
  0xa3   : > { %p9540_p3 = pneg %p9539_p2 }
  0xa5   : > { %p9547_p11 = pnand %p9546_p8, %p9540_p3 }
  0xa7   : > { %9550 = shalt.err (!%p9547_p11)
}
  0xa8   : > { %9318 = dma.hbm_to_vmem [thread:$0]  (!%p9744_p12), %s12540_s6, 16, %s282_s2, [#allocation12]  }
  0xa9   : > { %p12779_p13 = scmp.ne.s32.totalorder %s12774_s13, 0 }
  0xab   : > { %302 = sbr.rel (%p12779_p13) target bundleno = 2360 (0x938), region = 48 }
  0xb2   : > { %p12780_p1 = scmp.eq.s32.totalorder %s9708_s28, 0 }
  0xb4   : > { %9596 = dma.done.wait (%p12780_p1), [#allocation3], 30720   ;;  %p12781_p0 = pmov %p12780_p1 }
  0xb6   : > { %9598 = vsyncadd (%p12781_p0), [#allocation3], 4294936576  ;;  %p12782_p6 = pmov %p12781_p0 }
  0xb7   : > { %p12783_p5 = pmov %p12781_p0 }
  0xb8   : > { %9600 = dma.done.wait (%p12782_p6), [#allocation6], 86080  }
  0xb9   : > { %9602 = vsyncadd (%p12783_p5), [#allocation6], 4294881216  ;;  %p12784_p9 = pmov %p12781_p0 }
  0xba   : > { %p12785_p12 = pmov %p12781_p0 }
  0xbb   : > { %9604 = dma.done.wait (%p12784_p9), [#allocation9], 28736  }
  0xbc   : > { %9606 = vsyncadd (%p12785_p12), [#allocation9], 4294938560  ;;  %p12786_p10 = pmov %p12781_p0 }
  0xbd   : > { %p12787_p2 = pmov %p12781_p0 }
  0xbe   : > { %9608 = dma.done.wait (%p12786_p10), [#allocation12], 16  }
  0xbf   : > { %9610 = vsyncadd (%p12787_p2), [#allocation12], 4294967280  ;;  %v12560_v0 = vmov 0.0   ;;  %p353_p3 = scmp.lt.s32.totalorder %s9708_s28, 1  ;;  %v406_v1 = vld [vmem:[#allocation2 + $0x148] sm:$0xff]  ;;  %v405_v6 = vld [vmem:[#allocation2 + $0x140] sm:$0xff] }
  0xc0   : > { %547 = vmatprep.mubr.f32.mxu1 %v12560_v0  ;;  %759 = vmatprep.mubr.f32.mxu0 %v12560_v0  ;;  %v410_v2 = vld [vmem:[#allocation2 + $0x168] sm:$0xff]  ;;  %v409_v7 = vld [vmem:[#allocation2 + $0x160] sm:$0xff]  ;;  %vm12550_vm0 = vcmask 1046528   ;;  %vm12551_vm1 = vmmov 1   ;;  %v408_v62 = vld [vmem:[#allocation2 + $0x158] sm:$0xff]  ;;  %vm460_vm3 = vcmask 646144  }
  0xc1   : > { %v365_v3 = vld [vmem:[#allocation2 + $0x8] sm:$0xff]  ;;  %v7393_v4 = vpack.c.bf16 %v410_v2, %v406_v1  ;;  %v7395_v9 = vpack.c.bf16 %v409_v7, %v405_v6  ;;  %v364_v10 = vld [vmem:[#allocation2] sm:$0xff]  ;;  %s9898_s13 = scalar_select %p353_p3, %s9708_s28, 1  ;;  %vm9908_vm2 = vmpackc.low %vm12550_vm0, %vm12551_vm1  ;;  %vm12548_vm4 = vcmask 1042432   ;;  %vm12557_vm5 = vcmask 1045504  }
  0xc2   : > { %v369_v5 = vld [vmem:[#allocation2 + $0x28] sm:$0xff]  ;;  %v368_v11 = vld [vmem:[#allocation2 + $0x20] sm:$0xff]  ;;  %v412_v63 = vld [vmem:[#allocation2 + $0x178] sm:$0xff]  ;;  %vm12549_vm6 = vcmask 1044480   ;;  %vm12552_vm7 = vcmask 1043456   ;;  %vm12553_vm9 = vcmask 310272  }
  0xc3   : > { %v7437_v8 = vpack.c.bf16 %v369_v5, %v365_v3  ;;  %v414_v12 = vld [vmem:[#allocation2 + $0x188] sm:$0xff]  ;;  %7394 = vmatprep.subr.bf16.mxu1 %v7393_v4  ;;  %v7439_v13 = vpack.c.bf16 %v368_v11, %v364_v10  ;;  %v413_v19 = vld [vmem:[#allocation2 + $0x180] sm:$0xff]  ;;  %s9273_s18 = smul.u32 48, %s9898_s13  ;;  %v7415_v7 = vpack.c.bf16 %v412_v63, %v408_v62  ;;  %s351_s17 = sand.u32 1, %s9621_s25  }
  0xc4   : > { %v418_v14 = vld [vmem:[#allocation2 + $0x1a8] sm:$0xff]  ;;  %7396 = vmatpush1.bf16.msra.mxu1 %v7395_v9  ;;  %v417_v20 = vld [vmem:[#allocation2 + $0x1a0] sm:$0xff]  ;;  %v411_v9 = vld [vmem:[#allocation2 + $0x170] sm:$0xff]  ;;  %s7355_s20 = sshll.u32 %s9708_s28, 4  ;;  %s352_s2 = scalar_lea.vmem [#allocation13], %s351_s17 }
  0xc5   : > { %v373_v15 = vld [vmem:[#allocation2 + $0x48] sm:$0xff]  ;;  %7438 = vmatprep.subr.bf16.mxu0 %v7437_v8  ;;  %v7397_v17 = vpack.c.bf16 %v418_v14, %v414_v12  ;;  %v372_v21 = vld [vmem:[#allocation2 + $0x40] sm:$0xff]  ;;  %v7399_v22 = vpack.c.bf16 %v417_v20, %v413_v19  ;;  %s9904_s29 = scalar_lea.vmem %s12534_s0, %s9273_s18  ;;  %v407_v8 = vld [vmem:[#allocation2 + $0x150] sm:$0xff]  ;;  %s6573_s4 = sshll.u32 %s352_s2, 4  ;;  %s12494_s4 = int_to_ptr.vmem [resolvable:$true] %s6573_s4 }
  0xc6   : > { %v377_v16 = vld [vmem:[#allocation2 + $0x68] sm:$0xff]  ;;  %7440 = vmatpush1.bf16.msra.mxu0 %v7439_v13  ;;  %v376_v23 = vld [vmem:[#allocation2 + $0x60] sm:$0xff]  ;;  %v9923_v10 = vld [vmem:[%s9904_s29 + $0x10] sm:$0xff]  ;;  %s12492_s21 = scalar_lea.hbm %s12541_s7, %s7355_s20  ;;  %s6561_s22 = scalar_lea.sflag [#allocation4], %s351_s17 }
  0xc7   : > { %v7441_v18 = vpack.c.bf16 %v377_v16, %v373_v15  ;;  %v422_v24 = vld [vmem:[#allocation2 + $0x1c8] sm:$0xff]  ;;  %7398 = vmatprep.subr.bf16.mxu1 %v7397_v17  ;;  %v7443_v26 = vpack.c.bf16 %v376_v23, %v372_v21  ;;  %v421_v30 = vld [vmem:[#allocation2 + $0x1c0] sm:$0xff]  ;;  %v416_v14 = vld [vmem:[#allocation2 + $0x198] sm:$0xff]  ;;  %v7417_v17 = vpack.c.bf16 %v411_v9, %v407_v8  ;;  %s9551_s23 = scalar_lea.vmem %s12494_s4, 16  ;;  %p13444_p7 = scmp.ne.s32.totalorder %s12772_s11, 0 }
  0xc8   : > { %v426_v25 = vld [vmem:[#allocation2 + $0x1e8] sm:$0xff]  ;;  %v425_v32 = vld [vmem:[#allocation2 + $0x1e0] sm:$0xff]  ;;  %7400 = vmatpush1.bf16.msra.mxu1 %v7399_v22  ;;  %v420_v15 = vld [vmem:[#allocation2 + $0x1b8] sm:$0xff]  ;;  %p9552_p4 = scmp.ne.s32.totalorder %s12494_s4, %s9551_s23  ;;  %s9646_s28 = smov [#allocation13]  }
  0xc9   : > { %7442 = vmatprep.subr.bf16.mxu0 %v7441_v18  ;;  %v7401_v27 = vpack.c.bf16 %v426_v25, %v422_v24  ;;  %v381_v28 = vld [vmem:[#allocation2 + $0x88] sm:$0xff]  ;;  %v380_v33 = vld [vmem:[#allocation2 + $0x80] sm:$0xff]  ;;  %v7403_v35 = vpack.c.bf16 %v425_v32, %v421_v30  ;;  %v454_v18 = vrot.slane %v9923_v10, 1  ;;  %v9934_v21 = vld [vmem:[%s9904_s29 + $0x18] sm:$0xff]  ;;  %v7419_v25 = vpack.c.bf16 %v420_v15, %v416_v14  ;;  %s9555_s8 = sshll.u32 %s9646_s28, 4  ;;  %s9556_s8 = int_to_ptr.vmem [resolvable:$false] %s9555_s8 }
  0xca   : > { %v385_v29 = vld [vmem:[#allocation2 + $0xa8] sm:$0xff]  ;;  %v384_v34 = vld [vmem:[#allocation2 + $0xa0] sm:$0xff]  ;;  %7444 = vmatpush1.bf16.msra.mxu0 %v7443_v26  ;;  %v415_v23 = vld [vmem:[#allocation2 + $0x190] sm:$0xff]  ;;  %p9553_p8 = pnand %p9552_p4, %p13444_p7  ;;  %s9557_s14 = scalar_lea.vmem %s9556_s8, 32 }
  0xcb   : > { %v7445_v31 = vpack.c.bf16 %v385_v29, %v381_v28  ;;  %v430_v36 = vld [vmem:[#allocation2 + $0x208] sm:$0xff]  ;;  %7402 = vmatprep.subr.bf16.mxu1 %v7401_v27  ;;  %v7447_v39 = vpack.c.bf16 %v384_v34, %v380_v33  ;;  %v429_v42 = vld [vmem:[#allocation2 + $0x200] sm:$0xff]  ;;  %v419_v24 = vld [vmem:[#allocation2 + $0x1b0] sm:$0xff]  ;;  %v456_v29 = vrot.slane %v9934_v21, 1  ;;  %p9558_p13 = scmp.lt.s32.totalorder %s12494_s4, %s9556_s8  ;;  %p9559_p1 = scmp.lt.s32.totalorder %s9557_s14, %s9551_s23 }
  0xcc   : > { %v434_v37 = vld [vmem:[#allocation2 + $0x228] sm:$0xff]  ;;  %v433_v43 = vld [vmem:[#allocation2 + $0x220] sm:$0xff]  ;;  %7404 = vmatpush1.bf16.msra.mxu1 %v7403_v35  ;;  %v424_v30 = vld [vmem:[#allocation2 + $0x1d8] sm:$0xff]  ;;  %v7421_v33 = vpack.c.bf16 %v419_v24, %v415_v23  ;;  %p9554_p11 = pneg %p9553_p8 }
  0xcd   : > { %v389_v38 = vld [vmem:[#allocation2 + $0xc8] sm:$0xff]  ;;  %v7405_v40 = vpack.c.bf16 %v434_v37, %v430_v36  ;;  %7446 = vmatprep.subr.bf16.mxu0 %v7445_v31  ;;  %v388_v45 = vld [vmem:[#allocation2 + $0xc0] sm:$0xff]  ;;  %v7407_v51 = vpack.c.bf16 %v433_v43, %v429_v42  ;;  %v428_v31 = vld [vmem:[#allocation2 + $0x1f8] sm:$0xff]  ;;  %p9560_p0 = por %p9559_p1, %p9558_p13 }
  0xce   : > { %v393_v41 = vld [vmem:[#allocation2 + $0xe8] sm:$0xff]  ;;  %v392_v46 = vld [vmem:[#allocation2 + $0xe0] sm:$0xff]  ;;  %7448 = vmatpush1.bf16.msra.mxu0 %v7447_v39  ;;  %v423_v37 = vld [vmem:[#allocation2 + $0x1d0] sm:$0xff] }
  0xcf   : > { %v7449_v44 = vpack.c.bf16 %v393_v41, %v389_v38  ;;  %v438_v47 = vld [vmem:[#allocation2 + $0x248] sm:$0xff]  ;;  %v437_v53 = vld [vmem:[#allocation2 + $0x240] sm:$0xff]  ;;  %7406 = vmatprep.subr.bf16.mxu1 %v7405_v40  ;;  %v7451_v55 = vpack.c.bf16 %v392_v46, %v388_v45  ;;  %v427_v38 = vld [vmem:[#allocation2 + $0x1f0] sm:$0xff]  ;;  %v7423_v40 = vpack.c.bf16 %v428_v31, %v424_v30  ;;  %p9561_p6 = pnand %p9560_p0, %p9554_p11 }
  0xd0   : > { %v442_v48 = vld [vmem:[#allocation2 + $0x268] sm:$0x7f]  ;;  %v441_v54 = vld [vmem:[#allocation2 + $0x260] sm:$0x7f]  ;;  %7408 = vmatpush1.bf16.msra.mxu1 %v7407_v51  ;;  %v432_v46 = vld [vmem:[#allocation2 + $0x218] sm:$0xff] }
  0xd1   : > { %v397_v49 = vld [vmem:[#allocation2 + $0x108] sm:$0xff]  ;;  %v7409_v56 = vpack.c.bf16 %v442_v48, %v438_v47  ;;  %v396_v57 = vld [vmem:[#allocation2 + $0x100] sm:$0xff]  ;;  %7450 = vmatprep.subr.bf16.mxu0 %v7449_v44  ;;  %v7412_v3 = vpack.c.bf16 %v441_v54, %v437_v53  ;;  %v9955_v44 = vsel %vm12550_vm0, %v454_v18, %v456_v29  ;;  %v436_v47 = vld [vmem:[#allocation2 + $0x238] sm:$0xff]  ;;  %v1784_v54 = vrot.slane %v9923_v10, 5 }
  0xd2   : > { %v401_v50 = vld [vmem:[#allocation2 + $0x128] sm:$0x7f]  ;;  %v9913_v58 = vld [vmem:[%s9904_s29] sm:$0xff]  ;;  %7452 = vmatpush1.bf16.msra.mxu0 %v7451_v55  ;;  %v1786_v55 = vrot.slane %v9934_v21, 5  ;;  %v7427_v63 = vpack.c.bf16 %v436_v47, %v432_v46  ;;  %v439_v15 = vld [vmem:[#allocation2 + $0x250] sm:$0xff]  ;;  %v930_v47 = vrot.slane %v9923_v10, 2 }
  0xd3   : > { %v9916_v59 = vld [vmem:[%s9904_s29 + $0x8] sm:$0xff]  ;;  %v7453_v60 = vpack.c.bf16 %v401_v50, %v397_v49  ;;  %v400_v61 = vld [vmem:[#allocation2 + $0x120] sm:$0x7f]  ;;  %v451_v4 = vrot.slane %v9913_v58, 1  ;;  %7411 = vmatprep.subr.msk.bf16.mxu1 %vm9908_vm2, %v7409_v56  ;;  %v1781_v43 = vrot.slane %v9913_v58, 5  ;;  %v7425_v49 = vpack.c.bf16 %v427_v38, %v423_v37  ;;  %v367_v23 = vld [vmem:[#allocation2 + $0x18] sm:$0xff] }
  0xd4   : > { %v887_v1 = vld [vmem:[#allocation2 + $0x288] sm:$0xff]  ;;  %v452_v5 = vrot.slane %v9916_v59, 1  ;;  %v7456_v6 = vpack.c.bf16 %v400_v61, %v396_v57  ;;  %v886_v12 = vld [vmem:[#allocation2 + $0x280] sm:$0xff]  ;;  %7414 = vmatpush1.bf16.msk.msra.mxu1 %vm9908_vm2, %v7412_v3  ;;  %v1782_v48 = vrot.slane %v9916_v59, 5  ;;  %v431_v57 = vld [vmem:[#allocation2 + $0x210] sm:$0xff]  ;;  %v928_v30 = vrot.slane %v9916_v59, 2 }
  0xd5   : > { %v891_v2 = vld [vmem:[#allocation2 + $0x2a8] sm:$0xff]  ;;  %7455 = vmatprep.subr.msk.bf16.mxu0 %vm9908_vm2, %v7453_v60  ;;  %v890_v13 = vld [vmem:[#allocation2 + $0x2a0] sm:$0xff]  ;;  %7416 = vmatprep.subr.bf16.mxu1 %v7415_v7  ;;  %v435_v60 = vld [vmem:[#allocation2 + $0x230] sm:$0xff] }
  0xd6   : > { %v7481_v11 = vpack.c.bf16 %v891_v2, %v887_v1  ;;  %v9930_v16 = vsel %vm12550_vm0, %v451_v4, %v452_v5  ;;  %v895_v19 = vld [vmem:[#allocation2 + $0x2c8] sm:$0xff]  ;;  %7458 = vmatpush1.bf16.msk.msra.mxu0 %vm9908_vm2, %v7456_v6  ;;  %v7483_v22 = vpack.c.bf16 %v890_v13, %v886_v12  ;;  %v894_v26 = vld [vmem:[#allocation2 + $0x2c0] sm:$0xff]  ;;  %v9944_v32 = vsel %vm12550_vm0, %v452_v5, %v454_v18  ;;  %v440_v6 = vld [vmem:[#allocation2 + $0x258] sm:$0xff] }
  0xd7   : > { %v899_v20 = vld [vmem:[#allocation2 + $0x2e8] sm:$0xff]  ;;  %v898_v27 = vld [vmem:[#allocation2 + $0x2e0] sm:$0xff]  ;;  %6707 = vmatmul.mubr.msk.f32.vlgmr.msra.gmra.mrb[0].mxu1 %vm460_vm3, %v9930_v16  ;;  %v9967_v61 = vsel %vm12548_vm4, %v1781_v43, %v1782_v48  ;;  %v9972_v3 = vsel %vm12548_vm4, %v1782_v48, %v1784_v54  ;;  %v9975_v4 = vsel %vm12548_vm4, %v1784_v54, %v1786_v55  ;;  %v444_v7 = vld [vmem:[#allocation2 + $0x278] sm:$0x7f] }
  0xd8   : > { %7482 = vmatprep.subr.bf16.mxu0 %v7481_v11  ;;  %v7485_v28 = vpack.c.bf16 %v899_v20, %v895_v19  ;;  %7418 = vmatpush1.bf16.msra.mxu1 %v7417_v17  ;;  %v903_v34 = vld [vmem:[#allocation2 + $0x308] sm:$0xff]  ;;  %v7487_v36 = vpack.c.bf16 %v898_v27, %v894_v26  ;;  %v9948_v39 = vld [vmem:[%s9904_s29 + $0x20] sm:$0xff]  ;;  %v7429_v11 = vpack.c.bf16 %v435_v60, %v431_v57  ;;  %v443_v17 = vld [vmem:[#allocation2 + $0x270] sm:$0x7f] }
  0xd9   : > { %6721 = vmatmul.mubr.msk.f32.vlgmr.msra.gmra.mrb[0].mxu0 %vm460_vm3, %v9913_v58  ;;  %v907_v35 = vld [vmem:[#allocation2 + $0x328] sm:$0xff]  ;;  %553 = vmatprep.mubr.f32.mxu1 %v12560_v0  ;;  %v902_v41 = vld [vmem:[#allocation2 + $0x300] sm:$0xff]  ;;  %v9961_v50 = vrot.slane %v9948_v39, 1  ;;  %v1788_v62 = vrot.slane %v9948_v39, 5  ;;  %v7431_v18 = vpack.c.bf16 %v444_v7, %v440_v6  ;;  %v371_v24 = vld [vmem:[#allocation2 + $0x38] sm:$0xff] }
  0xda   : > { %7484 = vmatpush1.bf16.msra.mxu0 %v7483_v22  ;;  %765 = vmatprep.mubr.f32.mxu0 %v12560_v0  ;;  %v906_v42 = vld [vmem:[#allocation2 + $0x320] sm:$0xff]  ;;  %v7489_v45 = vpack.c.bf16 %v907_v35, %v903_v34  ;;  %v911_v51 = vld [vmem:[#allocation2 + $0x348] sm:$0xff]  ;;  %v366_v31 = vld [vmem:[#allocation2 + $0x10] sm:$0xff]  ;;  %v7459_v34 = vpack.c.bf16 %v371_v24, %v367_v23 }
  0xdb   : > { %7420 = vmatprep.subr.bf16.mxu1 %v7419_v25  ;;  %6708 = vmatmul.mubr.msk.f32.gmra.mrb[2].mxu1 %vm460_vm3, %v9944_v32  ;;  %v915_v53 = vld [vmem:[#allocation2 + $0x368] sm:$0xff]  ;;  %v7491_v56 = vpack.c.bf16 %v906_v42, %v902_v41  ;;  %v910_v1 = vld [vmem:[#allocation2 + $0x340] sm:$0xff]  ;;  %v9982_v8 = vsel %vm12548_vm4, %v1786_v55, %v1788_v62  ;;  %v9988_v9 = vsel %vm12550_vm0, %v456_v29, %v9961_v50  ;;  %v927_v29 = vrot.slane %v9913_v58, 2  ;;  %v375_v38 = vld [vmem:[#allocation2 + $0x58] sm:$0xff] }
  0xdc   : > { %7486 = vmatprep.subr.bf16.mxu0 %v7485_v28  ;;  %7422 = vmatpush1.bf16.msra.mxu1 %v7421_v33  ;;  %v914_v2 = vld [vmem:[#allocation2 + $0x360] sm:$0xff]  ;;  %v7493_v5 = vpack.c.bf16 %v915_v53, %v911_v51  ;;  %v919_v12 = vld [vmem:[#allocation2 + $0x388] sm:$0xff]  ;;  %v7434_v25 = vpack.c.bf16 %v443_v17, %v439_v15  ;;  %v370_v33 = vld [vmem:[#allocation2 + $0x30] sm:$0xff] }
  0xdd   : > { %6722 = vmatmul.mubr.msk.f32.gmra.mrb[2].mxu0 %vm460_vm3, %v9916_v59  ;;  %559 = vmatprep.mubr.f32.mxu1 %v12560_v0  ;;  %v923_v13 = vld [vmem:[#allocation2 + $0x3a8] sm:$0x7f]  ;;  %v7495_v14 = vpack.c.bf16 %v914_v2, %v910_v1  ;;  %v918_v19 = vld [vmem:[#allocation2 + $0x380] sm:$0xff]  ;;  %v7461_v41 = vpack.c.bf16 %v370_v33, %v366_v31  ;;  %v374_v48 = vld [vmem:[#allocation2 + $0x50] sm:$0xff]  ;;  %v10024_v2 = vsel %vm12557_vm5, %v928_v30, %v930_v47 }
  0xde   : > { %7488 = vmatpush1.bf16.msra.mxu0 %v7487_v36  ;;  %771 = vmatprep.mubr.f32.mxu0 %v12560_v0  ;;  %v922_v20 = vld [vmem:[#allocation2 + $0x3a0] sm:$0x7f]  ;;  %v7497_v22 = vpack.c.bf16 %v923_v13, %v919_v12  ;;  %v1170_v26 = vld [vmem:[#allocation2 + $0x3c8] sm:$0xff]  ;;  %v387_v57 = vld [vmem:[#allocation2 + $0xb8] sm:$0xff] }
  0xdf   : > { %7424 = vmatprep.subr.bf16.mxu1 %v7423_v40  ;;  %6709 = vmatmul.mubr.msk.f32.gmra.mrb[4].mxu1 %vm460_vm3, %v9955_v44  ;;  %v1174_v27 = vld [vmem:[#allocation2 + $0x3e8] sm:$0xff]  ;;  %v7500_v28 = vpack.c.bf16 %v922_v20, %v918_v19  ;;  %v1169_v35 = vld [vmem:[#allocation2 + $0x3c0] sm:$0xff]  ;;  %v379_v40 = vld [vmem:[#allocation2 + $0x78] sm:$0xff] }
  0xe0   : > { %7490 = vmatprep.subr.bf16.mxu0 %v7489_v45  ;;  %7426 = vmatpush1.bf16.msra.mxu1 %v7425_v49  ;;  %v1173_v36 = vld [vmem:[#allocation2 + $0x3e0] sm:$0xff]  ;;  %v7525_v37 = vpack.c.bf16 %v1174_v27, %v1170_v26  ;;  %v1178_v42 = vld [vmem:[#allocation2 + $0x408] sm:$0xff]  ;;  %v10014_v45 = vsel %vm12557_vm5, %v927_v29, %v928_v30  ;;  %v378_v49 = vld [vmem:[#allocation2 + $0x70] sm:$0xff]  ;;  %v7463_v51 = vpack.c.bf16 %v379_v40, %v375_v38 }
  0xe1   : > { %6723 = vmatmul.mubr.msk.f32.gmra.mrb[4].mxu0 %vm460_vm3, %v9923_v10  ;;  %565 = vmatprep.mubr.f32.mxu1 %v12560_v0  ;;  %v1182_v43 = vld [vmem:[#allocation2 + $0x428] sm:$0xff]  ;;  %v7527_v46 = vpack.c.bf16 %v1173_v36, %v1169_v35  ;;  %v1177_v53 = vld [vmem:[#allocation2 + $0x400] sm:$0xff]  ;;  %v7465_v60 = vpack.c.bf16 %v378_v49, %v374_v48  ;;  %v382_v6 = vld [vmem:[#allocation2 + $0x90] sm:$0xff] }
  0xe2   : > { %7492 = vmatpush1.bf16.msra.mxu0 %v7491_v56  ;;  %777 = vmatprep.mubr.f32.mxu0 %v12560_v0  ;;  %v1181_v54 = vld [vmem:[#allocation2 + $0x420] sm:$0xff]  ;;  %v7529_v55 = vpack.c.bf16 %v1182_v43, %v1178_v42  ;;  %v383_v56 = vld [vmem:[#allocation2 + $0x98] sm:$0xff]  ;;  %v1190_v1 = vld [vmem:[#allocation2 + $0x468] sm:$0xff] }
  0xe3   : > { %7428 = vmatprep.subr.bf16.mxu1 %v7427_v63  ;;  %6710 = vmatmul.mubr.msk.f32.gmra.mrb[6].mxu1 %vm460_vm3, %v9988_v9  ;;  %v1186_v63 = vld [vmem:[#allocation2 + $0x448] sm:$0xff]  ;;  %v386_v7 = vld [vmem:[#allocation2 + $0xb0] sm:$0xff]  ;;  %v1185_v12 = vld [vmem:[#allocation2 + $0x440] sm:$0xff] }
  0xe4   : > { %7494 = vmatprep.subr.bf16.mxu0 %v7493_v5  ;;  %7430 = vmatpush1.bf16.msra.mxu1 %v7429_v11  ;;  %v7531_v5 = vpack.c.bf16 %v1181_v54, %v1177_v53  ;;  %v7467_v11 = vpack.c.bf16 %v387_v57, %v383_v56  ;;  %v1189_v13 = vld [vmem:[#allocation2 + $0x460] sm:$0xff]  ;;  %v391_v15 = vld [vmem:[#allocation2 + $0xd8] sm:$0xff]  ;;  %v1194_v19 = vld [vmem:[#allocation2 + $0x488] sm:$0xff]  ;;  %v1211_v54 = vrot.slane %v9913_v58, 3 }
  0xe5   : > { %6724 = vmatmul.mubr.msk.f32.gmra.mrb[6].mxu0 %vm460_vm3, %v9934_v21  ;;  %571 = vmatprep.mubr.f32.mxu1 %v12560_v0  ;;  %v395_v17 = vld [vmem:[#allocation2 + $0xf8] sm:$0xff]  ;;  %v1198_v20 = vld [vmem:[#allocation2 + $0x4a8] sm:$0xff]  ;;  %v7535_v23 = vpack.c.bf16 %v1189_v13, %v1185_v12  ;;  %v390_v24 = vld [vmem:[#allocation2 + $0xd0] sm:$0xff]  ;;  %v1214_v13 = vrot.slane %v9923_v10, 3 }
  0xe6   : > { %7496 = vmatpush1.bf16.msra.mxu0 %v7495_v14  ;;  %783 = vmatprep.mubr.f32.mxu0 %v12560_v0  ;;  %v7533_v14 = vpack.c.bf16 %v1190_v1, %v1186_v63  ;;  %v7471_v26 = vpack.c.bf16 %v395_v17, %v391_v15  ;;  %v1193_v27 = vld [vmem:[#allocation2 + $0x480] sm:$0xff]  ;;  %v7537_v29 = vpack.c.bf16 %v1198_v20, %v1194_v19  ;;  %v399_v30 = vld [vmem:[#allocation2 + $0x118] sm:$0xff]  ;;  %v1206_v35 = vld [vmem:[#allocation2 + $0x4e8] sm:$0x7f] }
  0xe7   : > { %7433 = vmatprep.subr.msk.bf16.mxu1 %vm9908_vm2, %v7431_v18  ;;  %6711 = vmatmul.mubr.msk.f32.gmra.mrb[8].mxu1 %vm460_vm3, %v9961_v50  ;;  %v7469_v18 = vpack.c.bf16 %v386_v7, %v382_v6  ;;  %v403_v31 = vld [vmem:[#allocation2 + $0x138] sm:$0x7f]  ;;  %v402_v38 = vld [vmem:[#allocation2 + $0x130] sm:$0x7f]  ;;  %v1205_v42 = vld [vmem:[#allocation2 + $0x4e0] sm:$0x7f] }
  0xe8   : > { %7499 = vmatprep.subr.msk.bf16.mxu0 %vm9908_vm2, %v7497_v22  ;;  %7436 = vmatpush1.bf16.msk.msra.mxu1 %vm9908_vm2, %v7434_v25  ;;  %v394_v25 = vld [vmem:[#allocation2 + $0xf0] sm:$0xff]  ;;  %v7475_v40 = vpack.c.bf16 %v403_v31, %v399_v30  ;;  %v1456_v49 = vld [vmem:[#allocation2 + $0x508] sm:$0xff]  ;;  %v1459_v63 = vld [vmem:[#allocation2 + $0x520] sm:$0xff]  ;;  %v1216_v30 = vrot.slane %v9934_v21, 3 }
  0xe9   : > { %6725 = vmatmul.mubr.msk.f32.gmra.mrb[8].mxu0 %vm460_vm3, %v9948_v39  ;;  %642 = vmatprep.mubr.f32.mxu1 %v12560_v0  ;;  %v7473_v33 = vpack.c.bf16 %v394_v25, %v390_v24  ;;  %v892_v56 = vld [vmem:[#allocation2 + $0x2b0] sm:$0xff]  ;;  %v1464_v7 = vld [vmem:[#allocation2 + $0x548] sm:$0xff]  ;;  %v1467_v19 = vld [vmem:[#allocation2 + $0x560] sm:$0xff] }
  0xea   : > { %7502 = vmatpush1.bf16.msk.msra.mxu0 %vm9908_vm2, %v7500_v28  ;;  %1022 = vmatprep.mubr.f32.mxu0 %v12560_v0  ;;  %v1197_v28 = vld [vmem:[#allocation2 + $0x4a0] sm:$0xff]  ;;  %v900_v15 = vld [vmem:[#allocation2 + $0x2f0] sm:$0xff]  ;;  %v909_v24 = vld [vmem:[#allocation2 + $0x338] sm:$0xff] }
  0xeb   : > { %7460 = vmatprep.subr.bf16.mxu1 %v7459_v34  ;;  %6714 = vmatmul.mubr.msk.f32.vlgmr.msra.gmra.mrb[10].mxu1 %vm460_vm3, %v9930_v16  ;;  %v932_v16 = vrot.slane %v9934_v21, 2  ;;  %v1202_v34 = vld [vmem:[#allocation2 + $0x4c8] sm:$0xff]  ;;  %v904_v31 = vld [vmem:[#allocation2 + $0x310] sm:$0xff] }
  0xec   : > { %7526 = vmatprep.subr.bf16.mxu0 %v7525_v37  ;;  %7462 = vmatpush1.bf16.msra.mxu1 %v7461_v41  ;;  %v7539_v37 = vpack.c.bf16 %v1197_v28, %v1193_v27  ;;  %v1201_v41 = vld [vmem:[#allocation2 + $0x4c0] sm:$0xff]  ;;  %v7541_v43 = vpack.c.bf16 %v1206_v35, %v1202_v34  ;;  %v1476_v27 = vld [vmem:[#allocation2 + $0x5a8] sm:$0xff] }
  0xed   : > { %6735 = vmatmul.mubr.msk.f32.vlgmr.msra.gmra.mrb[0].mxu0 %vm460_vm3, %v10014_v45  ;;  %648 = vmatprep.mubr.f32.mxu1 %v12560_v0  ;;  %v10034_v22 = vsel %vm12557_vm5, %v930_v47, %v932_v16  ;;  %v893_v47 = vld [vmem:[#allocation2 + $0x2b8] sm:$0xff]  ;;  %v7544_v53 = vpack.c.bf16 %v1205_v42, %v1201_v41  ;;  %v1471_v35 = vld [vmem:[#allocation2 + $0x580] sm:$0xff]  ;;  %v1480_v42 = vld [vmem:[#allocation2 + $0x5c8] sm:$0xff] }
  0xee   : > { %7528 = vmatpush1.bf16.msra.mxu0 %v7527_v46  ;;  %1028 = vmatprep.mubr.f32.mxu0 %v12560_v0  ;;  %v889_v46 = vld [vmem:[#allocation2 + $0x298] sm:$0xff] }
  0xef   : > { %7464 = vmatprep.subr.bf16.mxu1 %v7463_v51  ;;  %6715 = vmatmul.mubr.msk.f32.gmra.mrb[12].mxu1 %vm460_vm3, %v9944_v32  ;;  %v10037_v32 = vrot.slane %v9948_v39, 2  ;;  %v1460_v51 = vld [vmem:[#allocation2 + $0x528] sm:$0xff]  ;;  %v7503_v57 = vpack.c.bf16 %v893_v47, %v889_v46  ;;  %v10092_v46 = vsel %vm12549_vm6, %v1214_v13, %v1216_v30 }
  0xf0   : > { %7530 = vmatprep.subr.bf16.mxu0 %v7529_v55  ;;  %7466 = vmatpush1.bf16.msra.mxu1 %v7465_v60  ;;  %v1212_v55 = vrot.slane %v9916_v59, 3  ;;  %v1455_v60 = vld [vmem:[#allocation2 + $0x500] sm:$0xff]  ;;  %v7569_v1 = vpack.c.bf16 %v1460_v51, %v1456_v49  ;;  %v912_v49 = vld [vmem:[#allocation2 + $0x350] sm:$0xff] }
  0xf1   : > { %6736 = vmatmul.mubr.msk.f32.gmra.mrb[2].mxu0 %vm460_vm3, %v10024_v2  ;;  %654 = vmatprep.mubr.f32.mxu1 %v12560_v0  ;;  %v10047_v36 = vsel %vm12557_vm5, %v932_v16, %v10037_v32  ;;  %v901_v16 = vld [vmem:[#allocation2 + $0x2f8] sm:$0xff]  ;;  %v7571_v12 = vpack.c.bf16 %v1459_v63, %v1455_v60  ;;  %v916_v51 = vld [vmem:[#allocation2 + $0x370] sm:$0xff] }
  0xf2   : > { %7532 = vmatpush1.bf16.msra.mxu0 %v7531_v5  ;;  %1034 = vmatprep.mubr.f32.mxu0 %v12560_v0  ;;  %v897_v5 = vld [vmem:[#allocation2 + $0x2d8] sm:$0xff]  ;;  %v10082_v28 = vsel %vm12549_vm6, %v1212_v55, %v1214_v13  ;;  %v7517_v63 = vpack.c.bf16 %v916_v51, %v912_v49  ;;  %v1748_v51 = vld [vmem:[#allocation2 + $0x680] sm:$0xff] }
  0xf3   : > { %7468 = vmatprep.subr.bf16.mxu1 %v7467_v11  ;;  %6716 = vmatmul.mubr.msk.f32.gmra.mrb[14].mxu1 %vm460_vm3, %v9955_v44  ;;  %v398_v44 = vld [vmem:[#allocation2 + $0x110] sm:$0xff]  ;;  %v1468_v11 = vld [vmem:[#allocation2 + $0x568] sm:$0xff]  ;;  %v7507_v17 = vpack.c.bf16 %v901_v16, %v897_v5  ;;  %v925_v60 = vld [vmem:[#allocation2 + $0x3b8] sm:$0x7f] }
  0xf4   : > { %7534 = vmatprep.subr.bf16.mxu0 %v7533_v14  ;;  %7470 = vmatpush1.bf16.msra.mxu1 %v7469_v18  ;;  %v7478_v48 = vpack.c.bf16 %v402_v38, %v398_v44  ;;  %v896_v14 = vld [vmem:[#allocation2 + $0x2d0] sm:$0xff]  ;;  %v1463_v18 = vld [vmem:[#allocation2 + $0x540] sm:$0xff]  ;;  %v7573_v20 = vpack.c.bf16 %v1468_v11, %v1464_v7  ;;  %v913_v38 = vld [vmem:[#allocation2 + $0x358] sm:$0xff] }
  0xf5   : > { %6737 = vmatmul.mubr.msk.f32.gmra.mrb[4].mxu0 %vm460_vm3, %v10034_v22  ;;  %660 = vmatprep.mubr.f32.mxu1 %v12560_v0  ;;  %v7509_v25 = vpack.c.bf16 %v900_v15, %v896_v14  ;;  %v1492_v5 = vld [vmem:[#allocation2 + $0x628] sm:$0x7f]  ;;  %v920_v11 = vld [vmem:[#allocation2 + $0x390] sm:$0xff]  ;;  %v1487_v14 = vld [vmem:[#allocation2 + $0x600] sm:$0xff] }
  0xf6   : > { %7536 = vmatpush1.bf16.msra.mxu0 %v7535_v23  ;;  %1040 = vmatprep.mubr.f32.mxu0 %v12560_v0  ;;  %v905_v23 = vld [vmem:[#allocation2 + $0x318] sm:$0xff]  ;;  %v1491_v15 = vld [vmem:[#allocation2 + $0x620] sm:$0x7f] }
  0xf7   : > { %7472 = vmatprep.subr.bf16.mxu1 %v7471_v26  ;;  %6717 = vmatmul.mubr.msk.f32.gmra.mrb[16].mxu1 %vm460_vm3, %v9988_v9  ;;  %v888_v9 = vld [vmem:[#allocation2 + $0x290] sm:$0xff]  ;;  %v1472_v26 = vld [vmem:[#allocation2 + $0x588] sm:$0xff]  ;;  %v7511_v34 = vpack.c.bf16 %v909_v24, %v905_v23 }
  0xf8   : > { %7538 = vmatprep.subr.bf16.mxu0 %v7537_v29  ;;  %7474 = vmatpush1.bf16.msra.mxu1 %v7473_v33  ;;  %v7505_v6 = vpack.c.bf16 %v892_v56, %v888_v9  ;;  %v7575_v29 = vpack.c.bf16 %v1467_v19, %v1463_v18  ;;  %v908_v33 = vld [vmem:[#allocation2 + $0x330] sm:$0xff]  ;;  %v7577_v44 = vpack.c.bf16 %v1476_v27, %v1472_v26  ;;  %v10097_v9 = vld [vmem:[%s9904_s29 + $0x28] sm:$0x7]  ;;  %v1172_v18 = vld [vmem:[#allocation2 + $0x3d8] sm:$0xff]  ;;  %v1496_v27 = vrot.slane %v9913_v58, 4 }
  0xf9   : > { %6738 = vmatmul.mubr.msk.f32.gmra.mrb[6].mxu0 %vm460_vm3, %v10047_v36  ;;  %666 = vmatprep.mubr.f32.mxu1 %v12560_v0  ;;  %v7513_v41 = vpack.c.bf16 %v908_v33, %v904_v31  ;;  %v1220_v7 = vrot.slane %v10097_v9, 3  ;;  %v1176_v19 = vld [vmem:[#allocation2 + $0x3f8] sm:$0xff]  ;;  %v1741_v23 = vld [vmem:[#allocation2 + $0x648] sm:$0xff]  ;;  %v7588_v26 = vpack.c.bf16 %v1491_v15, %v1487_v14  ;;  %v1175_v31 = vld [vmem:[#allocation2 + $0x3f0] sm:$0xff] }
  0xfa   : > { %7540 = vmatpush1.bf16.msra.mxu0 %v7539_v37  ;;  %1046 = vmatprep.mubr.f32.mxu0 %v12560_v0  ;;  %v1475_v37 = vld [vmem:[#allocation2 + $0x5a0] sm:$0xff]  ;;  %v1745_v24 = vld [vmem:[#allocation2 + $0x668] sm:$0xff]  ;;  %v7547_v33 = vpack.c.bf16 %v1176_v19, %v1172_v18  ;;  %v1196_v14 = vld [vmem:[#allocation2 + $0x498] sm:$0xff] }
  0xfb   : > { %7477 = vmatprep.subr.msk.bf16.mxu1 %vm9908_vm2, %v7475_v40  ;;  %6718 = vmatmul.mubr.msk.f32.gmra.mrb[18].mxu1 %vm460_vm3, %v9961_v50  ;;  %v10072_v50 = vsel %vm12549_vm6, %v1211_v54, %v1212_v55  ;;  %v917_v40 = vld [vmem:[#allocation2 + $0x378] sm:$0xff]  ;;  %v7579_v47 = vpack.c.bf16 %v1475_v37, %v1471_v35  ;;  %v1479_v54 = vld [vmem:[#allocation2 + $0x5c0] sm:$0xff]  ;;  %v1769_v18 = vld [vmem:[#allocation2 + $0x728] sm:$0xff] }
  0xfc   : > { %7543 = vmatprep.subr.msk.bf16.mxu0 %vm9908_vm2, %v7541_v43  ;;  %7480 = vmatpush1.bf16.msk.msra.mxu1 %vm9908_vm2, %v7478_v48  ;;  %v1484_v43 = vld [vmem:[#allocation2 + $0x5e8] sm:$0xff]  ;;  %v1218_v48 = vrot.slane %v9948_v39, 3  ;;  %v1483_v55 = vld [vmem:[#allocation2 + $0x5e0] sm:$0xff]  ;;  %v1180_v37 = vld [vmem:[#allocation2 + $0x418] sm:$0xff] }
  0xfd   : > { %6739 = vmatmul.mubr.msk.f32.gmra.mrb[8].mxu0 %vm460_vm3, %v10037_v32  ;;  %854 = vmatprep.mubr.f32.mxu1 %v12560_v0  ;;  %v7581_v56 = vpack.c.bf16 %v1484_v43, %v1480_v42  ;;  %v1744_v35 = vld [vmem:[#allocation2 + $0x660] sm:$0xff]  ;;  %v1499_v43 = vrot.slane %v9923_v10, 4  ;;  %v1200_v15 = vld [vmem:[#allocation2 + $0x4b8] sm:$0xff] }
  0xfe   : > { %7546 = vmatpush1.bf16.msk.msra.mxu0 %vm9908_vm2, %v7544_v53  ;;  %1308 = vmatprep.mubr.f32.mxu0 %v12560_v0  ;;  %v7515_v53 = vpack.c.bf16 %v917_v40, %v913_v38  ;;  %v10105_v16 = vsel %vm12549_vm6, %v1216_v30, %v1218_v48  ;;  %v1171_v30 = vld [vmem:[#allocation2 + $0x3d0] sm:$0xff]  ;;  %v1749_v38 = vld [vmem:[#allocation2 + $0x688] sm:$0xff] }
  0xff   : > { %7504 = vmatprep.subr.bf16.mxu1 %v7503_v57  ;;  %6728 = vmatmul.mubr.msk.f32.vlgmr.msra.gmra.mrb[10].mxu1 %vm460_vm3, %v9913_v58  ;;  %v921_v57 = vld [vmem:[#allocation2 + $0x398] sm:$0xff]  ;;  %v7613_v58 = vpack.c.bf16 %v1745_v24, %v1741_v23  ;;  %v1753_v40 = vld [vmem:[#allocation2 + $0x6a8] sm:$0xff]  ;;  %v1195_v23 = vld [vmem:[#allocation2 + $0x490] sm:$0xff] }
 0x100   : > { %7570 = vmatprep.subr.bf16.mxu0 %v7569_v1  ;;  %7506 = vmatpush1.bf16.msra.mxu1 %v7505_v6  ;;  %v1488_v1 = vld [vmem:[#allocation2 + $0x608] sm:$0xff]  ;;  %v7583_v6 = vpack.c.bf16 %v1483_v55, %v1479_v54  ;;  %v7519_v13 = vpack.c.bf16 %v925_v60, %v921_v57  ;;  %v7617_v54 = vpack.c.bf16 %v1753_v40, %v1749_v38  ;;  %v1188_v55 = vld [vmem:[#allocation2 + $0x458] sm:$0xff]  ;;  %v1199_v24 = vld [vmem:[#allocation2 + $0x4b0] sm:$0xff] }
 0x101   : > { %6749 = vmatmul.mubr.msk.f32.vlgmr.msra.gmra.mrb[0].mxu0 %vm460_vm3, %v10072_v50  ;;  %860 = vmatprep.mubr.f32.mxu1 %v12560_v0  ;;  %v1757_v57 = vld [vmem:[#allocation2 + $0x6c8] sm:$0xff]  ;;  %v1207_v38 = vld [vmem:[#allocation2 + $0x4f0] sm:$0x7f] }
 0x102   : > { %7572 = vmatpush1.bf16.msra.mxu0 %v7571_v12  ;;  %1314 = vmatprep.mubr.f32.mxu0 %v12560_v0  ;;  %v924_v12 = vld [vmem:[#allocation2 + $0x3b0] sm:$0x7f]  ;;  %v1761_v60 = vld [vmem:[#allocation2 + $0x6e8] sm:$0xff] }
 0x103   : > { %7508 = vmatprep.subr.bf16.mxu1 %v7507_v17  ;;  %6729 = vmatmul.mubr.msk.f32.gmra.mrb[12].mxu1 %vm460_vm3, %v9916_v59  ;;  %v7585_v17 = vpack.c.bf16 %v1492_v5, %v1488_v1  ;;  %v1187_v5 = vld [vmem:[#allocation2 + $0x450] sm:$0xff] }
 0x104   : > { %7574 = vmatprep.subr.bf16.mxu0 %v7573_v20  ;;  %7510 = vmatpush1.bf16.msra.mxu1 %v7509_v25  ;;  %v7522_v20 = vpack.c.bf16 %v924_v12, %v920_v11  ;;  %v10115_v25 = vsel %vm12549_vm6, %v1218_v48, %v1220_v7  ;;  %v1183_v48 = vld [vmem:[#allocation2 + $0x430] sm:$0xff]  ;;  %v1756_v11 = vld [vmem:[#allocation2 + $0x6c0] sm:$0xff] }
 0x105   : > { %6750 = vmatmul.mubr.msk.f32.gmra.mrb[2].mxu0 %vm460_vm3, %v10082_v28  ;;  %866 = vmatprep.mubr.f32.mxu1 %v12560_v0  ;;  %v1760_v12 = vld [vmem:[#allocation2 + $0x6e0] sm:$0xff] }
 0x106   : > { %7576 = vmatpush1.bf16.msra.mxu0 %v7575_v29  ;;  %1320 = vmatprep.mubr.f32.mxu0 %v12560_v0  ;;  %v1497_v29 = vrot.slane %v9916_v59, 4  ;;  %v1184_v59 = vld [vmem:[#allocation2 + $0x438] sm:$0xff] }
 0x107   : > { %7512 = vmatprep.subr.bf16.mxu1 %v7511_v34  ;;  %6730 = vmatmul.mubr.msk.f32.gmra.mrb[14].mxu1 %vm460_vm3, %v9923_v10  ;;  %v1740_v34 = vld [vmem:[#allocation2 + $0x640] sm:$0xff]  ;;  %v7551_v49 = vpack.c.bf16 %v1184_v59, %v1180_v37 }
 0x108   : > { %7578 = vmatprep.subr.bf16.mxu0 %v7577_v44  ;;  %7514 = vmatpush1.bf16.msra.mxu1 %v7513_v41  ;;  %v7549_v44 = vpack.c.bf16 %v1175_v31, %v1171_v30  ;;  %v10134_v41 = vsel %vm12552_vm7, %v1496_v27, %v1497_v29  ;;  %v7615_v42 = vpack.c.bf16 %v1744_v35, %v1740_v34  ;;  %v1764_v27 = vld [vmem:[#allocation2 + $0x700] sm:$0xff]  ;;  %v1204_v31 = vld [vmem:[#allocation2 + $0x4d8] sm:$0xff]  ;;  %v1773_v35 = vld [vmem:[#allocation2 + $0x748] sm:$0xff] }
 0x109   : > { %6751 = vmatmul.mubr.msk.f32.gmra.mrb[4].mxu0 %vm460_vm3, %v10092_v46  ;;  %872 = vmatprep.mubr.f32.mxu1 %v12560_v0  ;;  %v7561_v34 = vpack.c.bf16 %v1199_v24, %v1195_v23  ;;  %v1790_v23 = vrot.slane %v10097_v9, 5  ;;  %v1489_v24 = vld [vmem:[#allocation2 + $0x610] sm:$0xff] }
 0x10a   : > { %7580 = vmatpush1.bf16.msra.mxu0 %v7579_v47  ;;  %1326 = vmatprep.mubr.f32.mxu0 %v12560_v0  ;;  %v1179_v47 = vld [vmem:[#allocation2 + $0x410] sm:$0xff] }
 0x10b   : > { %7516 = vmatprep.subr.bf16.mxu1 %v7515_v53  ;;  %6731 = vmatmul.mubr.msk.f32.gmra.mrb[16].mxu1 %vm460_vm3, %v9934_v21  ;;  %v1752_v53 = vld [vmem:[#allocation2 + $0x6a0] sm:$0xff]  ;;  %v7553_v10 = vpack.c.bf16 %v1183_v48, %v1179_v47  ;;  %v1458_v48 = vld [vmem:[#allocation2 + $0x518] sm:$0xff] }
 0x10c   : > { %7582 = vmatprep.subr.bf16.mxu0 %v7581_v56  ;;  %7518 = vmatpush1.bf16.msra.mxu1 %v7517_v63  ;;  %v1192_v56 = vld [vmem:[#allocation2 + $0x478] sm:$0xff]  ;;  %v10144_v63 = vsel %vm12552_vm7, %v1497_v29, %v1499_v43  ;;  %v7619_v1 = vpack.c.bf16 %v1752_v53, %v1748_v51  ;;  %v1768_v29 = vld [vmem:[#allocation2 + $0x720] sm:$0xff] }
 0x10d   : > { %6752 = vmatmul.mubr.msk.f32.gmra.mrb[6].mxu0 %vm460_vm3, %v10105_v16  ;;  %878 = vmatprep.mubr.f32.mxu1 %v12560_v0  ;;  %v7555_v7 = vpack.c.bf16 %v1192_v56, %v1188_v55  ;;  %v7627_v59 = vpack.c.bf16 %v1768_v29, %v1764_v27  ;;  %v1457_v55 = vld [vmem:[#allocation2 + $0x510] sm:$0xff]  ;;  %v1743_v29 = vld [vmem:[#allocation2 + $0x658] sm:$0xff] }
 0x10e   : > { %7584 = vmatpush1.bf16.msra.mxu0 %v7583_v6  ;;  %1332 = vmatprep.mubr.f32.mxu0 %v12560_v0  ;;  %v1191_v6 = vld [vmem:[#allocation2 + $0x470] sm:$0xff] }
 0x10f   : > { %7521 = vmatprep.subr.msk.bf16.mxu1 %vm9908_vm2, %v7519_v13  ;;  %6732 = vmatmul.mubr.msk.f32.gmra.mrb[18].mxu1 %vm460_vm3, %v9948_v39  ;;  %v7621_v13 = vpack.c.bf16 %v1761_v60, %v1757_v57  ;;  %v1461_v56 = vld [vmem:[#allocation2 + $0x530] sm:$0xff]  ;;  %v1470_v57 = vld [vmem:[#allocation2 + $0x578] sm:$0xff] }
 0x110   : > { %7587 = vmatprep.subr.msk.bf16.mxu0 %vm9908_vm2, %v7585_v17  ;;  %7524 = vmatpush1.bf16.msk.msra.mxu1 %vm9908_vm2, %v7522_v20  ;;  %v1765_v17 = vld [vmem:[#allocation2 + $0x708] sm:$0xff]  ;;  %v7623_v20 = vpack.c.bf16 %v1760_v12, %v1756_v11  ;;  %v7593_v60 = vpack.c.bf16 %v1461_v56, %v1457_v55  ;;  %v1473_v11 = vld [vmem:[#allocation2 + $0x590] sm:$0xff]  ;;  %v1779_v55 = vld [vmem:[#allocation2 + $0x778] sm:$0x7f] }
 0x111   : > { %6753 = vmatmul.mubr.msk.f32.gmra.mrb[8].mxu0 %vm460_vm3, %v10115_v25  ;;  %1117 = vmatprep.mubr.f32.mxu1 %v12560_v0  ;;  %v7625_v30 = vpack.c.bf16 %v1769_v18, %v1765_v17  ;;  %v1477_v12 = vld [vmem:[#allocation2 + $0x5b0] sm:$0xff] }
 0x112   : > { %7590 = vmatpush1.bf16.msk.msra.mxu0 %vm9908_vm2, %v7588_v26  ;;  %1593 = vmatprep.mubr.f32.mxu0 %v12560_v0  ;;  %v7559_v26 = vpack.c.bf16 %v1200_v15, %v1196_v14  ;;  %v1482_v14 = vld [vmem:[#allocation2 + $0x5d8] sm:$0xff]  ;;  %v7601_v15 = vpack.c.bf16 %v1477_v12, %v1473_v11  ;;  %v1485_v17 = vld [vmem:[#allocation2 + $0x5f0] sm:$0xff] }
 0x113   : > { %7548 = vmatprep.subr.bf16.mxu1 %v7547_v33  ;;  %6742 = vmatmul.mubr.msk.f32.vlgmr.msra.gmra.mrb[10].mxu1 %vm460_vm3, %v10014_v45  ;;  %v1501_v45 = vrot.slane %v9934_v21, 4  ;;  %v7557_v21 = vpack.c.bf16 %v1191_v6, %v1187_v5  ;;  %v1208_v33 = vld [vmem:[#allocation2 + $0x4f8] sm:$0x7f] }
 0x114   : > { %7614 = vmatprep.subr.bf16.mxu0 %v7613_v58  ;;  %7550 = vmatpush1.bf16.msra.mxu1 %v7549_v44  ;;  %v1777_v58 = vld [vmem:[#allocation2 + $0x768] sm:$0x7f]  ;;  %v1203_v44 = vld [vmem:[#allocation2 + $0x4d0] sm:$0xff]  ;;  %v7563_v40 = vpack.c.bf16 %v1208_v33, %v1204_v31  ;;  %v1474_v5 = vld [vmem:[#allocation2 + $0x598] sm:$0xff] }
 0x115   : > { %6763 = vmatmul.mubr.msk.f32.vlgmr.msra.gmra.mrb[0].mxu0 %vm460_vm3, %v10134_v41  ;;  %1123 = vmatprep.mubr.f32.mxu1 %v12560_v0  ;;  %v10154_v19 = vsel %vm12552_vm7, %v1499_v43, %v1501_v45  ;;  %v1776_v43 = vld [vmem:[#allocation2 + $0x760] sm:$0x7f]  ;;  %v7629_v47 = vpack.c.bf16 %v1777_v58, %v1773_v35  ;;  %v7566_v51 = vpack.c.bf16 %v1207_v38, %v1203_v44  ;;  %v1478_v6 = vld [vmem:[#allocation2 + $0x5b8] sm:$0xff]  ;;  %v1742_v33 = vld [vmem:[#allocation2 + $0x650] sm:$0xff] }
 0x116   : > { %7616 = vmatpush1.bf16.msra.mxu0 %v7615_v42  ;;  %1599 = vmatprep.mubr.f32.mxu0 %v12560_v0  ;;  %v1772_v42 = vld [vmem:[#allocation2 + $0x740] sm:$0xff]  ;;  %v1755_v35 = vld [vmem:[#allocation2 + $0x6b8] sm:$0xff]  ;;  %v1750_v58 = vld [vmem:[#allocation2 + $0x690] sm:$0xff] }
 0x117   : > { %7552 = vmatprep.subr.bf16.mxu1 %v7551_v49  ;;  %6743 = vmatmul.mubr.msk.f32.gmra.mrb[12].mxu1 %vm460_vm3, %v10024_v2  ;;  %v1503_v2 = vrot.slane %v9948_v39, 4  ;;  %v1462_v49 = vld [vmem:[#allocation2 + $0x538] sm:$0xff] }
 0x118   : > { %7618 = vmatprep.subr.bf16.mxu0 %v7617_v54  ;;  %7554 = vmatpush1.bf16.msra.mxu1 %v7553_v10  ;;  %v7632_v54 = vpack.c.bf16 %v1776_v43, %v1772_v42  ;;  %v1466_v10 = vld [vmem:[#allocation2 + $0x558] sm:$0xff]  ;;  %v1762_v42 = vld [vmem:[#allocation2 + $0x6f0] sm:$0xff] }
 0x119   : > { %6764 = vmatmul.mubr.msk.f32.gmra.mrb[2].mxu0 %vm460_vm3, %v10144_v63  ;;  %1129 = vmatprep.mubr.f32.mxu1 %v12560_v0  ;;  %v10164_v37 = vsel %vm12552_vm7, %v1501_v45, %v1503_v2  ;;  %v1469_v45 = vld [vmem:[#allocation2 + $0x570] sm:$0xff]  ;;  %v1763_v44 = vld [vmem:[#allocation2 + $0x6f8] sm:$0xff] }
 0x11a   : > { %7620 = vmatpush1.bf16.msra.mxu0 %v7619_v1  ;;  %1605 = vmatprep.mubr.f32.mxu0 %v12560_v0  ;;  %v1465_v1 = vld [vmem:[#allocation2 + $0x550] sm:$0xff]  ;;  %v1767_v43 = vld [vmem:[#allocation2 + $0x718] sm:$0xff] }
 0x11b   : > { %7556 = vmatprep.subr.bf16.mxu1 %v7555_v7  ;;  %6744 = vmatmul.mubr.msk.f32.gmra.mrb[14].mxu1 %vm460_vm3, %v10034_v22  ;;  %v1505_v22 = vrot.slane %v10097_v9, 4  ;;  %v7597_v7 = vpack.c.bf16 %v1469_v45, %v1465_v1  ;;  %v10219_v9 = vsel %vm12548_vm4, %v1788_v62, %v1790_v23 }
 0x11c   : > { %7622 = vmatprep.subr.bf16.mxu0 %v7621_v13  ;;  %7558 = vmatpush1.bf16.msra.mxu1 %v7557_v21  ;;  %v7599_v13 = vpack.c.bf16 %v1478_v6, %v1474_v5  ;;  %v1481_v21 = vld [vmem:[#allocation2 + $0x5d0] sm:$0xff] }
 0x11d   : > { %6765 = vmatmul.mubr.msk.f32.gmra.mrb[4].mxu0 %vm460_vm3, %v10154_v19  ;;  %1135 = vmatprep.mubr.f32.mxu1 %v12560_v0  ;;  %v10174_v53 = vsel %vm12552_vm7, %v1503_v2, %v1505_v22  ;;  %v7605_v2 = vpack.c.bf16 %v1485_v17, %v1481_v21  ;;  %v1759_v22 = vld [vmem:[#allocation2 + $0x6d8] sm:$0xff] }
 0x11e   : > { %7624 = vmatpush1.bf16.msra.mxu0 %v7623_v20  ;;  %1611 = vmatprep.mubr.f32.mxu0 %v12560_v0  ;;  %v1490_v20 = vld [vmem:[#allocation2 + $0x618] sm:$0xff]  ;;  %v7643_v38 = vpack.c.bf16 %v1763_v44, %v1759_v22 }
 0x11f   : > { %7560 = vmatprep.subr.bf16.mxu1 %v7559_v26  ;;  %6745 = vmatmul.mubr.msk.f32.gmra.mrb[16].mxu1 %vm460_vm3, %v10047_v36  ;;  %v7591_v36 = vpack.c.bf16 %v1462_v49, %v1458_v48  ;;  %v1493_v26 = vld [vmem:[#allocation2 + $0x630] sm:$0x7f] }
 0x120   : > { %7626 = vmatprep.subr.bf16.mxu0 %v7625_v30  ;;  %7562 = vmatpush1.bf16.msra.mxu1 %v7561_v34  ;;  %v1747_v30 = vld [vmem:[#allocation2 + $0x678] sm:$0xff]  ;;  %v1746_v34 = vld [vmem:[#allocation2 + $0x670] sm:$0xff] }
 0x121   : > { %6766 = vmatmul.mubr.msk.f32.gmra.mrb[6].mxu0 %vm460_vm3, %v10164_v37  ;;  %1141 = vmatprep.mubr.f32.mxu1 %v12560_v0  ;;  %v7635_v31 = vpack.c.bf16 %v1747_v30, %v1743_v29  ;;  %v7637_v39 = vpack.c.bf16 %v1746_v34, %v1742_v33 }
 0x122   : > { %7628 = vmatpush1.bf16.msra.mxu0 %v7627_v59  ;;  %1617 = vmatprep.mubr.f32.mxu0 %v12560_v0  ;;  %v1754_v59 = vld [vmem:[#allocation2 + $0x6b0] sm:$0xff] }
 0x123   : > { %7565 = vmatprep.subr.msk.bf16.mxu1 %vm9908_vm2, %v7563_v40  ;;  %6746 = vmatmul.mubr.msk.f32.gmra.mrb[18].mxu1 %vm460_vm3, %v10037_v32  ;;  %v7595_v32 = vpack.c.bf16 %v1470_v57, %v1466_v10  ;;  %v1758_v40 = vld [vmem:[#allocation2 + $0x6d0] sm:$0xff] }
 0x124   : > { %7631 = vmatprep.subr.msk.bf16.mxu0 %vm9908_vm2, %v7629_v47  ;;  %7568 = vmatpush1.bf16.msk.msra.mxu1 %vm9908_vm2, %v7566_v51  ;;  %v1771_v47 = vld [vmem:[#allocation2 + $0x738] sm:$0xff]  ;;  %v7645_v48 = vpack.c.bf16 %v1762_v42, %v1758_v40  ;;  %v1770_v51 = vld [vmem:[#allocation2 + $0x730] sm:$0xff] }
 0x125   : > { %6767 = vmatmul.mubr.msk.f32.gmra.mrb[8].mxu0 %vm460_vm3, %v10174_v53  ;;  %1403 = vmatprep.mubr.f32.mxu1 %v12560_v0  ;;  %v7647_v49 = vpack.c.bf16 %v1771_v47, %v1767_v43  ;;  %v1778_v10 = vld [vmem:[#allocation2 + $0x770] sm:$0x7f] }
 0x126   : > { %7634 = vmatpush1.bf16.msk.msra.mxu0 %vm9908_vm2, %v7632_v54  ;;  %1878 = vmatprep.mubr.f32.mxu0 %v12560_v0  ;;  %v1775_v54 = vld [vmem:[#allocation2 + $0x758] sm:$0xff] }
 0x127   : > { %7592 = vmatprep.subr.bf16.mxu1 %v7591_v36  ;;  %6756 = vmatmul.mubr.msk.f32.vlgmr.msra.gmra.mrb[10].mxu1 %vm460_vm3, %v10072_v50  ;;  %v1486_v50 = vld [vmem:[#allocation2 + $0x5f8] sm:$0xff]  ;;  %v7651_v36 = vpack.c.bf16 %v1779_v55, %v1775_v54 }
 0x128   : > { %7594 = vmatpush1.bf16.msra.mxu1 %v7593_v60  ;;  %1409 = vmatprep.mubr.f32.mxu1 %v12560_v0  ;;  %v7603_v18 = vpack.c.bf16 %v1486_v50, %v1482_v14 }
 0x129   : > { %6777 = vmatmul.mubr.msk.f32.vlgmr.msra.gmra.mrb[0].mxu0 %vm460_vm3, %v9967_v61  ;;  %7596 = vmatprep.subr.bf16.mxu1 %v7595_v32  ;;  %v2026_v32 = vlaneseq }
 0x12a   : > { %1884 = vmatprep.mubr.f32.mxu0 %v12560_v0 }
 0x12b   : > { %6757 = vmatmul.mubr.msk.f32.gmra.mrb[12].mxu1 %vm460_vm3, %v10082_v28  ;;  %v1494_v28 = vld [vmem:[#allocation2 + $0x638] sm:$0x7f]  ;;  %v10265_v5 = vshrl.u32 %v2026_v32, 7 }
 0x12c   : > { %7598 = vmatpush1.bf16.msra.mxu1 %v7597_v7  ;;  %1415 = vmatprep.mubr.f32.mxu1 %v12560_v0  ;;  %v7607_v27 = vpack.c.bf16 %v1494_v28, %v1490_v20  ;;  %v10268_v7 = vld [vmem:[#allocation5] sm:$0xf] }
 0x12d   : > { %6778 = vmatmul.mubr.msk.f32.gmra.mrb[2].mxu0 %vm460_vm3, %v9972_v3  ;;  %7600 = vmatprep.subr.bf16.mxu1 %v7599_v13  ;;  %v12555_v11 = vsub.s32 1, %v10265_v5  ;;  %v2072_v33 = vmul.u32 2, %v10265_v5  ;;  %v2069_v42 = vadd.s32 16, %v10265_v5 }
 0x12e   : > { %1890 = vmatprep.mubr.f32.mxu0 %v12560_v0 }
 0x12f   : > { %6758 = vmatmul.mubr.msk.f32.gmra.mrb[14].mxu1 %vm460_vm3, %v10092_v46  ;;  %v7610_v46 = vpack.c.bf16 %v1493_v26, %v1489_v24 }
 0x130   : > { %7602 = vmatpush1.bf16.msra.mxu1 %v7601_v15  ;;  %1421 = vmatprep.mubr.f32.mxu1 %v12560_v0  ;;  %v2033_v15 = vrot.slane %v10268_v7, %v12555_v11 }
 0x131   : > { %6779 = vmatmul.mubr.msk.f32.gmra.mrb[4].mxu0 %vm460_vm3, %v9975_v4  ;;  %7604 = vmatprep.subr.bf16.mxu1 %v7603_v18 }
 0x132   : > { %1896 = vmatprep.mubr.f32.mxu0 %v12560_v0 }
 0x133   : > { %6759 = vmatmul.mubr.msk.f32.gmra.mrb[16].mxu1 %vm460_vm3, %v10105_v16  ;;  %v1751_v16 = vld [vmem:[#allocation2 + $0x698] sm:$0xff] }
 0x134   : > { %7606 = vmatpush1.bf16.msra.mxu1 %v7605_v2  ;;  %1427 = vmatprep.mubr.f32.mxu1 %v12560_v0  ;;  %v7639_v62 = vpack.c.bf16 %v1755_v35, %v1751_v16  ;;  %v2068_v16 = vadd.s32 8, %v10265_v5 }
 0x135   : > { %6780 = vmatmul.mubr.msk.f32.gmra.mrb[6].mxu0 %vm460_vm3, %v9982_v8  ;;  %7609 = vmatprep.subr.msk.bf16.mxu1 %vm9908_vm2, %v7607_v27 }
 0x136   : > { %1902 = vmatprep.mubr.f32.mxu0 %v12560_v0  ;;  %v2073_v40 = vmul.u32 2, %v2068_v16 }
 0x137   : > { %6760 = vmatmul.mubr.msk.f32.gmra.mrb[18].mxu1 %vm460_vm3, %v10115_v25  ;;  %v7641_v25 = vpack.c.bf16 %v1754_v59, %v1750_v58 }
 0x138   : > { %7612 = vmatpush1.bf16.msk.msra.mxu1 %vm9908_vm2, %v7610_v46  ;;  %1688 = vmatprep.mubr.f32.mxu1 %v12560_v0 }
 0x139   : > { %6781 = vmatmul.mubr.msk.f32.gmra.mrb[8].mxu0 %vm460_vm3, %v10219_v9  ;;  %7636 = vmatprep.subr.bf16.mxu1 %v7635_v31  ;;  %v2071_v31 = vand.u32 127, %v2026_v32  ;;  %v2092_v32 = vadd.s32 40, %v10265_v5 }
 0x13a   : > { %2792 = vmatprep.mubr.f32.mxu0 %v12560_v0 }
 0x13b   : > { %6770 = vmatmul.mubr.msk.f32.vlgmr.msra.gmra.mrb[10].mxu1 %vm460_vm3, %v10134_v41  ;;  %v1766_v41 = vld [vmem:[#allocation2 + $0x710] sm:$0xff]  ;;  %v10279_v22 = vsub.s32 %v2071_v31, %v2072_v33  ;;  %v10283_v55 = vsub.s32 %v2071_v31, %v2073_v40 }
 0x13c   : > { %7638 = vmatpush1.bf16.msra.mxu1 %v7637_v39  ;;  %1694 = vmatprep.mubr.f32.mxu1 %v12560_v0  ;;  %v7649_v56 = vpack.c.bf16 %v1770_v51, %v1766_v41  ;;  %v2143_v51 = vadd.s32 128, %v2071_v31 }
 0x13d   : > { %7640 = vmatprep.subr.bf16.mxu1 %v7639_v62  ;;  %vm2078_vm8 = vcmp.eq.s32.totalorder %v10279_v22, 0  ;;  %vm2079_vm10 = vcmp.eq.s32.totalorder %v10283_v55, 0  ;;  %vm2084_vm14 = vcmp.eq.s32.totalorder %v10279_v22, 1  ;;  %v12802_v22 = vmov 0 }
 0x13f   : > { %6771 = vmatmul.mubr.msk.f32.gmra.mrb[12].mxu1 %vm460_vm3, %v10144_v63  ;;  %v1774_v63 = vld [vmem:[#allocation2 + $0x750] sm:$0xff] }
 0x140   : > { %7642 = vmatpush1.bf16.msra.mxu1 %v7641_v25  ;;  %1700 = vmatprep.mubr.f32.mxu1 %v12560_v0  ;;  %v7654_v57 = vpack.c.bf16 %v1778_v10, %v1774_v63  ;;  %v10289_v10 = vsel %vm2078_vm8, 1.0, %v12560_v0 }
 0x141   : > { %7644 = vmatprep.subr.bf16.mxu1 %v7643_v38 }
 0x143   : > { %6772 = vmatmul.mubr.msk.f32.gmra.mrb[14].mxu1 %vm460_vm3, %v10154_v19 }
 0x144   : > { %7646 = vmatpush1.bf16.msra.mxu1 %v7645_v48  ;;  %1706 = vmatprep.mubr.f32.mxu1 %v12560_v0 }
 0x145   : > { %7648 = vmatprep.subr.bf16.mxu1 %v7647_v49 }
 0x147   : > { %6773 = vmatmul.mubr.msk.f32.gmra.mrb[16].mxu1 %vm460_vm3, %v10164_v37 }
 0x148   : > { %7650 = vmatpush1.bf16.msra.mxu1 %v7649_v56  ;;  %1712 = vmatprep.mubr.f32.mxu1 %v12560_v0  ;;  %v2074_v56 = vmul.u32 2, %v2069_v42 }
 0x149   : > { %7653 = vmatprep.subr.msk.bf16.mxu1 %vm9908_vm2, %v7651_v36  ;;  %v10286_v36 = vmul.u32 2, %v2143_v51 }
 0x14b   : > { %6774 = vmatmul.mubr.msk.f32.gmra.mrb[18].mxu1 %vm460_vm3, %v10174_v53  ;;  %12790 = vst [vmem:[#allocation22_spill] sm:$0xff] %v10286_v36 }
 0x14c   : > { %7656 = vmatpush1.bf16.msk.msra.mxu1 %vm9908_vm2, %v7654_v57  ;;  %1973 = vmatprep.mubr.f32.mxu1 %v12560_v0  ;;  %v10291_v57 = vmul.u32 2, %v2071_v31 }
 0x14e   : > { %12791 = vst [vmem:[#allocation23_spill] sm:$0xff] %v10291_v57 }
 0x14f   : > { %6784 = vmatmul.mubr.msk.f32.vlgmr.msra.gmra.mrb[10].mxu1 %vm460_vm3, %v9967_v61 }
 0x150   : > { %1979 = vmatprep.mubr.f32.mxu1 %v12560_v0 }
 0x153   : > { %6785 = vmatmul.mubr.msk.f32.gmra.mrb[12].mxu1 %vm460_vm3, %v9972_v3 }
 0x154   : > { %1985 = vmatprep.mubr.f32.mxu1 %v12560_v0 }
 0x157   : > { %6786 = vmatmul.mubr.msk.f32.gmra.mrb[14].mxu1 %vm460_vm3, %v9975_v4 }
 0x158   : > { %1991 = vmatprep.mubr.f32.mxu1 %v12560_v0 }
 0x15b   : > { %6787 = vmatmul.mubr.msk.f32.gmra.mrb[16].mxu1 %vm460_vm3, %v9982_v8  ;;  %v12559_v8 = vsub.s32 0, %v10265_v5 }
 0x15c   : > { %1997 = vmatprep.mubr.f32.mxu1 %v12560_v0 }
 0x15d   : > { %v2029_v50 = vrot.slane %v10268_v7, %v12559_v8 }
 0x15f   : > { %6788 = vmatmul.mubr.msk.f32.gmra.mrb[18].mxu1 %vm460_vm3, %v10219_v9 }
 0x160   : > { %2875 = vmatprep.mubr.f32.mxu1 %v12560_v0 }
 0x1aa   : > { %v549_v52 = vpop.f32.mrb[0].mxu1 }
 0x1ab   : > { %v551_v61 = vpop.f32.mrb[1].mxu1 }
 0x1ae   : > { %v555_v3 = vpop.f32.mrb[2].mxu1 }
 0x1af   : > { %v557_v19 = vpop.f32.mrb[3].mxu1 }
 0x1b2   : > { %v561_v37 = vpop.f32.mrb[4].mxu1 }
 0x1b3   : > { %v563_v53 = vpop.f32.mrb[5].mxu1 }
 0x1b6   : > { %v567_v60 = vpop.f32.mrb[6].mxu1 }
 0x1b7   : > { %v569_v4 = vpop.f32.mrb[7].mxu1 }
 0x1ba   : > { %v573_v1 = vpop.f32.mrb[8].mxu1 }
 0x1bb   : > { %v575_v45 = vpop.f32.mrb[9].mxu1 }
 0x1fc   : > { %v1880_v6 = vpop.f32.mrb[0].mxu0 }
 0x1fd   : > { %v9117_v12 = vadd.f32 %v1880_v6, %v549_v52  ;;  %v1882_v13 = vpop.f32.mrb[1].mxu0  ;;  %v10294_v52 = vsub.s32 %v2071_v31, %v2074_v56  ;;  %v2099_v56 = vadd.s32 96, %v10265_v5 }
 0x1fe   : > { %v9118_v14 = vadd.f32 %v1882_v13, %v551_v61  ;;  %v2090_v61 = vadd.s32 24, %v10265_v5  ;;  %v12792_v13 = vmov 0 }
 0x1ff   : > { %v2046_v28 = vadd.f32 %v9117_v12, %v2029_v50  ;;  %vm2080_vm11 = vcmp.eq.s32.totalorder %v10294_v52, 0  ;;  %v10339_v12 = vsub.s32 %v2069_v42, %v10291_v57 }
 0x200   : > { %v1886_v21 = vpop.f32.mrb[2].mxu0  ;;  %v2047_v23 = vadd.f32 %v9118_v14, %v2033_v15  ;;  %v10333_v6 = vsel %vm2080_vm11, 1.0, %v12560_v0  ;;  %v10349_v14 = vsub.s32 %v2090_v61, %v10291_v57  ;;  %vm2085_vm11 = vcmp.eq.s32.totalorder %v10283_v55, 1 }
 0x201   : > { %v9119_v17 = vadd.f32 %v1886_v21, %v555_v3  ;;  %v1888_v18 = vpop.f32.mrb[3].mxu0  ;;  %v10302_v3 = vsub.s32 %v10265_v5, %v10286_v36  ;;  %v2093_v21 = vadd.s32 48, %v10265_v5  ;;  %v10412_v33 = vsel %vm2085_vm11, 1.0, %v12560_v0 }
 0x202   : > { %v9120_v20 = vadd.f32 %v1888_v18, %v557_v19  ;;  %v10305_v19 = vsub.s32 %v2068_v16, %v10286_v36  ;;  %v10364_v18 = vsel %vm2084_vm14, 1.0, %v12560_v0  ;;  %vm2264_vm4 = vcmp.eq.s32.totalorder %v10349_v14, 0 }
 0x203   : > { %v2050_v2 = vadd.f32 %v9119_v17, %v2029_v50  ;;  %vm2259_vm12 = vcmp.eq.s32.totalorder %v10302_v3, 0  ;;  %v2094_v17 = vadd.s32 56, %v10265_v5  ;;  %v12808_v55 = vmov 0 }
 0x204   : > { %v2051_v24 = vadd.f32 %v9120_v20, %v2033_v15  ;;  %v1892_v26 = vpop.f32.mrb[4].mxu0  ;;  %vm2261_vm13 = vcmp.eq.s32.totalorder %v10305_v19, 0  ;;  %v12556_v20 = vsub.s32 2, %v10265_v5 }
 0x205   : > { %v7659_v27 = vpack.c.bf16 %v2050_v2, %v2046_v28  ;;  %v9121_v29 = vadd.f32 %v1892_v26, %v561_v37  ;;  %v1894_v30 = vpop.f32.mrb[5].mxu0  ;;  %v10309_v37 = vsel %vm2079_vm10, 1.0, %v12560_v0  ;;  %vm10341_vm2 = vmpackc.low %vm2261_vm13, %vm2259_vm12  ;;  %v12554_v28 = vsub.s32 3, %v10265_v5 }
 0x206   : > { %v9122_v46 = vadd.f32 %v1894_v30, %v563_v53  ;;  %v7657_v9 = vpack.c.bf16 %v2051_v24, %v2047_v23  ;;  %v10314_v53 = vsub.s32 %v10265_v5, %v10291_v57  ;;  %v12793_v13 = vsel %vm10341_vm2, 4294967295, %v12792_v13 }
 0x207   : > { %v2054_v58 = vadd.f32 %v9121_v29, %v2029_v50  ;;  %v12564_v2 = vmov 1.0|1.0   ;;  %v12794_v23 = vmov 0  ;;  %vm2262_vm13 = vcmp.eq.s32.totalorder %v10339_v12, 0 }
 0x208   : > { %v1898_v34 = vpop.f32.mrb[6].mxu0  ;;  %7658 = vmatprep.subr.bf16.mxu0 %v7657_v9  ;;  %v2055_v44 = vadd.f32 %v9122_v46, %v2033_v15  ;;  %vm2258_vm15 = vcmp.eq.s32.totalorder %v10314_v53, 0  ;;  %v2095_v24 = vadd.s32 64, %v10265_v5  ;;  %v12796_v26 = vmov 0 }
 0x209   : > { %v9123_v35 = vadd.f32 %v1898_v34, %v567_v60  ;;  %v1900_v39 = vpop.f32.mrb[7].mxu0  ;;  %7660 = vmatpush1.bf16.msra.mxu0 %v7659_v27  ;;  %v10317_v60 = vsub.s32 %v2068_v16, %v10291_v57  ;;  %v10395_v29 = vsub.s32 %v2092_v32, %v10291_v57  ;;  %v2096_v30 = vadd.s32 72, %v10265_v5 }
 0x20a   : > { %v9124_v62 = vadd.f32 %v1900_v39, %v569_v4  ;;  %v10320_v4 = vsub.s32 %v2069_v42, %v10286_v36  ;;  %v10403_v46 = vsub.s32 %v2093_v21, %v10286_v36  ;;  %v10418_v34 = vsub.s32 %v2093_v21, %v10291_v57 }
 0x20b   : > { %v2058_v59 = vadd.f32 %v9123_v35, %v2029_v50  ;;  %vm2260_vm3 = vcmp.eq.s32.totalorder %v10317_v60, 0  ;;  %v10423_v16 = vrot.slane %v10268_v7, %v12556_v20  ;;  %v12799_v39 = vmov 0 }
 0x20c   : > { %v2059_v25 = vadd.f32 %v9124_v62, %v2033_v15  ;;  %v1904_v38 = vpop.f32.mrb[8].mxu0  ;;  %vm2263_vm8 = vcmp.eq.s32.totalorder %v10320_v4, 0  ;;  %vm10376_vm12 = vmpackc.low %vm2260_vm3, %vm2258_vm15  ;;  %v10438_v62 = vsub.s32 %v2094_v17, %v10291_v57  ;;  %vm2271_vm6 = vcmp.eq.s32.totalorder %v10403_v46, 0 }
 0x20d   : > { %v7663_v43 = vpack.c.bf16 %v2058_v59, %v2054_v58  ;;  %v9125_v47 = vadd.f32 %v1904_v38, %v573_v1  ;;  %v1906_v48 = vpop.f32.mrb[9].mxu0  ;;  %v10323_v1 = vsub.s32 %v2090_v61, %v10286_v36  ;;  %v12795_v23 = vsel %vm10376_vm12, 4294967295, %v12794_v23 }
 0x20e   : > { %v9126_v49 = vadd.f32 %v1906_v48, %v575_v45  ;;  %v7661_v41 = vpack.c.bf16 %v2059_v25, %v2055_v44  ;;  %v2091_v45 = vadd.s32 32, %v10265_v5  ;;  %v10441_v58 = vsub.s32 %v2095_v24, %v10286_v36 }
 0x20f   : > { %v2062_v63 = vadd.f32 %v9125_v47, %v2029_v50  ;;  %vm2265_vm10 = vcmp.eq.s32.totalorder %v10323_v1, 0  ;;  %v10446_v59 = vrot.slane %v10268_v7, %v12554_v28  ;;  %v10459_v44 = vsub.s32 %v2096_v30, %v10286_v36 }
 0x210   : > { %v2063_v54 = vadd.f32 %v9126_v49, %v2033_v15  ;;  %7662 = vmatprep.subr.bf16.mxu0 %v7661_v41  ;;  %v10354_v50 = vsub.s32 %v2091_v45, %v10286_v36  ;;  %v10357_v15 = vsub.s32 %v2092_v32, %v10286_v36  ;;  %vm10386_vm14 = vmpackc.low %vm2265_vm10, %vm2263_vm8  ;;  %vm2086_vm8 = vcmp.eq.s32.totalorder %v10294_v52, 1 }
 0x211   : > { %7664 = vmatpush1.bf16.msra.mxu0 %v7663_v43  ;;  %v12797_v26 = vsel %vm10386_vm14, 4294967295, %v12796_v26  ;;  %vm10433_vm10 = vmpackc.low %vm2264_vm4, %vm2262_vm13  ;;  %vm2268_vm13 = vcmp.eq.s32.totalorder %v10395_v29, 0  ;;  %v2097_v7 = vadd.s32 80, %v10265_v5  ;;  %v2098_v25 = vadd.s32 88, %v10265_v5 }
 0x212   : > { %6789 = vmatprep.subr.msk.mxu0 %vm12557_vm5, %v2063_v54  ;;  %12798 = vst [vmem:[#allocation24_spill] sm:$0xff] %v12797_v26  ;;  %vm2267_vm15 = vcmp.eq.s32.totalorder %v10354_v50, 0  ;;  %vm2269_vm3 = vcmp.eq.s32.totalorder %v10357_v15, 0  ;;  %v12800_v39 = vsel %vm10433_vm10, 4294967295, %v12799_v39  ;;  %v10471_v40 = vsel %vm2086_vm8, 1.0, %v12560_v0 }
 0x213   : > { %12801 = vst [vmem:[#allocation25_spill] sm:$0xff] %v12800_v39  ;;  %vm10452_vm11 = vmpackc.low %vm2269_vm3, %vm2267_vm15  ;;  %vm2270_vm15 = vcmp.eq.s32.totalorder %v10418_v34, 0  ;;  %v10478_v42 = vsub.s32 %v2095_v24, %v10291_v57  ;;  %vm2272_vm8 = vcmp.eq.s32.totalorder %v10438_v62, 0  ;;  %vm2275_vm1 = vcmp.eq.s32.totalorder %v10441_v58, 0 }
 0x214   : > { %v12803_v22 = vsel %vm10452_vm11, 4294967295, %v12802_v22  ;;  %v10515_v52 = vsub.s32 %v2097_v7, %v10286_v36  ;;  %v10518_v61 = vsub.s32 %v2098_v25, %v10286_v36  ;;  %v12811_v24 = vmov 0 }
 0x215   : > { %6790 = vmatpush1.msk.msra.mxu0 %vm12557_vm5, %v2062_v63  ;;  %12804 = vst [vmem:[#allocation26_spill] sm:$0xff] %v12803_v22  ;;  %v10579_v28 = vsub.s32 %v2099_v56, %v10291_v57  ;;  %v12820_v20 = vmov 0  ;;  %v2107_v22 = vadd.s32 160, %v10265_v5  ;;  %v2108_v39 = vadd.s32 168, %v10265_v5 }
 0x216   : > { %6791 = vmatmul.mubr.msk.f32.vlgmr.msra.gmra.mrb[10].mxu0 %vm12553_vm9, %v10289_v10  ;;  %7674 = vmatprep.subr.bf16.mxu0 %v7657_v9  ;;  %v10406_v9 = vsub.s32 %v2094_v17, %v10286_v36  ;;  %v2110_v26 = vadd.s32 184, %v10265_v5 }
 0x217   : > { %7676 = vmatpush1.bf16.msra.mxu0 %v7659_v27  ;;  %2798 = vmatprep.mubr.f32.mxu0 %v12560_v0  ;;  %v10392_v27 = vsub.s32 %v2091_v45, %v10291_v57  ;;  %v2100_v45 = vadd.s32 104, %v10265_v5 }
 0x218   : > { %7678 = vmatprep.subr.bf16.mxu0 %v7661_v41  ;;  %vm2273_vm0 = vcmp.eq.s32.totalorder %v10406_v9, 0  ;;  %v12805_v41 = vmov 0 }
 0x219   : > { %vm2266_vm4 = vcmp.eq.s32.totalorder %v10392_v27, 0  ;;  %vm10504_vm7 = vmpackc.low %vm2273_vm0, %vm2271_vm6 }
 0x21a   : > { %6792 = vmatmul.mubr.msk.f32.gmra.mrb[12].mxu0 %vm12553_vm9, %v10309_v37  ;;  %vm10492_vm3 = vmpackc.low %vm2268_vm13, %vm2266_vm4  ;;  %v12809_v55 = vsel %vm10504_vm7, 4294967295, %v12808_v55  ;;  %vm2277_vm4 = vcmp.eq.s32.totalorder %v10459_v44, 0  ;;  %vm2274_vm13 = vcmp.eq.s32.totalorder %v10478_v42, 0 }
 0x21b   : > { %7680 = vmatpush1.bf16.msra.mxu0 %v7663_v43  ;;  %2804 = vmatprep.mubr.f32.mxu0 %v12560_v0  ;;  %v10481_v43 = vsub.s32 %v2096_v30, %v10291_v57  ;;  %v12806_v41 = vsel %vm10492_vm3, 4294967295, %v12805_v41  ;;  %12810 = vst [vmem:[#allocation28_spill] sm:$0xff] %v12809_v55  ;;  %vm10533_vm0 = vmpackc.low %vm2272_vm8, %vm2270_vm15  ;;  %v12814_v30 = vmov 0  ;;  %vm2279_vm15 = vcmp.eq.s32.totalorder %v10515_v52, 0 }
 0x21c   : > { %6799 = vmatprep.subr.msk.mxu0 %vm12557_vm5, %v2063_v54  ;;  %12807 = vst [vmem:[#allocation27_spill] sm:$0xff] %v12806_v41  ;;  %v12812_v24 = vsel %vm10533_vm0, 4294967295, %v12811_v24  ;;  %vm10540_vm6 = vmpackc.low %vm2277_vm4, %vm2275_vm1  ;;  %vm2281_vm8 = vcmp.eq.s32.totalorder %v10518_v61, 0 }
 0x21d   : > { %12813 = vst [vmem:[#allocation29_spill] sm:$0xff] %v12812_v24  ;;  %v12815_v30 = vsel %vm10540_vm6, 4294967295, %v12814_v30  ;;  %vm10588_vm4 = vmpackc.low %vm2281_vm8, %vm2279_vm15  ;;  %v2106_v24 = vadd.s32 152, %v10265_v5 }
 0x21e   : > { %6793 = vmatmul.mubr.msk.f32.gmra.mrb[14].mxu0 %vm12553_vm9, %v10333_v6  ;;  %12816 = vst [vmem:[#allocation30_spill] sm:$0xff] %v12815_v30  ;;  %v12821_v20 = vsel %vm10588_vm4, 4294967295, %v12820_v20 }
 0x21f   : > { %6800 = vmatpush1.msk.msra.mxu0 %vm12557_vm5, %v2062_v63  ;;  %2967 = vmatprep.mubr.f32.mxu0 %v12560_v0  ;;  %12822 = vst [vmem:[#allocation32_spill] sm:$0xff] %v12821_v20  ;;  %v12830_v20 = vmov 1.0|1.0  }
 0x220   : > { %7690 = vmatprep.subr.msk.bf16.mxu0 %vm10341_vm2, %v12564_v2 }
 0x222   : > { %6801 = vmatmul.mubr.msk.f32.vlgmr.msra.gmra.mrb[16].mxu0 %vm12553_vm9, %v10364_v18  ;;  %v1975_v31 = vpop.f32.mrb[10].mxu1 }
 0x223   : > { %2973 = vmatprep.mubr.f32.mxu0 %v12560_v0  ;;  %7692 = vmatpush1.bf16.msk.msra.mxu0 %vm10376_vm12, %v12564_v2  ;;  %v1977_v35 = vpop.f32.mrb[11].mxu1  ;;  %v2048_v47 = vadd.f32 %v10423_v16, %v1975_v31  ;;  %v10547_v31 = vsub.s32 %v2097_v7, %v10291_v57  ;;  %v2101_v7 = vadd.s32 112, %v10265_v5 }
 0x224   : > { %7694 = vmatprep.subr.msk.bf16.mxu0 %vm10386_vm14, %v12564_v2  ;;  %v2049_v51 = vadd.f32 %v10446_v59, %v1977_v35  ;;  %v10550_v35 = vsub.s32 %v2098_v25, %v10291_v57 }
 0x226   : > { %6802 = vmatmul.mubr.msk.f32.gmra.mrb[18].mxu0 %vm12553_vm9, %v10412_v33  ;;  %v1981_v38 = vpop.f32.mrb[12].mxu1 }
 0x227   : > { %2979 = vmatprep.mubr.f32.mxu0 %v12560_v0  ;;  %7696 = vmatpush1.bf16.msk.msra.mxu0 %vm10433_vm10, %v12564_v2  ;;  %v2052_v48 = vadd.f32 %v10423_v16, %v1981_v38  ;;  %v1983_v49 = vpop.f32.mrb[13].mxu1  ;;  %v10556_v38 = vsub.s32 %v2099_v56, %v10286_v36  ;;  %v10603_v0 = vsub.s32 %v2101_v7, %v10286_v36  ;;  %vm2492_vm10 = vcmp.eq.s32.totalorder %v10395_v29, 1 }
 0x228   : > { %7698 = vmatprep.subr.msk.bf16.mxu0 %vm10452_vm11, %v12564_v2  ;;  %v2053_v54 = vadd.f32 %v10446_v59, %v1983_v49  ;;  %vm12894_vm11 = vcmask 310272  }
 0x229   : > { %v10510_v63 = vpack.c.bf16 %v2052_v48, %v2048_v47  ;;  %v10559_v47 = vsub.s32 %v2100_v45, %v10286_v36  ;;  %vm2283_vm5 = vcmp.eq.s32.totalorder %v10556_v38, 0 }
 0x22a   : > { %6803 = vmatmul.mubr.msk.f32.gmra.mrb[20].mxu0 %vm12553_vm9, %v10471_v40  ;;  %v10521_v32 = vpack.c.bf16 %v2053_v54, %v2049_v51  ;;  %v1987_v21 = vpop.f32.mrb[14].mxu1  ;;  %vm2276_vm9 = vcmp.eq.s32.totalorder %v10481_v43, 0  ;;  %v12817_v54 = vmov 0 }
 0x22b   : > { %7700 = vmatpush1.bf16.msk.msra.mxu0 %vm10492_vm3, %v12564_v2  ;;  %v1989_v17 = vpop.f32.mrb[15].mxu1  ;;  %v2056_v25 = vadd.f32 %v10423_v16, %v1987_v21  ;;  %vm10574_vm1 = vmpackc.low %vm2276_vm9, %vm2274_vm13  ;;  %v2102_v21 = vadd.s32 120, %v10265_v5  ;;  %vm2278_vm9 = vcmp.eq.s32.totalorder %v10547_v31, 0  ;;  %vm2280_vm13 = vcmp.eq.s32.totalorder %v10550_v35, 0 }
 0x22c   : > { %7702 = vmatprep.subr.msk.bf16.mxu0 %vm10504_vm7, %v12564_v2  ;;  %7666 = vmatprep.subr.bf16.mxu1 %v10521_v32  ;;  %v12818_v54 = vsel %vm10574_vm1, 4294967295, %v12817_v54  ;;  %vm10608_vm15 = vmpackc.low %vm2280_vm13, %vm2278_vm9  ;;  %vm2282_vm9 = vcmp.eq.s32.totalorder %v10579_v28, 0  ;;  %vm2488_vm3 = vcmp.eq.s32.totalorder %v10349_v14, 1  ;;  %v10833_v14 = vsub.s32 %v2110_v26, %v10291_v57 }
 0x22d   : > { %7668 = vmatpush1.bf16.msra.mxu1 %v10510_v63  ;;  %12819 = vst [vmem:[#allocation31_spill] sm:$0xff] %v12818_v54  ;;  %v12826_v54 = vmov 0 }
 0x22e   : > { %v1993_v48 = vpop.f32.mrb[16].mxu1 }
 0x22f   : > { %7704 = vmatpush1.bf16.msk.msra.mxu0 %vm10533_vm0, %v12564_v2  ;;  %v2060_v49 = vadd.f32 %v10423_v16, %v1993_v48  ;;  %v1995_v51 = vpop.f32.mrb[17].mxu1  ;;  %v2057_v48 = vadd.f32 %v10446_v59, %v1989_v17  ;;  %v10597_v17 = vsub.s32 %v2100_v45, %v10291_v57  ;;  %v10613_v45 = vsub.s32 %v2102_v21, %v10286_v36 }
 0x230   : > { %7706 = vmatprep.subr.msk.bf16.mxu0 %vm10540_vm6, %v12564_v2  ;;  %v2061_v11 = vadd.f32 %v10446_v59, %v1995_v51  ;;  %vm2285_vm6 = vcmp.eq.s32.totalorder %v10559_v47, 0 }
 0x231   : > { %v7671_v56 = vpack.c.bf16 %v2060_v49, %v2056_v25  ;;  %v12823_v25 = vmov 0  ;;  %v2104_v49 = vadd.s32 136, %v10265_v5  ;;  %vm10620_vm8 = vmpackc.low %vm2285_vm6, %vm2283_vm5  ;;  %vm2284_vm13 = vcmp.eq.s32.totalorder %v10597_v17, 0 }
 0x232   : > { %v7669_v51 = vpack.c.bf16 %v2061_v11, %v2057_v48  ;;  %v1999_v8 = vpop.f32.mrb[18].mxu1  ;;  %v12824_v25 = vsel %vm10608_vm15, 4294967295, %v12823_v25  ;;  %v2103_v11 = vadd.s32 128, %v10265_v5  ;;  %v12827_v54 = vsel %vm10620_vm8, 4294967295, %v12826_v54 }
 0x233   : > { %7708 = vmatpush1.bf16.msk.msra.mxu0 %vm10574_vm1, %v12564_v2  ;;  %v2001_v30 = vpop.f32.mrb[19].mxu1  ;;  %12825 = vst [vmem:[#allocation33_spill] sm:$0xff] %v12824_v25  ;;  %12828 = vst [vmem:[#allocation34_spill] sm:$0xff] %v12827_v54  ;;  %v2064_v55 = vadd.f32 %v10423_v16, %v1999_v8  ;;  %vm2289_vm5 = vcmp.eq.s32.totalorder %v10613_v45, 0  ;;  %v10648_v25 = vsub.s32 %v2104_v49, %v10286_v36  ;;  %v12837_v16 = vmov 0 }
 0x234   : > { %7710 = vmatprep.subr.msk.bf16.mxu0 %vm10588_vm4, %v12564_v2  ;;  %v2065_v48 = vadd.f32 %v10446_v59, %v2001_v30  ;;  %7670 = vmatprep.subr.bf16.mxu1 %v7669_v51  ;;  %v10627_v2 = vsub.s32 %v2101_v7, %v10291_v57  ;;  %vm12829_vm4 = vcmask 1045504   ;;  %v10635_v59 = vsub.s32 %v2102_v21, %v10291_v57 }
 0x235   : > { %7672 = vmatpush1.bf16.msra.mxu1 %v7671_v56  ;;  %v2105_v30 = vadd.s32 144, %v10265_v5  ;;  %v10645_v7 = vsub.s32 %v2103_v11, %v10286_v36  ;;  %vm12831_vm6 = vmmov %vm12829_vm4  ;;  %v12832_v21 = vmov 0  ;;  %v10659_v8 = vsub.s32 %v2103_v11, %v10291_v57 }
 0x236   : > { %6794 = vmatprep.subr.msk.mxu1 %vm12829_vm4, %v2065_v48  ;;  %vm10653_vm4 = vmpackc.low %vm2284_vm13, %vm2282_vm9  ;;  %vm2286_vm1 = vcmp.eq.s32.totalorder %v10627_v2, 0  ;;  %vm2288_vm9 = vcmp.eq.s32.totalorder %v10635_v59, 0  ;;  %v10672_v54 = vsub.s32 %v2104_v49, %v10291_v57  ;;  %v10678_v11 = vsub.s32 %v2106_v24, %v10286_v36 }
 0x237   : > { %7712 = vmatpush1.bf16.msk.msra.mxu0 %vm10608_vm15, %v12830_v20  ;;  %v12833_v21 = vsel %vm10653_vm4, 4294967295, %v12832_v21  ;;  %vm12836_vm15 = vcmp.eq.s32.totalorder %v10603_v0, 0  ;;  %v10675_v41 = vsub.s32 %v2105_v30, %v10286_v36  ;;  %v10706_v49 = vsub.s32 %v2106_v24, %v10291_v57 }
 0x238   : > { %7714 = vmatprep.subr.msk.bf16.mxu0 %vm10620_vm8, %v12830_v20  ;;  %12834 = vst [vmem:[#allocation35_spill] sm:$0xff] %v12833_v21  ;;  %vm12835_vm8 = vcmask 310272   ;;  %vm10666_vm0 = vmpackc.low %vm2289_vm5, %vm12836_vm15  ;;  %vm2291_vm15 = vcmp.eq.s32.totalorder %v10645_v7, 0  ;;  %vm12844_vm5 = vcmask 310272   ;;  %v2109_v21 = vadd.s32 176, %v10265_v5 }
 0x239   : > { %6795 = vmatpush1.msk.msra.mxu1 %vm12831_vm6, %v2064_v55  ;;  %v12838_v16 = vsel %vm10666_vm0, 4294967295, %v12837_v16  ;;  %vm10698_vm6 = vmpackc.low %vm2288_vm9, %vm2286_vm1  ;;  %v10725_v24 = vsub.s32 %v2108_v39, %v10286_v36 }
 0x23a   : > { %6796 = vmatmul.mubr.msk.f32.vlgmr.msra.gmra.mrb[20].mxu1 %vm12835_vm8, %v10289_v10  ;;  %7682 = vmatprep.subr.bf16.mxu1 %v10521_v32  ;;  %12839 = vst [vmem:[#allocation36_spill] sm:$0xff] %v12838_v16  ;;  %v12840_v32 = vmov 0.0   ;;  %vm2293_vm8 = vcmp.eq.s32.totalorder %v10648_v25, 0  ;;  %v12845_v16 = vmov 0 }
 0x23b   : > { %7684 = vmatpush1.bf16.msra.mxu1 %v10510_v63  ;;  %2881 = vmatprep.mubr.f32.mxu1 %v12840_v32  ;;  %v12841_v63 = vmov 0  ;;  %vm10710_vm13 = vmpackc.low %vm2293_vm8, %vm2291_vm15  ;;  %vm12848_vm15 = vcmask 1045504   ;;  %vm12849_vm8 = vcmp.eq.s32.totalorder %v10302_v3, 1  ;;  %v12855_v3 = vmov 0 }
 0x23c   : > { %7686 = vmatprep.subr.bf16.mxu1 %v7669_v51  ;;  %7716 = vmatpush1.bf16.msk.msra.mxu0 %vm10653_vm4, %v12830_v20  ;;  %v12842_v63 = vsel %vm10698_vm6, 4294967295, %v12841_v63  ;;  %v10703_v51 = vsub.s32 %v2105_v30, %v10291_v57  ;;  %v12846_v16 = vsel %vm10710_vm13, 4294967295, %v12845_v16  ;;  %v10770_v30 = vsub.s32 %v2108_v39, %v10291_v57 }
 0x23d   : > { %7718 = vmatprep.subr.msk.bf16.mxu0 %vm10666_vm0, %v12830_v20  ;;  %12843 = vst [vmem:[#allocation37_spill] sm:$0xff] %v12842_v63  ;;  %12847 = vst [vmem:[#allocation38_spill] sm:$0xff] %v12846_v16  ;;  %vm12858_vm0 = vcmask 310272   ;;  %v10773_v16 = vsub.s32 %v2109_v21, %v10286_v36  ;;  %v10776_v63 = vsub.s32 %v2110_v26, %v10286_v36  ;;  %vm2301_vm9 = vcmp.eq.s32.totalorder %v10725_v24, 0 }
 0x23e   : > { %6797 = vmatmul.mubr.msk.f32.gmra.mrb[22].mxu1 %vm12844_vm5, %v10309_v37  ;;  %v10722_v37 = vsub.s32 %v2107_v22, %v10286_v36  ;;  %vm12850_vm5 = vcmp.eq.s32.totalorder %v10305_v19, 1  ;;  %v12861_v19 = vmov 0  ;;  %v2111_v39 = vadd.s32 192, %v10265_v5 }
 0x23f   : > { %7688 = vmatpush1.bf16.msra.mxu1 %v7671_v56  ;;  %2887 = vmatprep.mubr.f32.mxu1 %v12840_v32  ;;  %vm10732_vm1 = vmpackc.low %vm12850_vm5, %vm12849_vm8  ;;  %v12851_v56 = vmov 0  ;;  %vm12853_vm8 = vcmp.eq.s32.totalorder %v10659_v8, 0  ;;  %vm12854_vm5 = vcmp.eq.s32.totalorder %v10672_v54, 0  ;;  %vm12870_vm4 = vcmp.eq.s32.totalorder %v10323_v1, 1 }
 0x240   : > { %6804 = vmatprep.subr.msk.mxu1 %vm12848_vm15, %v2065_v48  ;;  %v12852_v56 = vsel %vm10732_vm1, 4294967295, %v12851_v56  ;;  %7720 = vmatpush1.bf16.msk.msra.mxu0 %vm10698_vm6, %v12830_v20  ;;  %vm10750_vm7 = vmpackc.low %vm12854_vm5, %vm12853_vm8  ;;  %vm12859_vm15 = vcmp.eq.s32.totalorder %v10675_v41, 0  ;;  %vm12860_vm6 = vcmp.eq.s32.totalorder %v10678_v11, 0  ;;  %v10767_v48 = vsub.s32 %v2107_v22, %v10291_v57 }
 0x241   : > { %7722 = vmatprep.subr.msk.bf16.mxu0 %vm10710_vm13, %v12830_v20  ;;  %v12856_v3 = vsel %vm10750_vm7, 4294967295, %v12855_v3  ;;  %vm10762_vm13 = vmpackc.low %vm12860_vm6, %vm12859_vm15  ;;  %vm12865_vm6 = vcmp.eq.s32.totalorder %v10314_v53, 1  ;;  %vm12866_vm15 = vcmp.eq.s32.totalorder %v10317_v60, 1  ;;  %vm2299_vm5 = vcmp.eq.s32.totalorder %v10722_v37, 0 }
 0x242   : > { %12857 = vst [vmem:[#allocation39_spill] sm:$0xff] %v12856_v3  ;;  %6798 = vmatmul.mubr.msk.f32.gmra.mrb[24].mxu1 %vm12858_vm0, %v10333_v6  ;;  %v12862_v19 = vsel %vm10762_vm13, 4294967295, %v12861_v19  ;;  %vm12864_vm0 = vcmask 1045504   ;;  %vm10784_vm8 = vmpackc.low %vm12866_vm15, %vm12865_vm6  ;;  %v12867_v6 = vmov 0  ;;  %v2112_v22 = vadd.s32 200, %v10265_v5 }
 0x243   : > { %12863 = vst [vmem:[#allocation40_spill] sm:$0xff] %v12862_v19  ;;  %6805 = vmatpush1.msk.msra.mxu1 %vm12864_vm0, %v2064_v55  ;;  %3050 = vmatprep.mubr.f32.mxu1 %v12840_v32  ;;  %v12868_v6 = vsel %vm10784_vm8, 4294967295, %v12867_v6  ;;  %vm12869_vm0 = vcmp.eq.s32.totalorder %v10320_v4, 1  ;;  %v12871_v53 = vmov 0  ;;  %v12875_v60 = vmov 0  ;;  %v3458_v19 = vld [vmem:[#allocation7 + $0x88] sm:$0xff] }
 0x244   : > { %7804 = vmatprep.subr.msk.bf16.mxu1 %vm10732_vm1, %v12830_v20  ;;  %vm10799_vm6 = vmpackc.low %vm12870_vm4, %vm12869_vm0  ;;  %7724 = vmatpush1.bf16.msk.msra.mxu0 %vm10750_vm7, %v12830_v20  ;;  %vm12873_vm4 = vcmp.eq.s32.totalorder %v10703_v51, 0  ;;  %vm12874_vm0 = vcmp.eq.s32.totalorder %v10706_v49, 0  ;;  %vm12878_vm15 = vcmask 310272   ;;  %v12879_v4 = vmov 0 }
 0x245   : > { %v12872_v53 = vsel %vm10799_vm6, 4294967295, %v12871_v53  ;;  %7726 = vmatprep.subr.msk.bf16.mxu0 %vm10762_vm13, %v12830_v20  ;;  %vm10817_vm14 = vmpackc.low %vm12874_vm0, %vm12873_vm4  ;;  %v10830_v1 = vsub.s32 %v2109_v21, %v10291_v57  ;;  %v12883_v55 = vmov 0  ;;  %vm2305_vm4 = vcmp.eq.s32.totalorder %v10776_v63, 0 }
 0x246   : > { %v12876_v60 = vsel %vm10817_vm14, 4294967295, %v12875_v60  ;;  %6806 = vmatmul.mubr.msk.f32.vlgmr.msra.gmra.mrb[26].mxu1 %vm12878_vm15, %v10364_v18  ;;  %vm10823_vm7 = vmpackc.low %vm2301_vm9, %vm2299_vm5  ;;  %vm12882_vm9 = vcmp.eq.s32.totalorder %v10339_v12, 1  ;;  %vm2303_vm15 = vcmp.eq.s32.totalorder %v10773_v16, 0  ;;  %v10848_v21 = vsub.s32 %v2111_v39, %v10286_v36 }
 0x247   : > { %12877 = vst [vmem:[#allocation41_spill] sm:$0xff] %v12876_v60  ;;  %v12880_v4 = vsel %vm10823_vm7, 4294967295, %v12879_v4  ;;  %3056 = vmatprep.mubr.f32.mxu1 %v12840_v32  ;;  %7806 = vmatpush1.bf16.msk.msra.mxu1 %vm10784_vm8, %v12830_v20  ;;  %vm10841_vm5 = vmpackc.low %vm2488_vm3, %vm12882_vm9  ;;  %v10851_v26 = vsub.s32 %v2112_v22, %v10286_v36  ;;  %vm12885_vm0 = vcmp.eq.s32.totalorder %v10354_v50, 1  ;;  %vm12886_vm3 = vcmp.eq.s32.totalorder %v10357_v15, 1 }
 0x248   : > { %12881 = vst [vmem:[#allocation42_spill] sm:$0xff] %v12880_v4  ;;  %v12884_v55 = vsel %vm10841_vm5, 4294967295, %v12883_v55  ;;  %7808 = vmatprep.subr.msk.bf16.mxu1 %vm10799_vm6, %v12830_v20  ;;  %vm10860_vm9 = vmpackc.low %vm12886_vm3, %vm12885_vm0  ;;  %v12887_v12 = vmov 0  ;;  %7728 = vmatpush1.bf16.msk.msra.mxu0 %vm10817_vm14, %v12830_v20  ;;  %vm12889_vm0 = vcmp.eq.s32.totalorder %v10767_v48, 0  ;;  %vm12890_vm3 = vcmp.eq.s32.totalorder %v10770_v30, 0 }
 0x249   : > { %v12888_v12 = vsel %vm10860_vm9, 4294967295, %v12887_v12  ;;  %7730 = vmatprep.subr.msk.bf16.mxu0 %vm10823_vm7, %v12830_v20  ;;  %vm10878_vm2 = vmpackc.low %vm12890_vm3, %vm12889_vm0  ;;  %v12891_v50 = vmov 0  ;;  %v12895_v15 = vmov 0  ;;  %v10891_v29 = vsub.s32 %v2111_v39, %v10291_v57 }
 0x24a   : > { %v12892_v50 = vsel %vm10878_vm2, 4294967295, %v12891_v50  ;;  %6807 = vmatmul.mubr.msk.f32.gmra.mrb[28].mxu1 %vm12894_vm11, %v10412_v33  ;;  %vm10884_vm14 = vmpackc.low %vm2305_vm4, %vm2303_vm15  ;;  %v10894_v4 = vsub.s32 %v2112_v22, %v10291_v57  ;;  %vm12898_vm11 = vcmp.eq.s32.totalorder %v10392_v27, 1  ;;  %v12899_v33 = vmov 0 }
 0x24b   : > { %12893 = vst [vmem:[#allocation43_spill] sm:$0xff] %v12892_v50  ;;  %v12896_v15 = vsel %vm10884_vm14, 4294967295, %v12895_v15  ;;  %3062 = vmatprep.mubr.f32.mxu1 %v12840_v32  ;;  %7810 = vmatpush1.bf16.msk.msra.mxu1 %vm10841_vm5, %v12830_v20  ;;  %vm10902_vm15 = vmpackc.low %vm2492_vm10, %vm12898_vm11  ;;  %vm2307_vm4 = vcmp.eq.s32.totalorder %v10848_v21, 0  ;;  %vm2309_vm0 = vcmp.eq.s32.totalorder %v10851_v26, 0  ;;  %vm12901_vm3 = vcmp.eq.s32.totalorder %v10403_v46, 1 }
 0x24c   : > { %12897 = vst [vmem:[#allocation44_spill] sm:$0xff] %v12896_v15  ;;  %v12900_v33 = vsel %vm10902_vm15, 4294967295, %v12899_v33  ;;  %7812 = vmatprep.subr.msk.bf16.mxu1 %vm10860_vm9, %v12830_v20  ;;  %vm12902_vm13 = vcmp.eq.s32.totalorder %v10406_v9, 1  ;;  %v12903_v39 = vmov 0  ;;  %vm2494_vm10 = vcmp.eq.s32.totalorder %v10418_v34, 1  ;;  %7732 = vmatpush1.bf16.msk.msra.mxu0 %vm10878_vm2, %v12830_v20  ;;  %vm10939_vm2 = vmpackc.low %vm2309_vm0, %vm2307_vm4 }
 0x24d   : > { %vm10915_vm12 = vmpackc.low %vm12902_vm13, %vm12901_vm3  ;;  %vm2496_vm11 = vcmp.eq.s32.totalorder %v10438_v62, 1  ;;  %vm2499_vm7 = vcmp.eq.s32.totalorder %v10441_v58, 1  ;;  %vm2501_vm9 = vcmp.eq.s32.totalorder %v10459_v44, 1  ;;  %7734 = vmatprep.subr.msk.bf16.mxu0 %vm10884_vm14, %v12830_v20  ;;  %vm12905_vm13 = vcmp.eq.s32.totalorder %v10830_v1, 0 }
 0x24e   : > { %v12904_v39 = vsel %vm10915_vm12, 4294967295, %v12903_v39  ;;  %vm12906_vm3 = vcmp.eq.s32.totalorder %v10833_v14, 0  ;;  %v12907_v27 = vmov 0  ;;  %vm12910_vm6 = vcmask 310272   ;;  %vm10948_vm14 = vmpackc.low %vm2496_vm11, %vm2494_vm10 }
 0x24f   : > { %vm10933_vm5 = vmpackc.low %vm12906_vm3, %vm12905_vm13  ;;  %6808 = vmatmul.mubr.msk.f32.gmra.mrb[30].mxu1 %vm12910_vm6, %v10471_v40  ;;  %v12911_v46 = vmov 0  ;;  %vm2306_vm8 = vcmp.eq.s32.totalorder %v10891_v29, 0  ;;  %vm2308_vm1 = vcmp.eq.s32.totalorder %v10894_v4, 0  ;;  %v12914_v9 = vmov 0 }
 0x250   : > { %v12908_v27 = vsel %vm10933_vm5, 4294967295, %v12907_v27  ;;  %v12912_v46 = vsel %vm10939_vm2, 4294967295, %v12911_v46  ;;  %7814 = vmatpush1.bf16.msk.msra.mxu1 %vm10902_vm15, %v12830_v20  ;;  %v12915_v9 = vsel %vm10948_vm14, 4294967295, %v12914_v9  ;;  %vm10955_vm6 = vmpackc.low %vm2501_vm9, %vm2499_vm7  ;;  %v12916_v34 = vmov 0  ;;  %7736 = vmatpush1.bf16.msk.msra.mxu0 %vm10933_vm5, %v12830_v20 }
 0x251   : > { %12909 = vst [vmem:[#allocation45_spill] sm:$0xff] %v12908_v27  ;;  %12913 = vst [vmem:[#allocation46_spill] sm:$0xff] %v12912_v46  ;;  %7816 = vmatprep.subr.msk.bf16.mxu1 %vm10915_vm12, %v12830_v20  ;;  %v12917_v34 = vsel %vm10955_vm6, 4294967295, %v12916_v34  ;;  %vm2498_vm4 = vcmp.eq.s32.totalorder %v10478_v42, 1  ;;  %vm2500_vm0 = vcmp.eq.s32.totalorder %v10481_v43, 1  ;;  %7738 = vmatprep.subr.msk.bf16.mxu0 %vm10939_vm2, %v12830_v20  ;;  %v12918_v62 = vmov 0 }
 0x252   : > { %vm10967_vm10 = vmpackc.low %vm2308_vm1, %vm2306_vm8  ;;  %vm2503_vm7 = vcmp.eq.s32.totalorder %v10515_v52, 1  ;;  %vm2505_vm9 = vcmp.eq.s32.totalorder %v10518_v61, 1  ;;  %v12921_v58 = vmov 0  ;;  %v12923_v44 = vmov 0 }
 0x253   : > { %v12919_v62 = vsel %vm10967_vm10, 4294967295, %v12918_v62  ;;  %vm10979_vm11 = vmpackc.low %vm2500_vm0, %vm2498_vm4  ;;  %vm2502_vm8 = vcmp.eq.s32.totalorder %v10547_v31, 1  ;;  %vm2504_vm13 = vcmp.eq.s32.totalorder %v10550_v35, 1  ;;  %vm2507_vm3 = vcmp.eq.s32.totalorder %v10556_v38, 1 }
 0x254   : > { %12920 = vst [vmem:[#allocation47_spill] sm:$0xff] %v12919_v62  ;;  %7818 = vmatpush1.bf16.msk.msra.mxu1 %vm10948_vm14, %v12830_v20  ;;  %v12922_v58 = vsel %vm10979_vm11, 4294967295, %v12921_v58  ;;  %7740 = vmatpush1.bf16.msk.msra.mxu0 %vm10967_vm10, %v12830_v20  ;;  %vm10986_vm1 = vmpackc.low %vm2505_vm9, %vm2503_vm7  ;;  %vm2509_vm2 = vcmp.eq.s32.totalorder %v10559_v47, 1  ;;  %v12925_v40 = vmov 0  ;;  %v12927_v42 = vmov 0 }
 0x255   : > { %7820 = vmatprep.subr.msk.bf16.mxu1 %vm10955_vm6, %v12830_v20  ;;  %v12924_v44 = vsel %vm10986_vm1, 4294967295, %v12923_v44  ;;  %vm11000_vm4 = vmpackc.low %vm2504_vm13, %vm2502_vm8  ;;  %vm2506_vm7 = vcmp.eq.s32.totalorder %v10579_v28, 1  ;;  %vm2508_vm9 = vcmp.eq.s32.totalorder %v10597_v17, 1  ;;  %vm2511_vm10 = vcmp.eq.s32.totalorder %v10603_v0, 1 }
 0x256   : > { %v12926_v40 = vsel %vm11000_vm4, 4294967295, %v12925_v40  ;;  %vm11004_vm0 = vmpackc.low %vm2509_vm2, %vm2507_vm3  ;;  %vm2513_vm5 = vcmp.eq.s32.totalorder %v10613_v45, 1  ;;  %v12929_v43 = vmov 0  ;;  %v12931_v28 = vmov 0 }
 0x257   : > { %v12928_v42 = vsel %vm11004_vm0, 4294967295, %v12927_v42  ;;  %vm11018_vm2 = vmpackc.low %vm2508_vm9, %vm2506_vm7  ;;  %vm2510_vm13 = vcmp.eq.s32.totalorder %v10627_v2, 1  ;;  %vm2512_vm3 = vcmp.eq.s32.totalorder %v10635_v59, 1  ;;  %v12933_v0 = vmov 0 }
 0x258   : > { %7822 = vmatpush1.bf16.msk.msra.mxu1 %vm10979_vm11, %v12830_v20  ;;  %v12930_v43 = vsel %vm11018_vm2, 4294967295, %v12929_v43  ;;  %vm11022_vm8 = vmpackc.low %vm2513_vm5, %vm2511_vm10  ;;  %v12935_v2 = vmov 0  ;;  %vm2514_vm7 = vcmp.eq.s32.totalorder %v10659_v8, 1  ;;  %vm2516_vm9 = vcmp.eq.s32.totalorder %v10672_v54, 1 }
 0x259   : > { %7824 = vmatprep.subr.msk.bf16.mxu1 %vm10986_vm1, %v12830_v20  ;;  %v12932_v28 = vsel %vm11022_vm8, 4294967295, %v12931_v28  ;;  %vm2515_vm1 = vcmp.eq.s32.totalorder %v10645_v7, 1  ;;  %vm11036_vm5 = vmpackc.low %vm2512_vm3, %vm2510_vm13  ;;  %v12937_v52 = vmov 0  ;;  %v12939_v61 = vmov 0 }
 0x25a   : > { %v12934_v0 = vsel %vm11036_vm5, 4294967295, %v12933_v0  ;;  %vm2518_vm13 = vcmp.eq.s32.totalorder %v10703_v51, 1  ;;  %vm2520_vm3 = vcmp.eq.s32.totalorder %v10706_v49, 1  ;;  %v2114_v31 = vadd.s32 216, %v10265_v5 }
 0x25b   : > { %v12942_v35 = vmov 0  ;;  %v12945_v54 = vmov 0  ;;  %v12948_v45 = vmov 0  ;;  %v12951_v59 = vmov 0 }
 0x25c   : > { %7826 = vmatpush1.bf16.msk.msra.mxu1 %vm11000_vm4, %v12830_v20  ;;  %vm2517_vm4 = vcmp.eq.s32.totalorder %v10648_v25, 1  ;;  %v2201_v47 = vsub.s32 %v2114_v31, %v10286_v36  ;;  %v2200_v25 = vsub.s32 %v2114_v31, %v10291_v57  ;;  %v12954_v7 = vmov 0 }
 0x25d   : > { %7828 = vmatprep.subr.msk.bf16.mxu1 %vm11004_vm0, %v12830_v20  ;;  %vm11040_vm10 = vmpackc.low %vm2517_vm4, %vm2515_vm1  ;;  %vm2519_vm0 = vcmp.eq.s32.totalorder %v10675_v41, 1  ;;  %v2113_v41 = vadd.s32 208, %v10265_v5  ;;  %vm2528_vm6 = vcmp.eq.s32.totalorder %v10833_v14, 1  ;;  %v2115_v8 = vadd.s32 224, %v10265_v5 }
 0x25e   : > { %v12936_v2 = vsel %vm11040_vm10, 4294967295, %v12935_v2  ;;  %vm11054_vm1 = vmpackc.low %vm2516_vm9, %vm2514_vm7  ;;  %vm2312_vm11 = vcmp.eq.s32.totalorder %v2200_v25, 0  ;;  %v12963_v22 = vmov 0  ;;  %v2119_v31 = vadd.s32 256, %v10265_v5 }
 0x25f   : > { %v12938_v52 = vsel %vm11054_vm1, 4294967295, %v12937_v52  ;;  %vm11076_vm7 = vmpackc.low %vm2520_vm3, %vm2518_vm13  ;;  %v2199_v38 = vsub.s32 %v2113_v41, %v10286_v36  ;;  %v2198_v17 = vsub.s32 %v2113_v41, %v10291_v57  ;;  %v2202_v49 = vsub.s32 %v2115_v8, %v10291_v57 }
 0x260   : > { %7830 = vmatpush1.bf16.msk.msra.mxu1 %vm11018_vm2, %v12830_v20  ;;  %vm2521_vm2 = vcmp.eq.s32.totalorder %v10678_v11, 1  ;;  %v12943_v35 = vsel %vm11076_vm7, 4294967295, %v12942_v35  ;;  %v12957_v11 = vmov 0  ;;  %v12972_v41 = vmov 0 }
 0x261   : > { %7832 = vmatprep.subr.msk.bf16.mxu1 %vm11022_vm8, %v12830_v20  ;;  %vm11058_vm4 = vmpackc.low %vm2521_vm2, %vm2519_vm0  ;;  %vm2523_vm8 = vcmp.eq.s32.totalorder %v10722_v37, 1  ;;  %vm2522_vm0 = vcmp.eq.s32.totalorder %v10767_v48, 1  ;;  %vm2524_vm2 = vcmp.eq.s32.totalorder %v10770_v30, 1  ;;  %12944 = vst [vmem:[#allocation49_spill] sm:$0xff] %v12943_v35  ;;  %vm2311_vm3 = vcmp.eq.s32.totalorder %v2199_v38, 0 }
 0x262   : > { %v12940_v61 = vsel %vm11058_vm4, 4294967295, %v12939_v61  ;;  %vm11090_vm13 = vmpackc.low %vm2524_vm2, %vm2522_vm0  ;;  %vm2526_vm2 = vcmp.eq.s32.totalorder %v10830_v1, 1  ;;  %v2117_v48 = vadd.s32 240, %v10265_v5  ;;  %v2118_v30 = vadd.s32 248, %v10265_v5 }
 0x263   : > { %12941 = vst [vmem:[#allocation48_spill] sm:$0xff] %v12940_v61  ;;  %v12949_v45 = vsel %vm11090_vm13, 4294967295, %v12948_v45  ;;  %v12969_v1 = vmov 0 }
 0x264   : > { %7834 = vmatpush1.bf16.msk.msra.mxu1 %vm11036_vm5, %v12830_v20  ;;  %vm2525_vm5 = vcmp.eq.s32.totalorder %v10725_v24, 1  ;;  %12950 = vst [vmem:[#allocation51_spill] sm:$0xff] %v12949_v45  ;;  %v12960_v24 = vmov 0  ;;  %v2207_v14 = vsub.s32 %v2117_v48, %v10286_v36  ;;  %v3455_v45 = vld [vmem:[#allocation7 + $0x70] sm:$0xff] }
 0x265   : > { %7836 = vmatprep.subr.msk.bf16.mxu1 %vm11040_vm10, %v12830_v20  ;;  %vm11082_vm9 = vmpackc.low %vm2525_vm5, %vm2523_vm8  ;;  %vm2529_vm10 = vcmp.eq.s32.totalorder %v10776_v63, 1  ;;  %vm2310_vm5 = vcmp.eq.s32.totalorder %v2198_v17, 0  ;;  %v2203_v63 = vsub.s32 %v2115_v8, %v10286_v36  ;;  %v2120_v8 = vadd.s32 264, %v10265_v5 }
 0x266   : > { %v12946_v54 = vsel %vm11082_vm9, 4294967295, %v12945_v54 }
 0x267   : > { %12947 = vst [vmem:[#allocation50_spill] sm:$0xff] %v12946_v54  ;;  %v3457_v54 = vld [vmem:[#allocation7 + $0x80] sm:$0xff] }
 0x268   : > { %7838 = vmatpush1.bf16.msk.msra.mxu1 %vm11054_vm1, %v12830_v20  ;;  %vm2527_vm1 = vcmp.eq.s32.totalorder %v10773_v16, 1  ;;  %v2116_v16 = vadd.s32 232, %v10265_v5 }
 0x269   : > { %7840 = vmatprep.subr.msk.bf16.mxu1 %vm11058_vm4, %v12830_v20  ;;  %vm2313_vm4 = vcmp.eq.s32.totalorder %v2201_v47, 0  ;;  %vm11104_vm0 = vmpackc.low %vm2529_vm10, %vm2527_vm1  ;;  %vm2530_vm1 = vcmp.eq.s32.totalorder %v10891_v29, 1  ;;  %v2208_v29 = vsub.s32 %v2118_v30, %v10291_v57 }
 0x26a   : > { %vm11097_vm8 = vmpackc.low %vm2313_vm4, %vm2311_vm3  ;;  %v12955_v7 = vsel %vm11104_vm0, 4294967295, %v12954_v7  ;;  %vm2531_vm4 = vcmp.eq.s32.totalorder %v10848_v21, 1  ;;  %vm2533_vm3 = vcmp.eq.s32.totalorder %v10851_v26, 1  ;;  %v2205_v51 = vsub.s32 %v2116_v16, %v10286_v36 }
 0x26b   : > { %v12952_v59 = vsel %vm11097_vm8, 4294967295, %v12951_v59  ;;  %12956 = vst [vmem:[#allocation53_spill] sm:$0xff] %v12955_v7  ;;  %7742 = vmatprep.subr.msk.bf16.mxu0 %vm11097_vm8, %v12830_v20  ;;  %vm11117_vm10 = vmpackc.low %vm2312_vm11, %vm2310_vm5  ;;  %v2204_v37 = vsub.s32 %v2116_v16, %v10291_v57  ;;  %vm2532_vm5 = vcmp.eq.s32.totalorder %v10894_v4, 1  ;;  %vm2535_vm8 = vcmp.eq.s32.totalorder %v2199_v38, 1  ;;  %v3451_v7 = vld [vmem:[#allocation7 + $0x50] sm:$0xff] }
 0x26c   : > { %7842 = vmatpush1.bf16.msk.msra.mxu1 %vm11076_vm7, %v12830_v20  ;;  %12953 = vst [vmem:[#allocation52_spill] sm:$0xff] %v12952_v59  ;;  %v12958_v11 = vsel %vm11117_vm10, 4294967295, %v12957_v11  ;;  %7744 = vmatpush1.bf16.msk.msra.mxu0 %vm11117_vm10, %v12830_v20  ;;  %vm11131_vm11 = vmpackc.low %vm2528_vm6, %vm2526_vm2  ;;  %vm2315_vm6 = vcmp.eq.s32.totalorder %v2203_v63, 0  ;;  %vm2317_vm2 = vcmp.eq.s32.totalorder %v2205_v51, 0  ;;  %v12966_v4 = vmov 0 }
 0x26d   : > { %7844 = vmatprep.subr.msk.bf16.mxu1 %vm11082_vm9, %v12830_v20  ;;  %12959 = vst [vmem:[#allocation54_spill] sm:$0xff] %v12958_v11  ;;  %v12961_v24 = vsel %vm11131_vm11, 4294967295, %v12960_v24  ;;  %vm11144_vm10 = vmpackc.low %vm2533_vm3, %vm2531_vm4  ;;  %vm2314_vm7 = vcmp.eq.s32.totalorder %v2202_v49, 0  ;;  %vm2316_vm14 = vcmp.eq.s32.totalorder %v2204_v37, 0  ;;  %v2209_v21 = vsub.s32 %v2118_v30, %v10286_v36 }
 0x26e   : > { %12962 = vst [vmem:[#allocation55_spill] sm:$0xff] %v12961_v24  ;;  %v12964_v22 = vsel %vm11144_vm10, 4294967295, %v12963_v22  ;;  %vm11148_vm9 = vmpackc.low %vm2317_vm2, %vm2315_vm6  ;;  %v2206_v26 = vsub.s32 %v2117_v48, %v10291_v57  ;;  %vm2536_vm3 = vcmp.eq.s32.totalorder %v2200_v25, 1  ;;  %v12975_v16 = vmov 0 }
 0x26f   : > { %12965 = vst [vmem:[#allocation56_spill] sm:$0xff] %v12964_v22  ;;  %v12967_v4 = vsel %vm11148_vm9, 4294967295, %v12966_v4  ;;  %vm11152_vm12 = vmpackc.low %vm2532_vm5, %vm2530_vm1  ;;  %7746 = vmatprep.subr.msk.bf16.mxu0 %vm11148_vm9, %v12830_v20  ;;  %vm2539_vm6 = vcmp.eq.s32.totalorder %v2203_v63, 1  ;;  %vm2541_vm2 = vcmp.eq.s32.totalorder %v2205_v51, 1  ;;  %v12978_v25 = vmov 0 }
 0x270   : > { %7846 = vmatpush1.bf16.msk.msra.mxu1 %vm11090_vm13, %v12830_v20  ;;  %vm2537_vm13 = vcmp.eq.s32.totalorder %v2201_v47, 1  ;;  %12968 = vst [vmem:[#allocation57_spill] sm:$0xff] %v12967_v4  ;;  %v12970_v1 = vsel %vm11152_vm12, 4294967295, %v12969_v1  ;;  %vm11166_vm1 = vmpackc.low %vm2316_vm14, %vm2314_vm7  ;;  %vm2319_vm14 = vcmp.eq.s32.totalorder %v2207_v14, 0  ;;  %vm2321_vm7 = vcmp.eq.s32.totalorder %v2209_v21, 0 }
 0x271   : > { %7848 = vmatprep.subr.msk.bf16.mxu1 %vm11104_vm0, %v12830_v20  ;;  %12971 = vst [vmem:[#allocation58_spill] sm:$0xff] %v12970_v1  ;;  %v12973_v41 = vsel %vm11166_vm1, 4294967295, %v12972_v41  ;;  %vm11177_vm5 = vmpackc.low %vm2537_vm13, %vm2535_vm8  ;;  %7748 = vmatpush1.bf16.msk.msra.mxu0 %vm11166_vm1, %v12830_v20  ;;  %vm2318_vm9 = vcmp.eq.s32.totalorder %v2206_v26, 0  ;;  %v12982_v38 = vmov 0  ;;  %v2211_v47 = vsub.s32 %v2119_v31, %v10286_v36 }
 0x272   : > { %12974 = vst [vmem:[#allocation59_spill] sm:$0xff] %v12973_v41  ;;  %v12976_v16 = vsel %vm11177_vm5, 4294967295, %v12975_v16  ;;  %vm11184_vm4 = vmpackc.low %vm2321_vm7, %vm2319_vm14  ;;  %v2213_v48 = vsub.s32 %v2120_v8, %v10286_v36  ;;  %v2210_v30 = vsub.s32 %v2119_v31, %v10291_v57  ;;  %v2212_v41 = vsub.s32 %v2120_v8, %v10291_v57 }
 0x273   : > { %12977 = vst [vmem:[#allocation60_spill] sm:$0xff] %v12976_v16  ;;  %v12979_v25 = vsel %vm11184_vm4, 4294967295, %v12978_v25  ;;  %7750 = vmatprep.subr.msk.bf16.mxu0 %vm11184_vm4, %v12830_v20  ;;  %vm2538_vm13 = vcmp.eq.s32.totalorder %v2202_v49, 1  ;;  %vm2540_vm8 = vcmp.eq.s32.totalorder %v2204_v37, 1  ;;  %v12988_v31 = vmov 0 }
 0x274   : > { %7850 = vmatpush1.bf16.msk.msra.mxu1 %vm11131_vm11, %v12830_v20  ;;  %12980 = vst [vmem:[#allocation61_spill] sm:$0xff] %v12979_v25  ;;  %vm12981_vm11 = vcmp.eq.s32.totalorder %v2198_v17, 1  ;;  %v12985_v17 = vmov 0  ;;  %vm2323_vm14 = vcmp.eq.s32.totalorder %v2211_v47, 0  ;;  %vm2325_vm7 = vcmp.eq.s32.totalorder %v2213_v48, 0 }
 0x275   : > { %7852 = vmatprep.subr.msk.bf16.mxu1 %vm11144_vm10, %v12830_v20  ;;  %vm2320_vm10 = vcmp.eq.s32.totalorder %v2208_v29, 0  ;;  %vm11189_vm0 = vmpackc.low %vm2536_vm3, %vm12981_vm11  ;;  %v12991_v49 = vmov 0  ;;  %vm2324_vm4 = vcmp.eq.s32.totalorder %v2212_v41, 0  ;;  %vm2546_vm1 = vcmp.eq.s32.totalorder %v2210_v30, 1 }
 0x276   : > { %v12983_v38 = vsel %vm11189_vm0, 4294967295, %v12982_v38  ;;  %vm11203_vm11 = vmpackc.low %vm2320_vm10, %vm2318_vm9  ;;  %vm2322_vm10 = vcmp.eq.s32.totalorder %v2210_v30, 0  ;;  %v12994_v63 = vmov 0  ;;  %v12997_v51 = vmov 0 }
 0x277   : > { %12984 = vst [vmem:[#allocation62_spill] sm:$0xff] %v12983_v38  ;;  %v12986_v17 = vsel %vm11203_vm11, 4294967295, %v12985_v17  ;;  %vm11212_vm3 = vmpackc.low %vm2541_vm2, %vm2539_vm6  ;;  %7752 = vmatpush1.bf16.msk.msra.mxu0 %vm11203_vm11, %v12830_v20  ;;  %vm2543_vm6 = vcmp.eq.s32.totalorder %v2207_v14, 1  ;;  %vm2545_vm2 = vcmp.eq.s32.totalorder %v2209_v21, 1  ;;  %v13000_v37 = vmov 0 }
 0x278   : > { %7854 = vmatpush1.bf16.msk.msra.mxu1 %vm11152_vm12, %v12830_v20  ;;  %12987 = vst [vmem:[#allocation63_spill] sm:$0xff] %v12986_v17  ;;  %v12989_v31 = vsel %vm11212_vm3, 4294967295, %v12988_v31  ;;  %vm11219_vm9 = vmpackc.low %vm2325_vm7, %vm2323_vm14  ;;  %v13003_v14 = vmov 0  ;;  %vm2542_vm7 = vcmp.eq.s32.totalorder %v2206_v26, 1  ;;  %vm2547_vm11 = vcmp.eq.s32.totalorder %v2211_v47, 1 }
 0x279   : > { %7856 = vmatprep.subr.msk.bf16.mxu1 %vm11177_vm5, %v12830_v20  ;;  %12990 = vst [vmem:[#allocation64_spill] sm:$0xff] %v12989_v31  ;;  %v12992_v49 = vsel %vm11219_vm9, 4294967295, %v12991_v49  ;;  %vm2548_vm5 = vcmp.eq.s32.totalorder %v2212_v41, 1  ;;  %vm11223_vm12 = vmpackc.low %vm2540_vm8, %vm2538_vm13  ;;  %7754 = vmatprep.subr.msk.bf16.mxu0 %vm11219_vm9, %v12830_v20  ;;  %vm2544_vm9 = vcmp.eq.s32.totalorder %v2208_v29, 1  ;;  %v13006_v21 = vmov 0 }
 0x27a   : > { %12993 = vst [vmem:[#allocation65_spill] sm:$0xff] %v12992_v49  ;;  %v12995_v63 = vsel %vm11223_vm12, 4294967295, %v12994_v63  ;;  %vm11233_vm14 = vmpackc.low %vm2324_vm4, %vm2322_vm10  ;;  %v13009_v41 = vmov 0  ;;  %v2121_v8 = vadd.s32 272, %v10265_v5  ;;  %v2122_v47 = vadd.s32 280, %v10265_v5 }
 0x27b   : > { %12996 = vst [vmem:[#allocation66_spill] sm:$0xff] %v12995_v63  ;;  %v12998_v51 = vsel %vm11233_vm14, 4294967295, %v12997_v51  ;;  %vm11240_vm13 = vmpackc.low %vm2548_vm5, %vm2546_vm1  ;;  %v2123_v49 = vadd.s32 288, %v10265_v5  ;;  %v2125_v59 = vadd.s32 304, %v10265_v5  ;;  %v2126_v31 = vadd.s32 312, %v10265_v5 }
 0x27c   : > { %7858 = vmatpush1.bf16.msk.msra.mxu1 %vm11189_vm0, %v12830_v20  ;;  %12999 = vst [vmem:[#allocation67_spill] sm:$0xff] %v12998_v51  ;;  %v13001_v37 = vsel %vm11240_vm13, 4294967295, %v13000_v37  ;;  %vm11244_vm8 = vmpackc.low %vm2545_vm2, %vm2543_vm6  ;;  %vm2549_vm0 = vcmp.eq.s32.totalorder %v2213_v48, 1  ;;  %v2215_v17 = vsub.s32 %v2121_v8, %v10286_v36  ;;  %v2217_v25 = vsub.s32 %v2122_v47, %v10286_v36 }
 0x27d   : > { %7860 = vmatprep.subr.msk.bf16.mxu1 %vm11212_vm3, %v12830_v20  ;;  %13002 = vst [vmem:[#allocation68_spill] sm:$0xff] %v13001_v37  ;;  %v13004_v14 = vsel %vm11244_vm8, 4294967295, %v13003_v14  ;;  %vm11254_vm4 = vmpackc.low %vm2544_vm9, %vm2542_vm7  ;;  %v2216_v11 = vsub.s32 %v2122_v47, %v10291_v57  ;;  %v2219_v63 = vsub.s32 %v2123_v49, %v10286_v36  ;;  %v2218_v47 = vsub.s32 %v2123_v49, %v10291_v57  ;;  %v3453_v37 = vld [vmem:[#allocation7 + $0x60] sm:$0xff] }
 0x27e   : > { %13005 = vst [vmem:[#allocation69_spill] sm:$0xff] %v13004_v14  ;;  %v13007_v21 = vsel %vm11254_vm4, 4294967295, %v13006_v21  ;;  %vm11258_vm1 = vmpackc.low %vm2549_vm0, %vm2547_vm11  ;;  %vm2327_vm0 = vcmp.eq.s32.totalorder %v2215_v17, 0  ;;  %vm2329_vm5 = vcmp.eq.s32.totalorder %v2217_v25, 0  ;;  %vm2551_vm11 = vcmp.eq.s32.totalorder %v2215_v17, 1 }
 0x27f   : > { %13008 = vst [vmem:[#allocation70_spill] sm:$0xff] %v13007_v21  ;;  %v13010_v41 = vsel %vm11258_vm1, 4294967295, %v13009_v41  ;;  %v2124_v21 = vadd.s32 296, %v10265_v5  ;;  %vm2553_vm9 = vcmp.eq.s32.totalorder %v2217_v25, 1  ;;  %vm11287_vm7 = vmpackc.low %vm2329_vm5, %vm2327_vm0  ;;  %v13012_v1 = vmov 0 }
 0x280   : > { %7862 = vmatpush1.bf16.msk.msra.mxu1 %vm11223_vm12, %v12830_v20  ;;  %13011 = vst [vmem:[#allocation71_spill] sm:$0xff] %v13010_v41  ;;  %v2214_v41 = vsub.s32 %v2121_v8, %v10291_v57  ;;  %v13013_v1 = vsel %vm11287_vm7, 4294967295, %v13012_v1  ;;  %v2223_v15 = vsub.s32 %v2125_v59, %v10286_v36  ;;  %v13015_v25 = vmov 0 }
 0x281   : > { %7864 = vmatprep.subr.msk.bf16.mxu1 %vm11244_vm8, %v12830_v20  ;;  %v2221_v62 = vsub.s32 %v2124_v21, %v10286_v36  ;;  %v2220_v27 = vsub.s32 %v2124_v21, %v10291_v57  ;;  %13014 = vst [vmem:[#allocation72_spill] sm:$0xff] %v13013_v1  ;;  %vm11292_vm8 = vmpackc.low %vm2553_vm9, %vm2551_vm11  ;;  %v2127_v49 = vadd.s32 320, %v10265_v5  ;;  %vm13018_vm0 = vcmp.eq.s32.totalorder %v2216_v11, 0 }
 0x282   : > { %vm2326_vm10 = vcmp.eq.s32.totalorder %v2214_v41, 0  ;;  %vm2550_vm2 = vcmp.eq.s32.totalorder %v2214_v41, 1  ;;  %v13016_v25 = vsel %vm11292_vm8, 4294967295, %v13015_v25  ;;  %v13019_v21 = vmov 0 }
 0x283   : > { %13017 = vst [vmem:[#allocation73_spill] sm:$0xff] %v13016_v25  ;;  %vm11301_vm5 = vmpackc.low %vm13018_vm0, %vm2326_vm10  ;;  %vm13025_vm9 = vcmp.eq.s32.totalorder %v2219_v63, 0  ;;  %vm13026_vm11 = vcmp.eq.s32.totalorder %v2221_v62, 0  ;;  %vm13031_vm0 = vcmp.eq.s32.totalorder %v2221_v62, 1 }
 0x284   : > { %7866 = vmatpush1.bf16.msk.msra.mxu1 %vm11254_vm4, %v12830_v20  ;;  %v13020_v21 = vsel %vm11301_vm5, 4294967295, %v13019_v21  ;;  %vm11321_vm12 = vmpackc.low %vm13026_vm11, %vm13025_vm9  ;;  %vm13030_vm4 = vcmp.eq.s32.totalorder %v2219_v63, 1  ;;  %vm13035_vm9 = vcmp.eq.s32.totalorder %v2218_v47, 0  ;;  %vm13040_vm11 = vcmp.eq.s32.totalorder %v2218_v47, 1 }
 0x285   : > { %7868 = vmatprep.subr.msk.bf16.mxu1 %vm11258_vm1, %v12830_v20  ;;  %vm2552_vm1 = vcmp.eq.s32.totalorder %v2216_v11, 1  ;;  %13021 = vst [vmem:[#allocation74_spill] sm:$0xff] %v13020_v21  ;;  %v2129_v11 = vadd.s32 336, %v10265_v5  ;;  %vm11334_vm10 = vmpackc.low %vm13031_vm0, %vm13030_vm4  ;;  %vm2559_vm4 = vcmp.eq.s32.totalorder %v2223_v15, 1  ;;  %v3573_v21 = vld [vmem:[#allocation7 + $0x418] sm:$0xff] }
 0x286   : > { %vm11309_vm6 = vmpackc.low %vm2552_vm1, %vm2550_vm2  ;;  %vm13036_vm2 = vcmp.eq.s32.totalorder %v2220_v27, 0 }
 0x287   : > { %vm11343_vm1 = vmpackc.low %vm13036_vm2, %vm13035_vm9  ;;  %vm13045_vm2 = vcmp.eq.s32.totalorder %v2223_v15, 0  ;;  %v13058_v15 = vmov 0 }
 0x2e9   : > { %v2794_v26 = vpop.f32.mrb[10].mxu0 }
 0x2ea   : > { %v2796_v29 = vpop.f32.mrb[11].mxu0 }
 0x2ed   : > { %v2800_v48 = vpop.f32.mrb[12].mxu0 }
 0x2ee   : > { %v2802_v30 = vpop.f32.mrb[13].mxu0 }
 0x2f1   : > { %v11274_v4 = vpop.f32.mrb[14].mxu0 }
 0x2f2   : > { %v11278_v14 = vpop.f32.mrb[15].mxu0 }
 0x2f5   : > { %v2969_v38 = vpop.f32.mrb[16].mxu0 }
 0x2f6   : > { %v3069_v8 = vmax.f32 %v2794_v26, %v2969_v38  ;;  %v2971_v46 = vpop.f32.mrb[17].mxu0  ;;  %v2225_v38 = vsub.s32 %v2126_v31, %v10286_v36  ;;  %v2222_v26 = vsub.s32 %v2125_v59, %v10291_v57  ;;  %v13027_v59 = vmov 0 }
 0x2f7   : > { %v3070_v16 = vmax.f32 %v2796_v29, %v2971_v46  ;;  %v2128_v46 = vadd.s32 328, %v10265_v5  ;;  %v2224_v29 = vsub.s32 %v2126_v31, %v10291_v57  ;;  %v13028_v59 = vsel %vm11321_vm12, 4294967295, %v13027_v59 }
 0x2f8   : > { %13029 = vst [vmem:[#allocation76_spill] sm:$0xff] %v13028_v59  ;;  %v2227_v31 = vsub.s32 %v2127_v49, %v10286_v36  ;;  %vm2561_vm0 = vcmp.eq.s32.totalorder %v2225_v38, 1 }
 0x2f9   : > { %v2975_v17 = vpop.f32.mrb[18].mxu0  ;;  %3161 = vmatprep.mubr.f32.mxu0 %v3070_v16  ;;  %3333 = vmatprep.mubr.f32.mxu1 %v3070_v16  ;;  %v13022_v16 = vmov 0  ;;  %v2229_v41 = vsub.s32 %v2128_v46, %v10286_v36  ;;  %v2228_v25 = vsub.s32 %v2128_v46, %v10291_v57  ;;  %vm11379_vm3 = vmpackc.low %vm2561_vm0, %vm2559_vm4  ;;  %v13053_v46 = vmov 0 }
 0x2fa   : > { %v3073_v50 = vmax.f32 %v2800_v48, %v2975_v17  ;;  %v2977_v22 = vpop.f32.mrb[19].mxu0  ;;  %3162 = vmatmul.mubr.f32.vlgmr.msra.gmra.mrb[22].mxu0 %v3069_v8  ;;  %3334 = vmatmul.mubr.f32.vlgmr.msra.gmra.mrb[32].mxu1 %v3069_v8  ;;  %v13023_v16 = vsel %vm11309_vm6, 4294967295, %v13022_v16  ;;  %v2130_v48 = vadd.s32 344, %v10265_v5  ;;  %v13037_v8 = vmov 0 }
 0x2fb   : > { %13024 = vst [vmem:[#allocation75_spill] sm:$0xff] %v13023_v16  ;;  %v3074_v24 = vmax.f32 %v2802_v30, %v2977_v22  ;;  %7756 = vmatpush1.bf16.msk.msra.mxu0 %vm11233_vm14, %v12830_v20  ;;  %7870 = vmatpush1.bf16.msk.msra.mxu1 %vm11240_vm13, %v12830_v20  ;;  %v13032_v22 = vmov 0  ;;  %v13038_v8 = vsel %vm11343_vm1, 4294967295, %v13037_v8  ;;  %vm13041_vm13 = vcmp.eq.s32.totalorder %v2220_v27, 1 }
 0x2fc   : > { %7758 = vmatprep.subr.msk.bf16.mxu0 %vm11287_vm7, %v12830_v20  ;;  %7872 = vmatprep.subr.msk.bf16.mxu1 %vm11292_vm8, %v12830_v20  ;;  %v13033_v22 = vsel %vm11334_vm10, 4294967295, %v13032_v22  ;;  %13039 = vst [vmem:[#allocation78_spill] sm:$0xff] %v13038_v8  ;;  %vm2334_vm8 = vcmp.eq.s32.totalorder %v2222_v26, 0  ;;  %vm2336_vm7 = vcmp.eq.s32.totalorder %v2224_v29, 0  ;;  %vm11350_vm14 = vmpackc.low %vm13041_vm13, %vm13040_vm11  ;;  %v13042_v17 = vmov 0 }
 0x2fd   : > { %13034 = vst [vmem:[#allocation77_spill] sm:$0xff] %v13033_v22  ;;  %v2981_v30 = vpop.f32.mrb[20].mxu0  ;;  %3167 = vmatprep.mubr.f32.mxu0 %v3074_v24  ;;  %3339 = vmatprep.mubr.f32.mxu1 %v3074_v24  ;;  %v13043_v17 = vsel %vm11350_vm14, 4294967295, %v13042_v17  ;;  %v2226_v24 = vsub.s32 %v2127_v49, %v10291_v57  ;;  %vm13046_vm13 = vcmp.eq.s32.totalorder %v2225_v38, 0  ;;  %v2231_v27 = vsub.s32 %v2129_v11, %v10286_v36  ;;  %vm11387_vm9 = vmpackc.low %vm2336_vm7, %vm2334_vm8 }
 0x2fe   : > { %v3077_v62 = vmax.f32 %v11274_v4, %v2981_v30  ;;  %v2983_v63 = vpop.f32.mrb[21].mxu0  ;;  %3168 = vmatmul.mubr.f32.gmra.mrb[24].mxu0 %v3073_v50  ;;  %3340 = vmatmul.mubr.f32.gmra.mrb[34].mxu1 %v3073_v50  ;;  %13044 = vst [vmem:[#allocation79_spill] sm:$0xff] %v13043_v17  ;;  %vm11365_vm11 = vmpackc.low %vm13046_vm13, %vm13045_vm2  ;;  %v13047_v50 = vmov 0  ;;  %v2131_v4 = vadd.s32 352, %v10265_v5  ;;  %v2233_v47 = vsub.s32 %v2130_v48, %v10286_v36 }
 0x2ff   : > { %v3078_v1 = vmax.f32 %v11278_v14, %v2983_v63  ;;  %7760 = vmatpush1.bf16.msk.msra.mxu0 %vm11301_vm5, %v12830_v20  ;;  %7874 = vmatpush1.bf16.msk.msra.mxu1 %vm11309_vm6, %v12830_v20  ;;  %v13048_v50 = vsel %vm11365_vm11, 4294967295, %v13047_v50  ;;  %v13050_v14 = vmov 0  ;;  %v2132_v49 = vadd.s32 360, %v10265_v5 }
 0x300   : > { %13049 = vst [vmem:[#allocation80_spill] sm:$0xff] %v13048_v50  ;;  %7762 = vmatprep.subr.msk.bf16.mxu0 %vm11321_vm12, %v12830_v20  ;;  %7876 = vmatprep.subr.msk.bf16.mxu1 %vm11334_vm10, %v12830_v20  ;;  %v13051_v14 = vsel %vm11379_vm3, 4294967295, %v13050_v14  ;;  %v13054_v46 = vsel %vm11387_vm9, 4294967295, %v13053_v46  ;;  %vm2563_vm10 = vcmp.eq.s32.totalorder %v2227_v31, 1  ;;  %vm2565_vm12 = vcmp.eq.s32.totalorder %v2229_v41, 1 }
 0x301   : > { %13052 = vst [vmem:[#allocation81_spill] sm:$0xff] %v13051_v14  ;;  %3173 = vmatprep.mubr.f32.mxu0 %v3078_v1  ;;  %3345 = vmatprep.mubr.f32.mxu1 %v3078_v1  ;;  %13055 = vst [vmem:[#allocation82_spill] sm:$0xff] %v13054_v46  ;;  %vm13056_vm4 = vcmp.eq.s32.totalorder %v2222_v26, 1  ;;  %vm13057_vm0 = vcmp.eq.s32.totalorder %v2224_v29, 1  ;;  %v2230_v1 = vsub.s32 %v2129_v11, %v10291_v57  ;;  %vm13061_vm8 = vcmp.eq.s32.totalorder %v2227_v31, 0 }
 0x302   : > { %3174 = vmatmul.mubr.f32.gmra.mrb[26].mxu0 %v3077_v62  ;;  %3346 = vmatmul.mubr.f32.gmra.mrb[36].mxu1 %v3077_v62  ;;  %vm11393_vm2 = vmpackc.low %vm13057_vm0, %vm13056_vm4  ;;  %v2232_v38 = vsub.s32 %v2130_v48, %v10291_v57  ;;  %vm13062_vm7 = vcmp.eq.s32.totalorder %v2229_v41, 0  ;;  %v13063_v26 = vmov 0  ;;  %vm2562_vm0 = vcmp.eq.s32.totalorder %v2226_v24, 1 }
 0x303   : > { %v13059_v15 = vsel %vm11393_vm2, 4294967295, %v13058_v15  ;;  %7764 = vmatpush1.bf16.msk.msra.mxu0 %vm11343_vm1, %v12830_v20  ;;  %7878 = vmatpush1.bf16.msk.msra.mxu1 %vm11350_vm14, %v12830_v20  ;;  %vm11407_vm4 = vmpackc.low %vm13062_vm7, %vm13061_vm8  ;;  %vm2564_vm6 = vcmp.eq.s32.totalorder %v2228_v25, 1  ;;  %v2235_v29 = vsub.s32 %v2131_v4, %v10286_v36  ;;  %v13066_v11 = vmov 0 }
 0x304   : > { %13060 = vst [vmem:[#allocation83_spill] sm:$0xff] %v13059_v15  ;;  %v13064_v26 = vsel %vm11407_vm4, 4294967295, %v13063_v26  ;;  %7766 = vmatprep.subr.msk.bf16.mxu0 %vm11365_vm11, %v12830_v20  ;;  %7880 = vmatprep.subr.msk.bf16.mxu1 %vm11379_vm3, %v12830_v20  ;;  %vm11420_vm14 = vmpackc.low %vm2565_vm12, %vm2563_vm10  ;;  %vm2345_vm8 = vcmp.eq.s32.totalorder %v2233_v47, 0  ;;  %v2237_v48 = vsub.s32 %v2132_v49, %v10286_v36  ;;  %v2133_v30 = vadd.s32 368, %v10265_v5 }
 0x305   : > { %13065 = vst [vmem:[#allocation84_spill] sm:$0xff] %v13064_v26  ;;  %v13067_v11 = vsel %vm11420_vm14, 4294967295, %v13066_v11  ;;  %v2134_v62 = vadd.s32 376, %v10265_v5  ;;  %vm13069_vm7 = vcmp.eq.s32.totalorder %v2226_v24, 0  ;;  %vm13070_vm13 = vcmp.eq.s32.totalorder %v2228_v25, 0  ;;  %vm11433_vm5 = vmpackc.low %vm2564_vm6, %vm2562_vm0 }
 0x306   : > { %13068 = vst [vmem:[#allocation85_spill] sm:$0xff] %v13067_v11  ;;  %vm11429_vm11 = vmpackc.low %vm13070_vm13, %vm13069_vm7  ;;  %v13071_v63 = vmov 0  ;;  %vm2567_vm3 = vcmp.eq.s32.totalorder %v2231_v27, 1  ;;  %vm2569_vm1 = vcmp.eq.s32.totalorder %v2233_v47, 1  ;;  %v13074_v31 = vmov 0 }
 0x307   : > { %v13072_v63 = vsel %vm11429_vm11, 4294967295, %v13071_v63  ;;  %v13075_v31 = vsel %vm11433_vm5, 4294967295, %v13074_v31  ;;  %v2234_v41 = vsub.s32 %v2131_v4, %v10291_v57  ;;  %v2236_v14 = vsub.s32 %v2132_v49, %v10291_v57  ;;  %7768 = vmatpush1.bf16.msk.msra.mxu0 %vm11387_vm9, %v12830_v20  ;;  %7882 = vmatpush1.bf16.msk.msra.mxu1 %vm11393_vm2, %v12830_v20  ;;  %vm11459_vm12 = vmpackc.low %vm2569_vm1, %vm2567_vm3 }
 0x308   : > { %13073 = vst [vmem:[#allocation86_spill] sm:$0xff] %v13072_v63  ;;  %13076 = vst [vmem:[#allocation87_spill] sm:$0xff] %v13075_v31  ;;  %vm13077_vm13 = vcmp.eq.s32.totalorder %v2231_v27, 0  ;;  %v13078_v25 = vmov 0  ;;  %vm2566_vm6 = vcmp.eq.s32.totalorder %v2230_v1, 1  ;;  %vm2568_vm0 = vcmp.eq.s32.totalorder %v2232_v38, 1  ;;  %7770 = vmatprep.subr.msk.bf16.mxu0 %vm11407_vm4, %v12830_v20  ;;  %7884 = vmatprep.subr.msk.bf16.mxu1 %vm11420_vm14, %v12830_v20 }
 0x309   : > { %vm11446_vm7 = vmpackc.low %vm2345_vm8, %vm13077_vm13  ;;  %v2135_v24 = vadd.s32 384, %v10265_v5  ;;  %v13081_v4 = vmov 0  ;;  %vm2349_vm8 = vcmp.eq.s32.totalorder %v2237_v48, 0  ;;  %v2239_v49 = vsub.s32 %v2133_v30, %v10286_v36 }
 0x30a   : > { %v13079_v25 = vsel %vm11446_vm7, 4294967295, %v13078_v25  ;;  %v13082_v4 = vsel %vm11459_vm12, 4294967295, %v13081_v4  ;;  %v2241_v15 = vsub.s32 %v2134_v62, %v10286_v36  ;;  %v2136_v46 = vadd.s32 392, %v10265_v5  ;;  %vm11472_vm9 = vmpackc.low %vm2568_vm0, %vm2566_vm6 }
 0x30b   : > { %13080 = vst [vmem:[#allocation88_spill] sm:$0xff] %v13079_v25  ;;  %13083 = vst [vmem:[#allocation89_spill] sm:$0xff] %v13082_v4  ;;  %vm13084_vm13 = vcmp.eq.s32.totalorder %v2230_v1, 0  ;;  %vm13085_vm10 = vcmp.eq.s32.totalorder %v2232_v38, 0  ;;  %v13086_v26 = vmov 0  ;;  %vm2571_vm14 = vcmp.eq.s32.totalorder %v2235_v29, 1  ;;  %7772 = vmatpush1.bf16.msk.msra.mxu0 %vm11429_vm11, %v12830_v20  ;;  %7886 = vmatpush1.bf16.msk.msra.mxu1 %vm11433_vm5, %v12830_v20 }
 0x30c   : > { %vm11468_vm4 = vmpackc.low %vm13085_vm10, %vm13084_vm13  ;;  %vm2573_vm2 = vcmp.eq.s32.totalorder %v2237_v48, 1  ;;  %v13089_v27 = vmov 0  ;;  %vm2346_vm3 = vcmp.eq.s32.totalorder %v2234_v41, 0  ;;  %v2238_v47 = vsub.s32 %v2133_v30, %v10291_v57  ;;  %7774 = vmatprep.subr.msk.bf16.mxu0 %vm11446_vm7, %v12830_v20  ;;  %7888 = vmatprep.subr.msk.bf16.mxu1 %vm11459_vm12, %v12830_v20 }
 0x30d   : > { %v13087_v26 = vsel %vm11468_vm4, 4294967295, %v13086_v26  ;;  %v13090_v27 = vsel %vm11472_vm9, 4294967295, %v13089_v27  ;;  %v2240_v11 = vsub.s32 %v2134_v62, %v10291_v57  ;;  %vm13092_vm10 = vcmp.eq.s32.totalorder %v2235_v29, 0  ;;  %v11515_v48 = vpop.f32.mrb[20].mxu1 }
 0x30e   : > { %13088 = vst [vmem:[#allocation90_spill] sm:$0xff] %v13087_v26  ;;  %13091 = vst [vmem:[#allocation91_spill] sm:$0xff] %v13090_v27  ;;  %v13093_v1 = vmov 0  ;;  %vm2570_vm6 = vcmp.eq.s32.totalorder %v2234_v41, 1  ;;  %vm2572_vm0 = vcmp.eq.s32.totalorder %v2236_v14, 1  ;;  %v2243_v38 = vsub.s32 %v2135_v24, %v10286_v36  ;;  %v11530_v41 = vpop.f32.mrb[21].mxu1 }
 0x30f   : > { %vm11485_vm13 = vmpackc.low %vm2349_vm8, %vm13092_vm10  ;;  %v2137_v30 = vadd.s32 400, %v10265_v5  ;;  %v13096_v62 = vmov 0  ;;  %vm2351_vm10 = vcmp.eq.s32.totalorder %v2239_v49, 0  ;;  %vm2353_vm1 = vcmp.eq.s32.totalorder %v2241_v15, 0  ;;  %7776 = vmatpush1.bf16.msk.msra.mxu0 %vm11468_vm4, %v12830_v20  ;;  %7890 = vmatpush1.bf16.msk.msra.mxu1 %vm11472_vm9, %v12830_v20 }
 0x310   : > { %v13094_v1 = vsel %vm11485_vm13, 4294967295, %v13093_v1  ;;  %vm11499_vm8 = vmpackc.low %vm2573_vm2, %vm2571_vm14  ;;  %v2245_v31 = vsub.s32 %v2136_v46, %v10286_v36  ;;  %v2138_v63 = vadd.s32 408, %v10265_v5  ;;  %vm13099_vm5 = vcmp.eq.s32.totalorder %v2236_v14, 0  ;;  %7778 = vmatprep.subr.msk.bf16.mxu0 %vm11485_vm13, %v12830_v20 }
 0x311   : > { %13095 = vst [vmem:[#allocation92_spill] sm:$0xff] %v13094_v1  ;;  %v13097_v62 = vsel %vm11499_vm8, 4294967295, %v13096_v62  ;;  %vm11507_vm11 = vmpackc.low %vm13099_vm5, %vm2346_vm3  ;;  %v13100_v25 = vmov 0  ;;  %vm2575_vm7 = vcmp.eq.s32.totalorder %v2239_v49, 1  ;;  %vm2577_vm12 = vcmp.eq.s32.totalorder %v2241_v15, 1  ;;  %7892 = vmatprep.subr.msk.bf16.mxu1 %vm11499_vm8, %v12830_v20 }
 0x312   : > { %13098 = vst [vmem:[#allocation93_spill] sm:$0xff] %v13097_v62  ;;  %v13101_v25 = vsel %vm11507_vm11, 4294967295, %v13100_v25  ;;  %vm11511_vm15 = vmpackc.low %vm2572_vm0, %vm2570_vm6  ;;  %v13103_v29 = vmov 0  ;;  %vm2350_vm14 = vcmp.eq.s32.totalorder %v2238_v47, 0  ;;  %vm2352_vm2 = vcmp.eq.s32.totalorder %v2240_v11, 0  ;;  %v11560_v62 = vpop.f32.mrb[22].mxu1 }
 0x313   : > { %13102 = vst [vmem:[#allocation94_spill] sm:$0xff] %v13101_v25  ;;  %v13104_v29 = vsel %vm11511_vm15, 4294967295, %v13103_v29  ;;  %v2242_v4 = vsub.s32 %v2135_v24, %v10291_v57  ;;  %v2244_v50 = vsub.s32 %v2136_v46, %v10291_v57  ;;  %vm11526_vm5 = vmpackc.low %vm2353_vm1, %vm2351_vm10  ;;  %v13106_v14 = vmov 0  ;;  %7780 = vmatpush1.bf16.msk.msra.mxu0 %vm11507_vm11, %v12830_v20  ;;  %7894 = vmatpush1.bf16.msk.msra.mxu1 %vm11511_vm15, %v12830_v20 }
 0x314   : > { %13105 = vst [vmem:[#allocation95_spill] sm:$0xff] %v13104_v29  ;;  %v13107_v14 = vsel %vm11526_vm5, 4294967295, %v13106_v14  ;;  %vm2576_vm6 = vcmp.eq.s32.totalorder %v2240_v11, 1  ;;  %v2247_v46 = vsub.s32 %v2137_v30, %v10286_v36  ;;  %vm11541_vm1 = vmpackc.low %vm2577_vm12, %vm2575_vm7  ;;  %v13109_v24 = vmov 0  ;;  %7782 = vmatprep.subr.msk.bf16.mxu0 %vm11526_vm5, %v12830_v20 }
 0x315   : > { %13108 = vst [vmem:[#allocation96_spill] sm:$0xff] %v13107_v14  ;;  %v13110_v24 = vsel %vm11541_vm1, 4294967295, %v13109_v24  ;;  %v2249_v27 = vsub.s32 %v2138_v63, %v10286_v36  ;;  %v2139_v26 = vadd.s32 416, %v10265_v5  ;;  %v2140_v17 = vadd.s32 424, %v10265_v5  ;;  %vm11550_vm0 = vmpackc.low %vm2352_vm2, %vm2350_vm14  ;;  %7896 = vmatprep.subr.msk.bf16.mxu1 %vm11541_vm1, %v12830_v20 }
 0x316   : > { %13111 = vst [vmem:[#allocation97_spill] sm:$0xff] %v13110_v24  ;;  %v13112_v1 = vmov 0  ;;  %vm2579_vm3 = vcmp.eq.s32.totalorder %v2243_v38, 1  ;;  %vm2581_vm8 = vcmp.eq.s32.totalorder %v2245_v31, 1  ;;  %v2142_v15 = vadd.s32 440, %v10265_v5 }
 0x317   : > { %v13113_v1 = vsel %vm11550_vm0, 4294967295, %v13112_v1  ;;  %vm13115_vm12 = vcmp.eq.s32.totalorder %v2238_v47, 1  ;;  %v13116_v49 = vmov 0  ;;  %v2246_v8 = vsub.s32 %v2137_v30, %v10291_v57  ;;  %v11570_v47 = vpop.f32.mrb[23].mxu1  ;;  %vm11586_vm15 = vmpackc.low %vm2581_vm8, %vm2579_vm3  ;;  %7784 = vmatpush1.bf16.msk.msra.mxu0 %vm11550_vm0, %v12830_v20 }
 0x318   : > { %13114 = vst [vmem:[#allocation98_spill] sm:$0xff] %v13113_v1  ;;  %vm11556_vm7 = vmpackc.low %vm2576_vm6, %vm13115_vm12  ;;  %v2248_v11 = vsub.s32 %v2138_v63, %v10291_v57  ;;  %vm13119_vm14 = vcmp.eq.s32.totalorder %v2243_v38, 0  ;;  %vm13120_vm2 = vcmp.eq.s32.totalorder %v2245_v31, 0  ;;  %v13121_v22 = vmov 0  ;;  %v11602_v38 = vpop.f32.mrb[24].mxu1  ;;  %v3563_v1 = vld [vmem:[#allocation7 + $0x3c8] sm:$0xff] }
 0x319   : > { %v13117_v49 = vsel %vm11556_vm7, 4294967295, %v13116_v49  ;;  %vm11574_vm6 = vmpackc.low %vm13120_vm2, %vm13119_vm14  ;;  %vm2580_vm13 = vcmp.eq.s32.totalorder %v2244_v50, 1  ;;  %v13124_v63 = vmov 0  ;;  %v2251_v30 = vsub.s32 %v2139_v26, %v10286_v36  ;;  %7898 = vmatpush1.bf16.msk.msra.mxu1 %vm11556_vm7, %v12830_v20  ;;  %v11617_v16 = vpop.f32.mrb[25].mxu1 }
 0x31a   : > { %13118 = vst [vmem:[#allocation99_spill] sm:$0xff] %v13117_v49  ;;  %v13122_v22 = vsel %vm11574_vm6, 4294967295, %v13121_v22  ;;  %v13125_v63 = vsel %vm11586_vm15, 4294967295, %v13124_v63  ;;  %v2253_v29 = vsub.s32 %v2140_v17, %v10286_v36  ;;  %v2141_v25 = vadd.s32 432, %v10265_v5  ;;  %7786 = vmatprep.subr.msk.bf16.mxu0 %vm11574_vm6, %v12830_v20  ;;  %7900 = vmatprep.subr.msk.bf16.mxu1 %vm11586_vm15, %v12830_v20  ;;  %v3560_v49 = vld [vmem:[#allocation7 + $0x3b0] sm:$0xff] }
 0x31b   : > { %13123 = vst [vmem:[#allocation100_spill] sm:$0xff] %v13122_v22  ;;  %13126 = vst [vmem:[#allocation101_spill] sm:$0xff] %v13125_v63  ;;  %vm13127_vm2 = vcmp.eq.s32.totalorder %v2242_v4, 0  ;;  %vm13128_vm10 = vcmp.eq.s32.totalorder %v2244_v50, 0  ;;  %v13129_v14 = vmov 0  ;;  %vm2583_vm1 = vcmp.eq.s32.totalorder %v2247_v46, 1 }
 0x31c   : > { %vm11595_vm12 = vmpackc.low %vm13128_vm10, %vm13127_vm2  ;;  %vm2585_vm5 = vcmp.eq.s32.totalorder %v2249_v27, 1  ;;  %v11600_v31 = vsub.s32 %v2142_v15, %v10286_v36  ;;  %vm13133_vm8 = vcmp.eq.s32.totalorder %v2242_v4, 1  ;;  %v13134_v24 = vmov 0 }
 0x31d   : > { %v13130_v14 = vsel %vm11595_vm12, 4294967295, %v13129_v14  ;;  %vm11605_vm3 = vmpackc.low %vm2580_vm13, %vm13133_vm8  ;;  %v2250_v50 = vsub.s32 %v2139_v26, %v10291_v57  ;;  %v2252_v59 = vsub.s32 %v2140_v17, %v10291_v57  ;;  %vm13137_vm13 = vcmp.eq.s32.totalorder %v2247_v46, 0  ;;  %7788 = vmatpush1.bf16.msk.msra.mxu0 %vm11595_vm12, %v12830_v20 }
 0x31e   : > { %13131 = vst [vmem:[#allocation102_spill] sm:$0xff] %v13130_v14  ;;  %13132 = vst [vmem:[#allocation103_spill] sm:$0xff] %v11600_v31  ;;  %v13135_v24 = vsel %vm11605_vm3, 4294967295, %v13134_v24  ;;  %vm13138_vm10 = vcmp.eq.s32.totalorder %v2249_v27, 0  ;;  %v13139_v4 = vmov 0  ;;  %vm2582_vm8 = vcmp.eq.s32.totalorder %v2246_v8, 1  ;;  %7902 = vmatpush1.bf16.msk.msra.mxu1 %vm11605_vm3, %v12830_v20 }
 0x31f   : > { %13136 = vst [vmem:[#allocation104_spill] sm:$0xff] %v13135_v24  ;;  %vm11621_vm2 = vmpackc.low %vm13138_vm10, %vm13137_vm13  ;;  %vm2584_vm11 = vcmp.eq.s32.totalorder %v2248_v11, 1  ;;  %v13142_v17 = vmov 0  ;;  %v11638_v26 = vsub.s32 %v2141_v25, %v10286_v36  ;;  %vm13146_vm7 = vcmp.eq.s32.totalorder %v2246_v8, 0  ;;  %v3052_v27 = vpop.f32.mrb[26].mxu1  ;;  %v3556_v24 = vld [vmem:[#allocation7 + $0x390] sm:$0xff] }
 0x320   : > { %v13140_v4 = vsel %vm11621_vm2, 4294967295, %v13139_v4  ;;  %vm11633_vm14 = vmpackc.low %vm2585_vm5, %vm2583_vm1  ;;  %vm13147_vm0 = vcmp.eq.s32.totalorder %v2248_v11, 0  ;;  %v13148_v22 = vmov 0  ;;  %vm2587_vm6 = vcmp.eq.s32.totalorder %v2251_v30, 1  ;;  %7790 = vmatprep.subr.msk.bf16.mxu0 %vm11621_vm2, %v12830_v20 }
 0x321   : > { %13141 = vst [vmem:[#allocation105_spill] sm:$0xff] %v13140_v4  ;;  %v13143_v17 = vsel %vm11633_vm14, 4294967295, %v13142_v17  ;;  %13145 = vst [vmem:[#allocation107_spill] sm:$0xff] %v11638_v26  ;;  %vm2589_vm4 = vcmp.eq.s32.totalorder %v2253_v29, 1  ;;  %v11647_v46 = vsub.s32 %v2142_v15, %v10291_v57  ;;  %vm12730_vm5 = vcmp.eq.s32.totalorder %v11600_v31, 0  ;;  %v3054_v15 = vpop.f32.mrb[27].mxu1  ;;  %7904 = vmatprep.subr.msk.bf16.mxu1 %vm11633_vm14, %v12830_v20 }
 0x322   : > { %13144 = vst [vmem:[#allocation106_spill] sm:$0xff] %v13143_v17  ;;  %vm11642_vm9 = vmpackc.low %vm13147_vm0, %vm13146_vm7  ;;  %v13152_v63 = vmov 0  ;;  %vm2362_vm13 = vcmp.eq.s32.totalorder %v2250_v50, 0  ;;  %vm2364_vm15 = vcmp.eq.s32.totalorder %v2252_v59, 0  ;;  %v11662_v8 = vmax.f32 %v11515_v48, %v3052_v27  ;;  %v3577_v17 = vld [vmem:[#allocation7 + $0x438] sm:$0xff] }
 0x323   : > { %v13149_v22 = vsel %vm11642_vm9, 4294967295, %v13148_v22  ;;  %13151 = vst [vmem:[#allocation109_spill] sm:$0xff] %v11647_v46  ;;  %vm11650_vm1 = vmpackc.low %vm2584_vm11, %vm2582_vm8  ;;  %vm13155_vm11 = vcmp.eq.s32.totalorder %v2251_v30, 0  ;;  %vm13156_vm7 = vcmp.eq.s32.totalorder %v2253_v29, 0  ;;  %v13157_v11 = vmov 0  ;;  %v3058_v30 = vpop.f32.mrb[28].mxu1  ;;  %7792 = vmatpush1.bf16.msk.msra.mxu0 %vm11642_vm9, %v12830_v20 }
 0x324   : > { %13150 = vst [vmem:[#allocation108_spill] sm:$0xff] %v13149_v22  ;;  %v13153_v63 = vsel %vm11650_vm1, 4294967295, %v13152_v63  ;;  %vm11666_vm8 = vmpackc.low %vm13156_vm7, %vm13155_vm11  ;;  %v11671_v36 = vsub.s32 %v2141_v25, %v10291_v57  ;;  %v3072_v14 = vmax.f32 %v11530_v41, %v3054_v15  ;;  %v13161_v48 = vmov 0  ;;  %7906 = vmatpush1.bf16.msk.msra.mxu1 %vm11650_vm1, %v12830_v20 }
 0x325   : > { %13154 = vst [vmem:[#allocation110_spill] sm:$0xff] %v13153_v63  ;;  %v13158_v11 = vsel %vm11666_vm8, 4294967295, %v13157_v11  ;;  %vm11682_vm11 = vmpackc.low %vm2589_vm4, %vm2587_vm6  ;;  %v2481_v25 = vsel %vm12730_vm5, 1.0, %v12840_v32  ;;  %v13164_v41 = vmov 0  ;;  %vm12749_vm10 = vcmp.eq.s32.totalorder %v11638_v26, 1  ;;  %7794 = vmatprep.subr.msk.bf16.mxu0 %vm11666_vm8, %v12830_v20 }
 0x326   : > { %13159 = vst [vmem:[#allocation111_spill] sm:$0xff] %v13158_v11  ;;  %13160 = vst [vmem:[#allocation112_spill] sm:$0xff] %v11671_v36  ;;  %v13162_v48 = vsel %vm11682_vm11, 4294967295, %v13161_v48  ;;  %vm13167_vm4 = vcmp.eq.s32.totalorder %v11600_v31, 1  ;;  %vm12748_vm6 = vcmp.eq.s32.totalorder %v11647_v46, 0  ;;  %vm12744_vm7 = vcmp.eq.s32.totalorder %v11647_v46, 1  ;;  %7908 = vmatprep.subr.msk.bf16.mxu1 %vm11682_vm11, %v12830_v20 }
 0x327   : > { %13163 = vst [vmem:[#allocation113_spill] sm:$0xff] %v13162_v48  ;;  %vm11692_vm0 = vmpackc.low %vm2364_vm15, %vm2362_vm13  ;;  %v2705_v29 = vsel %vm13167_vm4, 1.0, %v12840_v32  ;;  %vm13168_vm14 = vcmask 490496   ;;  %vm13170_vm2 = vcmp.eq.s32.totalorder %v2250_v50, 1  ;;  %vm13171_vm15 = vcmp.eq.s32.totalorder %v2252_v59, 1  ;;  %v3060_v31 = vpop.f32.mrb[29].mxu1 }
 0x328   : > { %v13165_v41 = vsel %vm11692_vm0, 4294967295, %v13164_v41  ;;  %6921 = vmatprep.mubr.msk.f32.mxu0 %vm13168_vm14, %v3072_v14  ;;  %vm13169_vm5 = vmmov %vm13168_vm14  ;;  %v13172_v27 = vmov 0  ;;  %v11717_v15 = vmax.f32 %v11560_v62, %v3058_v30  ;;  %v9644_v57 = vmov 1.0   ;;  %v3555_v30 = vld [vmem:[#allocation7 + $0x388] sm:$0xff]  ;;  %v3561_v11 = vld [vmem:[#allocation7 + $0x3b8] sm:$0xff]  ;;  %7796 = vmatpush1.bf16.msk.msra.mxu0 %vm11692_vm0, %v12830_v20 }
 0x329   : > { %13166 = vst [vmem:[#allocation114_spill] sm:$0xff] %v13165_v41  ;;  %7036 = vmatprep.mubr.msk.f32.mxu1 %vm13169_vm5, %v3072_v14  ;;  %vm11706_vm13 = vmpackc.low %vm13171_vm15, %vm13170_vm2  ;;  %v7797_v14 = vpack.c.bf16 %v2481_v25, %v9644_v57  ;;  %vm13175_vm14 = vcmp.eq.s32.totalorder %v11638_v26, 0  ;;  %vm13176_vm2 = vcmask 1043456   ;;  %vm2366_vm4 = vcmp.eq.s32.totalorder %v11671_v36, 0  ;;  %v3559_v48 = vld [vmem:[#allocation7 + $0x3a8] sm:$0xff]  ;;  %v3064_v26 = vpop.f32.mrb[30].mxu1 }
 0x32a   : > { %v13173_v27 = vsel %vm11706_vm13, 4294967295, %v13172_v27  ;;  %vm11722_vm5 = vmpackc.low %vm13176_vm2, %vm13175_vm14  ;;  %v3076_v50 = vmax.f32 %v11570_v47, %v3060_v31  ;;  %v7911_v62 = vpack.c.bf16 %v2705_v29, %v9644_v57  ;;  %v2480_v47 = vsel %vm12748_vm6, 1.0, %v12840_v32  ;;  %v3557_v29 = vld [vmem:[#allocation7 + $0x398] sm:$0xff]  ;;  %7910 = vmatpush1.bf16.msk.msra.mxu1 %vm11706_vm13, %v12830_v20  ;;  %v3066_v46 = vpop.f32.mrb[31].mxu1  ;;  %v3562_v59 = vld [vmem:[#allocation7 + $0x3c0] sm:$0xff] }
 0x32b   : > { %13174 = vst [vmem:[#allocation115_spill] sm:$0xff] %v13173_v27  ;;  %vm13179_vm15 = vmmov %vm13176_vm2  ;;  %v2704_v31 = vsel %vm12744_vm7, 1.0, %v12840_v32  ;;  %vm2590_vm2 = vcmp.eq.s32.totalorder %v11671_v36, 1  ;;  %v11755_v63 = vmax.f32 %v11602_v38, %v3064_v26  ;;  %v7800_v22 = vpack.c.bf16 %v2480_v47, %v9644_v57  ;;  %7799 = vmatprep.subr.msk.bf16.mxu0 %vm11722_vm5, %v7797_v14  ;;  %v3554_v47 = vld [vmem:[#allocation7 + $0x380] sm:$0xff]  ;;  %v3564_v25 = vld [vmem:[#allocation7 + $0x3d0] sm:$0xff] }
 0x32c   : > { %vm11737_vm14 = vmpackc.low %vm13179_vm15, %vm12749_vm10  ;;  %v7914_v4 = vpack.c.bf16 %v2704_v31, %v9644_v57  ;;  %v3080_v41 = vmax.f32 %v11617_v16, %v3066_v46  ;;  %v7917_v38 = vpack.c.bf16 %v3559_v48, %v3555_v30  ;;  %v7975_v26 = vpack.c.bf16 %v3561_v11, %v3557_v29  ;;  %v3558_v27 = vld [vmem:[#allocation7 + $0x3a0] sm:$0xff]  ;;  %v3567_v57 = vld [vmem:[#allocation7 + $0x3e8] sm:$0xff] }
 0x32d   : > { %vm11760_vm7 = vmpackc.low %vm13179_vm15, %vm2366_vm4  ;;  %7913 = vmatprep.subr.msk.bf16.mxu1 %vm11737_vm14, %v7911_v62  ;;  %v3565_v31 = vld [vmem:[#allocation7 + $0x3d8] sm:$0xff]  ;;  %v7919_v46 = vpack.c.bf16 %v3558_v27, %v3554_v47  ;;  %v7977_v14 = vpack.c.bf16 %v3560_v49, %v3556_v24  ;;  %v3566_v62 = vld [vmem:[#allocation7 + $0x3e0] sm:$0xff]  ;;  %v7921_v48 = vpack.c.bf16 %v3567_v57, %v3563_v1  ;;  %v7983_v27 = vpack.c.bf16 %v3577_v17, %v3573_v21 }
 0x32e   : > { %vm13184_vm6 = vmmov %vm13179_vm15  ;;  %v3569_v16 = vld [vmem:[#allocation7 + $0x3f8] sm:$0xff]  ;;  %7802 = vmatpush1.bf16.msk.msra.mxu0 %vm11760_vm7, %v7800_v22  ;;  %v3568_v30 = vld [vmem:[#allocation7 + $0x3f0] sm:$0xff]  ;;  %vm13185_vm7 = vcmask 490496   ;;  %v7923_v22 = vpack.c.bf16 %v3566_v62, %v3562_v59  ;;  %vm13189_vm14 = vmmov 1   ;;  %vm13190_vm15 = vcmask 1045504  }
 0x32f   : > { %vm7915_vm10 = vmpackc.low %vm13184_vm6, %vm2590_vm2  ;;  %7918 = vmatprep.subr.bf16.mxu0 %v7917_v38  ;;  %v7979_v11 = vpack.c.bf16 %v3569_v16, %v3565_v31  ;;  %v3571_v29 = vld [vmem:[#allocation7 + $0x408] sm:$0xff]  ;;  %v7981_v24 = vpack.c.bf16 %v3568_v30, %v3564_v25  ;;  %v3570_v1 = vld [vmem:[#allocation7 + $0x400] sm:$0xff] }
 0x330   : > { %7916 = vmatpush1.bf16.msk.msra.mxu1 %vm7915_vm10, %v7914_v4  ;;  %v3575_v36 = vld [vmem:[#allocation7 + $0x428] sm:$0xff]  ;;  %vm13186_vm10 = vmmov %vm13185_vm7  ;;  %v3574_v49 = vld [vmem:[#allocation7 + $0x420] sm:$0xff] }
 0x331   : > { %7976 = vmatprep.subr.bf16.mxu1 %v7975_v26  ;;  %3245 = vmatmul.mubr.f32.vlgmr.msra.gmra.mrb[22].mxu0 %v11662_v8  ;;  %v7925_v4 = vpack.c.bf16 %v3575_v36, %v3571_v29  ;;  %v3572_v38 = vld [vmem:[#allocation7 + $0x410] sm:$0xff]  ;;  %v3583_v47 = vld [vmem:[#allocation7 + $0x468] sm:$0xff]  ;;  %v3581_v57 = vld [vmem:[#allocation7 + $0x458] sm:$0xff]  ;;  %v7927_v31 = vpack.c.bf16 %v3574_v49, %v3570_v1 }
 0x332   : > { %6922 = vmatprep.mubr.msk.f32.mxu0 %vm13185_vm7, %v3076_v50  ;;  %7920 = vmatpush1.bf16.msra.mxu0 %v7919_v46  ;;  %v3576_v26 = vld [vmem:[#allocation7 + $0x430] sm:$0xff]  ;;  %vm13187_vm6 = vmmov %vm13185_vm7  ;;  %v3578_v36 = vld [vmem:[#allocation7 + $0x440] sm:$0xff] }
 0x333   : > { %3417 = vmatmul.mubr.f32.vlgmr.msra.gmra.mrb[32].mxu1 %v11662_v8  ;;  %7922 = vmatprep.subr.bf16.mxu0 %v7921_v48  ;;  %v3579_v8 = vld [vmem:[#allocation7 + $0x448] sm:$0xff]  ;;  %vm13188_vm5 = vmmov %vm13187_vm6  ;;  %v7985_v16 = vpack.c.bf16 %v3576_v26, %v3572_v38  ;;  %v3582_v21 = vld [vmem:[#allocation7 + $0x460] sm:$0xff] }
 0x334   : > { %7037 = vmatprep.mubr.msk.f32.mxu1 %vm13186_vm10, %v3076_v50  ;;  %7978 = vmatpush1.bf16.msra.mxu1 %v7977_v14  ;;  %v3585_v50 = vld [vmem:[#allocation7 + $0x478] sm:$0xff]  ;;  %v7929_v46 = vpack.c.bf16 %v3583_v47, %v3579_v8  ;;  %v3580_v59 = vld [vmem:[#allocation7 + $0x450] sm:$0xff]  ;;  %v3591_v48 = vld [vmem:[#allocation7 + $0x4a8] sm:$0xff]  ;;  %v7931_v25 = vpack.c.bf16 %v3582_v21, %v3578_v36  ;;  %vm3678_vm10 = vcmask 769024  }
 0x335   : > { %7980 = vmatprep.subr.bf16.mxu1 %v7979_v11  ;;  %3251 = vmatmul.mubr.f32.gmra.mrb[24].mxu0 %v11717_v15  ;;  %v7987_v14 = vpack.c.bf16 %v3585_v50, %v3581_v57  ;;  %v3584_v62 = vld [vmem:[#allocation7 + $0x470] sm:$0xff]  ;;  %v3589_v11 = vld [vmem:[#allocation7 + $0x498] sm:$0xff]  ;;  %v3586_v29 = vld [vmem:[#allocation7 + $0x480] sm:$0xff] }
 0x336   : > { %6923 = vmatprep.mubr.msk.f32.mxu0 %vm13187_vm6, %v3080_v41  ;;  %7924 = vmatpush1.bf16.msra.mxu0 %v7923_v22  ;;  %v7989_v30 = vpack.c.bf16 %v3584_v62, %v3580_v59  ;;  %v3590_v17 = vld [vmem:[#allocation7 + $0x4a0] sm:$0xff]  ;;  %v3588_v1 = vld [vmem:[#allocation7 + $0x490] sm:$0xff]  ;;  %v3597_v38 = vld [vmem:[#allocation7 + $0x4d8] sm:$0xff]  ;;  %vm13193_vm6 = vcmask 1046528  }
 0x337   : > { %3423 = vmatmul.mubr.f32.gmra.mrb[34].mxu1 %v11717_v15  ;;  %7926 = vmatprep.subr.bf16.mxu0 %v7925_v4  ;;  %v3587_v15 = vld [vmem:[#allocation7 + $0x488] sm:$0xff]  ;;  %v3592_v49 = vld [vmem:[#allocation7 + $0x4b0] sm:$0xff]  ;;  %v3601_v26 = vld [vmem:[#allocation7 + $0x4f8] sm:$0xff] }
 0x338   : > { %7038 = vmatprep.mubr.msk.f32.mxu1 %vm13188_vm5, %v3080_v41  ;;  %7982 = vmatpush1.bf16.msra.mxu1 %v7981_v24  ;;  %v3593_v41 = vld [vmem:[#allocation7 + $0x4b8] sm:$0xff]  ;;  %v7933_v22 = vpack.c.bf16 %v3591_v48, %v3587_v15  ;;  %v3595_v4 = vld [vmem:[#allocation7 + $0x4c8] sm:$0xff]  ;;  %v7993_v8 = vpack.c.bf16 %v3592_v49, %v3588_v1  ;;  %v3594_v47 = vld [vmem:[#allocation7 + $0x4c0] sm:$0xff] }
 0x339   : > { %7984 = vmatprep.subr.bf16.mxu1 %v7983_v27  ;;  %3257 = vmatmul.mubr.f32.gmra.mrb[26].mxu0 %v11755_v63  ;;  %v7991_v24 = vpack.c.bf16 %v3593_v41, %v3589_v11  ;;  %v3599_v27 = vld [vmem:[#allocation7 + $0x4e8] sm:$0xff]  ;;  %v3598_v57 = vld [vmem:[#allocation7 + $0x4e0] sm:$0xff]  ;;  %v3600_v36 = vld [vmem:[#allocation7 + $0x4f0] sm:$0xff] }
 0x33a   : > { %7928 = vmatpush1.bf16.msra.mxu0 %v7927_v31  ;;  %v7937_v50 = vpack.c.bf16 %v3599_v27, %v3595_v4  ;;  %v7995_v31 = vpack.c.bf16 %v3601_v26, %v3597_v38  ;;  %v3603_v21 = vld [vmem:[#allocation7 + $0x508] sm:$0xff]  ;;  %v3609_v59 = vld [vmem:[#allocation7 + $0x538] sm:$0xff]  ;;  %v7939_v62 = vpack.c.bf16 %v3598_v57, %v3594_v47  ;;  %v3602_v48 = vld [vmem:[#allocation7 + $0x500] sm:$0xff] }
 0x33b   : > { %3429 = vmatmul.mubr.f32.gmra.mrb[36].mxu1 %v11755_v63  ;;  %7930 = vmatprep.subr.bf16.mxu0 %v7929_v46  ;;  %v7935_v63 = vpack.c.bf16 %v3590_v17, %v3586_v29  ;;  %v3607_v46 = vld [vmem:[#allocation7 + $0x528] sm:$0xff]  ;;  %v3606_v11 = vld [vmem:[#allocation7 + $0x520] sm:$0xff]  ;;  %v3608_v29 = vld [vmem:[#allocation7 + $0x530] sm:$0xff] }
 0x33c   : > { %7986 = vmatpush1.bf16.msra.mxu1 %v7985_v16  ;;  %v3596_v16 = vld [vmem:[#allocation7 + $0x4d0] sm:$0xff]  ;;  %v7941_v41 = vpack.c.bf16 %v3607_v46, %v3603_v21  ;;  %v3611_v17 = vld [vmem:[#allocation7 + $0x548] sm:$0xff]  ;;  %v3617_v1 = vld [vmem:[#allocation7 + $0x578] sm:$0xff]  ;;  %v7943_v49 = vpack.c.bf16 %v3606_v11, %v3602_v48 }
 0x33d   : > { %7988 = vmatprep.subr.bf16.mxu1 %v7987_v14  ;;  %v3605_v14 = vld [vmem:[#allocation7 + $0x518] sm:$0xff]  ;;  %v7997_v15 = vpack.c.bf16 %v3600_v36, %v3596_v16  ;;  %v3610_v27 = vld [vmem:[#allocation7 + $0x540] sm:$0xff]  ;;  %v3616_v47 = vld [vmem:[#allocation7 + $0x570] sm:$0xff] }
 0x33e   : > { %7932 = vmatpush1.bf16.msra.mxu0 %v7931_v25  ;;  %v7999_v25 = vpack.c.bf16 %v3609_v59, %v3605_v14  ;;  %v3614_v38 = vld [vmem:[#allocation7 + $0x560] sm:$0xff]  ;;  %v3619_v57 = vld [vmem:[#allocation7 + $0x588] sm:$0xff]  ;;  %v3625_v16 = vld [vmem:[#allocation7 + $0x5b8] sm:$0xff] }
 0x33f   : > { %7934 = vmatprep.subr.bf16.mxu0 %v7933_v22  ;;  %v3615_v22 = vld [vmem:[#allocation7 + $0x568] sm:$0xff]  ;;  %v7947_v36 = vpack.c.bf16 %v3614_v38, %v3610_v27  ;;  %v3618_v46 = vld [vmem:[#allocation7 + $0x580] sm:$0xff]  ;;  %v3624_v48 = vld [vmem:[#allocation7 + $0x5b0] sm:$0xff] }
 0x340   : > { %7990 = vmatpush1.bf16.msra.mxu1 %v7989_v30  ;;  %v3604_v30 = vld [vmem:[#allocation7 + $0x510] sm:$0xff]  ;;  %v7945_v26 = vpack.c.bf16 %v3615_v22, %v3611_v17  ;;  %v3622_v14 = vld [vmem:[#allocation7 + $0x5a0] sm:$0xff]  ;;  %v3627_v11 = vld [vmem:[#allocation7 + $0x5c8] sm:$0xff] }
 0x341   : > { %7992 = vmatprep.subr.bf16.mxu1 %v7991_v24  ;;  %v3613_v24 = vld [vmem:[#allocation7 + $0x558] sm:$0xff]  ;;  %v8001_v4 = vpack.c.bf16 %v3608_v29, %v3604_v30  ;;  %v7951_v29 = vpack.c.bf16 %v3622_v14, %v3618_v46  ;;  %v3626_v22 = vld [vmem:[#allocation7 + $0x5c0] sm:$0xff]  ;;  %v3632_v27 = vld [vmem:[#allocation7 + $0x5f0] sm:$0xff] }
 0x342   : > { %7936 = vmatpush1.bf16.msra.mxu0 %v7935_v63  ;;  %v8003_v63 = vpack.c.bf16 %v3617_v1, %v3613_v24  ;;  %v3633_v30 = vld [vmem:[#allocation7 + $0x5f8] sm:$0xff]  ;;  %v3630_v24 = vld [vmem:[#allocation7 + $0x5e0] sm:$0xff]  ;;  %v3635_v38 = vld [vmem:[#allocation7 + $0x608] sm:$0xff] }
 0x343   : > { %7938 = vmatprep.subr.bf16.mxu0 %v7937_v50  ;;  %v3623_v50 = vld [vmem:[#allocation7 + $0x5a8] sm:$0xff]  ;;  %v3640_v46 = vld [vmem:[#allocation7 + $0x630] sm:$0xff]  ;;  %vm11786_vm7 = vmpackc.low %vm13190_vm15, %vm13189_vm14  ;;  %vm13195_vm14 = vcmask 1044480  }
 0x344   : > { %7994 = vmatpush1.bf16.msra.mxu1 %v7993_v8  ;;  %v3612_v8 = vld [vmem:[#allocation7 + $0x550] sm:$0xff]  ;;  %v7949_v59 = vpack.c.bf16 %v3623_v50, %v3619_v57  ;;  %v3634_v50 = vld [vmem:[#allocation7 + $0x600] sm:$0xff]  ;;  %v3643_v14 = vld [vmem:[#allocation7 + $0x648] sm:$0xff] }
 0x345   : > { %7996 = vmatprep.subr.bf16.mxu1 %v7995_v31  ;;  %v3621_v31 = vld [vmem:[#allocation7 + $0x598] sm:$0xff]  ;;  %v8005_v21 = vpack.c.bf16 %v3616_v47, %v3612_v8  ;;  %v7955_v47 = vpack.c.bf16 %v3630_v24, %v3626_v22  ;;  %v3648_v24 = vld [vmem:[#allocation7 + $0x670] sm:$0xff]  ;;  %vm13194_vm5 = vmmov %vm13190_vm15 }
 0x346   : > { %7940 = vmatpush1.bf16.msra.mxu0 %v7939_v62  ;;  %v8007_v62 = vpack.c.bf16 %v3625_v16, %v3621_v31  ;;  %v3641_v8 = vld [vmem:[#allocation7 + $0x638] sm:$0xff]  ;;  %v3638_v31 = vld [vmem:[#allocation7 + $0x620] sm:$0xff]  ;;  %vm13196_vm15 = vmmov %vm13193_vm6 }
 0x347   : > { %7942 = vmatprep.subr.bf16.mxu0 %v7941_v41  ;;  %v3631_v41 = vld [vmem:[#allocation7 + $0x5e8] sm:$0xff] }
 0x348   : > { %7998 = vmatpush1.bf16.msra.mxu1 %v7997_v15  ;;  %v3620_v15 = vld [vmem:[#allocation7 + $0x590] sm:$0xff]  ;;  %v7953_v1 = vpack.c.bf16 %v3631_v41, %v3627_v11 }
 0x349   : > { %8000 = vmatprep.subr.bf16.mxu1 %v7999_v25  ;;  %v3629_v25 = vld [vmem:[#allocation7 + $0x5d8] sm:$0xff]  ;;  %v8009_v17 = vpack.c.bf16 %v3624_v48, %v3620_v15  ;;  %v7959_v48 = vpack.c.bf16 %v3638_v31, %v3634_v50  ;;  %v3652_v50 = vld [vmem:[#allocation7 + $0x690] sm:$0xff] }
 0x34a   : > { %7944 = vmatpush1.bf16.msra.mxu0 %v7943_v49  ;;  %v8011_v49 = vpack.c.bf16 %v3633_v30, %v3629_v25  ;;  %v3649_v15 = vld [vmem:[#allocation7 + $0x678] sm:$0xff]  ;;  %v3642_v30 = vld [vmem:[#allocation7 + $0x640] sm:$0xff]  ;;  %v3656_v31 = vld [vmem:[#allocation7 + $0x6b0] sm:$0xff] }
 0x34b   : > { %7946 = vmatprep.subr.bf16.mxu0 %v7945_v26  ;;  %v3639_v26 = vld [vmem:[#allocation7 + $0x628] sm:$0xff] }
 0x34c   : > { %8002 = vmatpush1.bf16.msra.mxu1 %v8001_v4  ;;  %v3628_v4 = vld [vmem:[#allocation7 + $0x5d0] sm:$0xff]  ;;  %v7957_v16 = vpack.c.bf16 %v3639_v26, %v3635_v38  ;;  %v3657_v26 = vld [vmem:[#allocation7 + $0x6b8] sm:$0xff] }
 0x34d   : > { %8004 = vmatprep.subr.bf16.mxu1 %v8003_v63  ;;  %v3637_v63 = vld [vmem:[#allocation7 + $0x618] sm:$0xff]  ;;  %v8013_v57 = vpack.c.bf16 %v3632_v27, %v3628_v4  ;;  %v3655_v4 = vld [vmem:[#allocation7 + $0x6a8] sm:$0xff] }
 0x34e   : > { %7948 = vmatpush1.bf16.msra.mxu0 %v7947_v36  ;;  %v8015_v36 = vpack.c.bf16 %v3641_v8, %v3637_v63  ;;  %v3653_v27 = vld [vmem:[#allocation7 + $0x698] sm:$0xff]  ;;  %v3650_v63 = vld [vmem:[#allocation7 + $0x680] sm:$0xff] }
 0x34f   : > { %7950 = vmatprep.subr.bf16.mxu0 %v7949_v59  ;;  %v3647_v59 = vld [vmem:[#allocation7 + $0x668] sm:$0xff]  ;;  %v3654_v8 = vld [vmem:[#allocation7 + $0x6a0] sm:$0xff] }
 0x350   : > { %8006 = vmatpush1.bf16.msra.mxu1 %v8005_v21  ;;  %v3636_v21 = vld [vmem:[#allocation7 + $0x610] sm:$0xff]  ;;  %v7961_v41 = vpack.c.bf16 %v3647_v59, %v3643_v14  ;;  %v3661_v14 = vld [vmem:[#allocation7 + $0x6d8] sm:$0xff] }
 0x351   : > { %8008 = vmatprep.subr.bf16.mxu1 %v8007_v62  ;;  %v3645_v62 = vld [vmem:[#allocation7 + $0x658] sm:$0xff]  ;;  %v8017_v11 = vpack.c.bf16 %v3640_v46, %v3636_v21  ;;  %v3659_v21 = vld [vmem:[#allocation7 + $0x6c8] sm:$0xff] }
 0x352   : > { %7952 = vmatpush1.bf16.msra.mxu0 %v7951_v29  ;;  %v8019_v25 = vpack.c.bf16 %v3649_v15, %v3645_v62  ;;  %v3646_v29 = vld [vmem:[#allocation7 + $0x660] sm:$0xff]  ;;  %v3663_v46 = vld [vmem:[#allocation7 + $0x6e8] sm:$0x3f]  ;;  %v3665_v62 = vld [vmem:[#allocation7 + $0x6f8] sm:$0x3f] }
 0x353   : > { %7954 = vmatprep.subr.bf16.mxu0 %v7953_v1  ;;  %v7963_v22 = vpack.c.bf16 %v3646_v29, %v3642_v30  ;;  %v7969_v59 = vpack.c.bf16 %v3663_v46, %v3659_v21  ;;  %v3658_v15 = vld [vmem:[#allocation7 + $0x6c0] sm:$0xff]  ;;  %v3664_v30 = vld [vmem:[#allocation7 + $0x6f0] sm:$0x3f] }
 0x354   : > { %8010 = vmatpush1.bf16.msra.mxu1 %v8009_v17  ;;  %v3644_v17 = vld [vmem:[#allocation7 + $0x650] sm:$0xff]  ;;  %v3441_v46 = vld [vmem:[#allocation7] sm:$0xff] }
 0x355   : > { %8012 = vmatprep.subr.bf16.mxu1 %v8011_v49  ;;  %v8021_v1 = vpack.c.bf16 %v3648_v24, %v3644_v17  ;;  %v3651_v49 = vld [vmem:[#allocation7 + $0x688] sm:$0xff]  ;;  %v3444_v24 = vld [vmem:[#allocation7 + $0x18] sm:$0xff] }
 0x356   : > { %7956 = vmatpush1.bf16.msra.mxu0 %v7955_v47  ;;  %v7965_v38 = vpack.c.bf16 %v3655_v4, %v3651_v49  ;;  %v8023_v47 = vpack.c.bf16 %v3657_v26, %v3653_v27  ;;  %v3442_v17 = vld [vmem:[#allocation7 + $0x8] sm:$0xff]  ;;  %v3448_v49 = vld [vmem:[#allocation7 + $0x38] sm:$0xff] }
 0x357   : > { %7958 = vmatprep.subr.bf16.mxu0 %v7957_v16  ;;  %v8091_v4 = vpack.c.bf16 %v3448_v49, %v3444_v24  ;;  %v13279_v16 = vld [vmem:[#allocation42_spill] sm:$0xff] }
 0x358   : > { %8014 = vmatpush1.bf16.msra.mxu1 %v8013_v57  ;;  %v7967_v57 = vpack.c.bf16 %v3654_v8, %v3650_v63 }
 0x359   : > { %8016 = vmatprep.subr.bf16.mxu1 %v8015_v36  ;;  %v8025_v36 = vpack.c.bf16 %v3656_v31, %v3652_v50 }
 0x35a   : > { %7960 = vmatpush1.bf16.msra.mxu0 %v7959_v48  ;;  %v3662_v48 = vld [vmem:[#allocation7 + $0x6e0] sm:$0x3f] }
 0x35b   : > { %7962 = vmatprep.subr.bf16.mxu0 %v7961_v41  ;;  %v7972_v41 = vpack.c.bf16 %v3662_v48, %v3658_v15  ;;  %v3447_v15 = vld [vmem:[#allocation7 + $0x30] sm:$0xff]  ;;  %v3450_v48 = vld [vmem:[#allocation7 + $0x48] sm:$0xff] }
 0x35c   : > { %8018 = vmatpush1.bf16.msra.mxu1 %v8017_v11  ;;  %v8027_v11 = vpack.c.bf16 %v3665_v62, %v3661_v14  ;;  %v3445_v14 = vld [vmem:[#allocation7 + $0x20] sm:$0xff]  ;;  %v3443_v62 = vld [vmem:[#allocation7 + $0x10] sm:$0xff] }
 0x35d   : > { %8020 = vmatprep.subr.bf16.mxu1 %v8019_v25  ;;  %v3660_v25 = vld [vmem:[#allocation7 + $0x6d0] sm:$0xff] }
 0x35e   : > { %7964 = vmatpush1.bf16.msra.mxu0 %v7963_v22  ;;  %v8030_v29 = vpack.c.bf16 %v3664_v30, %v3660_v25  ;;  %v3446_v22 = vld [vmem:[#allocation7 + $0x28] sm:$0xff]  ;;  %v3452_v30 = vld [vmem:[#allocation7 + $0x58] sm:$0xff] }
 0x35f   : > { %7966 = vmatprep.subr.bf16.mxu0 %v7965_v38  ;;  %v3454_v25 = vld [vmem:[#allocation7 + $0x68] sm:$0xff] }
 0x360   : > { %8022 = vmatpush1.bf16.msra.mxu1 %v8021_v1  ;;  %v8033_v1 = vpack.c.bf16 %v3446_v22, %v3442_v17 }
 0x361   : > { %8024 = vmatprep.subr.bf16.mxu1 %v8023_v47 }
 0x362   : > { %7968 = vmatpush1.bf16.msra.mxu0 %v7967_v57 }
 0x363   : > { %7971 = vmatprep.subr.msk.bf16.mxu0 %vm11786_vm7, %v7969_v59 }
 0x364   : > { %8026 = vmatpush1.bf16.msra.mxu1 %v8025_v36 }
 0x365   : > { %8029 = vmatprep.subr.msk.bf16.mxu1 %vm11786_vm7, %v8027_v11 }
 0x366   : > { %7974 = vmatpush1.bf16.msk.msra.mxu0 %vm11786_vm7, %v7972_v41 }
 0x367   : > { %8034 = vmatprep.subr.bf16.mxu0 %v8033_v1 }
 0x368   : > { %8032 = vmatpush1.bf16.msk.msra.mxu1 %vm11786_vm7, %v8030_v29  ;;  %v3456_v29 = vld [vmem:[#allocation7 + $0x78] sm:$0xff] }
 0x369   : > { %8092 = vmatprep.subr.bf16.mxu1 %v8091_v4 }
 0x404   : > { %v3246_v27 = vpop.f32.mrb[22].mxu0 }
 0x405   : > { %v3248_v63 = vpop.f32.mrb[23].mxu0 }
 0x406   : > { %v3418_v38 = vpop.f32.mrb[32].mxu1 }
 0x407   : > { %v11798_v26 = vmax.f32 %v3246_v27, %v3418_v38  ;;  %v3420_v8 = vpop.f32.mrb[33].mxu1 }
 0x408   : > { %v11800_v47 = vmax.f32 %v3248_v63, %v3420_v8  ;;  %v3252_v57 = vpop.f32.mrb[24].mxu0 }
 0x409   : > { %v3254_v36 = vpop.f32.mrb[25].mxu0 }
 0x40a   : > { %v3424_v50 = vpop.f32.mrb[34].mxu1  ;;  %v3673_v11 = vrot.slane %v11800_v47, 1  ;;  %v4135_v17 = vrot.slane %v11800_v47, 2  ;;  %v4436_v4 = vrot.slane %v11800_v47, 3  ;;  %v4739_v35 = vrot.slane %v11800_v47, 4 }
 0x40b   : > { %v11802_v31 = vmax.f32 %v3252_v57, %v3424_v50  ;;  %v3426_v21 = vpop.f32.mrb[35].mxu1  ;;  %v3670_v57 = vrot.slane %v11798_v26, 1  ;;  %v8035_v50 = vpack.c.bf16 %v3445_v14, %v3441_v46  ;;  %v8037_v14 = vpack.c.bf16 %v3454_v25, %v3450_v48 }
 0x40c   : > { %v11804_v59 = vmax.f32 %v3254_v36, %v3426_v21  ;;  %v3258_v22 = vpop.f32.mrb[26].mxu0  ;;  %v8093_v36 = vpack.c.bf16 %v3447_v15, %v3443_v62  ;;  %v3449_v21 = vld [vmem:[#allocation7 + $0x40] sm:$0xff]  ;;  %v8095_v62 = vpack.c.bf16 %v3456_v29, %v3452_v30  ;;  %v3462_v15 = vld [vmem:[#allocation7 + $0xa8] sm:$0xff] }
 0x40d   : > { %v11808_v41 = vrot.slane %v11802_v31, 1  ;;  %v3260_v63 = vpop.f32.mrb[27].mxu0  ;;  %v8041_v30 = vpack.c.bf16 %v3462_v15, %v3458_v19  ;;  %v5042_v19 = vrot.slane %v11800_v47, 5  ;;  %v3469_v15 = vld [vmem:[#allocation7 + $0xe0] sm:$0xff] }
 0x40e   : > { %v3430_v24 = vpop.f32.mrb[36].mxu1  ;;  %v3674_v1 = vrot.slane %v11804_v59, 1  ;;  %v11813_v49 = vrot.slane %v11804_v59, 2  ;;  %v4437_v27 = vrot.slane %v11804_v59, 3  ;;  %v4740_v48 = vrot.slane %v11804_v59, 4 }
 0x40f   : > { %v11817_v38 = vmax.f32 %v3258_v22, %v3430_v24  ;;  %v3432_v8 = vpop.f32.mrb[37].mxu1  ;;  %v3672_v46 = vsel %vm13196_vm15, %v3670_v57, %v11808_v41  ;;  %v3464_v24 = vld [vmem:[#allocation7 + $0xb8] sm:$0xff]  ;;  %v3459_v57 = vld [vmem:[#allocation7 + $0x90] sm:$0xff]  ;;  %vm13200_vm15 = vcmask 1042432  }
 0x410   : > { %v11820_v51 = vmax.f32 %v3260_v63, %v3432_v8  ;;  %v3675_v60 = vsel %vm13193_vm6, %v3673_v11, %v3674_v1  ;;  %v11825_v3 = vsel %vm13194_vm5, %v4135_v17, %v11813_v49  ;;  %v11828_v22 = vsel %vm13195_vm14, %v4436_v4, %v4437_v27  ;;  %v3460_v11 = vld [vmem:[#allocation7 + $0x98] sm:$0xff]  ;;  %vm13197_vm6 = vmmov %vm13195_vm14 }
 0x411   : > { %7041 = vmatprep.mubr.msk.f32.mxu0 %vm3678_vm10, %v3675_v60  ;;  %7045 = vmatprep.mubr.msk.f32.mxu1 %vm3678_vm10, %v3675_v60  ;;  %v8039_v4 = vpack.c.bf16 %v3453_v37, %v3449_v21  ;;  %v8097_v8 = vpack.c.bf16 %v3455_v45, %v3451_v7  ;;  %v3461_v60 = vld [vmem:[#allocation7 + $0xa0] sm:$0xff]  ;;  %v8099_v29 = vpack.c.bf16 %v3464_v24, %v3460_v11  ;;  %v3470_v45 = vld [vmem:[#allocation7 + $0xe8] sm:$0xff]  ;;  %v3468_v7 = vld [vmem:[#allocation7 + $0xd8] sm:$0xff]  ;;  %vm13198_vm5 = vcmask 1043456  }
 0x412   : > { %v4441_v63 = vrot.slane %v11820_v51, 3  ;;  %v4744_v17 = vrot.slane %v11820_v51, 4  ;;  %3760 = vmatmul.mubr.f32.vlgmr.msra.gmra.mrb[28].mxu0 %v3672_v46  ;;  %3837 = vmatmul.mubr.f32.vlgmr.msra.gmra.mrb[38].mxu1 %v3672_v46  ;;  %v5047_v25 = vrot.slane %v11820_v51, 5  ;;  %v3463_v46 = vld [vmem:[#allocation7 + $0xb0] sm:$0xff]  ;;  %v11845_v21 = vsel %vm13198_vm5, %v4739_v35, %v4740_v48  ;;  %vm13199_vm14 = vmmov %vm13198_vm5 }
 0x413   : > { %8036 = vmatpush1.bf16.msra.mxu0 %v8035_v50  ;;  %8094 = vmatpush1.bf16.msra.mxu1 %v8093_v36  ;;  %v3466_v50 = vld [vmem:[#allocation7 + $0xc8] sm:$0xff]  ;;  %v3472_v36 = vld [vmem:[#allocation7 + $0xf8] sm:$0xff]  ;;  %vm13202_vm5 = vcmask 1045504  }
 0x414   : > { %7042 = vmatprep.mubr.msk.f32.mxu0 %vm3678_vm10, %v3674_v1  ;;  %7046 = vmatprep.mubr.msk.f32.mxu1 %vm3678_vm10, %v3674_v1  ;;  %v11842_v37 = vsel %vm13197_vm6, %v4437_v27, %v4441_v63  ;;  %v11848_v51 = vsel %vm13199_vm14, %v4740_v48, %v4744_v17  ;;  %v5043_v1 = vrot.slane %v11804_v59, 5  ;;  %v8043_v27 = vpack.c.bf16 %v3461_v60, %v3457_v54  ;;  %v3467_v63 = vld [vmem:[#allocation7 + $0xd0] sm:$0xff]  ;;  %vm13201_vm6 = vmmov %vm13200_vm15  ;;  %v3478_v54 = vld [vmem:[#allocation7 + $0x128] sm:$0xff] }
 0x415   : > { %8038 = vmatprep.subr.bf16.mxu0 %v8037_v14  ;;  %8096 = vmatprep.subr.bf16.mxu1 %v8095_v62  ;;  %v8101_v14 = vpack.c.bf16 %v3463_v46, %v3459_v57  ;;  %v3465_v62 = vld [vmem:[#allocation7 + $0xc0] sm:$0xff]  ;;  %v8045_v11 = vpack.c.bf16 %v3470_v45, %v3466_v50  ;;  %v8103_v24 = vpack.c.bf16 %v3472_v36, %v3468_v7  ;;  %v3471_v17 = vld [vmem:[#allocation7 + $0xf0] sm:$0xff]  ;;  %v3480_v60 = vld [vmem:[#allocation7 + $0x138] sm:$0xff]  ;;  %vm13203_vm14 = vcmask 1044480  }
 0x416   : > { %3766 = vmatmul.mubr.f32.gmra.mrb[30].mxu0 %v11808_v41  ;;  %3843 = vmatmul.mubr.f32.gmra.mrb[40].mxu1 %v11808_v41  ;;  %v11855_v35 = vsel %vm13200_vm15, %v5042_v19, %v5043_v1  ;;  %v3474_v41 = vld [vmem:[#allocation7 + $0x108] sm:$0xff]  ;;  %v8047_v48 = vpack.c.bf16 %v3469_v15, %v3465_v62  ;;  %v8105_v57 = vpack.c.bf16 %v3471_v17, %v3467_v63  ;;  %v3473_v46 = vld [vmem:[#allocation7 + $0x100] sm:$0xff]  ;;  %v3475_v45 = vld [vmem:[#allocation7 + $0x110] sm:$0xff] }
 0x417   : > { %8040 = vmatpush1.bf16.msra.mxu0 %v8039_v4  ;;  %8098 = vmatpush1.bf16.msra.mxu1 %v8097_v8  ;;  %v11862_v4 = vsel %vm13201_vm6, %v5043_v1, %v5047_v25  ;;  %v3476_v8 = vld [vmem:[#allocation7 + $0x118] sm:$0xff]  ;;  %v3477_v19 = vld [vmem:[#allocation7 + $0x120] sm:$0xff]  ;;  %v3479_v7 = vld [vmem:[#allocation7 + $0x130] sm:$0xff]  ;;  %vm13205_vm6 = vcmask 1043456  }
 0x418   : > { %7049 = vmatprep.mubr.msk.f32.mxu0 %vm3678_vm10, %v11800_v47  ;;  %7053 = vmatprep.mubr.msk.f32.mxu1 %vm3678_vm10, %v11800_v47  ;;  %v8049_v47 = vpack.c.bf16 %v3478_v54, %v3474_v41  ;;  %v8107_v50 = vpack.c.bf16 %v3480_v60, %v3476_v8  ;;  %v3482_v36 = vld [vmem:[#allocation7 + $0x148] sm:$0xff]  ;;  %v3484_v1 = vld [vmem:[#allocation7 + $0x158] sm:$0xff]  ;;  %v8109_v61 = vpack.c.bf16 %v3479_v7, %v3475_v45  ;;  %vm13204_vm15 = vmmov %vm13203_vm14 }
 0x419   : > { %8042 = vmatprep.subr.bf16.mxu0 %v8041_v30  ;;  %8100 = vmatprep.subr.bf16.mxu1 %v8099_v29  ;;  %v3486_v25 = vld [vmem:[#allocation7 + $0x168] sm:$0xff]  ;;  %v3488_v30 = vld [vmem:[#allocation7 + $0x178] sm:$0xff]  ;;  %v8051_v29 = vpack.c.bf16 %v3477_v19, %v3473_v46 }
 0x41a   : > { %v8053_v62 = vpack.c.bf16 %v3486_v25, %v3482_v36  ;;  %v8111_v15 = vpack.c.bf16 %v3488_v30, %v3484_v1  ;;  %v3490_v63 = vld [vmem:[#allocation7 + $0x188] sm:$0xff]  ;;  %v3492_v41 = vld [vmem:[#allocation7 + $0x198] sm:$0xff] }
 0x41b   : > { %8044 = vmatpush1.bf16.msra.mxu0 %v8043_v27  ;;  %8102 = vmatpush1.bf16.msra.mxu1 %v8101_v14  ;;  %v3481_v27 = vld [vmem:[#allocation7 + $0x140] sm:$0xff]  ;;  %v3494_v17 = vld [vmem:[#allocation7 + $0x1a8] sm:$0xff]  ;;  %v3496_v54 = vld [vmem:[#allocation7 + $0x1b8] sm:$0xff] }
 0x41c   : > { %8046 = vmatprep.subr.bf16.mxu0 %v8045_v11  ;;  %8104 = vmatprep.subr.bf16.mxu1 %v8103_v24  ;;  %v3485_v14 = vld [vmem:[#allocation7 + $0x160] sm:$0xff]  ;;  %v3483_v11 = vld [vmem:[#allocation7 + $0x150] sm:$0xff]  ;;  %v8057_v46 = vpack.c.bf16 %v3494_v17, %v3490_v63  ;;  %v8115_v19 = vpack.c.bf16 %v3496_v54, %v3492_v41  ;;  %v3498_v45 = vld [vmem:[#allocation7 + $0x1c8] sm:$0xff] }
 0x41d   : > { %v3487_v24 = vld [vmem:[#allocation7 + $0x170] sm:$0xff]  ;;  %v8055_v8 = vpack.c.bf16 %v3485_v14, %v3481_v27  ;;  %v3502_v7 = vld [vmem:[#allocation7 + $0x1e8] sm:$0xff]  ;;  %v3500_v36 = vld [vmem:[#allocation7 + $0x1d8] sm:$0xff] }
 0x41e   : > { %v8113_v60 = vpack.c.bf16 %v3487_v24, %v3483_v11  ;;  %v3504_v25 = vld [vmem:[#allocation7 + $0x1f8] sm:$0xff]  ;;  %v8061_v27 = vpack.c.bf16 %v3502_v7, %v3498_v45  ;;  %v3506_v11 = vld [vmem:[#allocation7 + $0x208] sm:$0xff] }
 0x41f   : > { %8048 = vmatpush1.bf16.msra.mxu0 %v8047_v48  ;;  %8106 = vmatpush1.bf16.msra.mxu1 %v8105_v57  ;;  %v3489_v48 = vld [vmem:[#allocation7 + $0x180] sm:$0xff]  ;;  %v8119_v14 = vpack.c.bf16 %v3504_v25, %v3500_v36  ;;  %v3510_v24 = vld [vmem:[#allocation7 + $0x228] sm:$0xff]  ;;  %v3508_v63 = vld [vmem:[#allocation7 + $0x218] sm:$0xff] }
 0x420   : > { %8050 = vmatprep.subr.bf16.mxu0 %v8049_v47  ;;  %8108 = vmatprep.subr.bf16.mxu1 %v8107_v50  ;;  %v3493_v57 = vld [vmem:[#allocation7 + $0x1a0] sm:$0xff]  ;;  %v3491_v47 = vld [vmem:[#allocation7 + $0x190] sm:$0xff]  ;;  %v3512_v17 = vld [vmem:[#allocation7 + $0x238] sm:$0xff] }
 0x421   : > { %v3495_v50 = vld [vmem:[#allocation7 + $0x1b0] sm:$0xff]  ;;  %v8059_v1 = vpack.c.bf16 %v3493_v57, %v3489_v48  ;;  %v8065_v48 = vpack.c.bf16 %v3510_v24, %v3506_v11  ;;  %v8123_v57 = vpack.c.bf16 %v3512_v17, %v3508_v63  ;;  %v3516_v45 = vld [vmem:[#allocation7 + $0x258] sm:$0xff] }
 0x422   : > { %v8117_v30 = vpack.c.bf16 %v3495_v50, %v3491_v47  ;;  %v3514_v47 = vld [vmem:[#allocation7 + $0x248] sm:$0xff]  ;;  %v3520_v7 = vld [vmem:[#allocation7 + $0x278] sm:$0xff] }
 0x423   : > { %8052 = vmatpush1.bf16.msra.mxu0 %v8051_v29  ;;  %8110 = vmatpush1.bf16.msra.mxu1 %v8109_v61  ;;  %v3497_v29 = vld [vmem:[#allocation7 + $0x1c0] sm:$0xff]  ;;  %v3518_v50 = vld [vmem:[#allocation7 + $0x268] sm:$0xff]  ;;  %v3524_v11 = vld [vmem:[#allocation7 + $0x298] sm:$0xff] }
 0x424   : > { %8054 = vmatprep.subr.bf16.mxu0 %v8053_v62  ;;  %8112 = vmatprep.subr.bf16.mxu1 %v8111_v15  ;;  %v3501_v61 = vld [vmem:[#allocation7 + $0x1e0] sm:$0xff]  ;;  %v3499_v62 = vld [vmem:[#allocation7 + $0x1d0] sm:$0xff]  ;;  %v3528_v24 = vld [vmem:[#allocation7 + $0x2b8] sm:$0xff] }
 0x425   : > { %v3503_v15 = vld [vmem:[#allocation7 + $0x1f0] sm:$0xff]  ;;  %v8063_v41 = vpack.c.bf16 %v3501_v61, %v3497_v29  ;;  %v8069_v29 = vpack.c.bf16 %v3518_v50, %v3514_v47  ;;  %v8127_v61 = vpack.c.bf16 %v3520_v7, %v3516_v45  ;;  %v3532_v47 = vld [vmem:[#allocation7 + $0x2d8] sm:$0xff] }
 0x426   : > { %v8121_v54 = vpack.c.bf16 %v3503_v15, %v3499_v62  ;;  %v3522_v62 = vld [vmem:[#allocation7 + $0x288] sm:$0xff]  ;;  %v3536_v50 = vld [vmem:[#allocation7 + $0x2f8] sm:$0xff] }
 0x427   : > { %8056 = vmatpush1.bf16.msra.mxu0 %v8055_v8  ;;  %8114 = vmatpush1.bf16.msra.mxu1 %v8113_v60  ;;  %v3505_v8 = vld [vmem:[#allocation7 + $0x200] sm:$0xff]  ;;  %v3526_v15 = vld [vmem:[#allocation7 + $0x2a8] sm:$0xff] }
 0x428   : > { %8058 = vmatprep.subr.bf16.mxu0 %v8057_v46  ;;  %8116 = vmatprep.subr.bf16.mxu1 %v8115_v19  ;;  %v3509_v60 = vld [vmem:[#allocation7 + $0x220] sm:$0xff]  ;;  %v3507_v46 = vld [vmem:[#allocation7 + $0x210] sm:$0xff] }
 0x429   : > { %v3511_v19 = vld [vmem:[#allocation7 + $0x230] sm:$0xff]  ;;  %v8067_v36 = vpack.c.bf16 %v3509_v60, %v3505_v8  ;;  %v8073_v8 = vpack.c.bf16 %v3526_v15, %v3522_v62  ;;  %v8131_v60 = vpack.c.bf16 %v3528_v24, %v3524_v11  ;;  %v3540_v62 = vld [vmem:[#allocation7 + $0x318] sm:$0xff] }
 0x42a   : > { %v8125_v25 = vpack.c.bf16 %v3511_v19, %v3507_v46  ;;  %v3530_v46 = vld [vmem:[#allocation7 + $0x2c8] sm:$0xff]  ;;  %v3544_v15 = vld [vmem:[#allocation7 + $0x338] sm:$0xff] }
 0x42b   : > { %8060 = vmatpush1.bf16.msra.mxu0 %v8059_v1  ;;  %8118 = vmatpush1.bf16.msra.mxu1 %v8117_v30  ;;  %v3513_v1 = vld [vmem:[#allocation7 + $0x240] sm:$0xff]  ;;  %v3534_v19 = vld [vmem:[#allocation7 + $0x2e8] sm:$0xff] }
 0x42c   : > { %8062 = vmatprep.subr.bf16.mxu0 %v8061_v27  ;;  %8120 = vmatprep.subr.bf16.mxu1 %v8119_v14  ;;  %v3517_v30 = vld [vmem:[#allocation7 + $0x260] sm:$0xff]  ;;  %v3515_v27 = vld [vmem:[#allocation7 + $0x250] sm:$0xff] }
 0x42d   : > { %v3519_v14 = vld [vmem:[#allocation7 + $0x270] sm:$0xff]  ;;  %v8071_v63 = vpack.c.bf16 %v3517_v30, %v3513_v1  ;;  %v8077_v1 = vpack.c.bf16 %v3534_v19, %v3530_v46  ;;  %v8135_v30 = vpack.c.bf16 %v3536_v50, %v3532_v47  ;;  %v3548_v46 = vld [vmem:[#allocation7 + $0x358] sm:$0xff] }
 0x42e   : > { %v8129_v17 = vpack.c.bf16 %v3519_v14, %v3515_v27  ;;  %v3538_v27 = vld [vmem:[#allocation7 + $0x308] sm:$0xff]  ;;  %v3552_v19 = vld [vmem:[#allocation7 + $0x378] sm:$0x3f] }
 0x42f   : > { %8064 = vmatpush1.bf16.msra.mxu0 %v8063_v41  ;;  %8122 = vmatpush1.bf16.msra.mxu1 %v8121_v54  ;;  %v3521_v41 = vld [vmem:[#allocation7 + $0x280] sm:$0xff]  ;;  %v3542_v14 = vld [vmem:[#allocation7 + $0x328] sm:$0xff] }
 0x430   : > { %8066 = vmatprep.subr.bf16.mxu0 %v8065_v48  ;;  %8124 = vmatprep.subr.bf16.mxu1 %v8123_v57  ;;  %v3525_v54 = vld [vmem:[#allocation7 + $0x2a0] sm:$0xff]  ;;  %v3523_v48 = vld [vmem:[#allocation7 + $0x290] sm:$0xff] }
 0x431   : > { %v3527_v57 = vld [vmem:[#allocation7 + $0x2b0] sm:$0xff]  ;;  %v8075_v45 = vpack.c.bf16 %v3525_v54, %v3521_v41  ;;  %v8081_v41 = vpack.c.bf16 %v3542_v14, %v3538_v27  ;;  %v8139_v54 = vpack.c.bf16 %v3544_v15, %v3540_v62  ;;  %v4023_v27 = vld [vmem:[#allocation7 + $0x718] sm:$0xff] }
 0x432   : > { %v8133_v7 = vpack.c.bf16 %v3527_v57, %v3523_v48  ;;  %v3546_v48 = vld [vmem:[#allocation7 + $0x348] sm:$0xff]  ;;  %v4027_v14 = vld [vmem:[#allocation7 + $0x738] sm:$0xff] }
 0x433   : > { %8068 = vmatpush1.bf16.msra.mxu0 %v8067_v36  ;;  %8126 = vmatpush1.bf16.msra.mxu1 %v8125_v25  ;;  %v3529_v36 = vld [vmem:[#allocation7 + $0x2c0] sm:$0xff]  ;;  %v3550_v57 = vld [vmem:[#allocation7 + $0x368] sm:$0x3f] }
 0x434   : > { %8070 = vmatprep.subr.bf16.mxu0 %v8069_v29  ;;  %8128 = vmatprep.subr.bf16.mxu1 %v8127_v61  ;;  %v3533_v25 = vld [vmem:[#allocation7 + $0x2e0] sm:$0xff]  ;;  %v3531_v29 = vld [vmem:[#allocation7 + $0x2d0] sm:$0xff] }
 0x435   : > { %v3535_v61 = vld [vmem:[#allocation7 + $0x2f0] sm:$0xff]  ;;  %v8079_v11 = vpack.c.bf16 %v3533_v25, %v3529_v36  ;;  %v8085_v36 = vpack.c.bf16 %v3550_v57, %v3546_v48  ;;  %v8143_v25 = vpack.c.bf16 %v3552_v19, %v3548_v46  ;;  %v4031_v48 = vld [vmem:[#allocation7 + $0x758] sm:$0xff] }
 0x436   : > { %v8137_v24 = vpack.c.bf16 %v3535_v61, %v3531_v29  ;;  %v4021_v29 = vld [vmem:[#allocation7 + $0x708] sm:$0xff]  ;;  %v4035_v57 = vld [vmem:[#allocation7 + $0x778] sm:$0xff] }
 0x437   : > { %8072 = vmatpush1.bf16.msra.mxu0 %v8071_v63  ;;  %8130 = vmatpush1.bf16.msra.mxu1 %v8129_v17  ;;  %v3537_v63 = vld [vmem:[#allocation7 + $0x300] sm:$0xff]  ;;  %v4025_v61 = vld [vmem:[#allocation7 + $0x728] sm:$0xff] }
 0x438   : > { %8074 = vmatprep.subr.bf16.mxu0 %v8073_v8  ;;  %8132 = vmatprep.subr.bf16.mxu1 %v8131_v60  ;;  %v3541_v17 = vld [vmem:[#allocation7 + $0x320] sm:$0xff]  ;;  %v3539_v8 = vld [vmem:[#allocation7 + $0x310] sm:$0xff] }
 0x439   : > { %v3543_v60 = vld [vmem:[#allocation7 + $0x330] sm:$0xff]  ;;  %v8083_v47 = vpack.c.bf16 %v3541_v17, %v3537_v63  ;;  %v4020_v63 = vld [vmem:[#allocation7 + $0x700] sm:$0xff] }
 0x43a   : > { %v8141_v50 = vpack.c.bf16 %v3543_v60, %v3539_v8  ;;  %v4024_v17 = vld [vmem:[#allocation7 + $0x720] sm:$0xff]  ;;  %v4029_v8 = vld [vmem:[#allocation7 + $0x748] sm:$0xff] }
 0x43b   : > { %8076 = vmatpush1.bf16.msra.mxu0 %v8075_v45  ;;  %8134 = vmatpush1.bf16.msra.mxu1 %v8133_v7  ;;  %v3545_v45 = vld [vmem:[#allocation7 + $0x340] sm:$0xff]  ;;  %v4033_v60 = vld [vmem:[#allocation7 + $0x768] sm:$0xff]  ;;  %v8151_v46 = vpack.c.bf16 %v4024_v17, %v4020_v63  ;;  %v4038_v63 = vld [vmem:[#allocation7 + $0x790] sm:$0xff] }
 0x43c   : > { %8078 = vmatprep.subr.bf16.mxu0 %v8077_v1  ;;  %8136 = vmatprep.subr.bf16.mxu1 %v8135_v30  ;;  %v3549_v7 = vld [vmem:[#allocation7 + $0x360] sm:$0x3f]  ;;  %v3547_v1 = vld [vmem:[#allocation7 + $0x350] sm:$0xff] }
 0x43d   : > { %v3551_v30 = vld [vmem:[#allocation7 + $0x370] sm:$0x3f]  ;;  %v8088_v62 = vpack.c.bf16 %v3549_v7, %v3545_v45  ;;  %v8153_v45 = vpack.c.bf16 %v4033_v60, %v4029_v8  ;;  %v8211_v7 = vpack.c.bf16 %v4035_v57, %v4031_v48  ;;  %v4047_v8 = vld [vmem:[#allocation7 + $0x7d8] sm:$0xff]  ;;  %v4044_v57 = vld [vmem:[#allocation7 + $0x7c0] sm:$0xff] }
 0x43e   : > { %v8146_v15 = vpack.c.bf16 %v3551_v30, %v3547_v1  ;;  %v4037_v1 = vld [vmem:[#allocation7 + $0x788] sm:$0xff]  ;;  %v4042_v17 = vld [vmem:[#allocation7 + $0x7b0] sm:$0xff] }
 0x43f   : > { %8080 = vmatpush1.bf16.msra.mxu0 %v8079_v11  ;;  %8138 = vmatpush1.bf16.msra.mxu1 %v8137_v24  ;;  %v8149_v11 = vpack.c.bf16 %v4025_v61, %v4021_v29  ;;  %v8207_v24 = vpack.c.bf16 %v4027_v14, %v4023_v27  ;;  %v4041_v30 = vld [vmem:[#allocation7 + $0x7a8] sm:$0xff]  ;;  %v4039_v29 = vld [vmem:[#allocation7 + $0x798] sm:$0xff]  ;;  %v8217_v48 = vpack.c.bf16 %v4042_v17, %v4038_v63 }
 0x440   : > { %8082 = vmatprep.subr.bf16.mxu0 %v8081_v41  ;;  %8140 = vmatprep.subr.bf16.mxu1 %v8139_v54  ;;  %v4022_v41 = vld [vmem:[#allocation7 + $0x710] sm:$0xff]  ;;  %v4043_v61 = vld [vmem:[#allocation7 + $0x7b8] sm:$0xff] }
 0x441   : > { %v4026_v54 = vld [vmem:[#allocation7 + $0x730] sm:$0xff]  ;;  %v4063_v63 = vld [vmem:[#allocation7 + $0x858] sm:$0xff] }
 0x442   : > { %v8209_v19 = vpack.c.bf16 %v4026_v54, %v4022_v41  ;;  %v4045_v41 = vld [vmem:[#allocation7 + $0x7c8] sm:$0xff]  ;;  %v4067_v17 = vld [vmem:[#allocation7 + $0x878] sm:$0xff] }
 0x443   : > { %8084 = vmatpush1.bf16.msra.mxu0 %v8083_v47  ;;  %8142 = vmatpush1.bf16.msra.mxu1 %v8141_v50  ;;  %v4028_v47 = vld [vmem:[#allocation7 + $0x740] sm:$0xff]  ;;  %v4049_v54 = vld [vmem:[#allocation7 + $0x7e8] sm:$0xff] }
 0x444   : > { %8087 = vmatprep.subr.msk.bf16.mxu0 %vm11786_vm7, %v8085_v36  ;;  %8145 = vmatprep.subr.msk.bf16.mxu1 %vm11786_vm7, %v8143_v25  ;;  %v4032_v50 = vld [vmem:[#allocation7 + $0x760] sm:$0xff]  ;;  %v4030_v36 = vld [vmem:[#allocation7 + $0x750] sm:$0xff] }
 0x445   : > { %v4034_v25 = vld [vmem:[#allocation7 + $0x770] sm:$0xff]  ;;  %v8155_v27 = vpack.c.bf16 %v4032_v50, %v4028_v47 }
 0x446   : > { %v8213_v14 = vpack.c.bf16 %v4034_v25, %v4030_v36  ;;  %v4046_v50 = vld [vmem:[#allocation7 + $0x7d0] sm:$0xff]  ;;  %v4057_v36 = vld [vmem:[#allocation7 + $0x828] sm:$0xff]  ;;  %v4055_v25 = vld [vmem:[#allocation7 + $0x818] sm:$0xff] }
 0x447   : > { %8090 = vmatpush1.bf16.msk.msra.mxu0 %vm11786_vm7, %v8088_v62  ;;  %8148 = vmatpush1.bf16.msk.msra.mxu1 %vm11786_vm7, %v8146_v15  ;;  %v4036_v62 = vld [vmem:[#allocation7 + $0x780] sm:$0xff] }
 0x448   : > { %8150 = vmatprep.subr.bf16.mxu0 %v8149_v11  ;;  %8208 = vmatprep.subr.bf16.mxu1 %v8207_v24  ;;  %v4040_v15 = vld [vmem:[#allocation7 + $0x7a0] sm:$0xff]  ;;  %v8157_v11 = vpack.c.bf16 %v4041_v30, %v4037_v1  ;;  %v8215_v24 = vpack.c.bf16 %v4043_v61, %v4039_v29  ;;  %v4059_v1 = vld [vmem:[#allocation7 + $0x838] sm:$0xff] }
 0x449   : > { %v8159_v60 = vpack.c.bf16 %v4040_v15, %v4036_v62  ;;  %v4052_v29 = vld [vmem:[#allocation7 + $0x800] sm:$0xff]  ;;  %v4054_v62 = vld [vmem:[#allocation7 + $0x810] sm:$0xff] }
 0x44a   : > { %3930 = vmatmul.mubr.f32.vlgmr.msra.gmra.mrb[28].mxu0 %v11798_v26  ;;  %4007 = vmatmul.mubr.f32.vlgmr.msra.gmra.mrb[38].mxu1 %v11798_v26  ;;  %v4056_v61 = vld [vmem:[#allocation7 + $0x820] sm:$0xff]  ;;  %v4058_v15 = vld [vmem:[#allocation7 + $0x830] sm:$0xff] }
 0x44b   : > { %7050 = vmatprep.mubr.msk.f32.mxu0 %vm3678_vm10, %v11804_v59  ;;  %7054 = vmatprep.mubr.msk.f32.mxu1 %vm3678_vm10, %v11804_v59  ;;  %v4051_v59 = vld [vmem:[#allocation7 + $0x7f8] sm:$0xff] }
 0x44c   : > { %8152 = vmatpush1.bf16.msra.mxu0 %v8151_v46  ;;  %8210 = vmatpush1.bf16.msra.mxu1 %v8209_v19  ;;  %v4048_v46 = vld [vmem:[#allocation7 + $0x7e0] sm:$0xff]  ;;  %v8161_v19 = vpack.c.bf16 %v4049_v54, %v4045_v41  ;;  %v8219_v47 = vpack.c.bf16 %v4051_v59, %v4047_v8  ;;  %v8167_v41 = vpack.c.bf16 %v4056_v61, %v4052_v29  ;;  %v4070_v29 = vld [vmem:[#allocation7 + $0x890] sm:$0xff] }
 0x44d   : > { %8154 = vmatprep.subr.bf16.mxu0 %v8153_v45  ;;  %8212 = vmatprep.subr.bf16.mxu1 %v8211_v7  ;;  %v4050_v45 = vld [vmem:[#allocation7 + $0x7f0] sm:$0xff]  ;;  %v4053_v7 = vld [vmem:[#allocation7 + $0x808] sm:$0xff]  ;;  %v8163_v30 = vpack.c.bf16 %v4048_v46, %v4044_v57  ;;  %v8225_v54 = vpack.c.bf16 %v4058_v15, %v4054_v62  ;;  %v4060_v8 = vld [vmem:[#allocation7 + $0x840] sm:$0xff] }
 0x44e   : > { %3936 = vmatmul.mubr.f32.gmra.mrb[30].mxu0 %v11802_v31  ;;  %4013 = vmatmul.mubr.f32.gmra.mrb[40].mxu1 %v11802_v31  ;;  %v4064_v59 = vld [vmem:[#allocation7 + $0x860] sm:$0xff]  ;;  %v4062_v57 = vld [vmem:[#allocation7 + $0x850] sm:$0xff]  ;;  %v4079_v62 = vld [vmem:[#allocation7 + $0x8d8] sm:$0xff] }
 0x44f   : > { %7057 = vmatprep.mubr.msk.f32.mxu0 %vm3678_vm10, %v11825_v3  ;;  %7061 = vmatprep.mubr.msk.f32.mxu1 %vm3678_vm10, %v11825_v3  ;;  %v8221_v3 = vpack.c.bf16 %v4050_v45, %v4046_v50  ;;  %v4066_v46 = vld [vmem:[#allocation7 + $0x870] sm:$0xff]  ;;  %v4071_v50 = vld [vmem:[#allocation7 + $0x898] sm:$0xff] }
 0x450   : > { %8156 = vmatpush1.bf16.msra.mxu0 %v8155_v27  ;;  %8214 = vmatpush1.bf16.msra.mxu1 %v8213_v14  ;;  %v8165_v27 = vpack.c.bf16 %v4057_v36, %v4053_v7  ;;  %v8223_v14 = vpack.c.bf16 %v4059_v1, %v4055_v25  ;;  %v4075_v45 = vld [vmem:[#allocation7 + $0x8b8] sm:$0xff]  ;;  %v8171_v7 = vpack.c.bf16 %v4064_v59, %v4060_v8  ;;  %v4068_v25 = vld [vmem:[#allocation7 + $0x880] sm:$0xff]  ;;  %v4074_v61 = vld [vmem:[#allocation7 + $0x8b0] sm:$0xff] }
 0x451   : > { %8158 = vmatprep.subr.bf16.mxu0 %v8157_v11  ;;  %8216 = vmatprep.subr.bf16.mxu1 %v8215_v24  ;;  %v4061_v11 = vld [vmem:[#allocation7 + $0x848] sm:$0xff]  ;;  %v8229_v36 = vpack.c.bf16 %v4066_v46, %v4062_v57  ;;  %v4072_v1 = vld [vmem:[#allocation7 + $0x8a0] sm:$0xff]  ;;  %v4083_v15 = vld [vmem:[#allocation7 + $0x8f8] sm:$0xff] }
 0x452   : > { %v4065_v24 = vld [vmem:[#allocation7 + $0x868] sm:$0xff]  ;;  %v4078_v8 = vld [vmem:[#allocation7 + $0x8d0] sm:$0xff]  ;;  %v4087_v57 = vld [vmem:[#allocation7 + $0x918] sm:$0xff] }
 0x453   : > { %v4082_v59 = vld [vmem:[#allocation7 + $0x8f0] sm:$0xff]  ;;  %v4091_v46 = vld [vmem:[#allocation7 + $0x938] sm:$0xff] }
 0x454   : > { %8160 = vmatpush1.bf16.msra.mxu0 %v8159_v60  ;;  %8218 = vmatpush1.bf16.msra.mxu1 %v8217_v48  ;;  %v8169_v60 = vpack.c.bf16 %v4065_v24, %v4061_v11  ;;  %v8227_v48 = vpack.c.bf16 %v4067_v17, %v4063_v63  ;;  %v8175_v11 = vpack.c.bf16 %v4072_v1, %v4068_v25  ;;  %v4076_v63 = vld [vmem:[#allocation7 + $0x8c0] sm:$0xff]  ;;  %v4086_v25 = vld [vmem:[#allocation7 + $0x910] sm:$0xff] }
 0x455   : > { %8162 = vmatprep.subr.bf16.mxu0 %v8161_v19  ;;  %8220 = vmatprep.subr.bf16.mxu1 %v8219_v47  ;;  %v4069_v19 = vld [vmem:[#allocation7 + $0x888] sm:$0xff]  ;;  %v8233_v24 = vpack.c.bf16 %v4074_v61, %v4070_v29  ;;  %v4080_v17 = vld [vmem:[#allocation7 + $0x8e0] sm:$0xff]  ;;  %v4090_v1 = vld [vmem:[#allocation7 + $0x930] sm:$0xff] }
 0x456   : > { %v4073_v47 = vld [vmem:[#allocation7 + $0x8a8] sm:$0xff]  ;;  %v4095_v29 = vld [vmem:[#allocation7 + $0x958] sm:$0xff] }
 0x457   : > { %v4099_v61 = vld [vmem:[#allocation7 + $0x978] sm:$0xff] }
 0x458   : > { %8164 = vmatpush1.bf16.msra.mxu0 %v8163_v30  ;;  %8222 = vmatpush1.bf16.msra.mxu1 %v8221_v3  ;;  %v8173_v30 = vpack.c.bf16 %v4073_v47, %v4069_v19  ;;  %v8231_v3 = vpack.c.bf16 %v4075_v45, %v4071_v50  ;;  %v8179_v19 = vpack.c.bf16 %v4080_v17, %v4076_v63  ;;  %v4084_v50 = vld [vmem:[#allocation7 + $0x900] sm:$0xff]  ;;  %v4094_v63 = vld [vmem:[#allocation7 + $0x950] sm:$0xff] }
 0x459   : > { %8166 = vmatprep.subr.bf16.mxu0 %v8165_v27  ;;  %8224 = vmatprep.subr.bf16.mxu1 %v8223_v14  ;;  %v4077_v27 = vld [vmem:[#allocation7 + $0x8c8] sm:$0xff]  ;;  %v8237_v47 = vpack.c.bf16 %v4082_v59, %v4078_v8  ;;  %v4088_v45 = vld [vmem:[#allocation7 + $0x920] sm:$0xff]  ;;  %v4098_v17 = vld [vmem:[#allocation7 + $0x970] sm:$0xff] }
 0x45a   : > { %v4081_v14 = vld [vmem:[#allocation7 + $0x8e8] sm:$0xff]  ;;  %v4103_v8 = vld [vmem:[#allocation7 + $0x998] sm:$0xff] }
 0x45b   : > { %v4107_v59 = vld [vmem:[#allocation7 + $0x9b8] sm:$0xff] }
 0x45c   : > { %8168 = vmatpush1.bf16.msra.mxu0 %v8167_v41  ;;  %8226 = vmatpush1.bf16.msra.mxu1 %v8225_v54  ;;  %v8177_v41 = vpack.c.bf16 %v4081_v14, %v4077_v27  ;;  %v8235_v54 = vpack.c.bf16 %v4083_v15, %v4079_v62  ;;  %v8183_v27 = vpack.c.bf16 %v4088_v45, %v4084_v50  ;;  %v4092_v62 = vld [vmem:[#allocation7 + $0x940] sm:$0xff]  ;;  %v4102_v50 = vld [vmem:[#allocation7 + $0x990] sm:$0xff] }
 0x45d   : > { %8170 = vmatprep.subr.bf16.mxu0 %v8169_v60  ;;  %8228 = vmatprep.subr.bf16.mxu1 %v8227_v48  ;;  %v4085_v60 = vld [vmem:[#allocation7 + $0x908] sm:$0xff]  ;;  %v8241_v14 = vpack.c.bf16 %v4090_v1, %v4086_v25  ;;  %v4096_v15 = vld [vmem:[#allocation7 + $0x960] sm:$0xff]  ;;  %v4106_v45 = vld [vmem:[#allocation7 + $0x9b0] sm:$0xff] }
 0x45e   : > { %v4089_v48 = vld [vmem:[#allocation7 + $0x928] sm:$0xff]  ;;  %v4111_v25 = vld [vmem:[#allocation7 + $0x9d8] sm:$0xff] }
 0x45f   : > { %v4115_v1 = vld [vmem:[#allocation7 + $0x9f8] sm:$0xff] }
 0x460   : > { %8172 = vmatpush1.bf16.msra.mxu0 %v8171_v7  ;;  %8230 = vmatpush1.bf16.msra.mxu1 %v8229_v36  ;;  %v8181_v7 = vpack.c.bf16 %v4089_v48, %v4085_v60  ;;  %v8239_v36 = vpack.c.bf16 %v4091_v46, %v4087_v57  ;;  %v8187_v60 = vpack.c.bf16 %v4096_v15, %v4092_v62  ;;  %v4100_v57 = vld [vmem:[#allocation7 + $0x980] sm:$0xff]  ;;  %v4110_v62 = vld [vmem:[#allocation7 + $0x9d0] sm:$0xff] }
 0x461   : > { %8174 = vmatprep.subr.bf16.mxu0 %v8173_v30  ;;  %8232 = vmatprep.subr.bf16.mxu1 %v8231_v3  ;;  %v4093_v30 = vld [vmem:[#allocation7 + $0x948] sm:$0xff]  ;;  %v8245_v48 = vpack.c.bf16 %v4098_v17, %v4094_v63  ;;  %v4104_v46 = vld [vmem:[#allocation7 + $0x9a0] sm:$0xff]  ;;  %v4114_v15 = vld [vmem:[#allocation7 + $0x9f0] sm:$0xff] }
 0x462   : > { %v4097_v3 = vld [vmem:[#allocation7 + $0x968] sm:$0xff]  ;;  %v4119_v63 = vld [vmem:[#allocation7 + $0xa18] sm:$0xff] }
 0x463   : > { %v4123_v17 = vld [vmem:[#allocation7 + $0xa38] sm:$0xff] }
 0x464   : > { %8176 = vmatpush1.bf16.msra.mxu0 %v8175_v11  ;;  %8234 = vmatpush1.bf16.msra.mxu1 %v8233_v24  ;;  %v8185_v11 = vpack.c.bf16 %v4097_v3, %v4093_v30  ;;  %v8243_v24 = vpack.c.bf16 %v4099_v61, %v4095_v29  ;;  %v8191_v30 = vpack.c.bf16 %v4104_v46, %v4100_v57  ;;  %v4108_v29 = vld [vmem:[#allocation7 + $0x9c0] sm:$0xff]  ;;  %v4118_v57 = vld [vmem:[#allocation7 + $0xa10] sm:$0xff] }
 0x465   : > { %8178 = vmatprep.subr.bf16.mxu0 %v8177_v41  ;;  %8236 = vmatprep.subr.bf16.mxu1 %v8235_v54  ;;  %v4101_v41 = vld [vmem:[#allocation7 + $0x988] sm:$0xff]  ;;  %v8249_v3 = vpack.c.bf16 %v4106_v45, %v4102_v50  ;;  %v4112_v61 = vld [vmem:[#allocation7 + $0x9e0] sm:$0xff]  ;;  %v4122_v46 = vld [vmem:[#allocation7 + $0xa30] sm:$0xff] }
 0x466   : > { %v4105_v54 = vld [vmem:[#allocation7 + $0x9a8] sm:$0xff]  ;;  %v4127_v50 = vld [vmem:[#allocation7 + $0xa58] sm:$0xff] }
 0x467   : > { %v4131_v45 = vld [vmem:[#allocation7 + $0xa78] sm:$0x3f] }
 0x468   : > { %8180 = vmatpush1.bf16.msra.mxu0 %v8179_v19  ;;  %8238 = vmatpush1.bf16.msra.mxu1 %v8237_v47  ;;  %v8189_v19 = vpack.c.bf16 %v4105_v54, %v4101_v41  ;;  %v8247_v47 = vpack.c.bf16 %v4107_v59, %v4103_v8  ;;  %v8195_v41 = vpack.c.bf16 %v4112_v61, %v4108_v29  ;;  %v4116_v8 = vld [vmem:[#allocation7 + $0xa00] sm:$0xff]  ;;  %v4126_v29 = vld [vmem:[#allocation7 + $0xa50] sm:$0xff] }
 0x469   : > { %8182 = vmatprep.subr.bf16.mxu0 %v8181_v7  ;;  %8240 = vmatprep.subr.bf16.mxu1 %v8239_v36  ;;  %v4109_v7 = vld [vmem:[#allocation7 + $0x9c8] sm:$0xff]  ;;  %v8253_v54 = vpack.c.bf16 %v4114_v15, %v4110_v62  ;;  %v4120_v59 = vld [vmem:[#allocation7 + $0xa20] sm:$0xff]  ;;  %v4130_v61 = vld [vmem:[#allocation7 + $0xa70] sm:$0x3f] }
 0x46a   : > { %v4113_v36 = vld [vmem:[#allocation7 + $0x9e8] sm:$0xff]  ;;  %v4322_v62 = vld [vmem:[#allocation7 + $0xa98] sm:$0xff] }
 0x46b   : > { %v4326_v15 = vld [vmem:[#allocation7 + $0xab8] sm:$0xff] }
 0x46c   : > { %8184 = vmatpush1.bf16.msra.mxu0 %v8183_v27  ;;  %8242 = vmatpush1.bf16.msra.mxu1 %v8241_v14  ;;  %v8193_v27 = vpack.c.bf16 %v4113_v36, %v4109_v7  ;;  %v8251_v14 = vpack.c.bf16 %v4115_v1, %v4111_v25  ;;  %v8199_v7 = vpack.c.bf16 %v4120_v59, %v4116_v8  ;;  %v4124_v25 = vld [vmem:[#allocation7 + $0xa40] sm:$0xff]  ;;  %v4133_v8 = vrot.slane %v11802_v31, 2  ;;  %v4321_v59 = vld [vmem:[#allocation7 + $0xa90] sm:$0xff] }
 0x46d   : > { %8186 = vmatprep.subr.bf16.mxu0 %v8185_v11  ;;  %8244 = vmatprep.subr.bf16.mxu1 %v8243_v24  ;;  %v4117_v11 = vld [vmem:[#allocation7 + $0xa08] sm:$0xff]  ;;  %v8257_v36 = vpack.c.bf16 %v4122_v46, %v4118_v57  ;;  %v4128_v1 = vld [vmem:[#allocation7 + $0xa60] sm:$0x3f]  ;;  %v4330_v46 = vld [vmem:[#allocation7 + $0xad8] sm:$0xff] }
 0x46e   : > { %v4121_v24 = vld [vmem:[#allocation7 + $0xa28] sm:$0xff] }
 0x46f   : > { %v4332_v57 = vld [vmem:[#allocation7 + $0xae8] sm:$0xff] }
 0x470   : > { %8188 = vmatpush1.bf16.msra.mxu0 %v8187_v60  ;;  %8246 = vmatpush1.bf16.msra.mxu1 %v8245_v48  ;;  %v8197_v60 = vpack.c.bf16 %v4121_v24, %v4117_v11  ;;  %v8255_v48 = vpack.c.bf16 %v4123_v17, %v4119_v63  ;;  %v8204_v11 = vpack.c.bf16 %v4128_v1, %v4124_v25 }
 0x471   : > { %8190 = vmatprep.subr.bf16.mxu0 %v8189_v19  ;;  %8248 = vmatprep.subr.bf16.mxu1 %v8247_v47  ;;  %v4125_v19 = vld [vmem:[#allocation7 + $0xa48] sm:$0xff]  ;;  %v8262_v24 = vpack.c.bf16 %v4130_v61, %v4126_v29  ;;  %v8323_v17 = vpack.c.bf16 %v4326_v15, %v4322_v62  ;;  %v4333_v29 = vld [vmem:[#allocation7 + $0xaf0] sm:$0xff]  ;;  %v4342_v62 = vld [vmem:[#allocation7 + $0xb38] sm:$0xff] }
 0x472   : > { %v4129_v47 = vld [vmem:[#allocation7 + $0xa68] sm:$0x3f] }
 0x473   : > { %v4336_v61 = vld [vmem:[#allocation7 + $0xb08] sm:$0xff] }
 0x474   : > { %8192 = vmatpush1.bf16.msra.mxu0 %v8191_v30  ;;  %8250 = vmatpush1.bf16.msra.mxu1 %v8249_v3  ;;  %v8201_v30 = vpack.c.bf16 %v4129_v47, %v4125_v19  ;;  %v8259_v3 = vpack.c.bf16 %v4131_v45, %v4127_v50  ;;  %v4334_v19 = vld [vmem:[#allocation7 + $0xaf8] sm:$0xff]  ;;  %v4132_v47 = vrot.slane %v11798_v26, 2 }
 0x475   : > { %8194 = vmatprep.subr.bf16.mxu0 %v8193_v27  ;;  %8252 = vmatprep.subr.bf16.mxu1 %v8251_v14  ;;  %v4320_v27 = vld [vmem:[#allocation7 + $0xa88] sm:$0xff] }
 0x476   : > { %v4324_v14 = vld [vmem:[#allocation7 + $0xaa8] sm:$0xff]  ;;  %v4134_v25 = vsel %vm13202_vm5, %v4132_v47, %v4133_v8  ;;  %v4343_v47 = vld [vmem:[#allocation7 + $0xb40] sm:$0xff]  ;;  %vm13206_vm5 = vmmov %vm13205_vm6 }
 0x477   : > { %v8265_v63 = vpack.c.bf16 %v4324_v14, %v4320_v27  ;;  %v4340_v27 = vld [vmem:[#allocation7 + $0xb28] sm:$0xff]  ;;  %v4338_v14 = vld [vmem:[#allocation7 + $0xb18] sm:$0xff] }
 0x478   : > { %8196 = vmatpush1.bf16.msra.mxu0 %v8195_v41  ;;  %8254 = vmatpush1.bf16.msra.mxu1 %v8253_v54  ;;  %v4319_v41 = vld [vmem:[#allocation7 + $0xa80] sm:$0xff] }
 0x479   : > { %8198 = vmatprep.subr.bf16.mxu0 %v8197_v60  ;;  %8256 = vmatprep.subr.bf16.mxu1 %v8255_v48  ;;  %v4323_v54 = vld [vmem:[#allocation7 + $0xaa0] sm:$0xff]  ;;  %v4325_v60 = vld [vmem:[#allocation7 + $0xab0] sm:$0xff]  ;;  %v4328_v48 = vld [vmem:[#allocation7 + $0xac8] sm:$0xff] }
 0x47a   : > { %v8267_v50 = vpack.c.bf16 %v4323_v54, %v4319_v41  ;;  %v8325_v45 = vpack.c.bf16 %v4325_v60, %v4321_v59  ;;  %v8269_v1 = vpack.c.bf16 %v4332_v57, %v4328_v48  ;;  %v8331_v41 = vpack.c.bf16 %v4342_v62, %v4338_v14  ;;  %v4337_v54 = vld [vmem:[#allocation7 + $0xb10] sm:$0xff]  ;;  %v4344_v60 = vld [vmem:[#allocation7 + $0xb48] sm:$0xff]  ;;  %v4346_v57 = vld [vmem:[#allocation7 + $0xb58] sm:$0xff] }
 0x47b   : > { %v4341_v59 = vld [vmem:[#allocation7 + $0xb30] sm:$0xff]  ;;  %v4348_v48 = vld [vmem:[#allocation7 + $0xb68] sm:$0xff] }
 0x47c   : > { %8200 = vmatpush1.bf16.msra.mxu0 %v8199_v7  ;;  %8258 = vmatpush1.bf16.msra.mxu1 %v8257_v36  ;;  %v4327_v7 = vld [vmem:[#allocation7 + $0xac0] sm:$0xff] }
 0x47d   : > { %8203 = vmatprep.subr.msk.bf16.mxu0 %vm11786_vm7, %v8201_v30  ;;  %8261 = vmatprep.subr.msk.bf16.mxu1 %vm11786_vm7, %v8259_v3  ;;  %v4331_v36 = vld [vmem:[#allocation7 + $0xae0] sm:$0xff]  ;;  %v8327_v30 = vpack.c.bf16 %v4334_v19, %v4330_v46  ;;  %v4329_v3 = vld [vmem:[#allocation7 + $0xad0] sm:$0xff]  ;;  %v4350_v46 = vld [vmem:[#allocation7 + $0xb78] sm:$0xff]  ;;  %v8333_v19 = vpack.c.bf16 %v4341_v59, %v4337_v54 }
 0x47e   : > { %v8271_v15 = vpack.c.bf16 %v4331_v36, %v4327_v7  ;;  %v8335_v7 = vpack.c.bf16 %v4350_v46, %v4346_v57  ;;  %v4349_v36 = vld [vmem:[#allocation7 + $0xb70] sm:$0xff] }
 0x480   : > { %8206 = vmatpush1.bf16.msk.msra.mxu0 %vm11786_vm7, %v8204_v11  ;;  %8264 = vmatpush1.bf16.msk.msra.mxu1 %vm11786_vm7, %v8262_v24  ;;  %v8329_v11 = vpack.c.bf16 %v4333_v29, %v4329_v3  ;;  %v4335_v24 = vld [vmem:[#allocation7 + $0xb00] sm:$0xff]  ;;  %v4358_v3 = vld [vmem:[#allocation7 + $0xbb8] sm:$0xff] }
 0x481   : > { %8266 = vmatprep.subr.bf16.mxu0 %v8265_v63  ;;  %8324 = vmatprep.subr.bf16.mxu1 %v8323_v17  ;;  %v4339_v63 = vld [vmem:[#allocation7 + $0xb20] sm:$0xff]  ;;  %v8273_v17 = vpack.c.bf16 %v4340_v27, %v4336_v61 }
 0x482   : > { %v4351_v61 = vld [vmem:[#allocation7 + $0xb80] sm:$0xff] }
 0x483   : > { %4221 = vmatmul.mubr.f32.vlgmr.msra.gmra.mrb[28].mxu0 %v4134_v25  ;;  %4298 = vmatmul.mubr.f32.vlgmr.msra.gmra.mrb[38].mxu1 %v4134_v25  ;;  %v4352_v25 = vld [vmem:[#allocation7 + $0xb88] sm:$0xff]  ;;  %v4355_v27 = vld [vmem:[#allocation7 + $0xba0] sm:$0xff] }
 0x484   : > { %7058 = vmatprep.mubr.msk.f32.mxu0 %vm3678_vm10, %v11813_v49  ;;  %7062 = vmatprep.mubr.msk.f32.mxu1 %vm3678_vm10, %v11813_v49  ;;  %v8275_v49 = vpack.c.bf16 %v4339_v63, %v4335_v24  ;;  %v4360_v24 = vld [vmem:[#allocation7 + $0xbc8] sm:$0xff]  ;;  %v8283_v54 = vpack.c.bf16 %v4355_v27, %v4351_v61 }
 0x485   : > { %8268 = vmatpush1.bf16.msra.mxu0 %v8267_v50  ;;  %8326 = vmatpush1.bf16.msra.mxu1 %v8325_v45  ;;  %v4347_v50 = vld [vmem:[#allocation7 + $0xb60] sm:$0xff]  ;;  %v8277_v45 = vpack.c.bf16 %v4348_v48, %v4344_v60  ;;  %v4364_v63 = vld [vmem:[#allocation7 + $0xbe8] sm:$0xff] }
 0x486   : > { %8270 = vmatprep.subr.bf16.mxu0 %v8269_v1  ;;  %8328 = vmatprep.subr.bf16.mxu1 %v8327_v30  ;;  %v4356_v1 = vld [vmem:[#allocation7 + $0xba8] sm:$0xff]  ;;  %v4354_v30 = vld [vmem:[#allocation7 + $0xb98] sm:$0xff]  ;;  %v8279_v29 = vpack.c.bf16 %v4347_v50, %v4343_v47  ;;  %v4359_v60 = vld [vmem:[#allocation7 + $0xbc0] sm:$0xff]  ;;  %v8285_v57 = vpack.c.bf16 %v4364_v63, %v4360_v24 }
 0x487   : > { %4227 = vmatmul.mubr.f32.gmra.mrb[30].mxu0 %v4133_v8  ;;  %4304 = vmatmul.mubr.f32.gmra.mrb[40].mxu1 %v4133_v8  ;;  %v4345_v8 = vld [vmem:[#allocation7 + $0xb50] sm:$0xff]  ;;  %v8281_v14 = vpack.c.bf16 %v4356_v1, %v4352_v25  ;;  %v8339_v62 = vpack.c.bf16 %v4358_v3, %v4354_v30  ;;  %v4363_v48 = vld [vmem:[#allocation7 + $0xbe0] sm:$0xff]  ;;  %v4368_v47 = vld [vmem:[#allocation7 + $0xc08] sm:$0xff] }
 0x488   : > { %7065 = vmatprep.mubr.msk.f32.mxu0 %vm3678_vm10, %v11828_v22  ;;  %7069 = vmatprep.mubr.msk.f32.mxu1 %vm3678_vm10, %v11828_v22  ;;  %v8337_v22 = vpack.c.bf16 %v4349_v36, %v4345_v8  ;;  %v4372_v50 = vld [vmem:[#allocation7 + $0xc28] sm:$0xff]  ;;  %v8287_v8 = vpack.c.bf16 %v4363_v48, %v4359_v60  ;;  %v4367_v25 = vld [vmem:[#allocation7 + $0xc00] sm:$0xff] }
 0x489   : > { %8272 = vmatpush1.bf16.msra.mxu0 %v8271_v15  ;;  %8330 = vmatpush1.bf16.msra.mxu1 %v8329_v11  ;;  %v4353_v15 = vld [vmem:[#allocation7 + $0xb90] sm:$0xff]  ;;  %v4371_v1 = vld [vmem:[#allocation7 + $0xc20] sm:$0xff]  ;;  %v8289_v30 = vpack.c.bf16 %v4372_v50, %v4368_v47  ;;  %v4376_v61 = vld [vmem:[#allocation7 + $0xc48] sm:$0xff] }
 0x48a   : > { %8274 = vmatprep.subr.bf16.mxu0 %v8273_v17  ;;  %8332 = vmatprep.subr.bf16.mxu1 %v8331_v41  ;;  %v4357_v11 = vld [vmem:[#allocation7 + $0xbb0] sm:$0xff]  ;;  %v4362_v17 = vld [vmem:[#allocation7 + $0xbd8] sm:$0xff]  ;;  %v4380_v27 = vld [vmem:[#allocation7 + $0xc68] sm:$0xff] }
 0x48b   : > { %v4366_v41 = vld [vmem:[#allocation7 + $0xbf8] sm:$0xff]  ;;  %v8341_v59 = vpack.c.bf16 %v4357_v11, %v4353_v15  ;;  %v8291_v15 = vpack.c.bf16 %v4371_v1, %v4367_v25  ;;  %v4375_v24 = vld [vmem:[#allocation7 + $0xc40] sm:$0xff]  ;;  %v4384_v60 = vld [vmem:[#allocation7 + $0xc88] sm:$0xff] }
 0x48c   : > { %v8343_v46 = vpack.c.bf16 %v4366_v41, %v4362_v17  ;;  %v4379_v63 = vld [vmem:[#allocation7 + $0xc60] sm:$0xff]  ;;  %v8293_v17 = vpack.c.bf16 %v4380_v27, %v4376_v61  ;;  %v4388_v48 = vld [vmem:[#allocation7 + $0xca8] sm:$0xff] }
 0x48d   : > { %8276 = vmatpush1.bf16.msra.mxu0 %v8275_v49  ;;  %8334 = vmatpush1.bf16.msra.mxu1 %v8333_v19  ;;  %v4361_v49 = vld [vmem:[#allocation7 + $0xbd0] sm:$0xff]  ;;  %v4383_v47 = vld [vmem:[#allocation7 + $0xc80] sm:$0xff]  ;;  %v4392_v25 = vld [vmem:[#allocation7 + $0xcc8] sm:$0xff] }
 0x48e   : > { %8278 = vmatprep.subr.bf16.mxu0 %v8277_v45  ;;  %8336 = vmatprep.subr.bf16.mxu1 %v8335_v7  ;;  %v4365_v19 = vld [vmem:[#allocation7 + $0xbf0] sm:$0xff]  ;;  %v4370_v45 = vld [vmem:[#allocation7 + $0xc18] sm:$0xff]  ;;  %v4387_v50 = vld [vmem:[#allocation7 + $0xca0] sm:$0xff] }
 0x48f   : > { %v4374_v7 = vld [vmem:[#allocation7 + $0xc38] sm:$0xff]  ;;  %v8345_v36 = vpack.c.bf16 %v4365_v19, %v4361_v49  ;;  %v8295_v49 = vpack.c.bf16 %v4379_v63, %v4375_v24  ;;  %v4396_v1 = vld [vmem:[#allocation7 + $0xce8] sm:$0xff]  ;;  %v4391_v61 = vld [vmem:[#allocation7 + $0xcc0] sm:$0xff] }
 0x490   : > { %v8347_v3 = vpack.c.bf16 %v4374_v7, %v4370_v45  ;;  %v8297_v45 = vpack.c.bf16 %v4388_v48, %v4384_v60  ;;  %v4395_v27 = vld [vmem:[#allocation7 + $0xce0] sm:$0xff]  ;;  %v4400_v24 = vld [vmem:[#allocation7 + $0xd08] sm:$0xff] }
 0x491   : > { %8280 = vmatpush1.bf16.msra.mxu0 %v8279_v29  ;;  %8338 = vmatpush1.bf16.msra.mxu1 %v8337_v22  ;;  %v4369_v29 = vld [vmem:[#allocation7 + $0xc10] sm:$0xff]  ;;  %v4404_v63 = vld [vmem:[#allocation7 + $0xd28] sm:$0xff]  ;;  %v4399_v60 = vld [vmem:[#allocation7 + $0xd00] sm:$0xff] }
 0x492   : > { %8282 = vmatprep.subr.bf16.mxu0 %v8281_v14  ;;  %8340 = vmatprep.subr.bf16.mxu1 %v8339_v62  ;;  %v4373_v22 = vld [vmem:[#allocation7 + $0xc30] sm:$0xff]  ;;  %v4378_v14 = vld [vmem:[#allocation7 + $0xc58] sm:$0xff]  ;;  %v4403_v48 = vld [vmem:[#allocation7 + $0xd20] sm:$0xff] }
 0x493   : > { %v4382_v62 = vld [vmem:[#allocation7 + $0xc78] sm:$0xff]  ;;  %v8349_v11 = vpack.c.bf16 %v4373_v22, %v4369_v29  ;;  %v8299_v29 = vpack.c.bf16 %v4387_v50, %v4383_v47  ;;  %v4408_v47 = vld [vmem:[#allocation7 + $0xd48] sm:$0xff] }
 0x494   : > { %v8351_v41 = vpack.c.bf16 %v4382_v62, %v4378_v14  ;;  %v8301_v14 = vpack.c.bf16 %v4396_v1, %v4392_v25  ;;  %v4412_v50 = vld [vmem:[#allocation7 + $0xd68] sm:$0xff]  ;;  %v4407_v25 = vld [vmem:[#allocation7 + $0xd40] sm:$0xff] }
 0x495   : > { %8284 = vmatpush1.bf16.msra.mxu0 %v8283_v54  ;;  %8342 = vmatpush1.bf16.msra.mxu1 %v8341_v59  ;;  %v4377_v54 = vld [vmem:[#allocation7 + $0xc50] sm:$0xff]  ;;  %v4411_v1 = vld [vmem:[#allocation7 + $0xd60] sm:$0xff] }
 0x496   : > { %8286 = vmatprep.subr.bf16.mxu0 %v8285_v57  ;;  %8344 = vmatprep.subr.bf16.mxu1 %v8343_v46  ;;  %v4381_v59 = vld [vmem:[#allocation7 + $0xc70] sm:$0xff]  ;;  %v4386_v57 = vld [vmem:[#allocation7 + $0xc98] sm:$0xff] }
 0x497   : > { %v4390_v46 = vld [vmem:[#allocation7 + $0xcb8] sm:$0xff]  ;;  %v8353_v19 = vpack.c.bf16 %v4381_v59, %v4377_v54  ;;  %v8303_v54 = vpack.c.bf16 %v4395_v27, %v4391_v61  ;;  %v4416_v61 = vld [vmem:[#allocation7 + $0xd88] sm:$0xff] }
 0x498   : > { %v8355_v7 = vpack.c.bf16 %v4390_v46, %v4386_v57  ;;  %v8305_v57 = vpack.c.bf16 %v4404_v63, %v4400_v24  ;;  %v4420_v27 = vld [vmem:[#allocation7 + $0xda8] sm:$0xff]  ;;  %v4415_v24 = vld [vmem:[#allocation7 + $0xd80] sm:$0xff] }
 0x499   : > { %8288 = vmatpush1.bf16.msra.mxu0 %v8287_v8  ;;  %8346 = vmatpush1.bf16.msra.mxu1 %v8345_v36  ;;  %v4385_v8 = vld [vmem:[#allocation7 + $0xc90] sm:$0xff]  ;;  %v4419_v63 = vld [vmem:[#allocation7 + $0xda0] sm:$0xff] }
 0x49a   : > { %8290 = vmatprep.subr.bf16.mxu0 %v8289_v30  ;;  %8348 = vmatprep.subr.bf16.mxu1 %v8347_v3  ;;  %v4389_v36 = vld [vmem:[#allocation7 + $0xcb0] sm:$0xff]  ;;  %v4394_v30 = vld [vmem:[#allocation7 + $0xcd8] sm:$0xff] }
 0x49b   : > { %v4398_v3 = vld [vmem:[#allocation7 + $0xcf8] sm:$0xff]  ;;  %v8357_v22 = vpack.c.bf16 %v4389_v36, %v4385_v8  ;;  %v8307_v8 = vpack.c.bf16 %v4403_v48, %v4399_v60  ;;  %v4424_v60 = vld [vmem:[#allocation7 + $0xdc8] sm:$0xff] }
 0x49c   : > { %v8359_v62 = vpack.c.bf16 %v4398_v3, %v4394_v30  ;;  %v8309_v30 = vpack.c.bf16 %v4412_v50, %v4408_v47  ;;  %v4428_v48 = vld [vmem:[#allocation7 + $0xde8] sm:$0x3f]  ;;  %v4423_v47 = vld [vmem:[#allocation7 + $0xdc0] sm:$0xff] }
 0x49d   : > { %8292 = vmatpush1.bf16.msra.mxu0 %v8291_v15  ;;  %8350 = vmatpush1.bf16.msra.mxu1 %v8349_v11  ;;  %v4393_v15 = vld [vmem:[#allocation7 + $0xcd0] sm:$0xff]  ;;  %v4427_v50 = vld [vmem:[#allocation7 + $0xde0] sm:$0x3f] }
 0x49e   : > { %8294 = vmatprep.subr.bf16.mxu0 %v8293_v17  ;;  %8352 = vmatprep.subr.bf16.mxu1 %v8351_v41  ;;  %v4397_v11 = vld [vmem:[#allocation7 + $0xcf0] sm:$0xff]  ;;  %v4402_v17 = vld [vmem:[#allocation7 + $0xd18] sm:$0xff] }
 0x49f   : > { %v4406_v41 = vld [vmem:[#allocation7 + $0xd38] sm:$0xff]  ;;  %v8361_v59 = vpack.c.bf16 %v4397_v11, %v4393_v15  ;;  %v8311_v15 = vpack.c.bf16 %v4411_v1, %v4407_v25  ;;  %v4625_v25 = vld [vmem:[#allocation7 + $0xe08] sm:$0xff] }
 0x4a0   : > { %v8363_v46 = vpack.c.bf16 %v4406_v41, %v4402_v17  ;;  %v8313_v17 = vpack.c.bf16 %v4420_v27, %v4416_v61  ;;  %v4629_v1 = vld [vmem:[#allocation7 + $0xe28] sm:$0xff] }
 0x4a1   : > { %8296 = vmatpush1.bf16.msra.mxu0 %v8295_v49  ;;  %8354 = vmatpush1.bf16.msra.mxu1 %v8353_v19  ;;  %v4401_v49 = vld [vmem:[#allocation7 + $0xd10] sm:$0xff]  ;;  %v8381_v61 = vpack.c.bf16 %v4629_v1, %v4625_v25  ;;  %v4643_v25 = vld [vmem:[#allocation7 + $0xe98] sm:$0xff] }
 0x4a2   : > { %8298 = vmatprep.subr.bf16.mxu0 %v8297_v45  ;;  %8356 = vmatprep.subr.bf16.mxu1 %v8355_v7  ;;  %v4405_v19 = vld [vmem:[#allocation7 + $0xd30] sm:$0xff]  ;;  %v4410_v45 = vld [vmem:[#allocation7 + $0xd58] sm:$0xff] }
 0x4a3   : > { %v4414_v7 = vld [vmem:[#allocation7 + $0xd78] sm:$0xff]  ;;  %v8365_v36 = vpack.c.bf16 %v4405_v19, %v4401_v49  ;;  %v8315_v49 = vpack.c.bf16 %v4419_v63, %v4415_v24  ;;  %v4630_v24 = vld [vmem:[#allocation7 + $0xe30] sm:$0xff]  ;;  %v4633_v63 = vld [vmem:[#allocation7 + $0xe48] sm:$0xff] }
 0x4a4   : > { %v8367_v3 = vpack.c.bf16 %v4414_v7, %v4410_v45  ;;  %v8317_v45 = vpack.c.bf16 %v4428_v48, %v4424_v60  ;;  %v4647_v1 = vld [vmem:[#allocation7 + $0xeb8] sm:$0xff] }
 0x4a5   : > { %8300 = vmatpush1.bf16.msra.mxu0 %v8299_v29  ;;  %8358 = vmatpush1.bf16.msra.mxu1 %v8357_v22  ;;  %v4409_v29 = vld [vmem:[#allocation7 + $0xd50] sm:$0xff] }
 0x4a6   : > { %8302 = vmatprep.subr.bf16.mxu0 %v8301_v14  ;;  %8360 = vmatprep.subr.bf16.mxu1 %v8359_v62  ;;  %v4413_v22 = vld [vmem:[#allocation7 + $0xd70] sm:$0xff]  ;;  %v4418_v14 = vld [vmem:[#allocation7 + $0xd98] sm:$0xff] }
 0x4a7   : > { %v4422_v62 = vld [vmem:[#allocation7 + $0xdb8] sm:$0xff]  ;;  %v8369_v11 = vpack.c.bf16 %v4413_v22, %v4409_v29  ;;  %v8320_v29 = vpack.c.bf16 %v4427_v50, %v4423_v47 }
 0x4a8   : > { %v8371_v41 = vpack.c.bf16 %v4422_v62, %v4418_v14  ;;  %v4624_v14 = vld [vmem:[#allocation7 + $0xe00] sm:$0xff] }
 0x4a9   : > { %8304 = vmatpush1.bf16.msra.mxu0 %v8303_v54  ;;  %8362 = vmatpush1.bf16.msra.mxu1 %v8361_v59  ;;  %v4417_v54 = vld [vmem:[#allocation7 + $0xd90] sm:$0xff]  ;;  %v4628_v62 = vld [vmem:[#allocation7 + $0xe20] sm:$0xff] }
 0x4aa   : > { %8306 = vmatprep.subr.bf16.mxu0 %v8305_v57  ;;  %8364 = vmatprep.subr.bf16.mxu1 %v8363_v46  ;;  %v4421_v59 = vld [vmem:[#allocation7 + $0xdb0] sm:$0xff]  ;;  %v4426_v57 = vld [vmem:[#allocation7 + $0xdd8] sm:$0xff]  ;;  %v8383_v60 = vpack.c.bf16 %v4628_v62, %v4624_v14  ;;  %v8447_v14 = vpack.c.bf16 %v4647_v1, %v4643_v25 }
 0x4ab   : > { %v4430_v46 = vld [vmem:[#allocation7 + $0xdf8] sm:$0x3f]  ;;  %v8373_v19 = vpack.c.bf16 %v4421_v59, %v4417_v54  ;;  %v4433_v59 = vrot.slane %v11798_v26, 3  ;;  %v4642_v62 = vld [vmem:[#allocation7 + $0xe90] sm:$0xff] }
 0x4ac   : > { %v8375_v7 = vpack.c.bf16 %v4430_v46, %v4426_v57  ;;  %v4639_v54 = vld [vmem:[#allocation7 + $0xe78] sm:$0xff]  ;;  %v4632_v57 = vld [vmem:[#allocation7 + $0xe40] sm:$0xff]  ;;  %v4658_v1 = vld [vmem:[#allocation7 + $0xf10] sm:$0xff] }
 0x4ad   : > { %8308 = vmatpush1.bf16.msra.mxu0 %v8307_v8  ;;  %8366 = vmatpush1.bf16.msra.mxu1 %v8365_v36  ;;  %v4425_v8 = vld [vmem:[#allocation7 + $0xdd0] sm:$0xff]  ;;  %v4636_v46 = vld [vmem:[#allocation7 + $0xe60] sm:$0xff] }
 0x4ae   : > { %8310 = vmatprep.subr.bf16.mxu0 %v8309_v30  ;;  %8368 = vmatprep.subr.bf16.mxu1 %v8367_v3  ;;  %v4429_v36 = vld [vmem:[#allocation7 + $0xdf0] sm:$0x3f]  ;;  %v4627_v30 = vld [vmem:[#allocation7 + $0xe18] sm:$0xff] }
 0x4af   : > { %v4631_v3 = vld [vmem:[#allocation7 + $0xe38] sm:$0xff]  ;;  %v8378_v22 = vpack.c.bf16 %v4429_v36, %v4425_v8  ;;  %v4641_v8 = vld [vmem:[#allocation7 + $0xe88] sm:$0xff] }
 0x4b0   : > { %v8439_v27 = vpack.c.bf16 %v4631_v3, %v4627_v30  ;;  %v4645_v36 = vld [vmem:[#allocation7 + $0xea8] sm:$0xff]  ;;  %v8387_v30 = vpack.c.bf16 %v4636_v46, %v4632_v57  ;;  %v4650_v57 = vld [vmem:[#allocation7 + $0xed0] sm:$0xff] }
 0x4b1   : > { %8312 = vmatpush1.bf16.msra.mxu0 %v8311_v15  ;;  %8370 = vmatpush1.bf16.msra.mxu1 %v8369_v11  ;;  %v4434_v15 = vrot.slane %v11802_v31, 3  ;;  %v4626_v11 = vld [vmem:[#allocation7 + $0xe10] sm:$0xff] }
 0x4b2   : > { %8314 = vmatprep.subr.bf16.mxu0 %v8313_v17  ;;  %8372 = vmatprep.subr.bf16.mxu1 %v8371_v41  ;;  %v4637_v17 = vld [vmem:[#allocation7 + $0xe68] sm:$0xff]  ;;  %v4635_v41 = vld [vmem:[#allocation7 + $0xe58] sm:$0xff]  ;;  %v8441_v48 = vpack.c.bf16 %v4630_v24, %v4626_v11  ;;  %v4646_v11 = vld [vmem:[#allocation7 + $0xeb0] sm:$0xff] }
 0x4b3   : > { %v8385_v47 = vpack.c.bf16 %v4637_v17, %v4633_v63  ;;  %v8443_v50 = vpack.c.bf16 %v4639_v54, %v4635_v41  ;;  %v4649_v24 = vld [vmem:[#allocation7 + $0xec8] sm:$0xff]  ;;  %v4651_v17 = vld [vmem:[#allocation7 + $0xed8] sm:$0xff]  ;;  %v8449_v41 = vpack.c.bf16 %v4646_v11, %v4642_v62  ;;  %v4648_v54 = vld [vmem:[#allocation7 + $0xec0] sm:$0xff] }
 0x4b4   : > { %v4653_v63 = vld [vmem:[#allocation7 + $0xee8] sm:$0xff]  ;;  %v4654_v46 = vld [vmem:[#allocation7 + $0xef0] sm:$0xff]  ;;  %v4664_v62 = vld [vmem:[#allocation7 + $0xf40] sm:$0xff] }
 0x4b5   : > { %8316 = vmatpush1.bf16.msra.mxu0 %v8315_v49  ;;  %8374 = vmatpush1.bf16.msra.mxu1 %v8373_v19  ;;  %v4439_v49 = vrot.slane %v11817_v38, 3  ;;  %v4435_v19 = vsel %vm13203_vm14, %v4433_v59, %v4434_v15  ;;  %v4652_v59 = vld [vmem:[#allocation7 + $0xee0] sm:$0xff]  ;;  %vm13207_vm14 = vcmask 1042432  }
 0x4b6   : > { %8319 = vmatprep.subr.msk.bf16.mxu0 %vm11786_vm7, %v8317_v45  ;;  %8377 = vmatprep.subr.msk.bf16.mxu1 %vm11786_vm7, %v8375_v7  ;;  %v4634_v45 = vld [vmem:[#allocation7 + $0xe50] sm:$0xff]  ;;  %v4668_v11 = vld [vmem:[#allocation7 + $0xf60] sm:$0xff] }
 0x4b7   : > { %v4638_v7 = vld [vmem:[#allocation7 + $0xe70] sm:$0xff] }
 0x4b8   : > { %v8445_v3 = vpack.c.bf16 %v4638_v7, %v4634_v45  ;;  %v8395_v45 = vpack.c.bf16 %v4652_v59, %v4648_v54  ;;  %v4656_v7 = vld [vmem:[#allocation7 + $0xf00] sm:$0xff]  ;;  %v4675_v54 = vld [vmem:[#allocation7 + $0xf98] sm:$0xff] }
 0x4b9   : > { %8322 = vmatpush1.bf16.msk.msra.mxu0 %vm11786_vm7, %v8320_v29  ;;  %8380 = vmatpush1.bf16.msk.msra.mxu1 %vm11786_vm7, %v8378_v22  ;;  %v4640_v29 = vld [vmem:[#allocation7 + $0xe80] sm:$0xff]  ;;  %v4679_v59 = vld [vmem:[#allocation7 + $0xfb8] sm:$0xff] }
 0x4ba   : > { %8382 = vmatprep.subr.bf16.mxu0 %v8381_v61  ;;  %8440 = vmatprep.subr.bf16.mxu1 %v8439_v27  ;;  %v4644_v22 = vld [vmem:[#allocation7 + $0xea0] sm:$0xff]  ;;  %v4440_v61 = vsel %vm13204_vm15, %v4434_v15, %v4439_v49  ;;  %v8389_v27 = vpack.c.bf16 %v4645_v36, %v4641_v8  ;;  %v4657_v49 = vld [vmem:[#allocation7 + $0xf08] sm:$0xff]  ;;  %vm13208_vm15 = vmmov %vm13207_vm14 }
 0x4bb   : > { %v8391_v15 = vpack.c.bf16 %v4644_v22, %v4640_v29  ;;  %v4660_v8 = vld [vmem:[#allocation7 + $0xf20] sm:$0xff]  ;;  %v4669_v29 = vld [vmem:[#allocation7 + $0xf68] sm:$0xff]  ;;  %v4667_v22 = vld [vmem:[#allocation7 + $0xf58] sm:$0xff] }
 0x4bc   : > { %4526 = vmatmul.mubr.f32.vlgmr.msra.gmra.mrb[28].mxu0 %v4435_v19  ;;  %4603 = vmatmul.mubr.f32.vlgmr.msra.gmra.mrb[38].mxu1 %v4435_v19  ;;  %v4661_v19 = vld [vmem:[#allocation7 + $0xf28] sm:$0xff] }
 0x4bd   : > { %7066 = vmatprep.mubr.msk.f32.mxu0 %vm3678_vm10, %v11842_v37  ;;  %7070 = vmatprep.mubr.msk.f32.mxu1 %vm3678_vm10, %v11842_v37  ;;  %v4655_v37 = vld [vmem:[#allocation7 + $0xef8] sm:$0xff]  ;;  %v8397_v36 = vpack.c.bf16 %v4661_v19, %v4657_v49  ;;  %v8463_v19 = vpack.c.bf16 %v4679_v59, %v4675_v54  ;;  %v4690_v54 = vld [vmem:[#allocation7 + $0x1010] sm:$0xff] }
 0x4be   : > { %8384 = vmatpush1.bf16.msra.mxu0 %v8383_v60  ;;  %8442 = vmatpush1.bf16.msra.mxu1 %v8441_v48  ;;  %v8393_v60 = vpack.c.bf16 %v4653_v63, %v4649_v24  ;;  %v8451_v48 = vpack.c.bf16 %v4655_v37, %v4651_v17  ;;  %v4666_v17 = vld [vmem:[#allocation7 + $0xf50] sm:$0xff] }
 0x4bf   : > { %8386 = vmatprep.subr.bf16.mxu0 %v8385_v47  ;;  %8444 = vmatprep.subr.bf16.mxu1 %v8443_v50  ;;  %v4659_v47 = vld [vmem:[#allocation7 + $0xf18] sm:$0xff]  ;;  %v4670_v37 = vld [vmem:[#allocation7 + $0xf70] sm:$0xff] }
 0x4c0   : > { %4532 = vmatmul.mubr.f32.gmra.mrb[30].mxu0 %v4440_v61  ;;  %4609 = vmatmul.mubr.f32.gmra.mrb[40].mxu1 %v4440_v61  ;;  %v4663_v50 = vld [vmem:[#allocation7 + $0xf38] sm:$0xff]  ;;  %v4694_v59 = vld [vmem:[#allocation7 + $0x1030] sm:$0xff] }
 0x4c1   : > { %7073 = vmatprep.mubr.msk.f32.mxu0 %vm3678_vm10, %v11845_v21  ;;  %7077 = vmatprep.mubr.msk.f32.mxu1 %vm3678_vm10, %v11845_v21  ;;  %v8453_v21 = vpack.c.bf16 %v4654_v46, %v4650_v57  ;;  %v8455_v25 = vpack.c.bf16 %v4663_v50, %v4659_v47  ;;  %v4671_v61 = vld [vmem:[#allocation7 + $0xf78] sm:$0xff]  ;;  %v4672_v57 = vld [vmem:[#allocation7 + $0xf80] sm:$0xff]  ;;  %v4674_v47 = vld [vmem:[#allocation7 + $0xf90] sm:$0xff] }
 0x4c2   : > { %8388 = vmatpush1.bf16.msra.mxu0 %v8387_v30  ;;  %8446 = vmatpush1.bf16.msra.mxu1 %v8445_v3  ;;  %v4662_v30 = vld [vmem:[#allocation7 + $0xf30] sm:$0xff]  ;;  %v4665_v3 = vld [vmem:[#allocation7 + $0xf48] sm:$0xff]  ;;  %v8459_v63 = vpack.c.bf16 %v4671_v61, %v4667_v22  ;;  %v4676_v46 = vld [vmem:[#allocation7 + $0xfa0] sm:$0xff] }
 0x4c3   : > { %8390 = vmatprep.subr.bf16.mxu0 %v8389_v27  ;;  %8448 = vmatprep.subr.bf16.mxu1 %v8447_v14  ;;  %v8399_v27 = vpack.c.bf16 %v4660_v8, %v4656_v7  ;;  %v8457_v14 = vpack.c.bf16 %v4662_v30, %v4658_v1  ;;  %v8401_v24 = vpack.c.bf16 %v4669_v29, %v4665_v3  ;;  %v4678_v50 = vld [vmem:[#allocation7 + $0xfb0] sm:$0xff]  ;;  %v4683_v7 = vld [vmem:[#allocation7 + $0xfd8] sm:$0xff]  ;;  %v4680_v1 = vld [vmem:[#allocation7 + $0xfc0] sm:$0xff] }
 0x4c4   : > { %v4687_v8 = vld [vmem:[#allocation7 + $0xff8] sm:$0xff]  ;;  %v4684_v30 = vld [vmem:[#allocation7 + $0xfe0] sm:$0xff]  ;;  %v4682_v22 = vld [vmem:[#allocation7 + $0xfd0] sm:$0xff] }
 0x4c5   : > { %v8467_v29 = vpack.c.bf16 %v4687_v8, %v4683_v7  ;;  %v4686_v61 = vld [vmem:[#allocation7 + $0xff0] sm:$0xff] }
 0x4c6   : > { %8392 = vmatpush1.bf16.msra.mxu0 %v8391_v15  ;;  %8450 = vmatpush1.bf16.msra.mxu1 %v8449_v41  ;;  %v4673_v15 = vld [vmem:[#allocation7 + $0xf88] sm:$0xff]  ;;  %v4698_v7 = vld [vmem:[#allocation7 + $0x1050] sm:$0xff] }
 0x4c7   : > { %8394 = vmatprep.subr.bf16.mxu0 %v8393_v60  ;;  %8452 = vmatprep.subr.bf16.mxu1 %v8451_v48  ;;  %v4677_v41 = vld [vmem:[#allocation7 + $0xfa8] sm:$0xff]  ;;  %v8403_v60 = vpack.c.bf16 %v4668_v11, %v4664_v62  ;;  %v8461_v48 = vpack.c.bf16 %v4670_v37, %v4666_v17  ;;  %v4691_v62 = vld [vmem:[#allocation7 + $0x1018] sm:$0xff]  ;;  %v4688_v17 = vld [vmem:[#allocation7 + $0x1000] sm:$0xff] }
 0x4c8   : > { %v8405_v49 = vpack.c.bf16 %v4677_v41, %v4673_v15  ;;  %v4695_v11 = vld [vmem:[#allocation7 + $0x1038] sm:$0xff]  ;;  %v4692_v37 = vld [vmem:[#allocation7 + $0x1020] sm:$0xff]  ;;  %v4702_v8 = vld [vmem:[#allocation7 + $0x1070] sm:$0xff] }
 0x4c9   : > { %v8471_v41 = vpack.c.bf16 %v4695_v11, %v4691_v62  ;;  %v4706_v62 = vld [vmem:[#allocation7 + $0x1090] sm:$0xff] }
 0x4ca   : > { %8396 = vmatpush1.bf16.msra.mxu0 %v8395_v45  ;;  %8454 = vmatpush1.bf16.msra.mxu1 %v8453_v21  ;;  %v4681_v45 = vld [vmem:[#allocation7 + $0xfc8] sm:$0xff]  ;;  %v4710_v11 = vld [vmem:[#allocation7 + $0x10b0] sm:$0xff] }
 0x4cb   : > { %8398 = vmatprep.subr.bf16.mxu0 %v8397_v36  ;;  %8456 = vmatprep.subr.bf16.mxu1 %v8455_v25  ;;  %v4685_v21 = vld [vmem:[#allocation7 + $0xfe8] sm:$0xff]  ;;  %v8407_v36 = vpack.c.bf16 %v4676_v46, %v4672_v57  ;;  %v8465_v25 = vpack.c.bf16 %v4678_v50, %v4674_v47  ;;  %v4699_v57 = vld [vmem:[#allocation7 + $0x1058] sm:$0xff]  ;;  %v4696_v47 = vld [vmem:[#allocation7 + $0x1040] sm:$0xff] }
 0x4cc   : > { %v8409_v3 = vpack.c.bf16 %v4685_v21, %v4681_v45  ;;  %v4703_v46 = vld [vmem:[#allocation7 + $0x1078] sm:$0xff]  ;;  %v4700_v50 = vld [vmem:[#allocation7 + $0x1060] sm:$0xff] }
 0x4cd   : > { %v8475_v21 = vpack.c.bf16 %v4703_v46, %v4699_v57  ;;  %v4714_v57 = vld [vmem:[#allocation7 + $0x10d0] sm:$0xff] }
 0x4ce   : > { %8400 = vmatpush1.bf16.msra.mxu0 %v8399_v27  ;;  %8458 = vmatpush1.bf16.msra.mxu1 %v8457_v14  ;;  %v4689_v27 = vld [vmem:[#allocation7 + $0x1008] sm:$0xff]  ;;  %v4718_v46 = vld [vmem:[#allocation7 + $0x10f0] sm:$0xff] }
 0x4cf   : > { %8402 = vmatprep.subr.bf16.mxu0 %v8401_v24  ;;  %8460 = vmatprep.subr.bf16.mxu1 %v8459_v63  ;;  %v4693_v14 = vld [vmem:[#allocation7 + $0x1028] sm:$0xff]  ;;  %v8411_v24 = vpack.c.bf16 %v4684_v30, %v4680_v1  ;;  %v8469_v63 = vpack.c.bf16 %v4686_v61, %v4682_v22  ;;  %v4707_v1 = vld [vmem:[#allocation7 + $0x1098] sm:$0xff]  ;;  %v4704_v22 = vld [vmem:[#allocation7 + $0x1080] sm:$0xff] }
 0x4d0   : > { %v8413_v15 = vpack.c.bf16 %v4693_v14, %v4689_v27  ;;  %v4711_v30 = vld [vmem:[#allocation7 + $0x10b8] sm:$0xff]  ;;  %v4708_v61 = vld [vmem:[#allocation7 + $0x10a0] sm:$0xff] }
 0x4d1   : > { %v8479_v14 = vpack.c.bf16 %v4711_v30, %v4707_v1  ;;  %v4722_v1 = vld [vmem:[#allocation7 + $0x1110] sm:$0xff] }
 0x4d2   : > { %8404 = vmatpush1.bf16.msra.mxu0 %v8403_v60  ;;  %8462 = vmatpush1.bf16.msra.mxu1 %v8461_v48  ;;  %v4697_v60 = vld [vmem:[#allocation7 + $0x1048] sm:$0xff]  ;;  %v4726_v30 = vld [vmem:[#allocation7 + $0x1130] sm:$0xff] }
 0x4d3   : > { %8406 = vmatprep.subr.bf16.mxu0 %v8405_v49  ;;  %8464 = vmatprep.subr.bf16.mxu1 %v8463_v19  ;;  %v4701_v48 = vld [vmem:[#allocation7 + $0x1068] sm:$0xff]  ;;  %v8415_v49 = vpack.c.bf16 %v4692_v37, %v4688_v17  ;;  %v8473_v19 = vpack.c.bf16 %v4694_v59, %v4690_v54  ;;  %v4715_v17 = vld [vmem:[#allocation7 + $0x10d8] sm:$0xff]  ;;  %v4712_v54 = vld [vmem:[#allocation7 + $0x10c0] sm:$0xff] }
 0x4d4   : > { %v8417_v45 = vpack.c.bf16 %v4701_v48, %v4697_v60  ;;  %v4719_v37 = vld [vmem:[#allocation7 + $0x10f8] sm:$0xff]  ;;  %v4716_v59 = vld [vmem:[#allocation7 + $0x10e0] sm:$0xff] }
 0x4d5   : > { %v8483_v48 = vpack.c.bf16 %v4719_v37, %v4715_v17  ;;  %v4730_v17 = vld [vmem:[#allocation7 + $0x1150] sm:$0xff] }
 0x4d6   : > { %8408 = vmatpush1.bf16.msra.mxu0 %v8407_v36  ;;  %8466 = vmatpush1.bf16.msra.mxu1 %v8465_v25  ;;  %v4705_v36 = vld [vmem:[#allocation7 + $0x1088] sm:$0xff]  ;;  %v4734_v37 = vld [vmem:[#allocation7 + $0x1170] sm:$0x3f] }
 0x4d7   : > { %8410 = vmatprep.subr.bf16.mxu0 %v8409_v3  ;;  %8468 = vmatprep.subr.bf16.mxu1 %v8467_v29  ;;  %v4709_v25 = vld [vmem:[#allocation7 + $0x10a8] sm:$0xff]  ;;  %v8419_v3 = vpack.c.bf16 %v4700_v50, %v4696_v47  ;;  %v8477_v29 = vpack.c.bf16 %v4702_v8, %v4698_v7  ;;  %v4723_v47 = vld [vmem:[#allocation7 + $0x1118] sm:$0xff]  ;;  %v4720_v7 = vld [vmem:[#allocation7 + $0x1100] sm:$0xff] }
 0x4d8   : > { %v8421_v27 = vpack.c.bf16 %v4709_v25, %v4705_v36  ;;  %v4727_v50 = vld [vmem:[#allocation7 + $0x1138] sm:$0xff]  ;;  %v4724_v8 = vld [vmem:[#allocation7 + $0x1120] sm:$0xff] }
 0x4d9   : > { %v8487_v25 = vpack.c.bf16 %v4727_v50, %v4723_v47  ;;  %v4737_v47 = vrot.slane %v11802_v31, 4  ;;  %v4929_v50 = vld [vmem:[#allocation7 + $0x1190] sm:$0xff] }
 0x4da   : > { %8412 = vmatpush1.bf16.msra.mxu0 %v8411_v24  ;;  %8470 = vmatpush1.bf16.msra.mxu1 %v8469_v63  ;;  %v4713_v24 = vld [vmem:[#allocation7 + $0x10c8] sm:$0xff] }
 0x4db   : > { %8414 = vmatprep.subr.bf16.mxu0 %v8413_v15  ;;  %8472 = vmatprep.subr.bf16.mxu1 %v8471_v41  ;;  %v4717_v63 = vld [vmem:[#allocation7 + $0x10e8] sm:$0xff]  ;;  %v8423_v15 = vpack.c.bf16 %v4708_v61, %v4704_v22  ;;  %v8481_v41 = vpack.c.bf16 %v4710_v11, %v4706_v62  ;;  %v4731_v22 = vld [vmem:[#allocation7 + $0x1158] sm:$0xff]  ;;  %v4728_v62 = vld [vmem:[#allocation7 + $0x1140] sm:$0xff] }
 0x4dc   : > { %v8425_v60 = vpack.c.bf16 %v4717_v63, %v4713_v24  ;;  %v4735_v61 = vld [vmem:[#allocation7 + $0x1178] sm:$0x3f]  ;;  %v4732_v11 = vld [vmem:[#allocation7 + $0x1160] sm:$0x3f] }
 0x4dd   : > { %v8491_v63 = vpack.c.bf16 %v4735_v61, %v4731_v22  ;;  %v4742_v22 = vrot.slane %v11817_v38, 4 }
 0x4de   : > { %8416 = vmatpush1.bf16.msra.mxu0 %v8415_v49  ;;  %8474 = vmatpush1.bf16.msra.mxu1 %v8473_v19  ;;  %v4721_v49 = vld [vmem:[#allocation7 + $0x1108] sm:$0xff] }
 0x4df   : > { %8418 = vmatprep.subr.bf16.mxu0 %v8417_v45  ;;  %8476 = vmatprep.subr.bf16.mxu1 %v8475_v21  ;;  %v4725_v19 = vld [vmem:[#allocation7 + $0x1128] sm:$0xff]  ;;  %v8427_v45 = vpack.c.bf16 %v4716_v59, %v4712_v54  ;;  %v8485_v21 = vpack.c.bf16 %v4718_v46, %v4714_v57  ;;  %v4930_v54 = vld [vmem:[#allocation7 + $0x1198] sm:$0xff] }
 0x4e0   : > { %v8429_v36 = vpack.c.bf16 %v4725_v19, %v4721_v49  ;;  %v4934_v59 = vld [vmem:[#allocation7 + $0x11b8] sm:$0xff]  ;;  %v4927_v49 = vld [vmem:[#allocation7 + $0x1180] sm:$0xff] }
 0x4e1   : > { %v8555_v46 = vpack.c.bf16 %v4934_v59, %v4930_v54  ;;  %v4931_v19 = vld [vmem:[#allocation7 + $0x11a0] sm:$0xff] }
 0x4e2   : > { %8420 = vmatpush1.bf16.msra.mxu0 %v8419_v3  ;;  %8478 = vmatpush1.bf16.msra.mxu1 %v8477_v29  ;;  %v4729_v3 = vld [vmem:[#allocation7 + $0x1148] sm:$0xff]  ;;  %v4943_v54 = vld [vmem:[#allocation7 + $0x1200] sm:$0xff] }
 0x4e3   : > { %8422 = vmatprep.subr.bf16.mxu0 %v8421_v27  ;;  %8480 = vmatprep.subr.bf16.mxu1 %v8479_v14  ;;  %v4733_v29 = vld [vmem:[#allocation7 + $0x1168] sm:$0x3f]  ;;  %v8431_v27 = vpack.c.bf16 %v4724_v8, %v4720_v7  ;;  %v8489_v14 = vpack.c.bf16 %v4726_v30, %v4722_v1  ;;  %v4938_v8 = vld [vmem:[#allocation7 + $0x11d8] sm:$0xff]  ;;  %v8499_v1 = vpack.c.bf16 %v4931_v19, %v4927_v49  ;;  %v4947_v59 = vld [vmem:[#allocation7 + $0x1220] sm:$0xff] }
 0x4e4   : > { %v8433_v24 = vpack.c.bf16 %v4733_v29, %v4729_v3  ;;  %v4940_v7 = vld [vmem:[#allocation7 + $0x11e8] sm:$0xff]  ;;  %v4935_v3 = vld [vmem:[#allocation7 + $0x11c0] sm:$0xff]  ;;  %v4949_v49 = vld [vmem:[#allocation7 + $0x1230] sm:$0xff] }
 0x4e5   : > { %v4939_v29 = vld [vmem:[#allocation7 + $0x11e0] sm:$0xff]  ;;  %v4952_v19 = vld [vmem:[#allocation7 + $0x1248] sm:$0xff] }
 0x4e6   : > { %8424 = vmatpush1.bf16.msra.mxu0 %v8423_v15  ;;  %8482 = vmatpush1.bf16.msra.mxu1 %v8481_v41  ;;  %v4928_v15 = vld [vmem:[#allocation7 + $0x1188] sm:$0xff] }
 0x4e7   : > { %8426 = vmatprep.subr.bf16.mxu0 %v8425_v60  ;;  %8484 = vmatprep.subr.bf16.mxu1 %v8483_v48  ;;  %v4932_v41 = vld [vmem:[#allocation7 + $0x11a8] sm:$0xff]  ;;  %v8436_v60 = vpack.c.bf16 %v4732_v11, %v4728_v62  ;;  %v8494_v48 = vpack.c.bf16 %v4734_v37, %v4730_v17  ;;  %v4937_v62 = vld [vmem:[#allocation7 + $0x11d0] sm:$0xff]  ;;  %v4946_v17 = vld [vmem:[#allocation7 + $0x1218] sm:$0xff] }
 0x4e8   : > { %v8497_v57 = vpack.c.bf16 %v4932_v41, %v4928_v15  ;;  %v4941_v11 = vld [vmem:[#allocation7 + $0x11f0] sm:$0xff]  ;;  %v4950_v37 = vld [vmem:[#allocation7 + $0x1238] sm:$0xff]  ;;  %v8503_v15 = vpack.c.bf16 %v4939_v29, %v4935_v3  ;;  %v4960_v3 = vld [vmem:[#allocation7 + $0x1288] sm:$0xff] }
 0x4e9   : > { %v8561_v41 = vpack.c.bf16 %v4941_v11, %v4937_v62  ;;  %v4964_v29 = vld [vmem:[#allocation7 + $0x12a8] sm:$0xff]  ;;  %v4963_v62 = vld [vmem:[#allocation7 + $0x12a0] sm:$0xff] }
 0x4ea   : > { %8428 = vmatpush1.bf16.msra.mxu0 %v8427_v45  ;;  %8486 = vmatpush1.bf16.msra.mxu1 %v8485_v21  ;;  %v4933_v45 = vld [vmem:[#allocation7 + $0x11b0] sm:$0xff]  ;;  %v4936_v21 = vld [vmem:[#allocation7 + $0x11c8] sm:$0xff]  ;;  %v8513_v11 = vpack.c.bf16 %v4964_v29, %v4960_v3 }
 0x4eb   : > { %8430 = vmatprep.subr.bf16.mxu0 %v8429_v36  ;;  %8488 = vmatprep.subr.bf16.mxu1 %v8487_v25  ;;  %v4942_v36 = vld [vmem:[#allocation7 + $0x11f8] sm:$0xff]  ;;  %v4736_v25 = vrot.slane %v11798_v26, 4  ;;  %v8557_v30 = vpack.c.bf16 %v4933_v45, %v4929_v50  ;;  %v4956_v50 = vld [vmem:[#allocation7 + $0x1268] sm:$0xff]  ;;  %v4977_v3 = vld [vmem:[#allocation7 + $0x1310] sm:$0xff] }
 0x4ec   : > { %v4954_v45 = vld [vmem:[#allocation7 + $0x1258] sm:$0xff]  ;;  %v4981_v29 = vld [vmem:[#allocation7 + $0x1330] sm:$0xff] }
 0x4ed   : > { %v4738_v61 = vsel %vm13205_vm6, %v4736_v25, %v4737_v47  ;;  %vm13213_vm6 = vnez %v12852_v56  ;;  %v13236_v56 = vld [vmem:[#allocation29_spill] sm:$0xff] }
 0x4ee   : > { %8432 = vmatpush1.bf16.msra.mxu0 %v8431_v27  ;;  %8490 = vmatpush1.bf16.msra.mxu1 %v8489_v14  ;;  %v8501_v27 = vpack.c.bf16 %v4940_v7, %v4936_v21  ;;  %v8559_v14 = vpack.c.bf16 %v4942_v36, %v4938_v8  ;;  %v4951_v7 = vld [vmem:[#allocation7 + $0x1240] sm:$0xff]  ;;  %v8509_v36 = vpack.c.bf16 %v4956_v50, %v4952_v19  ;;  %v4969_v19 = vld [vmem:[#allocation7 + $0x12d0] sm:$0xff] }
 0x4ef   : > { %8435 = vmatprep.subr.msk.bf16.mxu0 %vm11786_vm7, %v8433_v24  ;;  %8493 = vmatprep.subr.msk.bf16.mxu1 %vm11786_vm7, %v8491_v63  ;;  %v4944_v24 = vld [vmem:[#allocation7 + $0x1208] sm:$0xff]  ;;  %v4955_v8 = vld [vmem:[#allocation7 + $0x1260] sm:$0xff]  ;;  %v4973_v50 = vld [vmem:[#allocation7 + $0x12f0] sm:$0xff] }
 0x4f0   : > { %v4948_v63 = vld [vmem:[#allocation7 + $0x1228] sm:$0xff] }
 0x4f2   : > { %8438 = vmatpush1.bf16.msk.msra.mxu0 %vm11786_vm7, %v8436_v60  ;;  %8496 = vmatpush1.bf16.msk.msra.mxu1 %vm11786_vm7, %v8494_v48  ;;  %v4743_v60 = vsel %vm13206_vm5, %v4737_v47, %v4742_v22  ;;  %v8505_v48 = vpack.c.bf16 %v4948_v63, %v4944_v24  ;;  %v8507_v47 = vpack.c.bf16 %v4947_v59, %v4943_v54  ;;  %v4962_v22 = vld [vmem:[#allocation7 + $0x1298] sm:$0xff]  ;;  %v4961_v63 = vld [vmem:[#allocation7 + $0x1290] sm:$0xff] }
 0x4f3   : > { %8498 = vmatprep.subr.bf16.mxu0 %v8497_v57  ;;  %8556 = vmatprep.subr.bf16.mxu1 %v8555_v46  ;;  %v8563_v57 = vpack.c.bf16 %v4950_v37, %v4946_v17  ;;  %v4945_v46 = vld [vmem:[#allocation7 + $0x1210] sm:$0xff]  ;;  %v4968_v37 = vld [vmem:[#allocation7 + $0x12c8] sm:$0xff]  ;;  %v4974_v54 = vld [vmem:[#allocation7 + $0x12f8] sm:$0xff]  ;;  %vm13214_vm5 = vnez %v12868_v6 }
 0x4f4   : > { %v8565_v21 = vpack.c.bf16 %v4949_v49, %v4945_v46  ;;  %v4965_v17 = vld [vmem:[#allocation7 + $0x12b0] sm:$0xff]  ;;  %v13238_v6 = vld [vmem:[#allocation30_spill] sm:$0xff] }
 0x4f5   : > { %4829 = vmatmul.mubr.f32.vlgmr.msra.gmra.mrb[28].mxu0 %v4738_v61  ;;  %4906 = vmatmul.mubr.f32.vlgmr.msra.gmra.mrb[38].mxu1 %v4738_v61  ;;  %v4966_v61 = vld [vmem:[#allocation7 + $0x12b8] sm:$0xff] }
 0x4f6   : > { %7074 = vmatprep.mubr.msk.f32.mxu0 %vm3678_vm10, %v11848_v51  ;;  %7078 = vmatprep.mubr.msk.f32.mxu1 %vm3678_vm10, %v11848_v51  ;;  %v4958_v51 = vld [vmem:[#allocation7 + $0x1278] sm:$0xff]  ;;  %v8571_v24 = vpack.c.bf16 %v4966_v61, %v4962_v22  ;;  %v4984_v22 = vld [vmem:[#allocation7 + $0x1348] sm:$0xff] }
 0x4f7   : > { %8500 = vmatpush1.bf16.msra.mxu0 %v8499_v1  ;;  %8558 = vmatpush1.bf16.msra.mxu1 %v8557_v30  ;;  %v8567_v25 = vpack.c.bf16 %v4958_v51, %v4954_v45  ;;  %v4953_v1 = vld [vmem:[#allocation7 + $0x1250] sm:$0xff]  ;;  %v4976_v45 = vld [vmem:[#allocation7 + $0x1308] sm:$0xff] }
 0x4f8   : > { %8502 = vmatprep.subr.bf16.mxu0 %v8501_v27  ;;  %8560 = vmatprep.subr.bf16.mxu1 %v8559_v14  ;;  %v4957_v30 = vld [vmem:[#allocation7 + $0x1270] sm:$0xff]  ;;  %v8511_v27 = vpack.c.bf16 %v4955_v8, %v4951_v7  ;;  %v4959_v14 = vld [vmem:[#allocation7 + $0x1280] sm:$0xff]  ;;  %v4980_v51 = vld [vmem:[#allocation7 + $0x1328] sm:$0xff]  ;;  %v8577_v8 = vpack.c.bf16 %v4973_v50, %v4969_v19 }
 0x4f9   : > { %4835 = vmatmul.mubr.f32.gmra.mrb[30].mxu0 %v4743_v60  ;;  %4912 = vmatmul.mubr.f32.gmra.mrb[40].mxu1 %v4743_v60  ;;  %v8515_v59 = vpack.c.bf16 %v4963_v62, %v4959_v14  ;;  %v8573_v60 = vpack.c.bf16 %v4965_v17, %v4961_v63  ;;  %v4988_v61 = vld [vmem:[#allocation7 + $0x1368] sm:$0xff]  ;;  %v8581_v62 = vpack.c.bf16 %v4981_v29, %v4977_v3 }
 0x4fa   : > { %7081 = vmatprep.mubr.msk.f32.mxu0 %vm3678_vm10, %v11855_v35  ;;  %7085 = vmatprep.mubr.msk.f32.mxu1 %vm3678_vm10, %v11855_v35  ;;  %v8569_v35 = vpack.c.bf16 %v4957_v30, %v4953_v1  ;;  %v8521_v1 = vpack.c.bf16 %v4980_v51, %v4976_v45  ;;  %v8525_v63 = vpack.c.bf16 %v4988_v61, %v4984_v22  ;;  %v4993_v45 = vld [vmem:[#allocation7 + $0x1390] sm:$0xff] }
 0x4fb   : > { %8504 = vmatpush1.bf16.msra.mxu0 %v8503_v15  ;;  %8562 = vmatpush1.bf16.msra.mxu1 %v8561_v41  ;;  %v4972_v15 = vld [vmem:[#allocation7 + $0x12e8] sm:$0xff]  ;;  %v4970_v41 = vld [vmem:[#allocation7 + $0x12d8] sm:$0xff]  ;;  %v4997_v51 = vld [vmem:[#allocation7 + $0x13b0] sm:$0xff] }
 0x4fc   : > { %8506 = vmatprep.subr.bf16.mxu0 %v8505_v48  ;;  %8564 = vmatprep.subr.bf16.mxu1 %v8563_v57  ;;  %v4967_v48 = vld [vmem:[#allocation7 + $0x12c0] sm:$0xff]  ;;  %v8517_v46 = vpack.c.bf16 %v4972_v15, %v4968_v37  ;;  %v8575_v49 = vpack.c.bf16 %v4974_v54, %v4970_v41  ;;  %v4985_v37 = vld [vmem:[#allocation7 + $0x1350] sm:$0xff]  ;;  %v4992_v41 = vld [vmem:[#allocation7 + $0x1388] sm:$0xff] }
 0x4fd   : > { %v4971_v57 = vld [vmem:[#allocation7 + $0x12e0] sm:$0xff]  ;;  %v4989_v15 = vld [vmem:[#allocation7 + $0x1370] sm:$0xff]  ;;  %v4996_v54 = vld [vmem:[#allocation7 + $0x13a8] sm:$0xff] }
 0x4fe   : > { %v8519_v7 = vpack.c.bf16 %v4971_v57, %v4967_v48  ;;  %v8585_v57 = vpack.c.bf16 %v4989_v15, %v4985_v37  ;;  %v8529_v19 = vpack.c.bf16 %v4996_v54, %v4992_v41  ;;  %v5001_v22 = vld [vmem:[#allocation7 + $0x13d0] sm:$0xff] }
 0x4ff   : > { %8508 = vmatpush1.bf16.msra.mxu0 %v8507_v47  ;;  %8566 = vmatpush1.bf16.msra.mxu1 %v8565_v21  ;;  %v4978_v47 = vld [vmem:[#allocation7 + $0x1318] sm:$0xff]  ;;  %v5005_v61 = vld [vmem:[#allocation7 + $0x13f0] sm:$0xff] }
 0x500   : > { %8510 = vmatprep.subr.bf16.mxu0 %v8509_v36  ;;  %8568 = vmatprep.subr.bf16.mxu1 %v8567_v25  ;;  %v4982_v21 = vld [vmem:[#allocation7 + $0x1338] sm:$0xff]  ;;  %v4975_v36 = vld [vmem:[#allocation7 + $0x1300] sm:$0xff]  ;;  %v5009_v41 = vld [vmem:[#allocation7 + $0x1410] sm:$0xff] }
 0x501   : > { %v4979_v25 = vld [vmem:[#allocation7 + $0x1320] sm:$0xff]  ;;  %v8579_v30 = vpack.c.bf16 %v4982_v21, %v4978_v47  ;;  %v5000_v47 = vld [vmem:[#allocation7 + $0x13c8] sm:$0xff]  ;;  %v5013_v54 = vld [vmem:[#allocation7 + $0x1430] sm:$0xff] }
 0x502   : > { %v8523_v14 = vpack.c.bf16 %v4979_v25, %v4975_v36  ;;  %v5004_v21 = vld [vmem:[#allocation7 + $0x13e8] sm:$0xff]  ;;  %v8589_v25 = vpack.c.bf16 %v4997_v51, %v4993_v45 }
 0x503   : > { %8512 = vmatpush1.bf16.msra.mxu0 %v8511_v27  ;;  %8570 = vmatpush1.bf16.msra.mxu1 %v8569_v35  ;;  %v4986_v27 = vld [vmem:[#allocation7 + $0x1358] sm:$0xff]  ;;  %v8533_v3 = vpack.c.bf16 %v5004_v21, %v5000_v47  ;;  %v5017_v47 = vld [vmem:[#allocation7 + $0x1450] sm:$0xff] }
 0x504   : > { %8514 = vmatprep.subr.bf16.mxu0 %v8513_v11  ;;  %8572 = vmatprep.subr.bf16.mxu1 %v8571_v24  ;;  %v4990_v35 = vld [vmem:[#allocation7 + $0x1378] sm:$0xff]  ;;  %v4983_v11 = vld [vmem:[#allocation7 + $0x1340] sm:$0xff]  ;;  %v5021_v21 = vld [vmem:[#allocation7 + $0x1470] sm:$0xff] }
 0x505   : > { %v4987_v24 = vld [vmem:[#allocation7 + $0x1360] sm:$0xff]  ;;  %v8583_v17 = vpack.c.bf16 %v4990_v35, %v4986_v27  ;;  %v5008_v27 = vld [vmem:[#allocation7 + $0x1408] sm:$0xff] }
 0x506   : > { %v8527_v48 = vpack.c.bf16 %v4987_v24, %v4983_v11  ;;  %v5012_v35 = vld [vmem:[#allocation7 + $0x1428] sm:$0xff]  ;;  %v8593_v24 = vpack.c.bf16 %v5005_v61, %v5001_v22 }
 0x507   : > { %8516 = vmatpush1.bf16.msra.mxu0 %v8515_v59  ;;  %8574 = vmatpush1.bf16.msra.mxu1 %v8573_v60  ;;  %v4994_v59 = vld [vmem:[#allocation7 + $0x1398] sm:$0xff]  ;;  %v8537_v37 = vpack.c.bf16 %v5012_v35, %v5008_v27  ;;  %v5025_v27 = vld [vmem:[#allocation7 + $0x1490] sm:$0xff] }
 0x508   : > { %8518 = vmatprep.subr.bf16.mxu0 %v8517_v46  ;;  %8576 = vmatprep.subr.bf16.mxu1 %v8575_v49  ;;  %v4998_v60 = vld [vmem:[#allocation7 + $0x13b8] sm:$0xff]  ;;  %v4991_v46 = vld [vmem:[#allocation7 + $0x1380] sm:$0xff]  ;;  %v5029_v35 = vld [vmem:[#allocation7 + $0x14b0] sm:$0xff] }
 0x509   : > { %v4995_v49 = vld [vmem:[#allocation7 + $0x13a0] sm:$0xff]  ;;  %v8587_v50 = vpack.c.bf16 %v4998_v60, %v4994_v59  ;;  %v5016_v59 = vld [vmem:[#allocation7 + $0x1448] sm:$0xff] }
 0x50a   : > { %v8531_v36 = vpack.c.bf16 %v4995_v49, %v4991_v46  ;;  %v5020_v60 = vld [vmem:[#allocation7 + $0x1468] sm:$0xff]  ;;  %v8597_v49 = vpack.c.bf16 %v5013_v54, %v5009_v41  ;;  %v5035_v54 = vld [vmem:[#allocation7 + $0x14e0] sm:$0x3f] }
 0x50b   : > { %8520 = vmatpush1.bf16.msra.mxu0 %v8519_v7  ;;  %8578 = vmatpush1.bf16.msra.mxu1 %v8577_v8  ;;  %v5002_v7 = vld [vmem:[#allocation7 + $0x13d8] sm:$0xff]  ;;  %v8541_v45 = vpack.c.bf16 %v5020_v60, %v5016_v59  ;;  %v5033_v59 = vld [vmem:[#allocation7 + $0x14d0] sm:$0xff] }
 0x50c   : > { %8522 = vmatprep.subr.bf16.mxu0 %v8521_v1  ;;  %8580 = vmatprep.subr.bf16.mxu1 %v8579_v30  ;;  %v5006_v8 = vld [vmem:[#allocation7 + $0x13f8] sm:$0xff]  ;;  %v4999_v1 = vld [vmem:[#allocation7 + $0x13c0] sm:$0xff]  ;;  %v5037_v60 = vld [vmem:[#allocation7 + $0x14f0] sm:$0x3f] }
 0x50d   : > { %v5003_v30 = vld [vmem:[#allocation7 + $0x13e0] sm:$0xff]  ;;  %v8591_v29 = vpack.c.bf16 %v5006_v8, %v5002_v7  ;;  %v5024_v7 = vld [vmem:[#allocation7 + $0x1488] sm:$0xff] }
 0x50e   : > { %v8535_v11 = vpack.c.bf16 %v5003_v30, %v4999_v1  ;;  %v5028_v8 = vld [vmem:[#allocation7 + $0x14a8] sm:$0xff]  ;;  %v8601_v30 = vpack.c.bf16 %v5021_v21, %v5017_v47  ;;  %v13210_v21 = vsub.s32 2, %v10265_v5 }
 0x50f   : > { %8524 = vmatpush1.bf16.msra.mxu0 %v8523_v14  ;;  %8582 = vmatpush1.bf16.msra.mxu1 %v8581_v62  ;;  %v5010_v14 = vld [vmem:[#allocation7 + $0x1418] sm:$0xff]  ;;  %v8545_v22 = vpack.c.bf16 %v5028_v8, %v5024_v7 }
 0x510   : > { %8526 = vmatprep.subr.bf16.mxu0 %v8525_v63  ;;  %8584 = vmatprep.subr.bf16.mxu1 %v8583_v17  ;;  %v5014_v62 = vld [vmem:[#allocation7 + $0x1438] sm:$0xff]  ;;  %v5007_v63 = vld [vmem:[#allocation7 + $0x1400] sm:$0xff] }
 0x511   : > { %v5011_v17 = vld [vmem:[#allocation7 + $0x1420] sm:$0xff]  ;;  %v8595_v15 = vpack.c.bf16 %v5014_v62, %v5010_v14  ;;  %v5032_v14 = vld [vmem:[#allocation7 + $0x14c8] sm:$0xff] }
 0x512   : > { %v8539_v46 = vpack.c.bf16 %v5011_v17, %v5007_v63  ;;  %v5036_v62 = vld [vmem:[#allocation7 + $0x14e8] sm:$0x3f]  ;;  %v8605_v17 = vpack.c.bf16 %v5029_v35, %v5025_v27 }
 0x513   : > { %8528 = vmatpush1.bf16.msra.mxu0 %v8527_v48  ;;  %8586 = vmatpush1.bf16.msra.mxu1 %v8585_v57  ;;  %v5018_v48 = vld [vmem:[#allocation7 + $0x1458] sm:$0xff] }
 0x514   : > { %8530 = vmatprep.subr.bf16.mxu0 %v8529_v19  ;;  %8588 = vmatprep.subr.bf16.mxu1 %v8587_v50  ;;  %v5022_v57 = vld [vmem:[#allocation7 + $0x1478] sm:$0xff]  ;;  %v5015_v19 = vld [vmem:[#allocation7 + $0x1440] sm:$0xff] }
 0x515   : > { %v5019_v50 = vld [vmem:[#allocation7 + $0x1460] sm:$0xff]  ;;  %v8599_v51 = vpack.c.bf16 %v5022_v57, %v5018_v48  ;;  %v8610_v57 = vpack.c.bf16 %v5037_v60, %v5033_v59  ;;  %v13281_v59 = vld [vmem:[#allocation55_spill] sm:$0xff]  ;;  %v13283_v60 = vld [vmem:[#allocation56_spill] sm:$0xff] }
 0x516   : > { %v8543_v1 = vpack.c.bf16 %v5019_v50, %v5015_v19  ;;  %v5045_v19 = vrot.slane %v11817_v38, 5 }
 0x517   : > { %8532 = vmatpush1.bf16.msra.mxu0 %v8531_v36  ;;  %8590 = vmatpush1.bf16.msra.mxu1 %v8589_v25  ;;  %v5026_v36 = vld [vmem:[#allocation7 + $0x1498] sm:$0xff] }
 0x518   : > { %8534 = vmatprep.subr.bf16.mxu0 %v8533_v3  ;;  %8592 = vmatprep.subr.bf16.mxu1 %v8591_v29  ;;  %v5030_v25 = vld [vmem:[#allocation7 + $0x14b8] sm:$0xff]  ;;  %v5023_v3 = vld [vmem:[#allocation7 + $0x1480] sm:$0xff] }
 0x519   : > { %v5027_v29 = vld [vmem:[#allocation7 + $0x14a0] sm:$0xff]  ;;  %v8603_v61 = vpack.c.bf16 %v5030_v25, %v5026_v36 }
 0x51a   : > { %v8547_v63 = vpack.c.bf16 %v5027_v29, %v5023_v3 }
 0x51b   : > { %8536 = vmatpush1.bf16.msra.mxu0 %v8535_v11  ;;  %8594 = vmatpush1.bf16.msra.mxu1 %v8593_v24  ;;  %v5034_v11 = vld [vmem:[#allocation7 + $0x14d8] sm:$0xff] }
 0x51c   : > { %8538 = vmatprep.subr.bf16.mxu0 %v8537_v37  ;;  %8596 = vmatprep.subr.bf16.mxu1 %v8595_v15  ;;  %v5038_v24 = vld [vmem:[#allocation7 + $0x14f8] sm:$0x3f]  ;;  %v5031_v37 = vld [vmem:[#allocation7 + $0x14c0] sm:$0xff]  ;;  %v8549_v15 = vpack.c.bf16 %v5036_v62, %v5032_v14 }
 0x51d   : > { %v8607_v41 = vpack.c.bf16 %v5038_v24, %v5034_v11  ;;  %v8552_v48 = vpack.c.bf16 %v5035_v54, %v5031_v37 }
 0x51f   : > { %8540 = vmatpush1.bf16.msra.mxu0 %v8539_v46  ;;  %8598 = vmatpush1.bf16.msra.mxu1 %v8597_v49  ;;  %v5040_v46 = vrot.slane %v11802_v31, 5  ;;  %v5039_v49 = vrot.slane %v11798_v26, 5  ;;  %v5229_v26 = vld [vmem:[#allocation8] sm:$0xf] }
 0x520   : > { %8542 = vmatprep.subr.bf16.mxu0 %v8541_v45  ;;  %8600 = vmatprep.subr.bf16.mxu1 %v8599_v51  ;;  %v13209_v51 = vsub.s32 0, %v10265_v5  ;;  %v5242_v7 = vrot.slane %v5229_v26, %v13210_v21  ;;  %v13309_v21 = vld [vmem:[#allocation54_spill] sm:$0xff] }
 0x521   : > { %v5041_v50 = vsel %vm13207_vm14, %v5039_v49, %v5040_v46  ;;  %v5046_v31 = vsel %vm13208_vm15, %v5040_v46, %v5045_v19  ;;  %vm13215_vm14 = vnez %v12872_v53  ;;  %vm13216_vm15 = vnez %v12793_v13  ;;  %v13224_v13 = vld [vmem:[#allocation25_spill] sm:$0xff]  ;;  %v13242_v53 = vld [vmem:[#allocation31_spill] sm:$0xff]  ;;  %v13289_v46 = vld [vmem:[#allocation58_spill] sm:$0xff] }
 0x522   : > { %v5234_v47 = vrot.slane %v5229_v26, %v13209_v51  ;;  %v13291_v49 = vld [vmem:[#allocation60_spill] sm:$0xff]  ;;  %v13293_v19 = vld [vmem:[#allocation45_spill] sm:$0xff]  ;;  %v13305_v51 = vld [vmem:[#allocation66_spill] sm:$0xff] }
 0x523   : > { %8544 = vmatpush1.bf16.msra.mxu0 %v8543_v1  ;;  %8602 = vmatpush1.bf16.msra.mxu1 %v8601_v30  ;;  %v13212_v1 = vsub.s32 3, %v10265_v5 }
 0x524   : > { %8546 = vmatprep.subr.bf16.mxu0 %v8545_v22  ;;  %8604 = vmatprep.subr.bf16.mxu1 %v8603_v61 }
 0x525   : > { %v5246_v30 = vrot.slane %v5229_v26, %v13212_v1  ;;  %v13321_v1 = vld [vmem:[#allocation63_spill] sm:$0xff] }
 0x527   : > { %8548 = vmatpush1.bf16.msra.mxu0 %v8547_v63  ;;  %8606 = vmatpush1.bf16.msra.mxu1 %v8605_v17 }
 0x528   : > { %8551 = vmatprep.subr.msk.bf16.mxu0 %vm11786_vm7, %v8549_v15  ;;  %8609 = vmatprep.subr.msk.bf16.mxu1 %vm11786_vm7, %v8607_v41 }
 0x52b   : > { %8554 = vmatpush1.bf16.msk.msra.mxu0 %vm11786_vm7, %v8552_v48  ;;  %8612 = vmatpush1.bf16.msk.msra.mxu1 %vm11786_vm7, %v8610_v57  ;;  %v13285_v48 = vld [vmem:[#allocation43_spill] sm:$0xff]  ;;  %v13287_v57 = vld [vmem:[#allocation44_spill] sm:$0xff] }
 0x52e   : > { %5132 = vmatmul.mubr.f32.vlgmr.msra.gmra.mrb[28].mxu0 %v5041_v50  ;;  %5209 = vmatmul.mubr.f32.vlgmr.msra.gmra.mrb[38].mxu1 %v5041_v50  ;;  %v13295_v50 = vld [vmem:[#allocation46_spill] sm:$0xff] }
 0x52f   : > { %7082 = vmatprep.mubr.msk.f32.mxu0 %vm3678_vm10, %v11862_v4  ;;  %7086 = vmatprep.mubr.msk.f32.mxu1 %vm3678_vm10, %v11862_v4  ;;  %v13211_v4 = vsub.s32 1, %v10265_v5  ;;  %vm5347_vm10 = vcmask 113664  }
 0x531   : > { %v5238_v25 = vrot.slane %v5229_v26, %v13211_v4  ;;  %v13299_v26 = vld [vmem:[#allocation64_spill] sm:$0xff]  ;;  %v13317_v4 = vld [vmem:[#allocation59_spill] sm:$0xff] }
 0x532   : > { %5138 = vmatmul.mubr.f32.gmra.mrb[30].mxu0 %v5046_v31  ;;  %5215 = vmatmul.mubr.f32.gmra.mrb[40].mxu1 %v5046_v31  ;;  %v13297_v31 = vld [vmem:[#allocation62_spill] sm:$0xff] }
 0x533   : > { %5426 = vmatprep.mubr.f32.mxu0 %v12840_v32  ;;  %5641 = vmatprep.mubr.f32.mxu1 %v12840_v32 }
 0x601   : > { %v5133_v38 = vpop.f32.mrb[28].mxu0  ;;  %v5210_v45 = vpop.f32.mrb[38].mxu1 }
 0x602   : > { %v5135_v8 = vpop.f32.mrb[29].mxu0  ;;  %v5212_v36 = vpop.f32.mrb[39].mxu1  ;;  %v5251_v22 = vadd.f32 %v5234_v47, %v5133_v38  ;;  %v5253_v61 = vadd.f32 %v5242_v7, %v5210_v45  ;;  %v13301_v38 = vld [vmem:[#allocation47_spill] sm:$0xff]  ;;  %v13303_v45 = vld [vmem:[#allocation52_spill] sm:$0xff] }
 0x603   : > { %v5252_v11 = vadd.f32 %v5238_v25, %v5135_v8  ;;  %v5254_v24 = vadd.f32 %v5246_v30, %v5212_v36  ;;  %v13313_v8 = vld [vmem:[#allocation70_spill] sm:$0xff]  ;;  %v13315_v36 = vld [vmem:[#allocation71_spill] sm:$0xff] }
 0x605   : > { %v5139_v3 = vpop.f32.mrb[30].mxu0  ;;  %v5216_v29 = vpop.f32.mrb[40].mxu1 }
 0x606   : > { %v5255_v27 = vadd.f32 %v5234_v47, %v5139_v3  ;;  %v5257_v35 = vadd.f32 %v5242_v7, %v5216_v29  ;;  %v5141_v14 = vpop.f32.mrb[31].mxu0  ;;  %v5218_v62 = vpop.f32.mrb[41].mxu1  ;;  %v13307_v47 = vld [vmem:[#allocation69_spill] sm:$0xff] }
 0x607   : > { %v5256_v63 = vadd.f32 %v5238_v25, %v5141_v14  ;;  %v5258_v17 = vadd.f32 %v5246_v30, %v5218_v62  ;;  %v13311_v7 = vld [vmem:[#allocation57_spill] sm:$0xff] }
 0x608   : > { %v8616_v37 = vpack.c.bf16 %v5255_v27, %v5251_v22  ;;  %v8622_v15 = vpack.c.bf16 %v5257_v35, %v5253_v61  ;;  %v13319_v25 = vld [vmem:[#allocation61_spill] sm:$0xff] }
 0x609   : > { %v8613_v41 = vpack.c.bf16 %v5256_v63, %v5252_v11  ;;  %v8619_v54 = vpack.c.bf16 %v5258_v17, %v5254_v24  ;;  %v13323_v30 = vld [vmem:[#allocation65_spill] sm:$0xff] }
 0x60b   : > { %8615 = vmatprep.subr.msk.bf16.mxu0 %vm11786_vm7, %v8613_v41  ;;  %8633 = vmatprep.subr.msk.bf16.mxu1 %vm11786_vm7, %v8619_v54 }
 0x60c   : > { %8618 = vmatpush1.bf16.msk.msra.mxu0 %vm11786_vm7, %v8616_v37  ;;  %8636 = vmatpush1.bf16.msk.msra.mxu1 %vm11786_vm7, %v8622_v15 }
 0x60d   : > { %8621 = vmatprep.subr.msk.bf16.mxu0 %vm11786_vm7, %v8619_v54  ;;  %8766 = vmatprep.subr.msk.bf16.mxu1 %vm13213_vm6, %v12830_v20  ;;  %vm13217_vm6 = vnez %v12884_v55  ;;  %v13244_v55 = vld [vmem:[#allocation32_spill] sm:$0xff]  ;;  %v13331_v54 = vld [vmem:[#allocation73_spill] sm:$0xff] }
 0x60f   : > { %7089 = vmatmul.mubr.msk.f32.vlgmr.msra.gmra.mrb[32].mxu0 %vm5347_vm10, %v10289_v10  ;;  %7098 = vmatmul.mubr.msk.f32.vlgmr.msra.gmra.mrb[42].mxu1 %vm5347_vm10, %v10364_v18 }
 0x610   : > { %8624 = vmatpush1.bf16.msk.msra.mxu0 %vm11786_vm7, %v8622_v15  ;;  %5497 = vmatprep.mubr.f32.mxu0 %v12840_v32  ;;  %v13327_v15 = vld [vmem:[#allocation68_spill] sm:$0xff] }
 0x611   : > { %8627 = vmatprep.subr.msk.bf16.mxu0 %vm11786_vm7, %v8613_v41  ;;  %8768 = vmatpush1.bf16.msk.msra.mxu1 %vm13214_vm5, %v12830_v20  ;;  %vm13218_vm5 = vnez %v12888_v12  ;;  %v13248_v12 = vld [vmem:[#allocation33_spill] sm:$0xff]  ;;  %v13329_v41 = vld [vmem:[#allocation72_spill] sm:$0xff] }
 0x612   : > { %8770 = vmatprep.subr.msk.bf16.mxu1 %vm13215_vm14, %v12830_v20 }
 0x613   : > { %7092 = vmatmul.mubr.msk.f32.vlgmr.msra.gmra.mrb[34].mxu0 %vm5347_vm10, %v10289_v10  ;;  %v13220_v10 = vld [vmem:[#allocation24_spill] sm:$0xff] }
 0x614   : > { %8630 = vmatpush1.bf16.msk.msra.mxu0 %vm11786_vm7, %v8616_v37  ;;  %5570 = vmatprep.mubr.f32.mxu0 %v12840_v32  ;;  %vm13219_vm7 = vnez %v12795_v23  ;;  %vm13221_vm14 = vnez %v13220_v10  ;;  %v13230_v23 = vld [vmem:[#allocation27_spill] sm:$0xff]  ;;  %v13232_v32 = vld [vmem:[#allocation28_spill] sm:$0xff]  ;;  %v13333_v10 = vld [vmem:[#allocation74_spill] sm:$0xff] }
 0x615   : > { %8638 = vmatprep.subr.msk.bf16.mxu0 %vm13216_vm15, %v12830_v20  ;;  %8772 = vmatpush1.bf16.msk.msra.mxu1 %vm13217_vm6, %v12830_v20  ;;  %vm13222_vm15 = vnez %v12900_v33  ;;  %vm13223_vm6 = vnez %v12904_v39  ;;  %v13250_v33 = vld [vmem:[#allocation34_spill] sm:$0xff]  ;;  %v13254_v39 = vld [vmem:[#allocation35_spill] sm:$0xff] }
 0x616   : > { %8774 = vmatprep.subr.msk.bf16.mxu1 %vm13218_vm5, %v12830_v20  ;;  %vm13225_vm5 = vnez %v13224_v13  ;;  %v13325_v37 = vld [vmem:[#allocation67_spill] sm:$0xff] }
 0x617   : > { %7095 = vmatmul.mubr.msk.f32.vlgmr.msra.gmra.mrb[36].mxu0 %vm5347_vm10, %v10364_v18  ;;  %v13226_v18 = vld [vmem:[#allocation26_spill] sm:$0xff]  ;;  %v13335_v13 = vld [vmem:[#allocation75_spill] sm:$0xff] }
 0x618   : > { %8640 = vmatpush1.bf16.msk.msra.mxu0 %vm13219_vm7, %v12830_v20  ;;  %vm13227_vm10 = vnez %v13226_v18  ;;  %vm13228_vm7 = vnez %v12915_v9  ;;  %v13256_v9 = vld [vmem:[#allocation36_spill] sm:$0xff] }
 0x619   : > { %8642 = vmatprep.subr.msk.bf16.mxu0 %vm13221_vm14, %v12830_v20  ;;  %8776 = vmatpush1.bf16.msk.msra.mxu1 %vm13222_vm15, %v12830_v20  ;;  %vm13229_vm14 = vnez %v12917_v34  ;;  %vm13231_vm15 = vnez %v13230_v23  ;;  %v13259_v34 = vld [vmem:[#allocation48_spill] sm:$0xff]  ;;  %v13339_v23 = vld [vmem:[#allocation77_spill] sm:$0xff] }
 0x61a   : > { %8778 = vmatprep.subr.msk.bf16.mxu1 %vm13223_vm6, %v12830_v20  ;;  %vm13233_vm6 = vnez %v13232_v32  ;;  %v13337_v18 = vld [vmem:[#allocation76_spill] sm:$0xff]  ;;  %v13341_v32 = vld [vmem:[#allocation78_spill] sm:$0xff] }
 0x61c   : > { %8644 = vmatpush1.bf16.msk.msra.mxu0 %vm13225_vm5, %v12830_v20  ;;  %vm13234_vm5 = vnez %v12922_v58  ;;  %v13261_v58 = vld [vmem:[#allocation37_spill] sm:$0xff] }
 0x61d   : > { %8646 = vmatprep.subr.msk.bf16.mxu0 %vm13227_vm10, %v12830_v20  ;;  %8780 = vmatpush1.bf16.msk.msra.mxu1 %vm13228_vm7, %v12830_v20  ;;  %vm13235_vm10 = vnez %v12924_v44  ;;  %vm13237_vm7 = vnez %v13236_v56  ;;  %v13263_v44 = vld [vmem:[#allocation38_spill] sm:$0xff]  ;;  %v13343_v56 = vld [vmem:[#allocation79_spill] sm:$0xff] }
 0x61e   : > { %8782 = vmatprep.subr.msk.bf16.mxu1 %vm13229_vm14, %v12830_v20  ;;  %vm13239_vm14 = vnez %v13238_v6  ;;  %v13345_v6 = vld [vmem:[#allocation80_spill] sm:$0xff] }
 0x620   : > { %8648 = vmatpush1.bf16.msk.msra.mxu0 %vm13231_vm15, %v12830_v20  ;;  %vm13240_vm15 = vnez %v12926_v40  ;;  %v13265_v40 = vld [vmem:[#allocation49_spill] sm:$0xff] }
 0x621   : > { %8650 = vmatprep.subr.msk.bf16.mxu0 %vm13233_vm6, %v12830_v20  ;;  %8784 = vmatpush1.bf16.msk.msra.mxu1 %vm13234_vm5, %v12830_v20  ;;  %vm13241_vm6 = vnez %v12928_v42  ;;  %vm13243_vm5 = vnez %v13242_v53  ;;  %v13267_v42 = vld [vmem:[#allocation50_spill] sm:$0xff]  ;;  %v13347_v53 = vld [vmem:[#allocation81_spill] sm:$0xff] }
 0x622   : > { %8786 = vmatprep.subr.msk.bf16.mxu1 %vm13235_vm10, %v12830_v20  ;;  %vm13245_vm10 = vnez %v13244_v55  ;;  %v13349_v55 = vld [vmem:[#allocation82_spill] sm:$0xff] }
 0x624   : > { %8652 = vmatpush1.bf16.msk.msra.mxu0 %vm13237_vm7, %v12830_v20  ;;  %vm13246_vm7 = vnez %v12930_v43  ;;  %v13269_v43 = vld [vmem:[#allocation39_spill] sm:$0xff] }
 0x625   : > { %8654 = vmatprep.subr.msk.bf16.mxu0 %vm13239_vm14, %v12830_v20  ;;  %8788 = vmatpush1.bf16.msk.msra.mxu1 %vm13240_vm15, %v12830_v20  ;;  %vm13247_vm14 = vnez %v12932_v28  ;;  %vm13249_vm15 = vnez %v13248_v12  ;;  %v13271_v28 = vld [vmem:[#allocation40_spill] sm:$0xff]  ;;  %v13351_v12 = vld [vmem:[#allocation83_spill] sm:$0xff] }
 0x626   : > { %8790 = vmatprep.subr.msk.bf16.mxu1 %vm13241_vm6, %v12830_v20  ;;  %vm13251_vm6 = vnez %v13250_v33  ;;  %v13353_v33 = vld [vmem:[#allocation84_spill] sm:$0xff] }
 0x628   : > { %8656 = vmatpush1.bf16.msk.msra.mxu0 %vm13243_vm5, %v12830_v20  ;;  %vm13252_vm5 = vnez %v12934_v0  ;;  %v13273_v0 = vld [vmem:[#allocation51_spill] sm:$0xff] }
 0x629   : > { %8658 = vmatprep.subr.msk.bf16.mxu0 %vm13245_vm10, %v12830_v20  ;;  %8792 = vmatpush1.bf16.msk.msra.mxu1 %vm13246_vm7, %v12830_v20  ;;  %vm13253_vm10 = vnez %v12936_v2  ;;  %vm13255_vm7 = vnez %v13254_v39  ;;  %v13275_v2 = vld [vmem:[#allocation53_spill] sm:$0xff] }
 0x62a   : > { %8794 = vmatprep.subr.msk.bf16.mxu1 %vm13247_vm14, %v12830_v20  ;;  %vm13257_vm14 = vnez %v13256_v9  ;;  %v13355_v39 = vld [vmem:[#allocation85_spill] sm:$0xff]  ;;  %v13357_v9 = vld [vmem:[#allocation86_spill] sm:$0xff] }
 0x62c   : > { %8660 = vmatpush1.bf16.msk.msra.mxu0 %vm13249_vm15, %v12830_v20  ;;  %vm13258_vm15 = vnez %v12938_v52  ;;  %v13277_v52 = vld [vmem:[#allocation41_spill] sm:$0xff] }
 0x62d   : > { %8662 = vmatprep.subr.msk.bf16.mxu0 %vm13251_vm6, %v12830_v20  ;;  %8796 = vmatpush1.bf16.msk.msra.mxu1 %vm13252_vm5, %v12830_v20  ;;  %vm13260_vm6 = vnez %v13259_v34  ;;  %vm13262_vm5 = vnez %v13261_v58  ;;  %v13359_v34 = vld [vmem:[#allocation87_spill] sm:$0xff]  ;;  %v13361_v58 = vld [vmem:[#allocation88_spill] sm:$0xff] }
 0x62e   : > { %8798 = vmatprep.subr.msk.bf16.mxu1 %vm13253_vm10, %v12830_v20  ;;  %vm13264_vm10 = vnez %v13263_v44  ;;  %v13363_v44 = vld [vmem:[#allocation89_spill] sm:$0xff] }
 0x630   : > { %8664 = vmatpush1.bf16.msk.msra.mxu0 %vm13255_vm7, %v12830_v20  ;;  %vm13266_vm7 = vnez %v13265_v40  ;;  %v13365_v40 = vld [vmem:[#allocation90_spill] sm:$0xff] }
 0x631   : > { %8666 = vmatprep.subr.msk.bf16.mxu0 %vm13257_vm14, %v12830_v20  ;;  %8800 = vmatpush1.bf16.msk.msra.mxu1 %vm13258_vm15, %v12830_v20  ;;  %vm13268_vm14 = vnez %v13267_v42  ;;  %vm13270_vm15 = vnez %v13269_v43  ;;  %v13367_v42 = vld [vmem:[#allocation91_spill] sm:$0xff]  ;;  %v13369_v43 = vld [vmem:[#allocation92_spill] sm:$0xff] }
 0x632   : > { %8802 = vmatprep.subr.msk.bf16.mxu1 %vm13260_vm6, %v12830_v20  ;;  %vm13272_vm6 = vnez %v13271_v28  ;;  %v13371_v28 = vld [vmem:[#allocation93_spill] sm:$0xff] }
 0x634   : > { %8668 = vmatpush1.bf16.msk.msra.mxu0 %vm13262_vm5, %v12830_v20  ;;  %vm13274_vm5 = vnez %v13273_v0  ;;  %v13373_v0 = vld [vmem:[#allocation94_spill] sm:$0xff] }
 0x635   : > { %8670 = vmatprep.subr.msk.bf16.mxu0 %vm13264_vm10, %v12830_v20  ;;  %8804 = vmatpush1.bf16.msk.msra.mxu1 %vm13266_vm7, %v12830_v20  ;;  %vm13276_vm10 = vnez %v13275_v2  ;;  %vm13278_vm7 = vnez %v13277_v52  ;;  %v13375_v2 = vld [vmem:[#allocation95_spill] sm:$0xff]  ;;  %v13377_v52 = vld [vmem:[#allocation96_spill] sm:$0xff] }
 0x636   : > { %8806 = vmatprep.subr.msk.bf16.mxu1 %vm13268_vm14, %v12830_v20  ;;  %vm13280_vm14 = vnez %v13279_v16  ;;  %v13379_v16 = vld [vmem:[#allocation97_spill] sm:$0xff] }
 0x638   : > { %8672 = vmatpush1.bf16.msk.msra.mxu0 %vm13270_vm15, %v12830_v20  ;;  %vm13282_vm15 = vnez %v13281_v59  ;;  %v13381_v59 = vld [vmem:[#allocation98_spill] sm:$0xff] }
 0x639   : > { %8674 = vmatprep.subr.msk.bf16.mxu0 %vm13272_vm6, %v12830_v20  ;;  %8808 = vmatpush1.bf16.msk.msra.mxu1 %vm13274_vm5, %v12830_v20  ;;  %vm13284_vm6 = vnez %v13283_v60  ;;  %vm13286_vm5 = vnez %v13285_v48  ;;  %v13383_v60 = vld [vmem:[#allocation99_spill] sm:$0xff]  ;;  %v13385_v48 = vld [vmem:[#allocation100_spill] sm:$0xff] }
 0x63a   : > { %8810 = vmatprep.subr.msk.bf16.mxu1 %vm13276_vm10, %v12830_v20  ;;  %vm13288_vm10 = vnez %v13287_v57  ;;  %v13387_v57 = vld [vmem:[#allocation101_spill] sm:$0xff] }
 0x63c   : > { %8676 = vmatpush1.bf16.msk.msra.mxu0 %vm13278_vm7, %v12830_v20  ;;  %vm13290_vm7 = vnez %v13289_v46  ;;  %v5259_v46 = vadd.s32 448, %v10265_v5 }
 0x63d   : > { %8678 = vmatprep.subr.msk.bf16.mxu0 %vm13280_vm14, %v12830_v20  ;;  %8812 = vmatpush1.bf16.msk.msra.mxu1 %vm13282_vm15, %v12830_v20  ;;  %vm13292_vm14 = vnez %v13291_v49  ;;  %vm13294_vm15 = vnez %v13293_v19  ;;  %v5260_v49 = vadd.s32 456, %v10265_v5  ;;  %v5947_v19 = vld [vmem:[#allocation10 + $0x48] sm:$0xff] }
 0x63e   : > { %8814 = vmatprep.subr.msk.bf16.mxu1 %vm13284_vm6, %v12830_v20  ;;  %vm13296_vm6 = vnez %v13295_v50  ;;  %v5953_v50 = vld [vmem:[#allocation10 + $0x78] sm:$0xff] }
 0x640   : > { %8680 = vmatpush1.bf16.msk.msra.mxu0 %vm13286_vm5, %v12830_v20  ;;  %vm13298_vm5 = vnez %v13297_v31  ;;  %v13391_v31 = vld [vmem:[#allocation105_spill] sm:$0xff] }
 0x641   : > { %8682 = vmatprep.subr.msk.bf16.mxu0 %vm13288_vm10, %v12830_v20  ;;  %8816 = vmatpush1.bf16.msk.msra.mxu1 %vm13290_vm7, %v12830_v20  ;;  %vm13300_vm10 = vnez %v13299_v26  ;;  %vm13302_vm7 = vnez %v13301_v38  ;;  %v13393_v26 = vld [vmem:[#allocation106_spill] sm:$0xff]  ;;  %v5261_v38 = vadd.s32 464, %v10265_v5 }
 0x642   : > { %8818 = vmatprep.subr.msk.bf16.mxu1 %vm13292_vm14, %v12830_v20  ;;  %vm13304_vm14 = vnez %v13303_v45  ;;  %v5262_v45 = vadd.s32 472, %v10265_v5 }
 0x644   : > { %8684 = vmatpush1.bf16.msk.msra.mxu0 %vm13294_vm15, %v12830_v20  ;;  %vm13306_vm15 = vnez %v13305_v51  ;;  %v13395_v51 = vld [vmem:[#allocation22_spill] sm:$0xff] }
 0x645   : > { %8686 = vmatprep.subr.msk.bf16.mxu0 %vm13296_vm6, %v12830_v20  ;;  %8820 = vmatpush1.bf16.msk.msra.mxu1 %vm13298_vm5, %v12830_v20  ;;  %vm13308_vm6 = vnez %v13307_v47  ;;  %vm13310_vm5 = vnez %v13309_v21  ;;  %v5268_v47 = vsub.s32 %v5259_v46, %v13395_v51  ;;  %v5270_v21 = vsub.s32 %v5260_v49, %v13395_v51 }
 0x646   : > { %8822 = vmatprep.subr.msk.bf16.mxu1 %vm13300_vm10, %v12830_v20  ;;  %vm13312_vm10 = vnez %v13311_v7 }
 0x648   : > { %8688 = vmatpush1.bf16.msk.msra.mxu0 %vm13302_vm7, %v12830_v20  ;;  %vm13314_vm7 = vnez %v13313_v8 }
 0x649   : > { %8690 = vmatprep.subr.msk.bf16.mxu0 %vm13304_vm14, %v12830_v20  ;;  %8824 = vmatpush1.bf16.msk.msra.mxu1 %vm13306_vm15, %v12830_v20  ;;  %vm13316_vm14 = vnez %v13315_v36  ;;  %vm13318_vm15 = vnez %v13317_v4  ;;  %v13398_v36 = vld [vmem:[#allocation23_spill] sm:$0xff] }
 0x64a   : > { %8826 = vmatprep.subr.msk.bf16.mxu1 %vm13308_vm6, %v12830_v20  ;;  %vm13320_vm6 = vnez %v13319_v25  ;;  %v5267_v4 = vsub.s32 %v5259_v46, %v13398_v36  ;;  %v5269_v25 = vsub.s32 %v5260_v49, %v13398_v36  ;;  %v5940_v49 = vld [vmem:[#allocation10 + $0x10] sm:$0xff] }
 0x64c   : > { %8692 = vmatpush1.bf16.msk.msra.mxu0 %vm13310_vm5, %v12830_v20  ;;  %vm13322_vm5 = vnez %v13321_v1  ;;  %v5974_v1 = vld [vmem:[#allocation10 + $0x120] sm:$0xff] }
 0x64d   : > { %8694 = vmatprep.subr.msk.bf16.mxu0 %vm13312_vm10, %v12830_v20  ;;  %8828 = vmatpush1.bf16.msk.msra.mxu1 %vm13314_vm7, %v12830_v20  ;;  %vm13324_vm10 = vnez %v13323_v30  ;;  %vm13326_vm7 = vnez %v13325_v37  ;;  %v5969_v30 = vld [vmem:[#allocation10 + $0xf8] sm:$0xff]  ;;  %v5990_v37 = vld [vmem:[#allocation10 + $0x1a0] sm:$0xff] }
 0x64e   : > { %8830 = vmatprep.subr.msk.bf16.mxu1 %vm13316_vm14, %v12830_v20  ;;  %vm13328_vm14 = vnez %v13327_v15 }
 0x650   : > { %8696 = vmatpush1.bf16.msk.msra.mxu0 %vm13318_vm15, %v12830_v20  ;;  %vm13330_vm15 = vnez %v13329_v41  ;;  %v5980_v41 = vld [vmem:[#allocation10 + $0x150] sm:$0xff] }
 0x651   : > { %8698 = vmatprep.subr.msk.bf16.mxu0 %vm13320_vm6, %v12830_v20  ;;  %vm13332_vm6 = vnez %v13331_v54  ;;  %v5271_v54 = vsub.s32 %v5261_v38, %v13398_v36 }
 0x654   : > { %8700 = vmatpush1.bf16.msk.msra.mxu0 %vm13322_vm5, %v12830_v20  ;;  %vm13334_vm5 = vnez %v13333_v10  ;;  %v5273_v10 = vsub.s32 %v5262_v45, %v13398_v36 }
 0x655   : > { %8702 = vmatprep.subr.msk.bf16.mxu0 %vm13324_vm10, %v12830_v20  ;;  %vm13336_vm10 = vnez %v13335_v13 }
 0x6e2   : > { %v5428_v3 = vpop.f32.mrb[32].mxu0  ;;  %v5643_v29 = vpop.f32.mrb[42].mxu1 }
 0x6e3   : > { %v5430_v22 = vpop.f32.mrb[33].mxu0  ;;  %v5645_v61 = vpop.f32.mrb[43].mxu1 }
 0x6e6   : > { %v5499_v27 = vpop.f32.mrb[34].mxu0 }
 0x6e7   : > { %v5501_v35 = vpop.f32.mrb[35].mxu0  ;;  %v12196_v14 = vmax.f32 %v5499_v27, %v5643_v29  ;;  %v13403_v29 = vld [vmem:[#allocation103_spill] sm:$0xff]  ;;  %v5274_v27 = vsub.s32 %v5262_v45, %v13395_v51 }
 0x6e8   : > { %v5651_v62 = vmax.f32 %v5501_v35, %v5645_v61  ;;  %v5272_v61 = vsub.s32 %v5261_v38, %v13395_v51  ;;  %v5962_v38 = vld [vmem:[#allocation10 + $0xc0] sm:$0xff] }
 0x6ea   : > { %v5572_v11 = vpop.f32.mrb[36].mxu0 }
 0x6eb   : > { %v5648_v24 = vmax.f32 %v5428_v3, %v5572_v11  ;;  %v5574_v63 = vpop.f32.mrb[37].mxu0  ;;  %v13401_v3 = vld [vmem:[#allocation107_spill] sm:$0xff]  ;;  %v5264_v11 = vadd.s32 488, %v10265_v5 }
 0x6ec   : > { %v5649_v17 = vmax.f32 %v5430_v22, %v5574_v63  ;;  %v13412_v63 = vld [vmem:[#allocation109_spill] sm:$0xff] }
 0x6ed   : > { %v5966_v22 = vld [vmem:[#allocation10 + $0xe0] sm:$0xff] }
 0x6ee   : > { %5716 = vmatprep.mubr.f32.mxu0 %v5649_v17  ;;  %5858 = vmatprep.mubr.f32.mxu1 %v5649_v17  ;;  %v5983_v17 = vld [vmem:[#allocation10 + $0x168] sm:$0xff] }
 0x6ef   : > { %5717 = vmatmul.mubr.f32.vlgmr.msra.gmra.mrb[38].mxu0 %v5648_v24  ;;  %5859 = vmatmul.mubr.f32.vlgmr.msra.gmra.mrb[44].mxu1 %v5648_v24  ;;  %v5981_v24 = vld [vmem:[#allocation10 + $0x158] sm:$0xff]  ;;  %v8969_v13 = vpack.c.bf16 %v5990_v37, %v5983_v17  ;;  %v6050_v37 = vld [vmem:[#allocation10 + $0x380] sm:$0xff] }
 0x6f0   : > { %8704 = vmatpush1.bf16.msk.msra.mxu0 %vm13326_vm7, %v12830_v20  ;;  %8832 = vmatpush1.bf16.msk.msra.mxu1 %vm13328_vm14, %v12830_v20  ;;  %vm13338_vm7 = vnez %v13337_v18  ;;  %vm13340_vm14 = vnez %v13339_v23  ;;  %v5982_v18 = vld [vmem:[#allocation10 + $0x160] sm:$0xff] }
 0x6f1   : > { %5787 = vmatprep.mubr.f32.mxu0 %v5651_v62  ;;  %5929 = vmatprep.mubr.f32.mxu1 %v5651_v62  ;;  %v5263_v62 = vadd.s32 480, %v10265_v5 }
 0x6f2   : > { %8706 = vmatprep.subr.msk.bf16.mxu0 %vm13330_vm15, %v12830_v20  ;;  %8834 = vmatprep.subr.msk.bf16.mxu1 %vm13332_vm6, %v12830_v20  ;;  %vm13342_vm15 = vnez %v13341_v32  ;;  %vm13344_vm6 = vnez %v13343_v56  ;;  %v5278_v32 = vsub.s32 %v5264_v11, %v13395_v51  ;;  %v5265_v56 = vadd.s32 496, %v10265_v5 }
 0x6f3   : > { %v5276_v23 = vsub.s32 %v5263_v62, %v13395_v51 }
 0x6f4   : > { %8708 = vmatpush1.bf16.msk.msra.mxu0 %vm13334_vm5, %v12830_v20  ;;  %8836 = vmatpush1.bf16.msk.msra.mxu1 %vm13336_vm10, %v12830_v20  ;;  %vm13346_vm5 = vnez %v13345_v6  ;;  %vm13348_vm10 = vnez %v13347_v53  ;;  %v5266_v6 = vadd.s32 504, %v10265_v5  ;;  %v6004_v53 = vld [vmem:[#allocation10 + $0x210] sm:$0xff] }
 0x6f5   : > { %8710 = vmatprep.subr.msk.bf16.mxu0 %vm13338_vm7, %v12830_v20  ;;  %8838 = vmatprep.subr.msk.bf16.mxu1 %vm13340_vm14, %v12830_v20  ;;  %vm13350_vm7 = vnez %v13349_v55  ;;  %vm13352_vm14 = vnez %v13351_v12  ;;  %v5275_v12 = vsub.s32 %v5263_v62, %v13398_v36  ;;  %v5968_v62 = vld [vmem:[#allocation10 + $0xf0] sm:$0xff] }
 0x6f8   : > { %8712 = vmatpush1.bf16.msk.msra.mxu0 %vm13342_vm15, %v12830_v20  ;;  %8840 = vmatpush1.bf16.msk.msra.mxu1 %vm13344_vm6, %v12830_v20  ;;  %vm13354_vm15 = vnez %v13353_v33  ;;  %vm13356_vm6 = vnez %v13355_v39  ;;  %v5277_v33 = vsub.s32 %v5264_v11, %v13398_v36  ;;  %v5975_v11 = vld [vmem:[#allocation10 + $0x128] sm:$0xff]  ;;  %v6001_v39 = vld [vmem:[#allocation10 + $0x1f8] sm:$0xff] }
 0x6f9   : > { %8714 = vmatprep.subr.msk.bf16.mxu0 %vm13346_vm5, %v12830_v20  ;;  %8842 = vmatprep.subr.msk.bf16.mxu1 %vm13348_vm10, %v12830_v20  ;;  %vm13358_vm5 = vnez %v13357_v9  ;;  %vm13360_vm10 = vnez %v13359_v34  ;;  %v5280_v34 = vsub.s32 %v5265_v56, %v13395_v51 }
 0x6fc   : > { %8716 = vmatpush1.bf16.msk.msra.mxu0 %vm13350_vm7, %v12830_v20  ;;  %8844 = vmatpush1.bf16.msk.msra.mxu1 %vm13352_vm14, %v12830_v20  ;;  %vm13362_vm7 = vnez %v13361_v58  ;;  %vm13364_vm14 = vnez %v13363_v44  ;;  %v5282_v58 = vsub.s32 %v5266_v6, %v13395_v51  ;;  %v13433_v44 = vmov 0 }
 0x6fd   : > { %8718 = vmatprep.subr.msk.bf16.mxu0 %vm13354_vm15, %v12830_v20  ;;  %8846 = vmatprep.subr.msk.bf16.mxu1 %vm13356_vm6, %v12830_v20  ;;  %vm13366_vm15 = vnez %v13365_v40  ;;  %vm13368_vm6 = vnez %v13367_v42  ;;  %v13435_v40 = vmov 0  ;;  %v5279_v42 = vsub.s32 %v5265_v56, %v13398_v36  ;;  %v6002_v56 = vld [vmem:[#allocation10 + $0x200] sm:$0xff] }
 0x6fe   : > { %v8959_v51 = vpack.c.bf16 %v5947_v19, %v5940_v49  ;;  %v6030_v49 = vld [vmem:[#allocation10 + $0x2e0] sm:$0xff]  ;;  %v6025_v19 = vld [vmem:[#allocation10 + $0x2b8] sm:$0xff] }
 0x700   : > { %8720 = vmatpush1.bf16.msk.msra.mxu0 %vm13358_vm5, %v12830_v20  ;;  %8848 = vmatpush1.bf16.msk.msra.mxu1 %vm13360_vm10, %v12830_v20  ;;  %vm13370_vm5 = vnez %v13369_v43  ;;  %vm13372_vm10 = vnez %v13371_v28  ;;  %v5281_v43 = vsub.s32 %v5266_v6, %v13398_v36  ;;  %v13437_v28 = vmov 0  ;;  %v5954_v36 = vld [vmem:[#allocation10 + $0x80] sm:$0xff]  ;;  %v5997_v6 = vld [vmem:[#allocation10 + $0x1d8] sm:$0xff] }
 0x701   : > { %8722 = vmatprep.subr.msk.bf16.mxu0 %vm13362_vm7, %v12830_v20  ;;  %8850 = vmatprep.subr.msk.bf16.mxu1 %vm13364_vm14, %v12830_v20  ;;  %vm13374_vm7 = vnez %v13373_v0  ;;  %vm13376_vm14 = vnez %v13375_v2  ;;  %v5939_v0 = vld [vmem:[#allocation10 + $0x8] sm:$0xff]  ;;  %v5946_v2 = vld [vmem:[#allocation10 + $0x40] sm:$0xff] }
 0x704   : > { %8724 = vmatpush1.bf16.msk.msra.mxu0 %vm13366_vm15, %v12830_v20  ;;  %8852 = vmatpush1.bf16.msk.msra.mxu1 %vm13368_vm6, %v12830_v20  ;;  %vm13378_vm15 = vnez %v13377_v52  ;;  %vm13380_vm6 = vnez %v13379_v16  ;;  %v5941_v52 = vld [vmem:[#allocation10 + $0x18] sm:$0xff]  ;;  %v5948_v16 = vld [vmem:[#allocation10 + $0x50] sm:$0xff] }
 0x705   : > { %8726 = vmatprep.subr.msk.bf16.mxu0 %vm13370_vm5, %v12830_v20  ;;  %8854 = vmatprep.subr.msk.bf16.mxu1 %vm13372_vm10, %v12830_v20  ;;  %vm13382_vm5 = vnez %v13381_v59  ;;  %vm13384_vm10 = vnez %v13383_v60  ;;  %v5938_v60 = vld [vmem:[#allocation10] sm:$0xff]  ;;  %v8957_v46 = vpack.c.bf16 %v5948_v16, %v5941_v52  ;;  %v6008_v52 = vld [vmem:[#allocation10 + $0x230] sm:$0xff]  ;;  %v6015_v16 = vld [vmem:[#allocation10 + $0x268] sm:$0xff] }
 0x708   : > { %8728 = vmatpush1.bf16.msk.msra.mxu0 %vm13374_vm7, %v12830_v20  ;;  %8856 = vmatpush1.bf16.msk.msra.mxu1 %vm13376_vm14, %v12830_v20  ;;  %vm13386_vm7 = vnez %v13385_v48  ;;  %vm13388_vm14 = vnez %v13387_v57  ;;  %v5945_v48 = vld [vmem:[#allocation10 + $0x38] sm:$0xff]  ;;  %v8893_v57 = vpack.c.bf16 %v5946_v2, %v5939_v0 }
 0x709   : > { %8730 = vmatprep.subr.msk.bf16.mxu0 %vm13378_vm15, %v12830_v20  ;;  %8858 = vmatprep.subr.msk.bf16.mxu1 %vm13380_vm6, %v12830_v20  ;;  %vm13392_vm15 = vnez %v13391_v31  ;;  %vm13394_vm6 = vnez %v13393_v26  ;;  %v5960_v31 = vld [vmem:[#allocation10 + $0xb0] sm:$0xff]  ;;  %v5955_v26 = vld [vmem:[#allocation10 + $0x88] sm:$0xff]  ;;  %v8895_v45 = vpack.c.bf16 %v5945_v48, %v5938_v60  ;;  %v6010_v48 = vld [vmem:[#allocation10 + $0x240] sm:$0xff] }
 0x70a   : > { %v8897_v7 = vpack.c.bf16 %v5960_v31, %v5953_v50  ;;  %v8961_v8 = vpack.c.bf16 %v5962_v38, %v5955_v26  ;;  %v6032_v50 = vld [vmem:[#allocation10 + $0x2f0] sm:$0xff]  ;;  %v8915_v31 = vpack.c.bf16 %v6015_v16, %v6008_v52  ;;  %v6022_v38 = vld [vmem:[#allocation10 + $0x2a0] sm:$0xff] }
 0x70b   : > { %v6080_v16 = vld [vmem:[#allocation10 + $0x470] sm:$0xff] }
 0x70c   : > { %8732 = vmatpush1.bf16.msk.msra.mxu0 %vm13382_vm5, %v12830_v20  ;;  %8860 = vmatpush1.bf16.msk.msra.mxu1 %vm13384_vm10, %v12830_v20  ;;  %vm5286_vm10 = vcmp.eq.s32.totalorder %v5270_v21, 0 }
 0x70d   : > { %8734 = vmatprep.subr.msk.bf16.mxu0 %vm13386_vm7, %v12830_v20  ;;  %8862 = vmatprep.subr.msk.bf16.mxu1 %vm13388_vm14, %v12830_v20  ;;  %vm13413_vm7 = vcmp.eq.s32.totalorder %v13412_v63, 0 }
 0x70e   : > { %vm12350_vm14 = vmpackc.low %vm13413_vm7, %vm2366_vm4  ;;  %vm5283_vm4 = vcmp.eq.s32.totalorder %v5267_v4, 0  ;;  %vm5290_vm7 = vcmp.eq.s32.totalorder %v5274_v27, 0 }
 0x710   : > { %8736 = vmatpush1.bf16.msk.msra.mxu0 %vm11595_vm12, %v12830_v20  ;;  %8864 = vmatpush1.bf16.msk.msra.mxu1 %vm11605_vm3, %v12830_v20  ;;  %vm13402_vm12 = vcmp.eq.s32.totalorder %v13401_v3, 0 }
 0x711   : > { %8738 = vmatprep.subr.msk.bf16.mxu0 %vm13392_vm15, %v12830_v20  ;;  %8866 = vmatprep.subr.msk.bf16.mxu1 %vm13394_vm6, %v12830_v20  ;;  %vm5316_vm15 = vcmp.eq.s32.totalorder %v5268_v47, 1  ;;  %vm5318_vm6 = vcmp.eq.s32.totalorder %v5270_v21, 1  ;;  %v5959_v21 = vld [vmem:[#allocation10 + $0xa8] sm:$0xff] }
 0x714   : > { %8740 = vmatpush1.bf16.msk.msra.mxu0 %vm11642_vm9, %v12830_v20  ;;  %8868 = vmatpush1.bf16.msk.msra.mxu1 %vm11650_vm1, %v12830_v20  ;;  %vm13404_vm9 = vcmp.eq.s32.totalorder %v13403_v29, 0  ;;  %vm13407_vm1 = vcmp.eq.s32.totalorder %v13401_v3, 1  ;;  %v5976_v3 = vld [vmem:[#allocation10 + $0x130] sm:$0xff] }
 0x715   : > { %8742 = vmatprep.subr.msk.bf16.mxu0 %vm11666_vm8, %v12830_v20  ;;  %8870 = vmatprep.subr.msk.bf16.mxu1 %vm11682_vm11, %v12830_v20  ;;  %vm12330_vm3 = vmpackc.low %vm13404_vm9, %vm13402_vm12  ;;  %vm13408_vm8 = vcmp.eq.s32.totalorder %v13403_v29, 1  ;;  %vm5284_vm11 = vcmp.eq.s32.totalorder %v5268_v47, 0  ;;  %vm13418_vm12 = vcmp.eq.s32.totalorder %v13412_v63, 1  ;;  %v5952_v47 = vld [vmem:[#allocation10 + $0x70] sm:$0xff]  ;;  %v8965_v35 = vpack.c.bf16 %v5976_v3, %v5969_v30 }
 0x716   : > { %vm12340_vm5 = vmpackc.low %vm13408_vm8, %vm13407_vm1  ;;  %vm5285_vm1 = vcmp.eq.s32.totalorder %v5269_v25, 0  ;;  %vm5288_vm8 = vcmp.eq.s32.totalorder %v5272_v61, 0  ;;  %v5988_v63 = vld [vmem:[#allocation10 + $0x190] sm:$0xff] }
 0x717   : > { %vm12364_vm9 = vmpackc.low %vm13418_vm12, %vm2590_vm2  ;;  %vm5317_vm2 = vcmp.eq.s32.totalorder %v5269_v25, 1  ;;  %v5967_v25 = vld [vmem:[#allocation10 + $0xe8] sm:$0xff]  ;;  %v6036_v3 = vld [vmem:[#allocation10 + $0x310] sm:$0xff] }
 0x718   : > { %8744 = vmatpush1.bf16.msk.msra.mxu0 %vm11692_vm0, %v12830_v20  ;;  %8872 = vmatpush1.bf16.msk.msra.mxu1 %vm11706_vm13, %v12830_v20  ;;  %vm12378_vm0 = vmpackc.low %vm5286_vm10, %vm5284_vm11  ;;  %vm5315_vm13 = vcmp.eq.s32.totalorder %v5267_v4, 1  ;;  %vm5322_vm11 = vcmp.eq.s32.totalorder %v5274_v27, 1  ;;  %v5961_v4 = vld [vmem:[#allocation10 + $0xb8] sm:$0xff]  ;;  %v8901_v27 = vpack.c.bf16 %v5974_v1, %v5967_v25  ;;  %v6046_v25 = vld [vmem:[#allocation10 + $0x360] sm:$0xff] }
 0x719   : > { %8746 = vmatprep.subr.msk.bf16.mxu0 %vm12330_vm3, %v12830_v20  ;;  %8874 = vmatprep.subr.msk.bf16.mxu1 %vm12340_vm5, %v12830_v20  ;;  %vm12384_vm12 = vmpackc.low %vm5318_vm6, %vm5316_vm15  ;;  %vm5320_vm5 = vcmp.eq.s32.totalorder %v5272_v61, 1  ;;  %vm5287_vm15 = vcmp.eq.s32.totalorder %v5271_v54, 0  ;;  %vm5289_vm6 = vcmp.eq.s32.totalorder %v5273_v10, 0  ;;  %v8963_v29 = vpack.c.bf16 %v5961_v4, %v5954_v36  ;;  %v5973_v61 = vld [vmem:[#allocation10 + $0x118] sm:$0xff]  ;;  %v6044_v36 = vld [vmem:[#allocation10 + $0x350] sm:$0xff] }
 0x71a   : > { %vm12394_vm3 = vmpackc.low %vm5285_vm1, %vm5283_vm4  ;;  %vm5321_vm4 = vcmp.eq.s32.totalorder %v5273_v10, 1  ;;  %v8903_v15 = vpack.c.bf16 %v5973_v61, %v5966_v22  ;;  %v8905_v10 = vpack.c.bf16 %v5988_v63, %v5981_v24  ;;  %v6039_v4 = vld [vmem:[#allocation10 + $0x328] sm:$0xff]  ;;  %v6038_v61 = vld [vmem:[#allocation10 + $0x320] sm:$0xff] }
 0x71b   : > { %vm12404_vm10 = vmpackc.low %vm5317_vm2, %vm5315_vm13  ;;  %vm5292_vm13 = vcmp.eq.s32.totalorder %v5276_v23, 0  ;;  %vm5294_vm2 = vcmp.eq.s32.totalorder %v5278_v32, 0  ;;  %v8985_v22 = vpack.c.bf16 %v6046_v25, %v6039_v4  ;;  %v6060_v24 = vld [vmem:[#allocation10 + $0x3d0] sm:$0xff]  ;;  %v6106_v25 = vld [vmem:[#allocation10 + $0x540] sm:$0xff] }
 0x71c   : > { %8748 = vmatpush1.bf16.msk.msra.mxu0 %vm12350_vm14, %v12830_v20  ;;  %8876 = vmatpush1.bf16.msk.msra.mxu1 %vm12364_vm9, %v12830_v20  ;;  %vm12418_vm14 = vmpackc.low %vm5290_vm7, %vm5288_vm8  ;;  %vm5319_vm9 = vcmp.eq.s32.totalorder %v5271_v54, 1  ;;  %vm5324_vm8 = vcmp.eq.s32.totalorder %v5276_v23, 1  ;;  %vm5326_vm7 = vcmp.eq.s32.totalorder %v5278_v32, 1  ;;  %v5987_v54 = vld [vmem:[#allocation10 + $0x188] sm:$0xff]  ;;  %v5989_v23 = vld [vmem:[#allocation10 + $0x198] sm:$0xff] }
 0x71d   : > { %8750 = vmatprep.subr.msk.bf16.mxu0 %vm12378_vm0, %v12830_v20  ;;  %8878 = vmatprep.subr.msk.bf16.mxu1 %vm12384_vm12, %v12830_v20  ;;  %vm12422_vm1 = vmpackc.low %vm5322_vm11, %vm5320_vm5  ;;  %vm5291_vm5 = vcmp.eq.s32.totalorder %v5275_v12, 0  ;;  %vm5293_vm11 = vcmp.eq.s32.totalorder %v5277_v33, 0  ;;  %v5995_v32 = vld [vmem:[#allocation10 + $0x1c8] sm:$0xff]  ;;  %v8907_v55 = vpack.c.bf16 %v5987_v54, %v5980_v41  ;;  %v6052_v54 = vld [vmem:[#allocation10 + $0x390] sm:$0xff] }
 0x71e   : > { %vm12428_vm0 = vmpackc.low %vm5289_vm6, %vm5287_vm15  ;;  %vm5325_vm15 = vcmp.eq.s32.totalorder %v5277_v33, 1  ;;  %v5994_v33 = vld [vmem:[#allocation10 + $0x1c0] sm:$0xff]  ;;  %v8909_v9 = vpack.c.bf16 %v6002_v56, %v5995_v32 }
 0x71f   : > { %v13434_v44 = vsel %vm12428_vm0, 4294967295, %v13433_v44  ;;  %vm12438_vm12 = vmpackc.low %vm5321_vm4, %vm5319_vm9  ;;  %vm5296_vm9 = vcmp.eq.s32.totalorder %v5280_v34, 0  ;;  %vm5298_vm4 = vcmp.eq.s32.totalorder %v5282_v58, 0  ;;  %vm5328_vm0 = vcmp.eq.s32.totalorder %v5280_v34, 1  ;;  %v6074_v32 = vld [vmem:[#allocation10 + $0x440] sm:$0xff] }
 0x720   : > { %8752 = vmatpush1.bf16.msk.msra.mxu0 %vm12394_vm3, %v12830_v20  ;;  %8880 = vmatpush1.bf16.msk.msra.mxu1 %vm12404_vm10, %v12830_v20  ;;  %v13436_v40 = vsel %vm12438_vm12, 4294967295, %v13435_v40  ;;  %vm8757_vm3 = vmpackc.low %vm5294_vm2, %vm5292_vm13  ;;  %vm5323_vm10 = vcmp.eq.s32.totalorder %v5275_v12, 1  ;;  %v8971_v12 = vpack.c.bf16 %v5989_v23, %v5982_v18  ;;  %v8973_v34 = vpack.c.bf16 %v6004_v53, %v5997_v6  ;;  %v6072_v18 = vld [vmem:[#allocation10 + $0x430] sm:$0xff]  ;;  %v6067_v23 = vld [vmem:[#allocation10 + $0x408] sm:$0xff] }
 0x721   : > { %8754 = vmatprep.subr.msk.bf16.mxu0 %vm12418_vm14, %v12830_v20  ;;  %8882 = vmatprep.subr.msk.bf16.mxu1 %vm12422_vm1, %v12830_v20  ;;  %vm8885_vm6 = vmpackc.low %vm5326_vm7, %vm5324_vm8  ;;  %vm5330_vm14 = vcmp.eq.s32.totalorder %v5282_v58, 1  ;;  %vm13439_vm1 = vnez %v13434_v44  ;;  %vm13440_vm2 = vnez %v13436_v40  ;;  %vm5295_vm7 = vcmp.eq.s32.totalorder %v5279_v42, 0  ;;  %v5996_v58 = vld [vmem:[#allocation10 + $0x1d0] sm:$0xff]  ;;  %v6003_v44 = vld [vmem:[#allocation10 + $0x208] sm:$0xff] }
 0x722   : > { %vm12452_vm12 = vmpackc.low %vm5293_vm11, %vm5291_vm5  ;;  %vm5297_vm8 = vcmp.eq.s32.totalorder %v5281_v43, 0  ;;  %vm5327_vm11 = vcmp.eq.s32.totalorder %v5279_v42, 1  ;;  %v6009_v40 = vld [vmem:[#allocation10 + $0x238] sm:$0xff]  ;;  %v6016_v42 = vld [vmem:[#allocation10 + $0x270] sm:$0xff]  ;;  %v8911_v0 = vpack.c.bf16 %v6001_v39, %v5994_v33  ;;  %v8975_v2 = vpack.c.bf16 %v6003_v44, %v5996_v58 }
 0x723   : > { %v13438_v28 = vsel %vm12452_vm12, 4294967295, %v13437_v28  ;;  %vm8887_vm13 = vmpackc.low %vm5325_vm15, %vm5323_vm10  ;;  %vm5329_vm12 = vcmp.eq.s32.totalorder %v5281_v43, 1  ;;  %v6011_v43 = vld [vmem:[#allocation10 + $0x248] sm:$0xff]  ;;  %v8913_v59 = vpack.c.bf16 %v6016_v42, %v6009_v40  ;;  %v6064_v53 = vld [vmem:[#allocation10 + $0x3f0] sm:$0xff]  ;;  %v8993_v33 = vpack.c.bf16 %v6074_v32, %v6067_v23 }
 0x724   : > { %8756 = vmatpush1.bf16.msk.msra.mxu0 %vm13439_vm1, %v12830_v20  ;;  %8884 = vmatpush1.bf16.msk.msra.mxu1 %vm13440_vm2, %v12830_v20  ;;  %vm8761_vm5 = vmpackc.low %vm5298_vm4, %vm5296_vm9  ;;  %vm13443_vm10 = vnez %v13438_v28  ;;  %v6018_v28 = vld [vmem:[#allocation10 + $0x280] sm:$0xff]  ;;  %v6081_v44 = vld [vmem:[#allocation10 + $0x478] sm:$0xff] }
 0x725   : > { %8758 = vmatprep.subr.msk.bf16.mxu0 %vm8757_vm3, %v12830_v20  ;;  %8886 = vmatprep.subr.msk.bf16.mxu1 %vm8885_vm6, %v12830_v20  ;;  %vm8889_vm1 = vmpackc.low %vm5330_vm14, %vm5328_vm0  ;;  %v8977_v60 = vpack.c.bf16 %v6018_v28, %v6011_v43  ;;  %v6066_v39 = vld [vmem:[#allocation10 + $0x400] sm:$0xff]  ;;  %v6088_v40 = vld [vmem:[#allocation10 + $0x4b0] sm:$0xff] }
 0x726   : > { %vm12464_vm2 = vmpackc.low %vm5297_vm8, %vm5295_vm7  ;;  %v6086_v58 = vld [vmem:[#allocation10 + $0x4a0] sm:$0xff]  ;;  %v8997_v52 = vpack.c.bf16 %v6088_v40, %v6081_v44 }
 0x727   : > { %vm8891_vm3 = vmpackc.low %vm5329_vm12, %vm5327_vm11  ;;  %v6078_v28 = vld [vmem:[#allocation10 + $0x460] sm:$0xff] }
 0x728   : > { %8760 = vmatpush1.bf16.msk.msra.mxu0 %vm13443_vm10, %v12830_v20  ;;  %8888 = vmatpush1.bf16.msk.msra.mxu1 %vm8887_vm13, %v12830_v20  ;;  %v6134_v32 = vld [vmem:[#allocation10 + $0x620] sm:$0xff] }
 0x729   : > { %8762 = vmatprep.subr.msk.bf16.mxu0 %vm8761_vm5, %v12830_v20  ;;  %8890 = vmatprep.subr.msk.bf16.mxu1 %vm8889_vm1, %v12830_v20  ;;  %v6158_v40 = vld [vmem:[#allocation10 + $0x6e0] sm:$0xff] }
 0x72c   : > { %8764 = vmatpush1.bf16.msk.msra.mxu0 %vm12464_vm2, %v12830_v20  ;;  %8892 = vmatpush1.bf16.msk.msra.mxu1 %vm8891_vm3, %v12830_v20  ;;  %v8899_v20 = vpack.c.bf16 %v5959_v21, %v5952_v47  ;;  %v8981_v47 = vpack.c.bf16 %v6032_v50, %v6025_v19  ;;  %v6024_v21 = vld [vmem:[#allocation10 + $0x2b0] sm:$0xff] }
 0x72d   : > { %8894 = vmatprep.subr.bf16.mxu0 %v8893_v57  ;;  %8958 = vmatprep.subr.bf16.mxu1 %v8957_v46  ;;  %v6017_v57 = vld [vmem:[#allocation10 + $0x278] sm:$0xff]  ;;  %v6023_v46 = vld [vmem:[#allocation10 + $0x2a8] sm:$0xff]  ;;  %v6092_v50 = vld [vmem:[#allocation10 + $0x4d0] sm:$0xff] }
 0x72e   : > { %v8979_v26 = vpack.c.bf16 %v6017_v57, %v6010_v48  ;;  %v6100_v48 = vld [vmem:[#allocation10 + $0x510] sm:$0xff]  ;;  %v6095_v57 = vld [vmem:[#allocation10 + $0x4e8] sm:$0xff] }
 0x72f   : > { %5788 = vmatmul.mubr.f32.vlgmr.msra.gmra.mrb[38].mxu0 %v12196_v14  ;;  %5930 = vmatmul.mubr.f32.vlgmr.msra.gmra.mrb[44].mxu1 %v12196_v14  ;;  %v8967_v14 = vpack.c.bf16 %v5975_v11, %v5968_v62  ;;  %v6058_v62 = vld [vmem:[#allocation10 + $0x3c0] sm:$0xff]  ;;  %v6053_v11 = vld [vmem:[#allocation10 + $0x398] sm:$0xff] }
 0x730   : > { %8896 = vmatpush1.bf16.msra.mxu0 %v8895_v45  ;;  %8960 = vmatpush1.bf16.msra.mxu1 %v8959_v51  ;;  %v6029_v45 = vld [vmem:[#allocation10 + $0x2d8] sm:$0xff]  ;;  %v8917_v51 = vpack.c.bf16 %v6030_v49, %v6023_v46  ;;  %v8989_v41 = vpack.c.bf16 %v6060_v24, %v6053_v11  ;;  %v6102_v46 = vld [vmem:[#allocation10 + $0x520] sm:$0xff]  ;;  %v6120_v24 = vld [vmem:[#allocation10 + $0x5b0] sm:$0xff] }
 0x731   : > { %8898 = vmatprep.subr.bf16.mxu0 %v8897_v7  ;;  %8962 = vmatprep.subr.bf16.mxu1 %v8961_v8  ;;  %v6031_v7 = vld [vmem:[#allocation10 + $0x2e8] sm:$0xff]  ;;  %v6037_v8 = vld [vmem:[#allocation10 + $0x318] sm:$0xff]  ;;  %v8919_v1 = vpack.c.bf16 %v6029_v45, %v6022_v38  ;;  %v9001_v38 = vpack.c.bf16 %v6102_v46, %v6095_v57  ;;  %v6094_v45 = vld [vmem:[#allocation10 + $0x4e0] sm:$0xff] }
 0x732   : > { %v8983_v30 = vpack.c.bf16 %v6031_v7, %v6024_v21  ;;  %v6114_v21 = vld [vmem:[#allocation10 + $0x580] sm:$0xff]  ;;  %v6109_v7 = vld [vmem:[#allocation10 + $0x558] sm:$0xff]  ;;  %v6063_v46 = vld [vmem:[#allocation10 + $0x3e8] sm:$0xff] }
 0x734   : > { %8900 = vmatpush1.bf16.msra.mxu0 %v8899_v20  ;;  %8964 = vmatpush1.bf16.msra.mxu1 %v8963_v29  ;;  %v6043_v20 = vld [vmem:[#allocation10 + $0x348] sm:$0xff]  ;;  %v8921_v29 = vpack.c.bf16 %v6044_v36, %v6037_v8  ;;  %v6116_v8 = vld [vmem:[#allocation10 + $0x590] sm:$0xff] }
 0x735   : > { %8902 = vmatprep.subr.bf16.mxu0 %v8901_v27  ;;  %8966 = vmatprep.subr.bf16.mxu1 %v8965_v35  ;;  %v6045_v27 = vld [vmem:[#allocation10 + $0x358] sm:$0xff]  ;;  %v6051_v35 = vld [vmem:[#allocation10 + $0x388] sm:$0xff]  ;;  %v8923_v63 = vpack.c.bf16 %v6043_v20, %v6036_v3  ;;  %v9005_v3 = vpack.c.bf16 %v6116_v8, %v6109_v7  ;;  %v6108_v20 = vld [vmem:[#allocation10 + $0x550] sm:$0xff] }
 0x736   : > { %v8987_v17 = vpack.c.bf16 %v6045_v27, %v6038_v61  ;;  %v6128_v61 = vld [vmem:[#allocation10 + $0x5f0] sm:$0xff]  ;;  %v6123_v27 = vld [vmem:[#allocation10 + $0x5c8] sm:$0xff] }
 0x737   : > { %v5964_v8 = vld [vmem:[#allocation10 + $0xd0] sm:$0xff] }
 0x738   : > { %8904 = vmatpush1.bf16.msra.mxu0 %v8903_v15  ;;  %8968 = vmatpush1.bf16.msra.mxu1 %v8967_v14  ;;  %v6057_v15 = vld [vmem:[#allocation10 + $0x3b8] sm:$0xff]  ;;  %v8925_v14 = vpack.c.bf16 %v6058_v62, %v6051_v35  ;;  %v6130_v35 = vld [vmem:[#allocation10 + $0x600] sm:$0xff] }
 0x739   : > { %8906 = vmatprep.subr.bf16.mxu0 %v8905_v10  ;;  %8970 = vmatprep.subr.bf16.mxu1 %v8969_v13  ;;  %v6059_v10 = vld [vmem:[#allocation10 + $0x3c8] sm:$0xff]  ;;  %v6065_v13 = vld [vmem:[#allocation10 + $0x3f8] sm:$0xff]  ;;  %v8927_v56 = vpack.c.bf16 %v6057_v15, %v6050_v37  ;;  %v9009_v37 = vpack.c.bf16 %v6130_v35, %v6123_v27  ;;  %v6122_v15 = vld [vmem:[#allocation10 + $0x5c0] sm:$0xff] }
 0x73a   : > { %v8991_v6 = vpack.c.bf16 %v6059_v10, %v6052_v54  ;;  %v6142_v54 = vld [vmem:[#allocation10 + $0x660] sm:$0xff]  ;;  %v6137_v10 = vld [vmem:[#allocation10 + $0x638] sm:$0xff] }
 0x73c   : > { %8908 = vmatpush1.bf16.msra.mxu0 %v8907_v55  ;;  %8972 = vmatpush1.bf16.msra.mxu1 %v8971_v12  ;;  %v6071_v55 = vld [vmem:[#allocation10 + $0x428] sm:$0xff]  ;;  %v8929_v12 = vpack.c.bf16 %v6072_v18, %v6065_v13  ;;  %v6144_v13 = vld [vmem:[#allocation10 + $0x670] sm:$0xff] }
 0x73d   : > { %8910 = vmatprep.subr.bf16.mxu0 %v8909_v9  ;;  %8974 = vmatprep.subr.bf16.mxu1 %v8973_v34  ;;  %v6073_v9 = vld [vmem:[#allocation10 + $0x438] sm:$0xff]  ;;  %v6079_v34 = vld [vmem:[#allocation10 + $0x468] sm:$0xff]  ;;  %v8931_v42 = vpack.c.bf16 %v6071_v55, %v6064_v53  ;;  %v6136_v55 = vld [vmem:[#allocation10 + $0x630] sm:$0xff] }
 0x73e   : > { %v8995_v43 = vpack.c.bf16 %v6073_v9, %v6066_v39  ;;  %v6141_v53 = vld [vmem:[#allocation10 + $0x658] sm:$0xff] }
 0x73f   : > { %v6149_v9 = vld [vmem:[#allocation10 + $0x698] sm:$0xff] }
 0x740   : > { %8912 = vmatpush1.bf16.msra.mxu0 %v8911_v0  ;;  %8976 = vmatpush1.bf16.msra.mxu1 %v8975_v2  ;;  %v6085_v0 = vld [vmem:[#allocation10 + $0x498] sm:$0xff]  ;;  %v8933_v2 = vpack.c.bf16 %v6086_v58, %v6079_v34  ;;  %v6156_v34 = vld [vmem:[#allocation10 + $0x6d0] sm:$0xff]  ;;  %v6151_v58 = vld [vmem:[#allocation10 + $0x6a8] sm:$0xff] }
 0x741   : > { %8914 = vmatprep.subr.bf16.mxu0 %v8913_v59  ;;  %8978 = vmatprep.subr.bf16.mxu1 %v8977_v60  ;;  %v6087_v59 = vld [vmem:[#allocation10 + $0x4a8] sm:$0xff]  ;;  %v6093_v60 = vld [vmem:[#allocation10 + $0x4d8] sm:$0xff]  ;;  %v8935_v49 = vpack.c.bf16 %v6085_v0, %v6078_v28  ;;  %v8953_v44 = vpack.c.bf16 %v6156_v34, %v6149_v9  ;;  %v9017_v28 = vpack.c.bf16 %v6158_v40, %v6151_v58  ;;  %v6006_v58 = vld [vmem:[#allocation10 + $0x220] sm:$0xff] }
 0x742   : > { %v8999_v19 = vpack.c.bf16 %v6087_v59, %v6080_v16  ;;  %v5943_v59 = vld [vmem:[#allocation10 + $0x28] sm:$0xff]  ;;  %v5993_v9 = vld [vmem:[#allocation10 + $0x1b8] sm:$0xff] }
 0x743   : > { %v5999_v34 = vld [vmem:[#allocation10 + $0x1e8] sm:$0xff] }
 0x744   : > { %8916 = vmatpush1.bf16.msra.mxu0 %v8915_v31  ;;  %8980 = vmatpush1.bf16.msra.mxu1 %v8979_v26  ;;  %v6099_v31 = vld [vmem:[#allocation10 + $0x508] sm:$0xff]  ;;  %v8937_v26 = vpack.c.bf16 %v6100_v48, %v6093_v60  ;;  %v5950_v60 = vld [vmem:[#allocation10 + $0x60] sm:$0xff]  ;;  %v6056_v48 = vld [vmem:[#allocation10 + $0x3b0] sm:$0xff] }
 0x745   : > { %8918 = vmatprep.subr.bf16.mxu0 %v8917_v51  ;;  %8982 = vmatprep.subr.bf16.mxu1 %v8981_v47  ;;  %v6101_v51 = vld [vmem:[#allocation10 + $0x518] sm:$0xff]  ;;  %v6107_v47 = vld [vmem:[#allocation10 + $0x548] sm:$0xff]  ;;  %v8939_v36 = vpack.c.bf16 %v6099_v31, %v6092_v50  ;;  %v9021_v57 = vpack.c.bf16 %v5950_v60, %v5943_v59  ;;  %v5944_v31 = vld [vmem:[#allocation10 + $0x30] sm:$0xff] }
 0x746   : > { %v9003_v4 = vpack.c.bf16 %v6101_v51, %v6094_v45  ;;  %v5949_v50 = vld [vmem:[#allocation10 + $0x58] sm:$0xff]  ;;  %v6119_v40 = vld [vmem:[#allocation10 + $0x5a8] sm:$0xff] }
 0x747   : > { %v5957_v51 = vld [vmem:[#allocation10 + $0x98] sm:$0xff]  ;;  %v6007_v59 = vld [vmem:[#allocation10 + $0x228] sm:$0xff] }
 0x748   : > { %8920 = vmatpush1.bf16.msra.mxu0 %v8919_v1  ;;  %8984 = vmatpush1.bf16.msra.mxu1 %v8983_v30  ;;  %v6113_v1 = vld [vmem:[#allocation10 + $0x578] sm:$0xff]  ;;  %v8941_v30 = vpack.c.bf16 %v6114_v21, %v6107_v47  ;;  %v9025_v27 = vpack.c.bf16 %v5964_v8, %v5957_v51  ;;  %v6140_v8 = vld [vmem:[#allocation10 + $0x650] sm:$0xff] }
 0x749   : > { %8922 = vmatprep.subr.bf16.mxu0 %v8921_v29  ;;  %8986 = vmatprep.subr.bf16.mxu1 %v8985_v22  ;;  %v6115_v29 = vld [vmem:[#allocation10 + $0x588] sm:$0xff]  ;;  %v6121_v22 = vld [vmem:[#allocation10 + $0x5b8] sm:$0xff]  ;;  %v8943_v62 = vpack.c.bf16 %v6113_v1, %v6106_v25 }
 0x74a   : > { %v9007_v11 = vpack.c.bf16 %v6115_v29, %v6108_v20  ;;  %v5963_v20 = vld [vmem:[#allocation10 + $0xc8] sm:$0xff]  ;;  %v5958_v29 = vld [vmem:[#allocation10 + $0xa0] sm:$0xff]  ;;  %v6013_v60 = vld [vmem:[#allocation10 + $0x258] sm:$0xff] }
 0x74b   : > { %v6021_v51 = vld [vmem:[#allocation10 + $0x298] sm:$0xff] }
 0x74c   : > { %8924 = vmatpush1.bf16.msra.mxu0 %v8923_v63  ;;  %8988 = vmatpush1.bf16.msra.mxu1 %v8987_v17  ;;  %v6127_v63 = vld [vmem:[#allocation10 + $0x5e8] sm:$0xff]  ;;  %v8945_v17 = vpack.c.bf16 %v6128_v61, %v6121_v22  ;;  %v5965_v22 = vld [vmem:[#allocation10 + $0xd8] sm:$0xff] }
 0x74d   : > { %8926 = vmatprep.subr.bf16.mxu0 %v8925_v14  ;;  %8990 = vmatprep.subr.bf16.mxu1 %v8989_v41  ;;  %v6129_v14 = vld [vmem:[#allocation10 + $0x5f8] sm:$0xff]  ;;  %v6135_v41 = vld [vmem:[#allocation10 + $0x628] sm:$0xff]  ;;  %v8947_v18 = vpack.c.bf16 %v6127_v63, %v6120_v24 }
 0x74e   : > { %v9011_v23 = vpack.c.bf16 %v6129_v14, %v6122_v15  ;;  %v5971_v61 = vld [vmem:[#allocation10 + $0x108] sm:$0xff]  ;;  %v5977_v15 = vld [vmem:[#allocation10 + $0x138] sm:$0xff] }
 0x74f   : > { %v6091_v24 = vld [vmem:[#allocation10 + $0x4c8] sm:$0xff] }
 0x750   : > { %8928 = vmatpush1.bf16.msra.mxu0 %v8927_v56  ;;  %8992 = vmatpush1.bf16.msra.mxu1 %v8991_v6  ;;  %v8949_v56 = vpack.c.bf16 %v6142_v54, %v6135_v41  ;;  %v9013_v6 = vpack.c.bf16 %v6144_v13, %v6137_v10  ;;  %v5972_v54 = vld [vmem:[#allocation10 + $0x110] sm:$0xff]  ;;  %v5979_v10 = vld [vmem:[#allocation10 + $0x148] sm:$0xff]  ;;  %v5985_v13 = vld [vmem:[#allocation10 + $0x178] sm:$0xff] }
 0x751   : > { %8930 = vmatprep.subr.bf16.mxu0 %v8929_v12  ;;  %8994 = vmatprep.subr.bf16.mxu1 %v8993_v33  ;;  %v6143_v12 = vld [vmem:[#allocation10 + $0x668] sm:$0xff]  ;;  %v8951_v33 = vpack.c.bf16 %v6141_v53, %v6134_v32  ;;  %v6105_v32 = vld [vmem:[#allocation10 + $0x538] sm:$0xff]  ;;  %v5984_v53 = vld [vmem:[#allocation10 + $0x170] sm:$0xff] }
 0x752   : > { %v9015_v39 = vpack.c.bf16 %v6143_v12, %v6136_v55  ;;  %v5991_v55 = vld [vmem:[#allocation10 + $0x1a8] sm:$0xff] }
 0x754   : > { %8932 = vmatpush1.bf16.msra.mxu0 %v8931_v42  ;;  %8996 = vmatpush1.bf16.msra.mxu1 %v8995_v43  ;;  %v6148_v42 = vld [vmem:[#allocation10 + $0x690] sm:$0xff]  ;;  %v6155_v43 = vld [vmem:[#allocation10 + $0x6c8] sm:$0xff] }
 0x755   : > { %8934 = vmatprep.subr.bf16.mxu0 %v8933_v2  ;;  %8998 = vmatprep.subr.bf16.mxu1 %v8997_v52  ;;  %v8955_v0 = vpack.c.bf16 %v6155_v43, %v6148_v42  ;;  %v6150_v2 = vld [vmem:[#allocation10 + $0x6a0] sm:$0xff]  ;;  %v6157_v52 = vld [vmem:[#allocation10 + $0x6d8] sm:$0xff]  ;;  %v9035_v42 = vpack.c.bf16 %v5991_v55, %v5984_v53  ;;  %v6076_v53 = vld [vmem:[#allocation10 + $0x450] sm:$0xff] }
 0x756   : > { %v9019_v16 = vpack.c.bf16 %v6157_v52, %v6150_v2  ;;  %v9037_v2 = vpack.c.bf16 %v6006_v58, %v5999_v34  ;;  %v6090_v34 = vld [vmem:[#allocation10 + $0x4c0] sm:$0xff] }
 0x758   : > { %8936 = vmatpush1.bf16.msra.mxu0 %v8935_v49  ;;  %9000 = vmatpush1.bf16.msra.mxu1 %v8999_v19  ;;  %v9085_v49 = vpack.c.bf16 %v6063_v46, %v6056_v48  ;;  %v5942_v19 = vld [vmem:[#allocation10 + $0x20] sm:$0xff]  ;;  %v6020_v48 = vld [vmem:[#allocation10 + $0x290] sm:$0xff]  ;;  %v6133_v46 = vld [vmem:[#allocation10 + $0x618] sm:$0xff] }
 0x759   : > { %8938 = vmatprep.subr.bf16.mxu0 %v8937_v26  ;;  %9002 = vmatprep.subr.bf16.mxu1 %v9001_v38  ;;  %v5951_v26 = vld [vmem:[#allocation10 + $0x68] sm:$0xff]  ;;  %v9023_v1 = vpack.c.bf16 %v5949_v50, %v5942_v19  ;;  %v6012_v50 = vld [vmem:[#allocation10 + $0x250] sm:$0xff] }
 0x75c   : > { %8940 = vmatpush1.bf16.msra.mxu0 %v8939_v36  ;;  %9004 = vmatpush1.bf16.msra.mxu1 %v9003_v4  ;;  %v6070_v36 = vld [vmem:[#allocation10 + $0x420] sm:$0xff]  ;;  %v6077_v4 = vld [vmem:[#allocation10 + $0x458] sm:$0xff] }
 0x75d   : > { %8942 = vmatprep.subr.bf16.mxu0 %v8941_v30  ;;  %9006 = vmatprep.subr.bf16.mxu1 %v9005_v3  ;;  %v9087_v30 = vpack.c.bf16 %v5951_v26, %v5944_v31  ;;  %v5956_v3 = vld [vmem:[#allocation10 + $0x90] sm:$0xff]  ;;  %v9089_v35 = vpack.c.bf16 %v6077_v4, %v6070_v36  ;;  %v6019_v31 = vld [vmem:[#allocation10 + $0x288] sm:$0xff]  ;;  %v9041_v26 = vpack.c.bf16 %v6020_v48, %v6013_v60  ;;  %v6118_v60 = vld [vmem:[#allocation10 + $0x5a0] sm:$0xff] }
 0x75e   : > { %v9027_v63 = vpack.c.bf16 %v5963_v20, %v5956_v3  ;;  %v6147_v36 = vld [vmem:[#allocation10 + $0x688] sm:$0xff]  ;;  %v9043_v4 = vpack.c.bf16 %v6019_v31, %v6012_v50  ;;  %v6132_v50 = vld [vmem:[#allocation10 + $0x610] sm:$0xff] }
 0x75f   : > { %v9109_v20 = vpack.c.bf16 %v6147_v36, %v6140_v8  ;;  %v6138_v36 = vld [vmem:[#allocation10 + $0x640] sm:$0xff] }
 0x760   : > { %8944 = vmatpush1.bf16.msra.mxu0 %v8943_v62  ;;  %9008 = vmatpush1.bf16.msra.mxu1 %v9007_v11  ;;  %v5978_v62 = vld [vmem:[#allocation10 + $0x140] sm:$0xff]  ;;  %v6084_v11 = vld [vmem:[#allocation10 + $0x490] sm:$0xff] }
 0x761   : > { %8946 = vmatprep.subr.bf16.mxu0 %v8945_v17  ;;  %9010 = vmatprep.subr.bf16.mxu1 %v9009_v37  ;;  %v9091_v17 = vpack.c.bf16 %v5965_v22, %v5958_v29  ;;  %v5970_v37 = vld [vmem:[#allocation10 + $0x100] sm:$0xff]  ;;  %v9029_v14 = vpack.c.bf16 %v5978_v62, %v5971_v61  ;;  %v9093_v41 = vpack.c.bf16 %v6091_v24, %v6084_v11  ;;  %v6028_v29 = vld [vmem:[#allocation10 + $0x2d0] sm:$0xff]  ;;  %v6035_v22 = vld [vmem:[#allocation10 + $0x308] sm:$0xff] }
 0x762   : > { %v6041_v61 = vld [vmem:[#allocation10 + $0x338] sm:$0xff]  ;;  %v9111_v24 = vpack.c.bf16 %v6035_v22, %v6028_v29  ;;  %v6159_v29 = vld [vmem:[#allocation10 + $0x6e8] sm:$0xff] }
 0x763   : > { %v6161_v62 = vld [vmem:[#allocation10 + $0x6f8] sm:$0xff] }
 0x764   : > { %8948 = vmatpush1.bf16.msra.mxu0 %v8947_v18  ;;  %9012 = vmatpush1.bf16.msra.mxu1 %v9011_v23  ;;  %v5992_v18 = vld [vmem:[#allocation10 + $0x1b0] sm:$0xff]  ;;  %v6098_v23 = vld [vmem:[#allocation10 + $0x500] sm:$0xff] }
 0x765   : > { %8950 = vmatprep.subr.bf16.mxu0 %v8949_v56  ;;  %9014 = vmatprep.subr.bf16.mxu1 %v9013_v6  ;;  %v9031_v56 = vpack.c.bf16 %v5977_v15, %v5970_v37  ;;  %v9095_v6 = vpack.c.bf16 %v5979_v10, %v5972_v54  ;;  %v9033_v12 = vpack.c.bf16 %v5992_v18, %v5985_v13  ;;  %v6047_v15 = vld [vmem:[#allocation10 + $0x368] sm:$0xff]  ;;  %v6062_v10 = vld [vmem:[#allocation10 + $0x3e0] sm:$0xff] }
 0x766   : > { %v6055_v54 = vld [vmem:[#allocation10 + $0x3a8] sm:$0xff] }
 0x768   : > { %8952 = vmatpush1.bf16.msra.mxu0 %v8951_v33  ;;  %9016 = vmatpush1.bf16.msra.mxu1 %v9015_v39  ;;  %v9097_v33 = vpack.c.bf16 %v6105_v32, %v6098_v23  ;;  %v5986_v39 = vld [vmem:[#allocation10 + $0x180] sm:$0xff]  ;;  %v9053_v23 = vpack.c.bf16 %v6062_v10, %v6055_v54 }
 0x769   : > { %8954 = vmatprep.subr.bf16.mxu0 %v8953_v44  ;;  %9018 = vmatprep.subr.bf16.mxu1 %v9017_v28  ;;  %v6112_v44 = vld [vmem:[#allocation10 + $0x570] sm:$0xff]  ;;  %v9099_v43 = vpack.c.bf16 %v5993_v9, %v5986_v39  ;;  %v5998_v28 = vld [vmem:[#allocation10 + $0x1e0] sm:$0xff]  ;;  %v6075_v39 = vld [vmem:[#allocation10 + $0x448] sm:$0xff] }
 0x76a   : > { %v9101_v52 = vpack.c.bf16 %v6119_v40, %v6112_v44  ;;  %v6054_v32 = vld [vmem:[#allocation10 + $0x3a0] sm:$0xff]  ;;  %v6083_v9 = vld [vmem:[#allocation10 + $0x488] sm:$0xff] }
 0x76b   : > { %v9061_v44 = vpack.c.bf16 %v6090_v34, %v6083_v9  ;;  %v6082_v40 = vld [vmem:[#allocation10 + $0x480] sm:$0xff] }
 0x76c   : > { %8956 = vmatpush1.bf16.msra.mxu0 %v8955_v0  ;;  %9020 = vmatpush1.bf16.msra.mxu1 %v9019_v16  ;;  %v6005_v0 = vld [vmem:[#allocation10 + $0x218] sm:$0xff]  ;;  %v6000_v16 = vld [vmem:[#allocation10 + $0x1f0] sm:$0xff] }
 0x76d   : > { %9022 = vmatprep.subr.bf16.mxu0 %v9021_v57  ;;  %9086 = vmatprep.subr.bf16.mxu1 %v9085_v49  ;;  %v6126_v57 = vld [vmem:[#allocation10 + $0x5e0] sm:$0xff]  ;;  %v9039_v49 = vpack.c.bf16 %v6005_v0, %v5998_v28  ;;  %v9103_v19 = vpack.c.bf16 %v6007_v59, %v6000_v16  ;;  %v6104_v28 = vld [vmem:[#allocation10 + $0x530] sm:$0xff]  ;;  %v6103_v16 = vld [vmem:[#allocation10 + $0x528] sm:$0xff] }
 0x76e   : > { %v6111_v59 = vld [vmem:[#allocation10 + $0x568] sm:$0xff] }
 0x802   : > { %v5789_v38 = vpop.f32.mrb[38].mxu0  ;;  %v5931_v45 = vpop.f32.mrb[44].mxu1 }
 0x803   : > { %v12480_v47 = vmax.f32 %v5789_v38, %v5931_v45  ;;  %v5791_v21 = vpop.f32.mrb[39].mxu0  ;;  %v5933_v7 = vpop.f32.mrb[45].mxu1  ;;  %v9105_v38 = vpack.c.bf16 %v6133_v46, %v6126_v57  ;;  %v6014_v45 = vld [vmem:[#allocation10 + $0x260] sm:$0xff]  ;;  %v9069_v57 = vpack.c.bf16 %v6118_v60, %v6111_v59 }
 0x804   : > { %v5937_v25 = vmax.f32 %v5791_v21, %v5933_v7  ;;  %v6027_v21 = vld [vmem:[#allocation10 + $0x2c8] sm:$0xff]  ;;  %v6034_v7 = vld [vmem:[#allocation10 + $0x300] sm:$0xff] }
 0x805   : > { %v9045_v3 = vpack.c.bf16 %v6034_v7, %v6027_v21  ;;  %v6110_v46 = vld [vmem:[#allocation10 + $0x560] sm:$0xff] }
 0x806   : > { %6226 = vmatprep.mubr.f32.mxu0 %v5937_v25  ;;  %6297 = vmatprep.mubr.f32.mxu1 %v5937_v25  ;;  %v6146_v21 = vld [vmem:[#allocation10 + $0x680] sm:$0xff] }
 0x807   : > { %6227 = vmatmul.mubr.f32.vlgmr.msra.gmra.mrb[40].mxu0 %v12480_v47  ;;  %6298 = vmatmul.mubr.f32.vlgmr.msra.gmra.mrb[46].mxu1 %v12480_v47 }
 0x808   : > { %9024 = vmatpush1.bf16.msra.mxu0 %v9023_v1  ;;  %9088 = vmatpush3.bf16.msra.mxu1 %v9087_v30  ;;  %v6026_v1 = vld [vmem:[#allocation10 + $0x2c0] sm:$0xff]  ;;  %v6033_v30 = vld [vmem:[#allocation10 + $0x2f8] sm:$0xff] }
 0x809   : > { %6368 = vmatprep.mubr.f32.mxu0 %v5937_v25  ;;  %6439 = vmatprep.mubr.f32.mxu1 %v5937_v25  ;;  %v9107_v25 = vpack.c.bf16 %v6021_v51, %v6014_v45  ;;  %v9047_v11 = vpack.c.bf16 %v6033_v30, %v6026_v1  ;;  %v6131_v45 = vld [vmem:[#allocation10 + $0x608] sm:$0xff]  ;;  %v6160_v1 = vld [vmem:[#allocation10 + $0x6f0] sm:$0xff] }
 0x80a   : > { %9026 = vmatprep.subr.bf16.mxu0 %v9025_v27  ;;  %9090 = vmatprep.subr.bf16.mxu1 %v9089_v35  ;;  %v6048_v27 = vld [vmem:[#allocation10 + $0x370] sm:$0xff]  ;;  %v6154_v35 = vld [vmem:[#allocation10 + $0x6c0] sm:$0xff]  ;;  %v6139_v51 = vld [vmem:[#allocation10 + $0x648] sm:$0xff] }
 0x80b   : > { %v9113_v37 = vpack.c.bf16 %v6161_v62, %v6154_v35  ;;  %v9077_v8 = vpack.c.bf16 %v6146_v21, %v6139_v51 }
 0x80c   : > { %9028 = vmatpush1.bf16.msra.mxu0 %v9027_v63  ;;  %9092 = vmatpush3.bf16.msra.mxu1 %v9091_v17  ;;  %v6040_v63 = vld [vmem:[#allocation10 + $0x330] sm:$0xff]  ;;  %v9049_v17 = vpack.c.bf16 %v6048_v27, %v6041_v61  ;;  %v9645_v61 = vmov 1966171168  }
 0x80d   : > { %9030 = vmatprep.subr.bf16.mxu0 %v9029_v14  ;;  %9094 = vmatprep.subr.bf16.mxu1 %v9093_v41  ;;  %v6042_v14 = vld [vmem:[#allocation10 + $0x340] sm:$0xff]  ;;  %v6049_v41 = vld [vmem:[#allocation10 + $0x378] sm:$0xff]  ;;  %v9051_v13 = vpack.c.bf16 %v6047_v15, %v6040_v63  ;;  %v6449_v27 = vunpack.c.l.s4 %v9645_v61 }
 0x80e   : > { %v9115_v18 = vpack.c.bf16 %v6049_v41, %v6042_v14  ;;  %v6445_v41 = vld [vmem:[#allocation11] sm:$0x1] }
 0x80f   : > { %v6450_v35 = vunpack.c.0.s8 %v6449_v27 }
 0x810   : > { %9032 = vmatpush1.bf16.msra.mxu0 %v9031_v56  ;;  %9096 = vmatpush3.bf16.msra.mxu1 %v9095_v6  ;;  %v6061_v56 = vld [vmem:[#allocation10 + $0x3d8] sm:$0xff] }
 0x811   : > { %9034 = vmatprep.subr.bf16.mxu0 %v9033_v12  ;;  %9098 = vmatprep.subr.bf16.mxu1 %v9097_v33  ;;  %v6069_v6 = vld [vmem:[#allocation10 + $0x418] sm:$0xff]  ;;  %v9055_v55 = vpack.c.bf16 %v6061_v56, %v6054_v32  ;;  %v6068_v33 = vld [vmem:[#allocation10 + $0x410] sm:$0xff]  ;;  %v6453_v62 = vsub.s32 %v6450_v35, %v10265_v5 }
 0x812   : > { %v9057_v12 = vpack.c.bf16 %v6076_v53, %v6069_v6  ;;  %v9059_v58 = vpack.c.bf16 %v6075_v39, %v6068_v33 }
 0x814   : > { %9036 = vmatpush1.bf16.msra.mxu0 %v9035_v42  ;;  %9100 = vmatpush3.bf16.msra.mxu1 %v9099_v43  ;;  %v6089_v42 = vld [vmem:[#allocation10 + $0x4b8] sm:$0xff] }
 0x815   : > { %9038 = vmatprep.subr.bf16.mxu0 %v9037_v2  ;;  %9102 = vmatprep.subr.bf16.mxu1 %v9101_v52  ;;  %v6097_v43 = vld [vmem:[#allocation10 + $0x4f8] sm:$0xff]  ;;  %v9063_v0 = vpack.c.bf16 %v6089_v42, %v6082_v40  ;;  %v6096_v52 = vld [vmem:[#allocation10 + $0x4f0] sm:$0xff] }
 0x816   : > { %v9065_v2 = vpack.c.bf16 %v6104_v28, %v6097_v43  ;;  %v9067_v48 = vpack.c.bf16 %v6103_v16, %v6096_v52 }
 0x818   : > { %9040 = vmatpush1.bf16.msra.mxu0 %v9039_v49  ;;  %9104 = vmatpush3.bf16.msra.mxu1 %v9103_v19  ;;  %v6117_v49 = vld [vmem:[#allocation10 + $0x598] sm:$0xff] }
 0x819   : > { %9042 = vmatprep.subr.bf16.mxu0 %v9041_v26  ;;  %9106 = vmatprep.subr.bf16.mxu1 %v9105_v38  ;;  %v6125_v19 = vld [vmem:[#allocation10 + $0x5d8] sm:$0xff]  ;;  %v9071_v31 = vpack.c.bf16 %v6117_v49, %v6110_v46  ;;  %v6124_v38 = vld [vmem:[#allocation10 + $0x5d0] sm:$0xff] }
 0x81a   : > { %v9073_v26 = vpack.c.bf16 %v6132_v50, %v6125_v19  ;;  %v9075_v7 = vpack.c.bf16 %v6131_v45, %v6124_v38 }
 0x81c   : > { %9044 = vmatpush1.bf16.msra.mxu0 %v9043_v4  ;;  %9108 = vmatpush3.bf16.msra.mxu1 %v9107_v25  ;;  %v6145_v4 = vld [vmem:[#allocation10 + $0x678] sm:$0xff] }
 0x81d   : > { %9046 = vmatprep.subr.bf16.mxu0 %v9045_v3  ;;  %9110 = vmatprep.subr.bf16.mxu1 %v9109_v20  ;;  %v6153_v25 = vld [vmem:[#allocation10 + $0x6b8] sm:$0xff]  ;;  %v9079_v30 = vpack.c.bf16 %v6145_v4, %v6138_v36  ;;  %v6152_v20 = vld [vmem:[#allocation10 + $0x6b0] sm:$0xff] }
 0x81e   : > { %v9081_v3 = vpack.c.bf16 %v6160_v1, %v6153_v25  ;;  %v9083_v22 = vpack.c.bf16 %v6159_v29, %v6152_v20 }
 0x820   : > { %9048 = vmatpush1.bf16.msra.mxu0 %v9047_v11  ;;  %9112 = vmatpush3.bf16.msra.mxu1 %v9111_v24 }
 0x821   : > { %9050 = vmatprep.subr.bf16.mxu0 %v9049_v17  ;;  %9114 = vmatprep.subr.bf16.mxu1 %v9113_v37 }
 0x824   : > { %9052 = vmatpush1.bf16.msra.mxu0 %v9051_v13  ;;  %9116 = vmatpush3.bf16.msra.mxu1 %v9115_v18 }
 0x825   : > { %9054 = vmatprep.subr.bf16.mxu0 %v9053_v23 }
 0x827   : > { %6440 = vmatmul.mubr.f32.vlgmr.msra.gmra.mrb[48].mxu1 %v12480_v47 }
 0x828   : > { %9056 = vmatpush1.bf16.msra.mxu0 %v9055_v55 }
 0x829   : > { %9058 = vmatprep.subr.bf16.mxu0 %v9057_v12 }
 0x82c   : > { %9060 = vmatpush1.bf16.msra.mxu0 %v9059_v58 }
 0x82d   : > { %9062 = vmatprep.subr.bf16.mxu0 %v9061_v44 }
 0x830   : > { %9064 = vmatpush1.bf16.msra.mxu0 %v9063_v0 }
 0x831   : > { %9066 = vmatprep.subr.bf16.mxu0 %v9065_v2 }
 0x834   : > { %9068 = vmatpush1.bf16.msra.mxu0 %v9067_v48 }
 0x835   : > { %9070 = vmatprep.subr.bf16.mxu0 %v9069_v57 }
 0x838   : > { %9072 = vmatpush1.bf16.msra.mxu0 %v9071_v31 }
 0x839   : > { %9074 = vmatprep.subr.bf16.mxu0 %v9073_v26 }
 0x83c   : > { %9076 = vmatpush1.bf16.msra.mxu0 %v9075_v7 }
 0x83d   : > { %9078 = vmatprep.subr.bf16.mxu0 %v9077_v8 }
 0x840   : > { %9080 = vmatpush1.bf16.msra.mxu0 %v9079_v30 }
 0x841   : > { %9082 = vmatprep.subr.bf16.mxu0 %v9081_v3 }
 0x844   : > { %9084 = vmatpush1.bf16.msra.mxu0 %v9083_v22 }
 0x847   : > { %6369 = vmatmul.mubr.f32.vlgmr.msra.gmra.mrb[42].mxu0 %v12480_v47 }
 0x8da   : > { %v6228_v11 = vpop.f32.mrb[40].mxu0  ;;  %v6299_v24 = vpop.f32.mrb[46].mxu1 }
 0x8db   : > { %v6472_v63 = vrot.slane %v6299_v24, %v6453_v62  ;;  %v6230_v17 = vpop.f32.mrb[41].mxu0  ;;  %v6301_v37 = vpop.f32.mrb[47].mxu1  ;;  %v6446_v18 = vadd.f32 %v6445_v41, %v6228_v11 }
 0x8dc   : > { %v6454_v15 = vrot.slane %v6230_v17, %v6453_v62  ;;  %v6490_v14 = vrot.slane %v6301_v37, %v6453_v62 }
 0x8dd   : > { %v6479_v54 = vrot.slane %v6472_v63, %v6453_v62 }
 0x8de   : > { %v6455_v10 = vcombine.high %v6454_v15, %v6454_v15  ;;  %v6491_v13 = vcombine.high %v6490_v14, %v6490_v14 }
 0x8df   : > { %v6480_v47 = vcombine.high %v6479_v54, %v6479_v54 }
 0x8e0   : > { %v6462_v23 = vrot.slane %v6455_v10, %v6453_v62  ;;  %v6498_v32 = vrot.slane %v6491_v13, %v6453_v62 }
 0x8e2   : > { %v6464_v56 = vadd.f32 %v6462_v23, %v6446_v18  ;;  %v6499_v53 = vcombine.high %v6498_v32, %v6498_v32 }
 0x8e4   : > { %v6482_v6 = vadd.f32 %v6480_v47, %v6464_v56 }
 0x8e6   : > { %v6501_v5 = vadd.f32 %v6499_v53, %v6482_v6 }
 0x8fa   : > { %v7390_v55 = vpop.f32.mrb[48].mxu1 }
 0x8fb   : > { %v7391_v12 = vpop.f32.mrb[49].mxu1 }
 0x8fc   : > { %v7392_v33 = vadd.f32 %v7391_v12, %v7390_v55 }
 0x8fe   : > { %v6540_v39 = vcombine.high %v7392_v33, %v7392_v33 }
 0x900   : > { %v6547_v44 = vrot.slane %v6540_v39, %v6453_v62 }
 0x902   : > { %v6554_v0 = vrot.slane %v6547_v44, %v6453_v62 }
 0x904   : > { %v6555_v59 = vcombine.high %v6554_v0, %v6554_v0 }
 0x91a   : > { %v6370_v9 = vpop.f32.mrb[42].mxu0 }
 0x91b   : > { %v6503_v34 = vcombine.high %v6370_v9, %v6370_v9  ;;  %v6372_v58 = vpop.f32.mrb[43].mxu0 }
 0x91c   : > { %v6521_v40 = vcombine.high %v6372_v58, %v6372_v58 }
 0x91d   : > { %v6510_v42 = vrot.slane %v6503_v34, %v6453_v62 }
 0x91e   : > { %v6528_v43 = vrot.slane %v6521_v40, %v6453_v62 }
 0x91f   : > { %v6517_v28 = vrot.slane %v6510_v42, %v6453_v62 }
 0x920   : > { %v6529_v2 = vcombine.high %v6528_v43, %v6528_v43 }
 0x921   : > { %v6519_v52 = vadd.f32 %v6517_v28, %v6501_v5 }
 0x922   : > { %v6536_v16 = vrot.slane %v6529_v2, %v6453_v62 }
 0x924   : > { %v6538_v60 = vadd.f32 %v6536_v16, %v6519_v52 }
 0x926   : > { %v6557_v48 = vadd.f32 %v6555_v59, %v6538_v60 }
 0x928   : > { %v6558_v57 = vmax.f32 %v6557_v48, 0.0 }
 0x92a   : > { %6559 = vst [vmem:[%s352_s2] sm:$0x1] %v6558_v57 }
 0x92b   : > { %9564 = shalt.err (!%p9561_p6)
}
 0x92c   : > { %s9565_s16 = scalar_lea.hbm %s12492_s21, 16  ;;  %s9569_s13 = scalar_lea.hbm %s12541_s7, 32 }
 0x92d   : > { %p9566_p5 = scmp.ne.s32.totalorder %s12492_s21, %s9565_s16  ;;  %p9570_p10 = scmp.lt.u32.totalorder %s12492_s21, %s12541_s7 }
 0x92e   : > { %p9571_p2 = scmp.lt.u32.totalorder %s9569_s13, %s9565_s16  ;;  %p9573_p4 = scmp.lt.u32.totalorder %s9565_s16, %s12492_s21 }
 0x92f   : > { %p9567_p9 = pnand %p9566_p5, %p13444_p7 }
 0x930   : > { %p9572_p3 = por %p9571_p2, %p9570_p10 }
 0x931   : > { %p9568_p12 = pneg %p9567_p9 }
 0x932   : > { %p9574_p8 = por %p9573_p4, %p9572_p3 }
 0x934   : > { %p9575_p11 = pnand %p9574_p8, %p9568_p12 }
 0x936   : > { %9578 = shalt.err (!%p9575_p11)
}
 0x937   : > { %9298 = dma.vmem_to_hbm [thread:$0]  (%p13444_p7), %s12494_s4, 16, %s12492_s21, %s6561_s22  }
 0x938 PF: > { %p9335_p13 = scmp.ge.s32.totalorder %s9629_s27, 2  ;;  %s6585_s10 = sand.u32 1, %s9617_s24  }
 0x939   : > { %p13445_p1 = scmp.ne.s32.totalorder %s12773_s12, 0  ;;  %s6586_s29 = scalar_lea.sflag [#allocation4], %s6585_s10 }
 0x93b   : > { %p9320_p0 = pnand %p9335_p13, %p13445_p1 }
 0x93d   : > { %9612 = dma.done.wait (!%p9320_p0), %s6586_s29, 16  }
 0x93e   : > { %9614 = vsyncadd (!%p9320_p0), %s6586_s29, 4294967280  ;;  %s13446_s27 = sld [smem:[#allocation20_spill]]  ;;  %s13447_s17 = sld [smem:[#allocation19_spill]] }
 0x93f   : > { %s13448_s26 = sld [smem:[#allocation21_spill]]  ;;  %s13449_s24 = smov %s9621_s25 }
 0x944   : > { %p21_p6 = scmp.ge.s32.totalorder %s13446_s27, 4   ;;  %s13450_s25 = smov %s13447_s17 }
 0x946   :  { %23 = sbr.rel (!%p21_p6) target bundleno = 10 (0xa), region = 118 }
 0x94d   :  { %6590 = vsyncpa [#allocation3], 1 }
 0x94e   :  { %6592 = vsyncpa [#allocation3 + $0x1], 1 }
 0x94f   :  { %6593 = vsyncpa [#allocation6], 1 }
 0x950   :  { %6594 = vsyncpa [#allocation9], 1 }
 0x951   :  { %6595 = vsyncpa [#allocation12], 1 }
 0x952   :  { %6596 = vsyncpa [#allocation4], 1 }
 0x953   :  { %6598 = vsyncpa [#allocation4 + $0x1], 1 }

</bundles_post_ra>
